<compile_context>
chip_gen: v6e
topology: v6e:2x2x1
jax: 0.10.0
libtpu: 0.0.40
codegen_flags: <defaults>
</compile_context>

<pallas_src>
import functools

import jax
import jax.numpy as jnp
from jax import lax
from jax.experimental import pallas as pl
from jax.experimental.pallas import tpu as pltpu

EPS = 1e-5  # PyTorch GroupNorm default eps


def _resnet_block_kernel(
    xp_ref, temb_ref,
    w1_ref, b1_ref, g1_ref, be1_ref,
    wt_ref, bt_ref,
    w2_ref, b2_ref, g2_ref, be2_ref,
    wr_ref, br_ref, gmap_ref,
    out_ref,
    p1_ref, hpad_ref, p2_ref,
    *, inv_n,
):
    f32, bf16 = jnp.float32, jnp.bfloat16
    H = xp_ref.shape[1] - 2
    W = xp_ref.shape[2] - 2
    Cin = xp_ref.shape[3]
    Cp = out_ref.shape[2]          # channel dim padded to a multiple of 128
    HW = H * W

    def silu(v):
        return v * jax.nn.sigmoid(v)

    def group_norm(h, gamma, beta):
        # Column sums over H*W rows, then one (1,Cp)x(Cp,Cp) matmul with the
        # 0/1 group-membership matrix broadcasts the group mean to channels.
        # Second moment is centered (no E[x^2]-mean^2 cancellation).
        s_c = jnp.sum(h, axis=0, keepdims=True)                          # (1, Cp)
        mean_c = jnp.dot(s_c, gmap_ref[...], preferred_element_type=f32) * inv_n
        d = h - mean_c
        q_c = jnp.sum(d * d, axis=0, keepdims=True)                      # (1, Cp)
        var_c = jnp.dot(q_c, gmap_ref[...], preferred_element_type=f32) * inv_n
        return d * lax.rsqrt(var_c + EPS) * gamma + beta

    # ---- block1: im2col conv3x3 (single MXU matmul, bf16 operands) ----------
    xp = xp_ref[0]                                                       # (H+2, W+2, Cin) f32
    for t in range(9):
        dy, dx = t // 3, t % 3
        p1_ref[:, t * Cin:(t + 1) * Cin] = (
            xp[dy:dy + H, dx:dx + W, :].reshape(HW, Cin).astype(bf16))
    h = jnp.dot(p1_ref[...], w1_ref[...],
                preferred_element_type=f32) + b1_ref[...]                # (HW, Cp)
    h = silu(group_norm(h, g1_ref[...], be1_ref[...]))

    # ---- time embedding MLP: SiLU -> Linear, broadcast add over pixels ------
    te = temb_ref[0]                                                     # (1, T) f32
    t_emb = jnp.dot(silu(te).astype(bf16), wt_ref[...],
                    preferred_element_type=f32) + bt_ref[...]            # (1, Cp)
    h = h + t_emb

    # ---- block2: bf16 halo scratch, dy-banded im2col (3 x K=3*Cp matmuls) ---
    # Zero only the 1-pixel halo; the interior is fully overwritten each step
    # (re-zeroed each step: with a "parallel" batch axis each TensorCore owns
    # its own scratch instance, so program_id()==0-only init would be unsafe).
    zrow = jnp.zeros((1, W + 2, Cp), bf16)
    zcol = jnp.zeros((H + 2, 1, Cp), bf16)
    hpad_ref[0:1, :, :] = zrow
    hpad_ref[H + 1:H + 2, :, :] = zrow
    hpad_ref[:, 0:1, :] = zcol
    hpad_ref[:, W + 1:W + 2, :] = zcol
    hpad_ref[1:H + 1, 1:W + 1, :] = h.reshape(H, W, Cp).astype(bf16)

    h2 = jnp.zeros((HW, Cp), f32)
    for dy in range(3):
        for dx in range(3):
            p2_ref[:, dx * Cp:(dx + 1) * Cp] = (
                hpad_ref[dy:dy + H, dx:dx + W, :].reshape(HW, Cp))
        h2 = h2 + jnp.dot(p2_ref[...], w2_ref[dy], preferred_element_type=f32)
    h2 = silu(group_norm(h2 + b2_ref[...], g2_ref[...], be2_ref[...]))

    # ---- residual 1x1 conv: reuse centre-tap columns of p1 (already bf16) ---
    res = jnp.dot(p1_ref[:, 4 * Cin:5 * Cin], wr_ref[...],
                  preferred_element_type=f32) + br_ref[...]

    out_ref[0] = (h2 + res).astype(out_ref.dtype)                        # (HW, Cp) lane-dense


def prepare_resnet_block_params(params, groups=8):
    """One-time parameter prep: channel padding to a 128 multiple, im2col weight
    reshapes, bf16 weight casts, group-membership matrix.  Call once, reuse."""
    f32, bf16 = jnp.float32, jnp.bfloat16
    w1 = jnp.asarray(params["w1"], f32)                  # (3, 3, Cin, Cout) HWIO
    _, _, Cin, Cout = w1.shape
    G = groups
    assert Cout % G == 0
    cpg = Cout // G
    Cp = ((Cout + 127) // 128) * 128                     # lane-dense channel pad

    def padc(a, axis):
        a = jnp.asarray(a, f32)
        widths = [(0, 0)] * a.ndim
        widths[axis] = (0, Cp - Cout)
        return jnp.pad(a, widths)

    # nn.Identity residual case <-> wr = eye(Cin), br = 0.
    wr = jnp.asarray(params.get("wr", jnp.eye(Cin, dtype=f32)), f32)
    br = jnp.asarray(params.get("br", jnp.zeros((1, Cout), f32)), f32)

    w2 = padc(padc(params["w2"], 3), 2)                  # (3, 3, Cp, Cp)

    ch = jnp.arange(Cp)
    gmask = ((ch[:, None] // cpg == ch[None, :] // cpg)
             & (ch[:, None] < Cout) & (ch[None, :] < Cout)).astype(f32)  # (Cp, Cp)

    return {
        "w1m": padc(w1, 3).reshape(9 * Cin, Cp).astype(bf16),
        "b1": padc(params["b1"], 1),
        "g1": padc(params["g1"], 1),
        "be1": padc(params["be1"], 1),
        "wtm": padc(params["wt"], 1).astype(bf16),       # (T, Cp)
        "bt": padc(params["bt"], 1),
        "w2m": w2.reshape(3, 3 * Cp, Cp).astype(bf16),   # dy-banded layout
        "b2": padc(params["b2"], 1),
        "g2": padc(params["g2"], 1),
        "be2": padc(params["be2"], 1),
        "wrm": padc(wr, 1).astype(bf16),                 # (Cin, Cp)
        "br": padc(br, 1),
        "gmask": gmask,
        "meta": {"Cin": int(Cin), "Cout": int(Cout), "Cp": int(Cp),
                 "cpg": int(cpg), "G": int(G)},
    }


def _vmem_limit_bytes(scratch_bytes, io_block_bytes):
    try:
        cap = int(pltpu.get_tpu_info().vmem_capacity_bytes)
    except Exception:
        cap = 128 * 1024 * 1024
    # persistent scratch + double-buffered I/O blocks + headroom for the
    # compiler's own temporaries (f32 activation values, relayouts).
    need = 2 * (scratch_bytes + 2 * io_block_bytes) + (8 << 20)
    return int(max(32 << 20, min(need, (cap * 4) // 5)))


def resnet_block_forward_nhwc(x_nhwc, time_emb, prep, *, out_dtype=jnp.float32):
    """x_nhwc: (B, H, W, Cin) f32, time_emb: (B, T) f32 -> (B, H, W, Cout)."""
    f32, bf16 = jnp.float32, jnp.bfloat16
    B, H, W, Cin = x_nhwc.shape
    T = time_emb.shape[1]
    meta = prep["meta"]
    assert Cin == meta["Cin"]
    assert T == prep["wtm"].shape[0]
    Cout, Cp, cpg = meta["Cout"], meta["Cp"], meta["cpg"]

    xp = jnp.pad(x_nhwc.astype(f32), ((0, 0), (1, 1), (1, 1), (0, 0)))  # halo prepad
    te = time_emb.astype(f32).reshape(B, 1, T)

    weights = (prep["w1m"], prep["b1"], prep["g1"], prep["be1"],
               prep["wtm"], prep["bt"],
               prep["w2m"], prep["b2"], prep["g2"], prep["be2"],
               prep["wrm"], prep["br"], prep["gmask"])

    def bcast(shape):
        nd = len(shape)
        return pl.BlockSpec(shape, lambda b, _nd=nd: (0,) * _nd)

    in_specs = [
        pl.BlockSpec((1, H + 2, W + 2, Cin), lambda b: (b, 0, 0, 0)),   # x (prepadded)
        pl.BlockSpec((1, 1, T), lambda b: (b, 0, 0)),                   # time emb
    ] + [bcast(w.shape) for w in weights]

    scratch_shapes = [
        pltpu.VMEM((H * W, 9 * Cin), bf16),          # im2col patches, conv1
        pltpu.VMEM((H + 2, W + 2, Cp), bf16),        # halo-padded h
        pltpu.VMEM((H * W, 3 * Cp), bf16),           # dy-banded im2col patches, conv2
    ]

    out_itemsize = jnp.dtype(out_dtype).itemsize
    scratch_bytes = 2 * (H * W * 9 * Cin + (H + 2) * (W + 2) * Cp + H * W * 3 * Cp)
    io_block_bytes = (4 * ((H + 2) * (W + 2) * Cin + T)
                      + sum(int(w.size) * w.dtype.itemsize for w in weights)
                      + H * W * Cp * out_itemsize)
    vmem_limit = _vmem_limit_bytes(scratch_bytes, io_block_bytes)

    cost = pl.CostEstimate(
        flops=int(B * (2 * H * W * (9 * Cin * Cp + 9 * Cp * Cp + Cin * Cp)
                       + 2 * T * Cp + 8 * Cp * Cp)),
        transcendentals=int(B * (2 * H * W * Cp + T + 2 * Cp)),
        bytes_accessed=int(xp.size * 4 + te.size * 4
                           + sum(int(w.size) * w.dtype.itemsize for w in weights)
                           + B * H * W * Cp * out_itemsize),
    )

    kernel = functools.partial(_resnet_block_kernel,
                               inv_n=1.0 / float(H * W * cpg))

    out = pl.pallas_call(
        kernel,
        out_shape=jax.ShapeDtypeStruct((B, H * W, Cp), out_dtype),
        grid_spec=pltpu.PrefetchScalarGridSpec(
            num_scalar_prefetch=0,
            grid=(B,),
            in_specs=in_specs,
            out_specs=pl.BlockSpec((1, H * W, Cp), lambda b: (b, 0, 0)),
            scratch_shapes=scratch_shapes),
        compiler_params=pltpu.CompilerParams(
            dimension_semantics=("parallel",),       # B>=2 feeds both v7x cores
            vmem_limit_bytes=vmem_limit),
        cost_estimate=cost,
    )(xp, te, *weights)

    return out[:, :, :Cout].reshape(B, H, W, Cout)


def resnet_block_forward(x_nchw, time_emb, prep, *, out_dtype=jnp.float32):
    """NCHW convenience wrapper (adds two full-activation transposes per call;
    prefer the NHWC entry point in a real pipeline)."""
    x_nhwc = jnp.transpose(x_nchw, (0, 2, 3, 1))
    y = resnet_block_forward_nhwc(x_nhwc, time_emb, prep, out_dtype=out_dtype)
    return jnp.transpose(y, (0, 3, 1, 2))


def ref_forward(x, time_emb, p, groups, *, quantize_to_bf16=False):
    """Pure-JAX NCHW reference mirroring the PyTorch module.  With
    quantize_to_bf16=True, matmul/conv *operands* are rounded through bf16 but
    every dot/conv stays f32 x f32 (avoids BF16xBF16=F32 dot thunks) -- this
    mirrors the kernel's bf16-operand, f32-accumulate MXU dots."""
    f32 = jnp.float32
    q = ((lambda a: a.astype(jnp.bfloat16).astype(f32)) if quantize_to_bf16
         else (lambda a: a.astype(f32)))

    def conv3x3(v, w, b):
        y = lax.conv_general_dilated(
            q(v), q(w), (1, 1), "SAME",
            dimension_numbers=("NCHW", "HWIO", "NCHW"),
            preferred_element_type=f32)
        return y + b.reshape(1, -1, 1, 1)

    def gn(v, gamma, beta):
        B, C, H, W = v.shape
        vr = v.reshape(B, groups, C // groups, H, W)
        mean = vr.mean(axis=(2, 3, 4), keepdims=True)
        var = ((vr - mean) ** 2).mean(axis=(2, 3, 4), keepdims=True)
        vn = ((vr - mean) / jnp.sqrt(var + EPS)).reshape(B, C, H, W)
        return vn * gamma.reshape(1, -1, 1, 1) + beta.reshape(1, -1, 1, 1)

    silu = jax.nn.silu
    h = silu(gn(conv3x3(x, p["w1"], p["b1"][0]), p["g1"][0], p["be1"][0]))
    t = jnp.dot(q(silu(time_emb)), q(p["wt"]),
                preferred_element_type=f32) + p["bt"][0]
    h = h + t[:, :, None, None]
    h = silu(gn(conv3x3(h, p["w2"], p["b2"][0]), p["g2"][0], p["be2"][0]))
    res = jnp.einsum("bchw,cd->bdhw", q(x), q(p["wr"]),
                     preferred_element_type=f32) + p["br"].reshape(1, -1, 1, 1)
    return h + res


if __name__ == "__main__":
    key = jax.random.PRNGKey(0)
    B, dim, dim_out, H, W = 2, 4, 16, 16, 16
    groups = 8
    time_emb_dim = 32

    ks = jax.random.split(key, 14)
    nrm = lambda k, s, sc: sc * jax.random.normal(k, s, jnp.float32)

    # dim != dim_out here, so res_conv is a real 1x1 conv (the nn.Identity case
    # corresponds to wr = eye(dim), br = 0 and is handled in prep).
    params = {
        "w1": nrm(ks[0], (3, 3, dim, dim_out), 0.2),
        "b1": nrm(ks[1], (1, dim_out), 0.1),
        "g1": 1.0 + nrm(ks[2], (1, dim_out), 0.1),
        "be1": nrm(ks[3], (1, dim_out), 0.1),
        "wt": nrm(ks[4], (time_emb_dim, dim_out), 0.2),
        "bt": nrm(ks[5], (1, dim_out), 0.1),
        "w2": nrm(ks[6], (3, 3, dim_out, dim_out), 0.2),
        "b2": nrm(ks[7], (1, dim_out), 0.1),
        "g2": 1.0 + nrm(ks[8], (1, dim_out), 0.1),
        "be2": nrm(ks[9], (1, dim_out), 0.1),
        "wr": nrm(ks[10], (dim, dim_out), 0.2),
        "br": nrm(ks[11], (1, dim_out), 0.1),
    }

    x = jax.random.normal(ks[12], (B, dim, H, W), jnp.float32)
    time_emb = jax.random.normal(ks[13], (B, time_emb_dim), jnp.float32)

    prep = prepare_resnet_block_params(params, groups=groups)   # one-time prep

    out = resnet_block_forward(x, time_emb, prep)
    out = jax.block_until_ready(out)
    assert out.shape == (B, dim_out, H, W), out.shape

    # Check against a reference with bf16-rounded operands (mirrors the kernel's
    # bf16 MXU operands; computation stays f32 so no BF16 dot thunks).
    ref_q = ref_forward(x, time_emb, params, groups, quantize_to_bf16=True)
    err_q = float(jnp.max(jnp.abs(out - ref_q)))
    # Loose check against the pure-f32 reference (bounds bf16 quantization).
    ref_f = ref_forward(x, time_emb, params, groups, quantize_to_bf16=False)
    err_f = float(jnp.max(jnp.abs(out - ref_f)))

    assert err_q < 2e-2, f"bf16-matched reference max abs error {err_q}"
    assert err_f < 1.5e-1, f"f32 reference max abs error {err_f}"
    print("KERNEL_OK")
</pallas_src>

<mosaic_0001>
module attributes {stable_mosaic.version = 11 : i64} {
  func.func @_resnet_block_kernel(%arg0: i32, %arg1: memref<1x18x18x4xf32, #tpu.memory_space<vmem>>, %arg2: memref<1x1x32xf32, #tpu.memory_space<vmem>>, %arg3: memref<36x128xbf16, #tpu.memory_space<vmem>>, %arg4: memref<1x128xf32, #tpu.memory_space<vmem>>, %arg5: memref<1x128xf32, #tpu.memory_space<vmem>>, %arg6: memref<1x128xf32, #tpu.memory_space<vmem>>, %arg7: memref<32x128xbf16, #tpu.memory_space<vmem>>, %arg8: memref<1x128xf32, #tpu.memory_space<vmem>>, %arg9: memref<3x384x128xbf16, #tpu.memory_space<vmem>>, %arg10: memref<1x128xf32, #tpu.memory_space<vmem>>, %arg11: memref<1x128xf32, #tpu.memory_space<vmem>>, %arg12: memref<1x128xf32, #tpu.memory_space<vmem>>, %arg13: memref<4x128xbf16, #tpu.memory_space<vmem>>, %arg14: memref<1x128xf32, #tpu.memory_space<vmem>>, %arg15: memref<128x128xf32, #tpu.memory_space<vmem>>, %arg16: memref<1x256x128xf32, #tpu.memory_space<vmem>>, %arg17: memref<256x36xbf16, #tpu.memory_space<vmem>>, %arg18: memref<18x18x128xbf16, #tpu.memory_space<vmem>>, %arg19: memref<256x384xbf16, #tpu.memory_space<vmem>>) attributes {dimension_semantics = [#tpu.dimension_semantics<parallel>], iteration_bounds = array<i64: 2>, scalar_prefetch = 0 : i64, scratch_operands = 3 : i64, tpu.core_type = #tpu.core_type<tc>, window_params = [{transform_indices = @transform_0, window_bounds = array<i64: 1, 18, 18, 4>}, {transform_indices = @transform_1, window_bounds = array<i64: 1, 1, 32>}, {pipeline_mode = #tpu.pipeline_mode<synchronous>, transform_indices = @transform_2, window_bounds = array<i64: 36, 128>}, {pipeline_mode = #tpu.pipeline_mode<synchronous>, transform_indices = @transform_3, window_bounds = array<i64: 1, 128>}, {pipeline_mode = #tpu.pipeline_mode<synchronous>, transform_indices = @transform_4, window_bounds = array<i64: 1, 128>}, {pipeline_mode = #tpu.pipeline_mode<synchronous>, transform_indices = @transform_5, window_bounds = array<i64: 1, 128>}, {pipeline_mode = #tpu.pipeline_mode<synchronous>, transform_indices = @transform_6, window_bounds = array<i64: 32, 128>}, {pipeline_mode = #tpu.pipeline_mode<synchronous>, transform_indices = @transform_7, window_bounds = array<i64: 1, 128>}, {pipeline_mode = #tpu.pipeline_mode<synchronous>, transform_indices = @transform_8, window_bounds = array<i64: 3, 384, 128>}, {pipeline_mode = #tpu.pipeline_mode<synchronous>, transform_indices = @transform_9, window_bounds = array<i64: 1, 128>}, {pipeline_mode = #tpu.pipeline_mode<synchronous>, transform_indices = @transform_10, window_bounds = array<i64: 1, 128>}, {pipeline_mode = #tpu.pipeline_mode<synchronous>, transform_indices = @transform_11, window_bounds = array<i64: 1, 128>}, {pipeline_mode = #tpu.pipeline_mode<synchronous>, transform_indices = @transform_12, window_bounds = array<i64: 4, 128>}, {pipeline_mode = #tpu.pipeline_mode<synchronous>, transform_indices = @transform_13, window_bounds = array<i64: 1, 128>}, {pipeline_mode = #tpu.pipeline_mode<synchronous>, transform_indices = @transform_14, window_bounds = array<i64: 128, 128>}, {transform_indices = @transform_15, window_bounds = array<i64: 1, 256, 128>}]} {
    %c0 = arith.constant 0 : index
    %c0_0 = arith.constant 0 : index
    %c0_1 = arith.constant 0 : index
    %c0_2 = arith.constant 0 : index
    %0 = vector.load %arg1[%c0, %c0_0, %c0_1, %c0_2] : memref<1x18x18x4xf32, #tpu.memory_space<vmem>>, vector<1x18x18x4xf32>
    %1 = vector.shape_cast %0 : vector<1x18x18x4xf32> to vector<18x18x4xf32>
    %2 = vector.extract_strided_slice %1 {offsets = [0, 0, 0], sizes = [16, 16, 4], strides = [1, 1, 1]} : vector<18x18x4xf32> to vector<16x16x4xf32>
    %3 = vector.shape_cast %2 : vector<16x16x4xf32> to vector<256x4xf32>
    %4 = arith.truncf %3 : vector<256x4xf32> to vector<256x4xbf16>
    %c0_3 = arith.constant 0 : index
    %c0_4 = arith.constant 0 : index
    %5 = vector.load %arg17[%c0_3, %c0_4] : memref<256x36xbf16, #tpu.memory_space<vmem>>, vector<256x4xbf16>
    tpu.vector_store %arg17[%c0_3, %c0_4], %4 {strides = array<i32>} : memref<256x36xbf16, #tpu.memory_space<vmem>>, vector<256x4xbf16>,
    %6 = vector.extract_strided_slice %1 {offsets = [0, 1, 0], sizes = [16, 16, 4], strides = [1, 1, 1]} : vector<18x18x4xf32> to vector<16x16x4xf32>
    %7 = vector.shape_cast %6 : vector<16x16x4xf32> to vector<256x4xf32>
    %8 = arith.truncf %7 : vector<256x4xf32> to vector<256x4xbf16>
    %c0_5 = arith.constant 0 : index
    %c4 = arith.constant 4 : index
    %9 = vector.load %arg17[%c0_5, %c4] : memref<256x36xbf16, #tpu.memory_space<vmem>>, vector<256x4xbf16>
    tpu.vector_store %arg17[%c0_5, %c4], %8 {strides = array<i32>} : memref<256x36xbf16, #tpu.memory_space<vmem>>, vector<256x4xbf16>,
    %10 = vector.extract_strided_slice %1 {offsets = [0, 2, 0], sizes = [16, 16, 4], strides = [1, 1, 1]} : vector<18x18x4xf32> to vector<16x16x4xf32>
    %11 = vector.shape_cast %10 : vector<16x16x4xf32> to vector<256x4xf32>
    %12 = arith.truncf %11 : vector<256x4xf32> to vector<256x4xbf16>
    %c0_6 = arith.constant 0 : index
    %c8 = arith.constant 8 : index
    %13 = vector.load %arg17[%c0_6, %c8] : memref<256x36xbf16, #tpu.memory_space<vmem>>, vector<256x4xbf16>
    tpu.vector_store %arg17[%c0_6, %c8], %12 {strides = array<i32>} : memref<256x36xbf16, #tpu.memory_space<vmem>>, vector<256x4xbf16>,
    %14 = vector.extract_strided_slice %1 {offsets = [1, 0, 0], sizes = [16, 16, 4], strides = [1, 1, 1]} : vector<18x18x4xf32> to vector<16x16x4xf32>
    %15 = vector.shape_cast %14 : vector<16x16x4xf32> to vector<256x4xf32>
    %16 = arith.truncf %15 : vector<256x4xf32> to vector<256x4xbf16>
    %c0_7 = arith.constant 0 : index
    %c12 = arith.constant 12 : index
    %17 = vector.load %arg17[%c0_7, %c12] : memref<256x36xbf16, #tpu.memory_space<vmem>>, vector<256x4xbf16>
    tpu.vector_store %arg17[%c0_7, %c12], %16 {strides = array<i32>} : memref<256x36xbf16, #tpu.memory_space<vmem>>, vector<256x4xbf16>,
    %18 = vector.extract_strided_slice %1 {offsets = [1, 1, 0], sizes = [16, 16, 4], strides = [1, 1, 1]} : vector<18x18x4xf32> to vector<16x16x4xf32>
    %19 = vector.shape_cast %18 : vector<16x16x4xf32> to vector<256x4xf32>
    %20 = arith.truncf %19 : vector<256x4xf32> to vector<256x4xbf16>
    %c0_8 = arith.constant 0 : index
    %c16 = arith.constant 16 : index
    %21 = vector.load %arg17[%c0_8, %c16] : memref<256x36xbf16, #tpu.memory_space<vmem>>, vector<256x4xbf16>
    tpu.vector_store %arg17[%c0_8, %c16], %20 {strides = array<i32>} : memref<256x36xbf16, #tpu.memory_space<vmem>>, vector<256x4xbf16>,
    %22 = vector.extract_strided_slice %1 {offsets = [1, 2, 0], sizes = [16, 16, 4], strides = [1, 1, 1]} : vector<18x18x4xf32> to vector<16x16x4xf32>
    %23 = vector.shape_cast %22 : vector<16x16x4xf32> to vector<256x4xf32>
    %24 = arith.truncf %23 : vector<256x4xf32> to vector<256x4xbf16>
    %c0_9 = arith.constant 0 : index
    %c20 = arith.constant 20 : index
    %25 = vector.load %arg17[%c0_9, %c20] : memref<256x36xbf16, #tpu.memory_space<vmem>>, vector<256x4xbf16>
    tpu.vector_store %arg17[%c0_9, %c20], %24 {strides = array<i32>} : memref<256x36xbf16, #tpu.memory_space<vmem>>, vector<256x4xbf16>,
    %26 = vector.extract_strided_slice %1 {offsets = [2, 0, 0], sizes = [16, 16, 4], strides = [1, 1, 1]} : vector<18x18x4xf32> to vector<16x16x4xf32>
    %27 = vector.shape_cast %26 : vector<16x16x4xf32> to vector<256x4xf32>
    %28 = arith.truncf %27 : vector<256x4xf32> to vector<256x4xbf16>
    %c0_10 = arith.constant 0 : index
    %c24 = arith.constant 24 : index
    %29 = vector.load %arg17[%c0_10, %c24] : memref<256x36xbf16, #tpu.memory_space<vmem>>, vector<256x4xbf16>
    tpu.vector_store %arg17[%c0_10, %c24], %28 {strides = array<i32>} : memref<256x36xbf16, #tpu.memory_space<vmem>>, vector<256x4xbf16>,
    %30 = vector.extract_strided_slice %1 {offsets = [2, 1, 0], sizes = [16, 16, 4], strides = [1, 1, 1]} : vector<18x18x4xf32> to vector<16x16x4xf32>
    %31 = vector.shape_cast %30 : vector<16x16x4xf32> to vector<256x4xf32>
    %32 = arith.truncf %31 : vector<256x4xf32> to vector<256x4xbf16>
    %c0_11 = arith.constant 0 : index
    %c28 = arith.constant 28 : index
    %33 = vector.load %arg17[%c0_11, %c28] : memref<256x36xbf16, #tpu.memory_space<vmem>>, vector<256x4xbf16>
    tpu.vector_store %arg17[%c0_11, %c28], %32 {strides = array<i32>} : memref<256x36xbf16, #tpu.memory_space<vmem>>, vector<256x4xbf16>,
    %34 = vector.extract_strided_slice %1 {offsets = [2, 2, 0], sizes = [16, 16, 4], strides = [1, 1, 1]} : vector<18x18x4xf32> to vector<16x16x4xf32>
    %35 = vector.shape_cast %34 : vector<16x16x4xf32> to vector<256x4xf32>
    %36 = arith.truncf %35 : vector<256x4xf32> to vector<256x4xbf16>
    %c0_12 = arith.constant 0 : index
    %c32 = arith.constant 32 : index
    %37 = vector.load %arg17[%c0_12, %c32] : memref<256x36xbf16, #tpu.memory_space<vmem>>, vector<256x4xbf16>
    tpu.vector_store %arg17[%c0_12, %c32], %36 {strides = array<i32>} : memref<256x36xbf16, #tpu.memory_space<vmem>>, vector<256x4xbf16>,
    %c0_13 = arith.constant 0 : index
    %c0_14 = arith.constant 0 : index
    %38 = vector.load %arg17[%c0_13, %c0_14] : memref<256x36xbf16, #tpu.memory_space<vmem>>, vector<256x36xbf16>
    %c0_15 = arith.constant 0 : index
    %c0_16 = arith.constant 0 : index
    %39 = vector.load %arg3[%c0_15, %c0_16] : memref<36x128xbf16, #tpu.memory_space<vmem>>, vector<36x128xbf16>
    %cst = arith.constant dense<0.000000e+00> : vector<256x128xf32>
    %40 = tpu.matmul %38, %39, %cst {dimension_numbers = #tpu.dot_dimension_numbers<[1], [0], [0], [1], [0, 0, 1, 1], [], []>} : vector<256x36xbf16>, vector<36x128xbf16>, vector<256x128xf32> -> vector<256x128xf32>
    %c0_17 = arith.constant 0 : index
    %c0_18 = arith.constant 0 : index
    %41 = vector.load %arg4[%c0_17, %c0_18] : memref<1x128xf32, #tpu.memory_space<vmem>>, vector<1x128xf32>
    %42 = vector.broadcast %41 : vector<1x128xf32> to vector<256x128xf32>
    %43 = arith.addf %40, %42 : vector<256x128xf32>
    %c0_19 = arith.constant 0 : index
    %c0_20 = arith.constant 0 : index
    %44 = vector.load %arg5[%c0_19, %c0_20] : memref<1x128xf32, #tpu.memory_space<vmem>>, vector<1x128xf32>
    %c0_21 = arith.constant 0 : index
    %c0_22 = arith.constant 0 : index
    %45 = vector.load %arg6[%c0_21, %c0_22] : memref<1x128xf32, #tpu.memory_space<vmem>>, vector<1x128xf32>
    %cst_23 = arith.constant dense<0.000000e+00> : vector<128xf32>
    %46 = vector.multi_reduction <add>, %43, %cst_23 [0] : vector<256x128xf32> to vector<128xf32>
    %47 = vector.shape_cast %46 : vector<128xf32> to vector<1x128xf32>
    %c0_24 = arith.constant 0 : index
    %c0_25 = arith.constant 0 : index
    %48 = vector.load %arg15[%c0_24, %c0_25] : memref<128x128xf32, #tpu.memory_space<vmem>>, vector<128x128xf32>
    %cst_26 = arith.constant dense<0.000000e+00> : vector<1x128xf32>
    %49 = tpu.matmul %47, %48, %cst_26 {dimension_numbers = #tpu.dot_dimension_numbers<[1], [0], [0], [1], [0, 0, 1, 1], [], []>} : vector<1x128xf32>, vector<128x128xf32>, vector<1x128xf32> -> vector<1x128xf32>
    %cst_27 = arith.constant 0.001953125 : f32
    %50 = vector.broadcast %cst_27 : f32 to vector<1x128xf32>
    %51 = arith.mulf %49, %50 : vector<1x128xf32>
    %52 = vector.broadcast %51 : vector<1x128xf32> to vector<256x128xf32>
    %53 = arith.subf %43, %52 : vector<256x128xf32>
    %54 = arith.mulf %53, %53 : vector<256x128xf32>
    %cst_28 = arith.constant dense<0.000000e+00> : vector<128xf32>
    %55 = vector.multi_reduction <add>, %54, %cst_28 [0] : vector<256x128xf32> to vector<128xf32>
    %56 = vector.shape_cast %55 : vector<128xf32> to vector<1x128xf32>
    %c0_29 = arith.constant 0 : index
    %c0_30 = arith.constant 0 : index
    %57 = vector.load %arg15[%c0_29, %c0_30] : memref<128x128xf32, #tpu.memory_space<vmem>>, vector<128x128xf32>
    %cst_31 = arith.constant dense<0.000000e+00> : vector<1x128xf32>
    %58 = tpu.matmul %56, %57, %cst_31 {dimension_numbers = #tpu.dot_dimension_numbers<[1], [0], [0], [1], [0, 0, 1, 1], [], []>} : vector<1x128xf32>, vector<128x128xf32>, vector<1x128xf32> -> vector<1x128xf32>
    %cst_32 = arith.constant 0.001953125 : f32
    %59 = vector.broadcast %cst_32 : f32 to vector<1x128xf32>
    %60 = arith.mulf %58, %59 : vector<1x128xf32>
    %cst_33 = arith.constant 9.99999974E-6 : f32
    %61 = vector.broadcast %cst_33 : f32 to vector<1x128xf32>
    %62 = arith.addf %60, %61 : vector<1x128xf32>
    %63 = math.rsqrt %62 : vector<1x128xf32>
    %64 = vector.broadcast %63 : vector<1x128xf32> to vector<256x128xf32>
    %65 = arith.mulf %53, %64 : vector<256x128xf32>
    %66 = vector.broadcast %44 : vector<1x128xf32> to vector<256x128xf32>
    %67 = arith.mulf %65, %66 : vector<256x128xf32>
    %68 = vector.broadcast %45 : vector<1x128xf32> to vector<256x128xf32>
    %69 = arith.addf %67, %68 : vector<256x128xf32>
    %70 = arith.negf %69 : vector<256x128xf32>
    %71 = math.exp %70 : vector<256x128xf32>
    %cst_34 = arith.constant 1.000000e+00 : f32
    %72 = vector.broadcast %cst_34 : f32 to vector<256x128xf32>
    %73 = arith.addf %72, %71 : vector<256x128xf32>
    %74 = arith.divf %72, %73 : vector<256x128xf32>
    %75 = arith.mulf %69, %74 : vector<256x128xf32>
    %c0_35 = arith.constant 0 : index
    %c0_36 = arith.constant 0 : index
    %c0_37 = arith.constant 0 : index
    %76 = vector.load %arg2[%c0_35, %c0_36, %c0_37] : memref<1x1x32xf32, #tpu.memory_space<vmem>>, vector<1x1x32xf32>
    %77 = vector.shape_cast %76 : vector<1x1x32xf32> to vector<1x32xf32>
    %78 = arith.negf %77 : vector<1x32xf32>
    %79 = math.exp %78 : vector<1x32xf32>
    %cst_38 = arith.constant 1.000000e+00 : f32
    %80 = vector.broadcast %cst_38 : f32 to vector<1x32xf32>
    %81 = arith.addf %80, %79 : vector<1x32xf32>
    %82 = arith.divf %80, %81 : vector<1x32xf32>
    %83 = arith.mulf %77, %82 : vector<1x32xf32>
    %84 = arith.truncf %83 : vector<1x32xf32> to vector<1x32xbf16>
    %c0_39 = arith.constant 0 : index
    %c0_40 = arith.constant 0 : index
    %85 = vector.load %arg7[%c0_39, %c0_40] : memref<32x128xbf16, #tpu.memory_space<vmem>>, vector<32x128xbf16>
    %cst_41 = arith.constant dense<0.000000e+00> : vector<1x128xf32>
    %86 = tpu.matmul %84, %85, %cst_41 {dimension_numbers = #tpu.dot_dimension_numbers<[1], [0], [0], [1], [0, 0, 1, 1], [], []>} : vector<1x32xbf16>, vector<32x128xbf16>, vector<1x128xf32> -> vector<1x128xf32>
    %c0_42 = arith.constant 0 : index
    %c0_43 = arith.constant 0 : index
    %87 = vector.load %arg8[%c0_42, %c0_43] : memref<1x128xf32, #tpu.memory_space<vmem>>, vector<1x128xf32>
    %88 = arith.addf %86, %87 : vector<1x128xf32>
    %89 = vector.broadcast %88 : vector<1x128xf32> to vector<256x128xf32>
    %90 = arith.addf %75, %89 : vector<256x128xf32>
    %cst_44 = arith.constant 0.000000e+00 : bf16
    %91 = vector.broadcast %cst_44 : bf16 to vector<1x18x128xbf16>
    %cst_45 = arith.constant 0.000000e+00 : bf16
    %92 = vector.broadcast %cst_45 : bf16 to vector<18x1x128xbf16>
    %c0_46 = arith.constant 0 : index
    %c0_47 = arith.constant 0 : index
    %c0_48 = arith.constant 0 : index
    %93 = vector.load %arg18[%c0_46, %c0_47, %c0_48] : memref<18x18x128xbf16, #tpu.memory_space<vmem>>, vector<1x18x128xbf16>
    tpu.vector_store %arg18[%c0_46, %c0_47, %c0_48], %91 {strides = array<i32>} : memref<18x18x128xbf16, #tpu.memory_space<vmem>>, vector<1x18x128xbf16>,
    %c17 = arith.constant 17 : index
    %c0_49 = arith.constant 0 : index
    %c0_50 = arith.constant 0 : index
    %94 = vector.load %arg18[%c17, %c0_49, %c0_50] : memref<18x18x128xbf16, #tpu.memory_space<vmem>>, vector<1x18x128xbf16>
    tpu.vector_store %arg18[%c17, %c0_49, %c0_50], %91 {strides = array<i32>} : memref<18x18x128xbf16, #tpu.memory_space<vmem>>, vector<1x18x128xbf16>,
    %c0_51 = arith.constant 0 : index
    %c0_52 = arith.constant 0 : index
    %c0_53 = arith.constant 0 : index
    %95 = vector.load %arg18[%c0_51, %c0_52, %c0_53] : memref<18x18x128xbf16, #tpu.memory_space<vmem>>, vector<18x1x128xbf16>
    tpu.vector_store %arg18[%c0_51, %c0_52, %c0_53], %92 {strides = array<i32>} : memref<18x18x128xbf16, #tpu.memory_space<vmem>>, vector<18x1x128xbf16>,
    %c0_54 = arith.constant 0 : index
    %c17_55 = arith.constant 17 : index
    %c0_56 = arith.constant 0 : index
    %96 = vector.load %arg18[%c0_54, %c17_55, %c0_56] : memref<18x18x128xbf16, #tpu.memory_space<vmem>>, vector<18x1x128xbf16>
    tpu.vector_store %arg18[%c0_54, %c17_55, %c0_56], %92 {strides = array<i32>} : memref<18x18x128xbf16, #tpu.memory_space<vmem>>, vector<18x1x128xbf16>,
    %97 = vector.shape_cast %90 : vector<256x128xf32> to vector<16x16x128xf32>
    %98 = arith.truncf %97 : vector<16x16x128xf32> to vector<16x16x128xbf16>
    %c1 = arith.constant 1 : index
    %c1_57 = arith.constant 1 : index
    %c0_58 = arith.constant 0 : index
    %99 = vector.load %arg18[%c1, %c1_57, %c0_58] : memref<18x18x128xbf16, #tpu.memory_space<vmem>>, vector<16x16x128xbf16>
    tpu.vector_store %arg18[%c1, %c1_57, %c0_58], %98 {strides = array<i32>} : memref<18x18x128xbf16, #tpu.memory_space<vmem>>, vector<16x16x128xbf16>,
    %cst_59 = arith.constant 0.000000e+00 : f32
    %100 = vector.broadcast %cst_59 : f32 to vector<256x128xf32>
    %c0_60 = arith.constant 0 : index
    %c0_61 = arith.constant 0 : index
    %c0_62 = arith.constant 0 : index
    %101 = vector.load %arg18[%c0_60, %c0_61, %c0_62] : memref<18x18x128xbf16, #tpu.memory_space<vmem>>, vector<16x16x128xbf16>
    %102 = vector.shape_cast %101 : vector<16x16x128xbf16> to vector<256x128xbf16>
    %c0_63 = arith.constant 0 : index
    %c0_64 = arith.constant 0 : index
    %103 = vector.load %arg19[%c0_63, %c0_64] : memref<256x384xbf16, #tpu.memory_space<vmem>>, vector<256x128xbf16>
    tpu.vector_store %arg19[%c0_63, %c0_64], %102 {strides = array<i32>} : memref<256x384xbf16, #tpu.memory_space<vmem>>, vector<256x128xbf16>,
    %c0_65 = arith.constant 0 : index
    %c1_66 = arith.constant 1 : index
    %c0_67 = arith.constant 0 : index
    %104 = vector.load %arg18[%c0_65, %c1_66, %c0_67] : memref<18x18x128xbf16, #tpu.memory_space<vmem>>, vector<16x16x128xbf16>
    %105 = vector.shape_cast %104 : vector<16x16x128xbf16> to vector<256x128xbf16>
    %c0_68 = arith.constant 0 : index
    %c128 = arith.constant 128 : index
    %106 = vector.load %arg19[%c0_68, %c128] : memref<256x384xbf16, #tpu.memory_space<vmem>>, vector<256x128xbf16>
    tpu.vector_store %arg19[%c0_68, %c128], %105 {strides = array<i32>} : memref<256x384xbf16, #tpu.memory_space<vmem>>, vector<256x128xbf16>,
    %c0_69 = arith.constant 0 : index
    %c2 = arith.constant 2 : index
    %c0_70 = arith.constant 0 : index
    %107 = vector.load %arg18[%c0_69, %c2, %c0_70] : memref<18x18x128xbf16, #tpu.memory_space<vmem>>, vector<16x16x128xbf16>
    %108 = vector.shape_cast %107 : vector<16x16x128xbf16> to vector<256x128xbf16>
    %c0_71 = arith.constant 0 : index
    %c256 = arith.constant 256 : index
    %109 = vector.load %arg19[%c0_71, %c256] : memref<256x384xbf16, #tpu.memory_space<vmem>>, vector<256x128xbf16>
    tpu.vector_store %arg19[%c0_71, %c256], %108 {strides = array<i32>} : memref<256x384xbf16, #tpu.memory_space<vmem>>, vector<256x128xbf16>,
    %c0_72 = arith.constant 0 : index
    %c0_73 = arith.constant 0 : index
    %110 = vector.load %arg19[%c0_72, %c0_73] : memref<256x384xbf16, #tpu.memory_space<vmem>>, vector<256x384xbf16>
    %c0_74 = arith.constant 0 : index
    %c0_75 = arith.constant 0 : index
    %c0_76 = arith.constant 0 : index
    %111 = vector.load %arg9[%c0_74, %c0_75, %c0_76] : memref<3x384x128xbf16, #tpu.memory_space<vmem>>, vector<1x384x128xbf16>
    %112 = vector.shape_cast %111 : vector<1x384x128xbf16> to vector<384x128xbf16>
    %cst_77 = arith.constant dense<0.000000e+00> : vector<256x128xf32>
    %113 = tpu.matmul %110, %112, %cst_77 {dimension_numbers = #tpu.dot_dimension_numbers<[1], [0], [0], [1], [0, 0, 1, 1], [], []>} : vector<256x384xbf16>, vector<384x128xbf16>, vector<256x128xf32> -> vector<256x128xf32>
    %114 = arith.addf %100, %113 : vector<256x128xf32>
    %c1_78 = arith.constant 1 : index
    %c0_79 = arith.constant 0 : index
    %c0_80 = arith.constant 0 : index
    %115 = vector.load %arg18[%c1_78, %c0_79, %c0_80] : memref<18x18x128xbf16, #tpu.memory_space<vmem>>, vector<16x16x128xbf16>
    %116 = vector.shape_cast %115 : vector<16x16x128xbf16> to vector<256x128xbf16>
    %c0_81 = arith.constant 0 : index
    %c0_82 = arith.constant 0 : index
    %117 = vector.load %arg19[%c0_81, %c0_82] : memref<256x384xbf16, #tpu.memory_space<vmem>>, vector<256x128xbf16>
    tpu.vector_store %arg19[%c0_81, %c0_82], %116 {strides = array<i32>} : memref<256x384xbf16, #tpu.memory_space<vmem>>, vector<256x128xbf16>,
    %c1_83 = arith.constant 1 : index
    %c1_84 = arith.constant 1 : index
    %c0_85 = arith.constant 0 : index
    %118 = vector.load %arg18[%c1_83, %c1_84, %c0_85] : memref<18x18x128xbf16, #tpu.memory_space<vmem>>, vector<16x16x128xbf16>
    %119 = vector.shape_cast %118 : vector<16x16x128xbf16> to vector<256x128xbf16>
    %c0_86 = arith.constant 0 : index
    %c128_87 = arith.constant 128 : index
    %120 = vector.load %arg19[%c0_86, %c128_87] : memref<256x384xbf16, #tpu.memory_space<vmem>>, vector<256x128xbf16>
    tpu.vector_store %arg19[%c0_86, %c128_87], %119 {strides = array<i32>} : memref<256x384xbf16, #tpu.memory_space<vmem>>, vector<256x128xbf16>,
    %c1_88 = arith.constant 1 : index
    %c2_89 = arith.constant 2 : index
    %c0_90 = arith.constant 0 : index
    %121 = vector.load %arg18[%c1_88, %c2_89, %c0_90] : memref<18x18x128xbf16, #tpu.memory_space<vmem>>, vector<16x16x128xbf16>
    %122 = vector.shape_cast %121 : vector<16x16x128xbf16> to vector<256x128xbf16>
    %c0_91 = arith.constant 0 : index
    %c256_92 = arith.constant 256 : index
    %123 = vector.load %arg19[%c0_91, %c256_92] : memref<256x384xbf16, #tpu.memory_space<vmem>>, vector<256x128xbf16>
    tpu.vector_store %arg19[%c0_91, %c256_92], %122 {strides = array<i32>} : memref<256x384xbf16, #tpu.memory_space<vmem>>, vector<256x128xbf16>,
    %c0_93 = arith.constant 0 : index
    %c0_94 = arith.constant 0 : index
    %124 = vector.load %arg19[%c0_93, %c0_94] : memref<256x384xbf16, #tpu.memory_space<vmem>>, vector<256x384xbf16>
    %c1_95 = arith.constant 1 : index
    %c0_96 = arith.constant 0 : index
    %c0_97 = arith.constant 0 : index
    %125 = vector.load %arg9[%c1_95, %c0_96, %c0_97] : memref<3x384x128xbf16, #tpu.memory_space<vmem>>, vector<1x384x128xbf16>
    %126 = vector.shape_cast %125 : vector<1x384x128xbf16> to vector<384x128xbf16>
    %cst_98 = arith.constant dense<0.000000e+00> : vector<256x128xf32>
    %127 = tpu.matmul %124, %126, %cst_98 {dimension_numbers = #tpu.dot_dimension_numbers<[1], [0], [0], [1], [0, 0, 1, 1], [], []>} : vector<256x384xbf16>, vector<384x128xbf16>, vector<256x128xf32> -> vector<256x128xf32>
    %128 = arith.addf %114, %127 : vector<256x128xf32>
    %c2_99 = arith.constant 2 : index
    %c0_100 = arith.constant 0 : index
    %c0_101 = arith.constant 0 : index
    %129 = vector.load %arg18[%c2_99, %c0_100, %c0_101] : memref<18x18x128xbf16, #tpu.memory_space<vmem>>, vector<16x16x128xbf16>
    %130 = vector.shape_cast %129 : vector<16x16x128xbf16> to vector<256x128xbf16>
    %c0_102 = arith.constant 0 : index
    %c0_103 = arith.constant 0 : index
    %131 = vector.load %arg19[%c0_102, %c0_103] : memref<256x384xbf16, #tpu.memory_space<vmem>>, vector<256x128xbf16>
    tpu.vector_store %arg19[%c0_102, %c0_103], %130 {strides = array<i32>} : memref<256x384xbf16, #tpu.memory_space<vmem>>, vector<256x128xbf16>,
    %c2_104 = arith.constant 2 : index
    %c1_105 = arith.constant 1 : index
    %c0_106 = arith.constant 0 : index
    %132 = vector.load %arg18[%c2_104, %c1_105, %c0_106] : memref<18x18x128xbf16, #tpu.memory_space<vmem>>, vector<16x16x128xbf16>
    %133 = vector.shape_cast %132 : vector<16x16x128xbf16> to vector<256x128xbf16>
    %c0_107 = arith.constant 0 : index
    %c128_108 = arith.constant 128 : index
    %134 = vector.load %arg19[%c0_107, %c128_108] : memref<256x384xbf16, #tpu.memory_space<vmem>>, vector<256x128xbf16>
    tpu.vector_store %arg19[%c0_107, %c128_108], %133 {strides = array<i32>} : memref<256x384xbf16, #tpu.memory_space<vmem>>, vector<256x128xbf16>,
    %c2_109 = arith.constant 2 : index
    %c2_110 = arith.constant 2 : index
    %c0_111 = arith.constant 0 : index
    %135 = vector.load %arg18[%c2_109, %c2_110, %c0_111] : memref<18x18x128xbf16, #tpu.memory_space<vmem>>, vector<16x16x128xbf16>
    %136 = vector.shape_cast %135 : vector<16x16x128xbf16> to vector<256x128xbf16>
    %c0_112 = arith.constant 0 : index
    %c256_113 = arith.constant 256 : index
    %137 = vector.load %arg19[%c0_112, %c256_113] : memref<256x384xbf16, #tpu.memory_space<vmem>>, vector<256x128xbf16>
    tpu.vector_store %arg19[%c0_112, %c256_113], %136 {strides = array<i32>} : memref<256x384xbf16, #tpu.memory_space<vmem>>, vector<256x128xbf16>,
    %c0_114 = arith.constant 0 : index
    %c0_115 = arith.constant 0 : index
    %138 = vector.load %arg19[%c0_114, %c0_115] : memref<256x384xbf16, #tpu.memory_space<vmem>>, vector<256x384xbf16>
    %c2_116 = arith.constant 2 : index
    %c0_117 = arith.constant 0 : index
    %c0_118 = arith.constant 0 : index
    %139 = vector.load %arg9[%c2_116, %c0_117, %c0_118] : memref<3x384x128xbf16, #tpu.memory_space<vmem>>, vector<1x384x128xbf16>
    %140 = vector.shape_cast %139 : vector<1x384x128xbf16> to vector<384x128xbf16>
    %cst_119 = arith.constant dense<0.000000e+00> : vector<256x128xf32>
    %141 = tpu.matmul %138, %140, %cst_119 {dimension_numbers = #tpu.dot_dimension_numbers<[1], [0], [0], [1], [0, 0, 1, 1], [], []>} : vector<256x384xbf16>, vector<384x128xbf16>, vector<256x128xf32> -> vector<256x128xf32>
    %142 = arith.addf %128, %141 : vector<256x128xf32>
    %c0_120 = arith.constant 0 : index
    %c0_121 = arith.constant 0 : index
    %143 = vector.load %arg10[%c0_120, %c0_121] : memref<1x128xf32, #tpu.memory_space<vmem>>, vector<1x128xf32>
    %144 = vector.broadcast %143 : vector<1x128xf32> to vector<256x128xf32>
    %145 = arith.addf %142, %144 : vector<256x128xf32>
    %c0_122 = arith.constant 0 : index
    %c0_123 = arith.constant 0 : index
    %146 = vector.load %arg11[%c0_122, %c0_123] : memref<1x128xf32, #tpu.memory_space<vmem>>, vector<1x128xf32>
    %c0_124 = arith.constant 0 : index
    %c0_125 = arith.constant 0 : index
    %147 = vector.load %arg12[%c0_124, %c0_125] : memref<1x128xf32, #tpu.memory_space<vmem>>, vector<1x128xf32>
    %cst_126 = arith.constant dense<0.000000e+00> : vector<128xf32>
    %148 = vector.multi_reduction <add>, %145, %cst_126 [0] : vector<256x128xf32> to vector<128xf32>
    %149 = vector.shape_cast %148 : vector<128xf32> to vector<1x128xf32>
    %c0_127 = arith.constant 0 : index
    %c0_128 = arith.constant 0 : index
    %150 = vector.load %arg15[%c0_127, %c0_128] : memref<128x128xf32, #tpu.memory_space<vmem>>, vector<128x128xf32>
    %cst_129 = arith.constant dense<0.000000e+00> : vector<1x128xf32>
    %151 = tpu.matmul %149, %150, %cst_129 {dimension_numbers = #tpu.dot_dimension_numbers<[1], [0], [0], [1], [0, 0, 1, 1], [], []>} : vector<1x128xf32>, vector<128x128xf32>, vector<1x128xf32> -> vector<1x128xf32>
    %cst_130 = arith.constant 0.001953125 : f32
    %152 = vector.broadcast %cst_130 : f32 to vector<1x128xf32>
    %153 = arith.mulf %151, %152 : vector<1x128xf32>
    %154 = vector.broadcast %153 : vector<1x128xf32> to vector<256x128xf32>
    %155 = arith.subf %145, %154 : vector<256x128xf32>
    %156 = arith.mulf %155, %155 : vector<256x128xf32>
    %cst_131 = arith.constant dense<0.000000e+00> : vector<128xf32>
    %157 = vector.multi_reduction <add>, %156, %cst_131 [0] : vector<256x128xf32> to vector<128xf32>
    %158 = vector.shape_cast %157 : vector<128xf32> to vector<1x128xf32>
    %c0_132 = arith.constant 0 : index
    %c0_133 = arith.constant 0 : index
    %159 = vector.load %arg15[%c0_132, %c0_133] : memref<128x128xf32, #tpu.memory_space<vmem>>, vector<128x128xf32>
    %cst_134 = arith.constant dense<0.000000e+00> : vector<1x128xf32>
    %160 = tpu.matmul %158, %159, %cst_134 {dimension_numbers = #tpu.dot_dimension_numbers<[1], [0], [0], [1], [0, 0, 1, 1], [], []>} : vector<1x128xf32>, vector<128x128xf32>, vector<1x128xf32> -> vector<1x128xf32>
    %cst_135 = arith.constant 0.001953125 : f32
    %161 = vector.broadcast %cst_135 : f32 to vector<1x128xf32>
    %162 = arith.mulf %160, %161 : vector<1x128xf32>
    %cst_136 = arith.constant 9.99999974E-6 : f32
    %163 = vector.broadcast %cst_136 : f32 to vector<1x128xf32>
    %164 = arith.addf %162, %163 : vector<1x128xf32>
    %165 = math.rsqrt %164 : vector<1x128xf32>
    %166 = vector.broadcast %165 : vector<1x128xf32> to vector<256x128xf32>
    %167 = arith.mulf %155, %166 : vector<256x128xf32>
    %168 = vector.broadcast %146 : vector<1x128xf32> to vector<256x128xf32>
    %169 = arith.mulf %167, %168 : vector<256x128xf32>
    %170 = vector.broadcast %147 : vector<1x128xf32> to vector<256x128xf32>
    %171 = arith.addf %169, %170 : vector<256x128xf32>
    %172 = arith.negf %171 : vector<256x128xf32>
    %173 = math.exp %172 : vector<256x128xf32>
    %cst_137 = arith.constant 1.000000e+00 : f32
    %174 = vector.broadcast %cst_137 : f32 to vector<256x128xf32>
    %175 = arith.addf %174, %173 : vector<256x128xf32>
    %176 = arith.divf %174, %175 : vector<256x128xf32>
    %177 = arith.mulf %171, %176 : vector<256x128xf32>
    %c0_138 = arith.constant 0 : index
    %c16_139 = arith.constant 16 : index
    %178 = vector.load %arg17[%c0_138, %c16_139] : memref<256x36xbf16, #tpu.memory_space<vmem>>, vector<256x4xbf16>
    %c0_140 = arith.constant 0 : index
    %c0_141 = arith.constant 0 : index
    %179 = vector.load %arg13[%c0_140, %c0_141] : memref<4x128xbf16, #tpu.memory_space<vmem>>, vector<4x128xbf16>
    %cst_142 = arith.constant dense<0.000000e+00> : vector<256x128xf32>
    %180 = tpu.matmul %178, %179, %cst_142 {dimension_numbers = #tpu.dot_dimension_numbers<[1], [0], [0], [1], [0, 0, 1, 1], [], []>} : vector<256x4xbf16>, vector<4x128xbf16>, vector<256x128xf32> -> vector<256x128xf32>
    %c0_143 = arith.constant 0 : index
    %c0_144 = arith.constant 0 : index
    %181 = vector.load %arg14[%c0_143, %c0_144] : memref<1x128xf32, #tpu.memory_space<vmem>>, vector<1x128xf32>
    %182 = vector.broadcast %181 : vector<1x128xf32> to vector<256x128xf32>
    %183 = arith.addf %180, %182 : vector<256x128xf32>
    %184 = arith.addf %177, %183 : vector<256x128xf32>
    %c0_145 = arith.constant 0 : index
    %c0_146 = arith.constant 0 : index
    %c0_147 = arith.constant 0 : index
    %185 = vector.load %arg16[%c0_145, %c0_146, %c0_147] : memref<1x256x128xf32, #tpu.memory_space<vmem>>, vector<1x256x128xf32>
    %186 = vector.shape_cast %185 : vector<1x256x128xf32> to vector<256x128xf32>
    %187 = vector.shape_cast %184 : vector<256x128xf32> to vector<1x256x128xf32>
    tpu.vector_store %arg16[%c0_145, %c0_146, %c0_147], %187 {strides = array<i32>} : memref<1x256x128xf32, #tpu.memory_space<vmem>>, vector<1x256x128xf32>,
    return
  }
  func.func @transform_0(%arg0: i32) -> (i32, i32, i32, i32) {
    %c0_i32 = arith.constant 0 : i32
    %c0_i32_0 = arith.constant 0 : i32
    %c0_i32_1 = arith.constant 0 : i32
    %c0_i32_2 = arith.constant 0 : i32
    return %arg0, %c0_i32, %c0_i32_0, %c0_i32_1 : i32, i32, i32, i32
  }
  func.func @transform_1(%arg0: i32) -> (i32, i32, i32) {
    %c0_i32 = arith.constant 0 : i32
    %c0_i32_0 = arith.constant 0 : i32
    %c0_i32_1 = arith.constant 0 : i32
    return %arg0, %c0_i32, %c0_i32_0 : i32, i32, i32
  }
  func.func @transform_2(%arg0: i32) -> (i32, i32) {
    %c0_i32 = arith.constant 0 : i32
    %c0_i32_0 = arith.constant 0 : i32
    %c0_i32_1 = arith.constant 0 : i32
    return %c0_i32, %c0_i32_0 : i32, i32
  }
  func.func @transform_3(%arg0: i32) -> (i32, i32) {
    %c0_i32 = arith.constant 0 : i32
    %c0_i32_0 = arith.constant 0 : i32
    %c0_i32_1 = arith.constant 0 : i32
    return %c0_i32, %c0_i32_0 : i32, i32
  }
  func.func @transform_4(%arg0: i32) -> (i32, i32) {
    %c0_i32 = arith.constant 0 : i32
    %c0_i32_0 = arith.constant 0 : i32
    %c0_i32_1 = arith.constant 0 : i32
    return %c0_i32, %c0_i32_0 : i32, i32
  }
  func.func @transform_5(%arg0: i32) -> (i32, i32) {
    %c0_i32 = arith.constant 0 : i32
    %c0_i32_0 = arith.constant 0 : i32
    %c0_i32_1 = arith.constant 0 : i32
    return %c0_i32, %c0_i32_0 : i32, i32
  }
  func.func @transform_6(%arg0: i32) -> (i32, i32) {
    %c0_i32 = arith.constant 0 : i32
    %c0_i32_0 = arith.constant 0 : i32
    %c0_i32_1 = arith.constant 0 : i32
    return %c0_i32, %c0_i32_0 : i32, i32
  }
  func.func @transform_7(%arg0: i32) -> (i32, i32) {
    %c0_i32 = arith.constant 0 : i32
    %c0_i32_0 = arith.constant 0 : i32
    %c0_i32_1 = arith.constant 0 : i32
    return %c0_i32, %c0_i32_0 : i32, i32
  }
  func.func @transform_8(%arg0: i32) -> (i32, i32, i32) {
    %c0_i32 = arith.constant 0 : i32
    %c0_i32_0 = arith.constant 0 : i32
    %c0_i32_1 = arith.constant 0 : i32
    %c0_i32_2 = arith.constant 0 : i32
    return %c0_i32, %c0_i32_0, %c0_i32_1 : i32, i32, i32
  }
  func.func @transform_9(%arg0: i32) -> (i32, i32) {
    %c0_i32 = arith.constant 0 : i32
    %c0_i32_0 = arith.constant 0 : i32
    %c0_i32_1 = arith.constant 0 : i32
    return %c0_i32, %c0_i32_0 : i32, i32
  }
  func.func @transform_10(%arg0: i32) -> (i32, i32) {
    %c0_i32 = arith.constant 0 : i32
    %c0_i32_0 = arith.constant 0 : i32
    %c0_i32_1 = arith.constant 0 : i32
    return %c0_i32, %c0_i32_0 : i32, i32
  }
  func.func @transform_11(%arg0: i32) -> (i32, i32) {
    %c0_i32 = arith.constant 0 : i32
    %c0_i32_0 = arith.constant 0 : i32
    %c0_i32_1 = arith.constant 0 : i32
    return %c0_i32, %c0_i32_0 : i32, i32
  }
  func.func @transform_12(%arg0: i32) -> (i32, i32) {
    %c0_i32 = arith.constant 0 : i32
    %c0_i32_0 = arith.constant 0 : i32
    %c0_i32_1 = arith.constant 0 : i32
    return %c0_i32, %c0_i32_0 : i32, i32
  }
  func.func @transform_13(%arg0: i32) -> (i32, i32) {
    %c0_i32 = arith.constant 0 : i32
    %c0_i32_0 = arith.constant 0 : i32
    %c0_i32_1 = arith.constant 0 : i32
    return %c0_i32, %c0_i32_0 : i32, i32
  }
  func.func @transform_14(%arg0: i32) -> (i32, i32) {
    %c0_i32 = arith.constant 0 : i32
    %c0_i32_0 = arith.constant 0 : i32
    %c0_i32_1 = arith.constant 0 : i32
    return %c0_i32, %c0_i32_0 : i32, i32
  }
  func.func @transform_15(%arg0: i32) -> (i32, i32, i32) {
    %c0_i32 = arith.constant 0 : i32
    %c0_i32_0 = arith.constant 0 : i32
    %c0_i32_1 = arith.constant 0 : i32
    return %arg0, %c0_i32, %c0_i32_0 : i32, i32, i32
  }
}

</mosaic_0001>

<bundles_post_ra>
// kernel: tpu_custom_call.1
= control target key start
LH: loop header
LB: loop body
LE: loop exit
PB: predicated region body
PF: predicated region fallthrough
CT: control target
= control target key end

     0   :  { %s18534_s0 = inlined_call_operand.vmem [shape: f32[2,18,18,4], index: 0, kind: input, shape index: {}]   ;;  %s18535_s1 = inlined_call_operand.vmem [shape: f32[2,1,32], index: 1, kind: input, shape index: {}]   ;;  %s18536_s2 = inlined_call_operand.vmem [shape: bf16[36,128], index: 2, kind: input, shape index: {}]   ;;  %s18537_s3 = inlined_call_operand.vmem [shape: f32[1,128], index: 3, kind: input, shape index: {}]   ;;  %s18538_s4 = inlined_call_operand.vmem [shape: f32[1,128], index: 4, kind: input, shape index: {}]   ;;  %s18539_s5 = inlined_call_operand.vmem [shape: f32[1,128], index: 5, kind: input, shape index: {}]   ;;  %s18540_s6 = inlined_call_operand.vmem [shape: bf16[32,128], index: 6, kind: input, shape index: {}]   ;;  %s18541_s7 = inlined_call_operand.vmem [shape: f32[1,128], index: 7, kind: input, shape index: {}]   ;;  %s18542_s8 = inlined_call_operand.vmem [shape: bf16[3,384,128], index: 8, kind: input, shape index: {}]   ;;  %s18543_s9 = inlined_call_operand.vmem [shape: f32[1,128], index: 9, kind: input, shape index: {}]   ;;  %s18544_s10 = inlined_call_operand.vmem [shape: f32[1,128], index: 10, kind: input, shape index: {}]   ;;  %s18545_s11 = inlined_call_operand.vmem [shape: f32[1,128], index: 11, kind: input, shape index: {}]   ;;  %s18546_s12 = inlined_call_operand.vmem [shape: bf16[4,128], index: 12, kind: input, shape index: {}]   ;;  %s18547_s13 = inlined_call_operand.vmem [shape: f32[1,128], index: 13, kind: input, shape index: {}]   ;;  %s18548_s14 = inlined_call_operand.vmem [shape: f32[128,128], index: 14, kind: input, shape index: {}]   ;;  %s18549_s15 = inlined_call_operand.hbm [shape: f32[2,256,128], index: 15, kind: output, shape index: {}]  }
   0x1   :  { %18647 = sst [smem:[#allocation48_spill]] %s18534_s0 }
   0x2   :  { %18648 = sst [smem:[#allocation49_spill]] %s18535_s1 }
   0x3   :  { %18649 = sst [smem:[#allocation50_spill]] %s18536_s2 }
   0x4   :  { %18650 = sst [smem:[#allocation51_spill]] %s18537_s3 }
   0x5   :  { %20 = vsyncpa [#allocation6], 0 }
   0x6   :  { %22 = vsyncpa [#allocation6 + $0x1], 0  ;;  %s12656_s18 = smov 0   ;;  %s12658_s19 = smov 0  }
   0x7   :  { %s12660_s20 = smov 0   ;;  %s12662_s21 = smov 0  }
   0x8 LB: > { %18651 = sst [smem:[#allocation8_spill]] %s12556_s20  ;;  %s12677_s22 = sadd.s32 4294967295, %s12560_s21   ;;  %s12560_s21 = sphi %s12662_s21, %s19021_s21   ;;  %s12556_s20 = sphi %s12660_s20, %s19018_s20   ;;  %s12552_s19 = sphi %s12658_s19, %s19020_s19   ;;  %s12548_s18 = sphi %s12656_s18, %s19019_s18  }
   0x9   : > { %s10275_s23 = sadd.s32 4294967294, %s12560_s21   ;;  %s12681_s24 = sadd.s32 1, %s12560_s21  }
   0xa   : > { %s360_s25 = sadd.s32 1, %s12556_s20  ;;  %s357_s26 = ssub.s32 %s12560_s21, %s12681_s24 }
   0xb   : > { %p370_p0 = scmp.ne.s32.totalorder %s12556_s20, %s12552_s19  ;;  %p358_p1 = scmp.eq.s32.totalorder %s357_s26, 0 }
   0xc   : > { %p371_p2 = scmp.eq.s32.totalorder %s12677_s22, 1  ;;  %p376_p3 = scmp.ne.s32.totalorder %s12552_s19, %s12548_s18 }
   0xd   : > { %p377_p4 = scmp.eq.s32.totalorder %s10275_s23, 1  ;;  %p10278_p7 = scmp.ge.s32.totalorder %s12560_s21, 1 }
   0xe   : > { %s12692_s27 = scalar_select %p358_p1, %s12556_s20, %s360_s25  }
   0xf   : > { %p12694_p5 = por %p371_p2, %p370_p0  ;;  %p12698_p6 = por %p377_p4, %p376_p3 }
  0x10   : > { %18652 = sst [smem:[#allocation9_spill]] %s12692_s27  ;;  %p448_p8 = scmp.lt.s32.totalorder %s12560_s21, 3 }
  0x12   : > { %p449_p9 = pnand %p10278_p7, %p448_p8 }
  0x14   : > { %452 = sbr.rel (%p449_p9) target bundleno = 2959 (0xb8f), region = 80 }
  0x19   : > { %p499_p10 = scmp.lt.s32.totalorder %s12677_s22, 1  ;;  %s18655_s0 = sld [smem:[#allocation48_spill]]  ;;  %vm771_vm0 = vcmask 1046528   ;;  %vm690_vm1 = vcmask 27648   ;;  %vm1109_vm2 = vcmask 1045504   ;;  %vm18567_vm3 = vcmask 1041408  }
  0x1a   : > { %s18558_s26 = smov 4   ;;  %s18550_s17 = smov 12   ;;  %vm1076_vm4 = vcmask 60448   ;;  %vm18568_vm5 = vcmask 93248   ;;  %vm1549_vm6 = vcmask 126048   ;;  %vm1694_vm7 = vcmask 158848  }
  0x1b   : > { %s12706_s30 = scalar_select %p499_p10, %s12677_s22, 1  ;;  %vm1836_vm8 = vcmask 191648   ;;  %vm1971_vm9 = vcmask 224448   ;;  %vm2116_vm10 = vcmask 257248   ;;  %vm2258_vm11 = vcmask 290048  }
  0x1c   : > { %s18552_s23 = smov 16   ;;  %s18656_s2 = sld [smem:[#allocation50_spill]]  ;;  %vm2430_vm12 = vcmask 293888   ;;  %vm3397_vm13 = vcmask 1040384   ;;  %vm3398_vm14 = vsmask.f32 256 }
  0x1d   : > { %s11960_s16 = smul.u32 432, %s12706_s30  ;;  %s18562_s27 = smov 32   ;;  %vm3454_vm15 = vsmask.f32 7938 }
  0x1e   : > { %s18664_s20 = smov 32   ;;  %s18685_s3 = sld [smem:[#allocation51_spill]] }
  0x1f   : > { %s12712_s25 = scalar_lea.vmem %s18655_s0, %s11960_s16  ;;  %s18556_s16 = smov 8  }
  0x20   : > { %v511_v0 = vld [vmem:[%s12712_s25 + $0x18] sm:$0xff]  ;;  %v512_v1 = vld [vmem:[%s12712_s25 + $0x20] sm:$0xff]  ;;  %v12720_v5 = vld [vmem:[%s12712_s25 + $0x8] sm:$0xff]  ;;  %s18658_s0 = smov 8   ;;  %s18688_s1 = sld [smem:[#allocation49_spill]] }
  0x21   : > { %v12717_v2 = vld [vmem:[%s12712_s25] sm:$0xff]  ;;  %v777_v3 = vrot.slane %v511_v0, 1  ;;  %v778_v4 = vrot.slane %v512_v1, 1  ;;  %v513_v7 = vld [vmem:[%s12712_s25 + $0x28] sm:$0x3]  ;;  %v12724_v8 = vpack.c.bf16 %v512_v1, %v512_v1  ;;  %v773_v9 = vrot.slane %v12720_v5, 1 }
  0x22   : > { %v772_v6 = vrot.slane %v12717_v2, 1  ;;  %v780_v10 = vrot.slane %v513_v7, 1  ;;  %v510_v11 = vld [vmem:[%s12712_s25 + $0x10] sm:$0x3]  ;;  %v1111_v12 = vrot.slane %v12720_v5, 2  ;;  %v1110_v19 = vrot.slane %v12717_v2, 2 }
  0x23   : > { %v779_v13 = vsel %vm771_vm0, %v777_v3, %v778_v4  ;;  %v775_v14 = vrot.slane %v510_v11, 1  ;;  %v1113_v15 = vrot.slane %v510_v11, 2  ;;  %694 = vst.msk [vmem:[#allocation2 + $0xc] sm:$0xf] %vm690_vm1, %v12724_v8  ;;  %v12738_v20 = vld [vmem:[%s12712_s25 + $0x38] sm:$0xff]  ;;  %v12742_v23 = vld [vmem:[%s12712_s25 + $0x30] sm:$0xff]  ;;  %v10930_v29 = vpack.c.bf16 %v511_v0, %v511_v0 }
  0x24   : > { %v12732_v16 = vpack.c.bf16 %v779_v13, %v779_v13  ;;  %v774_v17 = vsel %vm771_vm0, %v772_v6, %v773_v9  ;;  %v781_v18 = vsel %vm771_vm0, %v778_v4, %v780_v10  ;;  %v1116_v26 = vrot.slane %v512_v1, 2  ;;  %v12755_v31 = vld [vmem:[%s12712_s25 + $0x50] sm:$0xff]  ;;  %v12772_v37 = vld [vmem:[%s12712_s25 + $0x48] sm:$0xff]  ;;  %v520_v42 = vld [vmem:[%s12712_s25 + $0x60] sm:$0xff] }
  0x25   : > { %v10960_v21 = vpack.c.bf16 %v774_v17, %v774_v17  ;;  %v776_v22 = vsel %vm771_vm0, %v773_v9, %v775_v14  ;;  %v12746_v24 = vpack.c.bf16 %v781_v18, %v781_v18  ;;  %v1114_v25 = vsel %vm1109_vm2, %v1111_v12, %v1113_v15  ;;  %693 = vst.msk [vmem:[#allocation2 + $0x8] sm:$0xf] %vm690_vm1, %v10930_v29  ;;  %v12779_v40 = vld [vmem:[%s12712_s25 + $0x68] sm:$0xff]  ;;  %v12797_v46 = vld [vmem:[%s12712_s25 + $0x80] sm:$0xff]  ;;  %v523_v47 = vld [vmem:[%s12712_s25 + $0x78] sm:$0xff] }
  0x26   : > { %984 = vrot.lane.b32.xlu1 %v12732_v16, %s18558_s26  ;;  %v10961_v27 = vpack.c.bf16 %v776_v22, %v776_v22  ;;  %v1118_v28 = vrot.slane %v513_v7, 2  ;;  %v12752_v30 = vpack.c.bf16 %v12738_v20, %v12738_v20  ;;  %v1112_v32 = vsel %vm1109_vm2, %v1110_v19, %v1111_v12  ;;  %v516_v54 = vld [vmem:[%s12712_s25 + $0x40] sm:$0x3]  ;;  %v526_v7 = vld [vmem:[%s12712_s25 + $0x90] sm:$0xff] }
  0x27   : > { %980 = vrot.lane.b32.xlu0 %v10960_v21, %s18558_s26  ;;  %v1115_v33 = vrot.slane %v511_v0, 2  ;;  %v12760_v34 = vpack.c.bf16 %v12742_v23, %v12742_v23  ;;  %v10993_v35 = vpack.c.bf16 %v1114_v25, %v1114_v25  ;;  %v12769_v36 = vpack.c.bf16 %v12755_v31, %v12755_v31 }
  0x28   : > { %696 = vst.msk [vmem:[#allocation2 + $0x14] sm:$0xf] %vm690_vm1, %v12752_v30  ;;  %v10992_v38 = vpack.c.bf16 %v1112_v32, %v1112_v32  ;;  %v1119_v39 = vsel %vm1109_vm2, %v1116_v26, %v1118_v28  ;;  %v12787_v43 = vpack.c.bf16 %v12772_v37, %v12772_v37  ;;  %v12794_v45 = vpack.c.bf16 %v12779_v40, %v12779_v40 }
  0x29   : > { %695 = vst.msk [vmem:[#allocation2 + $0x10] sm:$0xf] %vm690_vm1, %v12760_v34  ;;  %v1117_v41 = vsel %vm1109_vm2, %v1115_v33, %v1116_v26  ;;  %698 = vst.msk [vmem:[#allocation2 + $0x1c] sm:$0xf] %vm690_vm1, %v12769_v36  ;;  %v12790_v44 = vpack.c.bf16 %v1119_v39, %v1119_v39  ;;  %v793_v49 = vrot.slane %v12779_v40, 1  ;;  %v1131_v50 = vrot.slane %v12779_v40, 2 }
  0x2a   : > { %986 = vrot.lane.b32.xlu1 %v12746_v24, %s18558_s26  ;;  %v12801_v48 = vpack.c.bf16 %v1117_v41, %v1117_v41  ;;  %v12805_v51 = vpack.c.bf16 %v520_v42, %v520_v42  ;;  %697 = vst.msk [vmem:[#allocation2 + $0x18] sm:$0xf] %vm690_vm1, %v12787_v43  ;;  %700 = vst.msk [vmem:[#allocation2 + $0x24] sm:$0xf] %vm690_vm1, %v12794_v45  ;;  %v792_v52 = vrot.slane %v520_v42, 1  ;;  %v1130_v53 = vrot.slane %v520_v42, 2 }
  0x2b   : > { %982 = vrot.lane.b32.xlu0 %v10961_v27, %s18558_s26  ;;  %v12818_v55 = vpack.c.bf16 %v12797_v46, %v12797_v46  ;;  %v798_v56 = vrot.slane %v12797_v46, 1  ;;  %v1136_v59 = vrot.slane %v12797_v46, 2  ;;  %v12834_v60 = vpack.c.bf16 %v523_v47, %v523_v47  ;;  %v519_v27 = vld [vmem:[%s12712_s25 + $0x58] sm:$0x3]  ;;  %v12929_v33 = vld [vmem:[%s12712_s25 + $0xb0] sm:$0xff]  ;;  %s18564_s26 = smov 28  }
  0x2c   : > { %699 = vst.msk [vmem:[#allocation2 + $0x20] sm:$0xf] %vm690_vm1, %v12805_v51  ;;  %v12826_v57 = vsel %vm771_vm0, %v792_v52, %v793_v49  ;;  %v12831_v58 = vsel %vm1109_vm2, %v1130_v53, %v1131_v50  ;;  %v797_v61 = vrot.slane %v523_v47, 1  ;;  %v1135_v62 = vrot.slane %v523_v47, 2 }
  0x2d   : > { %702 = vst.msk [vmem:[#allocation2 + $0x2c] sm:$0xf] %vm690_vm1, %v12818_v55  ;;  %701 = vst.msk [vmem:[#allocation2 + $0x28] sm:$0xf] %vm690_vm1, %v12834_v60  ;;  %v10928_v63 = vpack.c.bf16 %v12717_v2, %v12717_v2  ;;  %v10929_v0 = vpack.c.bf16 %v12720_v5, %v12720_v5  ;;  %v783_v1 = vrot.slane %v12738_v20, 1  ;;  %v785_v3 = vrot.slane %v516_v54, 1 }
  0x2e   : > { %1320 = vrot.lane.b32.xlu1 %v10993_v35, %s18556_s16  ;;  %v12851_v4 = vsel %vm771_vm0, %v797_v61, %v798_v56  ;;  %v12856_v6 = vsel %vm1109_vm2, %v1135_v62, %v1136_v59  ;;  %v782_v2 = vrot.slane %v12742_v23, 1  ;;  %v12862_v5 = vld [vmem:[%s12712_s25 + $0x98] sm:$0xff]  ;;  %v12871_v9 = vpack.c.bf16 %v526_v7, %v526_v7  ;;  %v529_v35 = vld [vmem:[%s12712_s25 + $0xa8] sm:$0xff] }
  0x2f   : > { %1318 = vrot.lane.b32.xlu0 %v10992_v38, %s18556_s16  ;;  %691 = vst.msk [vmem:[#allocation2] sm:$0xf] %vm690_vm1, %v10928_v63  ;;  %692 = vst.msk [vmem:[#allocation2 + $0x4] sm:$0xf] %vm690_vm1, %v10929_v0  ;;  %v786_v10 = vsel %vm771_vm0, %v783_v1, %v785_v3  ;;  %v803_v11 = vrot.slane %v12862_v5, 1  ;;  %v802_v12 = vrot.slane %v526_v7, 1  ;;  %v12934_v38 = vpack.c.bf16 %v12929_v33, %v12929_v33 }
  0x30   : > { %v784_v13 = vsel %vm771_vm0, %v782_v2, %v783_v1  ;;  %703 = vst.msk [vmem:[#allocation2 + $0x30] sm:$0xf] %vm690_vm1, %v12871_v9  ;;  %v1121_v14 = vrot.slane %v12738_v20, 2  ;;  %v1120_v15 = vrot.slane %v12742_v23, 2  ;;  %v12886_v17 = vpack.c.bf16 %v786_v10, %v786_v10 }
  0x31   : > { %v1123_v18 = vrot.slane %v516_v54, 2  ;;  %v12890_v19 = vpack.c.bf16 %v784_v13, %v784_v13  ;;  %v1141_v21 = vrot.slane %v12862_v5, 2  ;;  %v1140_v22 = vrot.slane %v526_v7, 2  ;;  %706 = vst.msk [vmem:[#allocation2 + $0x3c] sm:$0xf] %vm690_vm1, %v12934_v38 }
  0x32   : > { %1324 = vrot.lane.b32.xlu1 %v12790_v44, %s18556_s16  ;;  %v12896_v20 = vsel %vm771_vm0, %v802_v12, %v803_v11  ;;  %v788_v28 = vrot.slane %v12755_v31, 1  ;;  %v787_v32 = vrot.slane %v12772_v37, 1  ;;  %v12936_v39 = vpack.c.bf16 %v529_v35, %v529_v35  ;;  %v522_v12 = vld [vmem:[%s12712_s25 + $0x70] sm:$0x3] }
  0x33   : > { %1322 = vrot.lane.b32.xlu0 %v12801_v48, %s18556_s16  ;;  %v1124_v23 = vsel %vm1109_vm2, %v1121_v14, %v1123_v18  ;;  %v12915_v26 = vsel %vm1109_vm2, %v1140_v22, %v1141_v21  ;;  %v1125_v61 = vrot.slane %v12772_v37, 2  ;;  %v1128_v62 = vrot.slane %v519_v27, 2  ;;  %v12016_v37 = vld [vmem:[%s18656_s2] sm:$0xff]   ;;  %s18657_s16 = smov 4  }
  0x34   : > { %705 = vst.msk [vmem:[#allocation2 + $0x38] sm:$0xf] %vm690_vm1, %v12936_v39  ;;  %v789_v42 = vsel %vm771_vm0, %v787_v32, %v788_v28  ;;  %v1146_v63 = vrot.slane %v12929_v33, 2  ;;  %v1145_v0 = vrot.slane %v529_v35, 2  ;;  %v795_v13 = vrot.slane %v522_v12, 1  ;;  %v535_v32 = vld [vmem:[%s12712_s25 + $0xd8] sm:$0xff] }
  0x35   : > { %v10966_v52 = vpack.c.bf16 %v789_v42, %v789_v42  ;;  %v13123_v46 = vpack.c.bf16 %v12856_v6, %v12856_v6 }
  0x36   : > { %1455 = vrot.lane.b32.xlu1 %v12724_v8, %s18550_s17  ;;  %v12867_v8 = vpack.c.bf16 %v12862_v5, %v12862_v5  ;;  %v12988_v10 = vsel %vm1109_vm2, %v1145_v0, %v1146_v63  ;;  %v1155_v0 = vrot.slane %v535_v32, 2  ;;  %v13222_v5 = vpack.c.bf16 %v12915_v26, %v12915_v26 }
  0x37   : > { %1453 = vrot.lane.b32.xlu0 %v10930_v29, %s18550_s17  ;;  %v790_v29 = vrot.slane %v519_v27, 1 }
  0x38   : > { %704 = vst.msk [vmem:[#allocation2 + $0x34] sm:$0xf] %vm690_vm1, %v12867_v8 }
  0x39   : > { %v791_v41 = vsel %vm771_vm0, %v788_v28, %v790_v29  ;;  %v13048_v28 = vpack.c.bf16 %v12831_v58, %v12831_v58  ;;  %v13065_v29 = vld [vmem:[%s12712_s25 + $0xe0] sm:$0xff] }
  0x3a   : > { %1459 = vrot.lane.b32.xlu1 %v12752_v30, %s18550_s17  ;;  %v10967_v47 = vpack.c.bf16 %v791_v41, %v791_v41  ;;  %v817_v41 = vrot.slane %v535_v32, 1 }
  0x3b   : > { %1457 = vrot.lane.b32.xlu0 %v12760_v34, %s18550_s17  ;;  %s18554_s17 = smov 20  }
  0x3e   : > { %1600 = vrot.lane.b32.xlu1 %v12746_v24, %s18552_s23  ;;  %v12906_v24 = vpack.c.bf16 %v1124_v23, %v1124_v23  ;;  %v10968_v23 = vpack.c.bf16 %v12826_v57, %v12826_v57 }
  0x3f   : > { %1598 = vrot.lane.b32.xlu0 %v12732_v16, %s18552_s23  ;;  %v1122_v16 = vsel %vm1109_vm2, %v1120_v15, %v1121_v14  ;;  %v13006_v14 = vld [vmem:[%s12712_s25 + $0xc8] sm:$0xff]  ;;  %v532_v15 = vld [vmem:[%s12712_s25 + $0xc0] sm:$0xff] }
  0x40   : > { %v12910_v25 = vpack.c.bf16 %v1122_v16, %v1122_v16  ;;  %v13013_v18 = vpack.c.bf16 %v532_v15, %v532_v15  ;;  %v1133_v16 = vrot.slane %v522_v12, 2  ;;  %v1150_v27 = vrot.slane %v532_v15, 2 }
  0x42   : > { %1604 = vrot.lane.b32.xlu1 %v12886_v17, %s18552_s23  ;;  %707 = vst.msk [vmem:[#allocation2 + $0x40] sm:$0xf] %vm690_vm1, %v13013_v18 }
  0x43   : > { %1602 = vrot.lane.b32.xlu0 %v12890_v19, %s18552_s23  ;;  %s18560_s23 = smov 24  }
  0x46   : > { %1742 = vrot.lane.b32.xlu1 %v12790_v44, %s18554_s17  ;;  %v12013_v44 = vld [vmem:[%s18656_s2 + $0x10] ss:$0 sps:$4 sm:$0x33]  }
  0x47   : > { %1740 = vrot.lane.b32.xlu0 %v12801_v48, %s18554_s17  ;;  %v1126_v48 = vrot.slane %v12755_v31, 2  ;;  %11956 = vmatprep.subr.msk.bf16.mxu0 %vm18567_vm3, %v12013_v44  ;;  %v2481_v53 = vsel %vm18567_vm3, %v12013_v44, 0  ;;  %v12014_v31 = vld [vmem:[%s18656_s2 + $0x8] sm:$0xff]   ;;  %s18663_s2 = smov 28  }
  0x48   : > { %11585 = vmatpush3.bf16.msra.mxu0 %v2481_v53  ;;  %11957 = vmatprep.subr.msk.bf16.mxu1 %vm18567_vm3, %v12013_v44  ;;  %v13092_v44 = vpack.c.bf16 %v12851_v4, %v12851_v4  ;;  %vm13512_vm3 = vmand %vm3397_vm13, %vm3398_vm14 }
  0x49   : > { %11951 = vmatpush3.bf16.msra.mxu1 %v2481_v53  ;;  %11586 = vmatprep.subr.bf16.mxu0 %v12014_v31  ;;  %v1129_v1 = vsel %vm1109_vm2, %v1126_v48, %v1128_v62  ;;  %v1127_v3 = vsel %vm1109_vm2, %v1125_v61, %v1126_v48  ;;  %v1156_v62 = vrot.slane %v13065_v29, 2 }
  0x4a   : > { %1746 = vrot.lane.b32.xlu1 %v12906_v24, %s18554_s17  ;;  %11949 = vmatprep.subr.bf16.mxu1 %v12014_v31  ;;  %v10999_v2 = vpack.c.bf16 %v1129_v1, %v1129_v1  ;;  %v10998_v7 = vpack.c.bf16 %v1127_v3, %v1127_v3 }
  0x4b   : > { %1744 = vrot.lane.b32.xlu0 %v12910_v25, %s18554_s17  ;;  %s18660_s17 = smov 16   ;;  %v13128_v3 = vsel %vm1109_vm2, %v1155_v0, %v1156_v62 }
  0x4c   : > { %11587 = vmatpush3.bf16.msra.mxu0 %v12014_v31 }
  0x4d   : > { %11952 = vmatpush3.bf16.msra.mxu1 %v12014_v31  ;;  %11588 = vmatprep.subr.bf16.mxu0 %v12016_v37 }
  0x4e   : > { %1877 = vrot.lane.b32.xlu1 %v12752_v30, %s18560_s23  ;;  %v808_v30 = vrot.slane %v12929_v33, 1  ;;  %11950 = vmatprep.subr.bf16.mxu1 %v12016_v37  ;;  %v13311_v33 = vpack.c.bf16 %v12988_v10, %v12988_v10 }
  0x4f   : > { %1875 = vrot.lane.b32.xlu0 %v12760_v34, %s18560_s23  ;;  %v807_v34 = vrot.slane %v529_v35, 1  ;;  %v13070_v35 = vpack.c.bf16 %v13065_v29, %v13065_v29 }
  0x50   : > { %11589 = vmatpush3.bf16.msra.mxu0 %v12016_v37 }
  0x51   : > { %v12962_v54 = vsel %vm771_vm0, %v807_v34, %v808_v30  ;;  %11953 = vmatpush3.bf16.msra.mxu1 %v12016_v37  ;;  %v13072_v34 = vpack.c.bf16 %v535_v32, %v535_v32  ;;  %710 = vst.msk [vmem:[#allocation2 + $0x4c] sm:$0xf] %vm690_vm1, %v13070_v35 }
  0x52   : > { %1881 = vrot.lane.b32.xlu1 %v12769_v36, %s18560_s23 }
  0x53   : > { %1879 = vrot.lane.b32.xlu0 %v12787_v43, %s18560_s23  ;;  %s18659_s23 = smov 12   ;;  %709 = vst.msk [vmem:[#allocation2 + $0x48] sm:$0xf] %vm690_vm1, %v13072_v34 }
  0x56   : > { %2022 = vrot.lane.b32.xlu1 %v12886_v17, %s18564_s26 }
  0x57   : > { %2020 = vrot.lane.b32.xlu0 %v12890_v19, %s18564_s26 }
  0x5a   : > { %2026 = vrot.lane.b32.xlu1 %v10967_v47, %s18564_s26 }
  0x5b   : > { %2024 = vrot.lane.b32.xlu0 %v10966_v52, %s18564_s26  ;;  %s18662_s26 = smov 24  }
  0x5e   : > { %2164 = vrot.lane.b32.xlu1 %v12906_v24, %s18562_s27 }
  0x5f   : > { %2162 = vrot.lane.b32.xlu0 %v12910_v25, %s18562_s27 }
  0x62   : > { %990 = vrot.lane.b32.xlu1 %v12886_v17, %s18657_s16  ;;  %v13011_v17 = vpack.c.bf16 %v13006_v14, %v13006_v14 }
  0x63   : > { %988 = vrot.lane.b32.xlu0 %v12890_v19, %s18657_s16  ;;  %v812_v19 = vrot.slane %v532_v15, 1 }
  0x64   : > { %708 = vst.msk [vmem:[#allocation2 + $0x44] sm:$0xf] %vm690_vm1, %v13011_v17 }
  0x66   : > { %2168 = vrot.lane.b32.xlu1 %v10999_v2, %s18562_s27 }
  0x67   : > { %2166 = vrot.lane.b32.xlu0 %v10998_v7, %s18562_s27  ;;  %s18661_s27 = smov 20  }
  0x6a   : > { %994 = vrot.lane.b32.xlu1 %v10967_v47, %s18657_s16 }
  0x6b   : > { %992 = vrot.lane.b32.xlu0 %v10966_v52, %s18657_s16 }
  0x6e   : > { %1328 = vrot.lane.b32.xlu1 %v12906_v24, %s18658_s0  ;;  %v1134_v24 = vsel %vm1109_vm2, %v1131_v50, %v1133_v16  ;;  %v525_v50 = vld [vmem:[%s12712_s25 + $0x88] sm:$0x3] }
  0x6f   : > { %1326 = vrot.lane.b32.xlu0 %v12910_v25, %s18658_s0  ;;  %v1151_v25 = vrot.slane %v13006_v14, 2  ;;  %v13043_v57 = vpack.c.bf16 %v1134_v24, %v1134_v24  ;;  %v800_v58 = vrot.slane %v525_v50, 1 }
  0x71   : > { %v13053_v40 = vsel %vm1109_vm2, %v1150_v27, %v1151_v25  ;;  %v13162_v27 = vld [vmem:[%s12712_s25 + $0xf8] sm:$0xff] }
  0x72   : > { %1332 = vrot.lane.b32.xlu1 %v10999_v2, %s18658_s0  ;;  %v823_v32 = vrot.slane %v13162_v27, 1 }
  0x73   : > { %1330 = vrot.lane.b32.xlu0 %v10998_v7, %s18658_s0 }
  0x76   : > { %1463 = vrot.lane.b32.xlu1 %v12769_v36, %s18659_s23  ;;  %v796_v36 = vsel %vm771_vm0, %v793_v49, %v795_v13 }
  0x77   : > { %1461 = vrot.lane.b32.xlu0 %v12787_v43, %s18659_s23  ;;  %v813_v43 = vrot.slane %v13006_v14, 1  ;;  %v10969_v22 = vpack.c.bf16 %v796_v36, %v796_v36  ;;  %v13410_v14 = vpack.c.bf16 %v13053_v40, %v13053_v40 }
  0x79   : > { %v13034_v49 = vsel %vm771_vm0, %v812_v19, %v813_v43 }
  0x7a   : > { %1467 = vrot.lane.b32.xlu1 %v12794_v45, %s18659_s23 }
  0x7b   : > { %1465 = vrot.lane.b32.xlu0 %v12805_v51, %s18659_s23 }
  0x7e   : > { %1608 = vrot.lane.b32.xlu1 %v10967_v47, %s18660_s17 }
  0x7f   : > { %1606 = vrot.lane.b32.xlu0 %v10966_v52, %s18660_s17  ;;  %v1138_v52 = vrot.slane %v525_v50, 2  ;;  %v13168_v50 = vpack.c.bf16 %v13162_v27, %v13162_v27 }
  0x81   : > { %v1139_v61 = vsel %vm1109_vm2, %v1136_v59, %v1138_v52  ;;  %712 = vst.msk [vmem:[#allocation2 + $0x54] sm:$0xf] %vm690_vm1, %v13168_v50 }
  0x82   : > { %1612 = vrot.lane.b32.xlu1 %v10969_v22, %s18660_s17  ;;  %v13118_v1 = vpack.c.bf16 %v1139_v61, %v1139_v61 }
  0x83   : > { %1610 = vrot.lane.b32.xlu0 %v10968_v23, %s18660_s17 }
  0x86   : > { %1750 = vrot.lane.b32.xlu1 %v10999_v2, %s18661_s27 }
  0x87   : > { %1748 = vrot.lane.b32.xlu0 %v10998_v7, %s18661_s27 }
  0x8a   : > { %1754 = vrot.lane.b32.xlu1 %v13043_v57, %s18661_s27 }
  0x8b   : > { %1752 = vrot.lane.b32.xlu0 %v13048_v28, %s18661_s27 }
  0x8e   : > { %1885 = vrot.lane.b32.xlu1 %v12794_v45, %s18662_s26  ;;  %v801_v45 = vsel %vm771_vm0, %v798_v56, %v800_v58 }
  0x8f   : > { %1883 = vrot.lane.b32.xlu0 %v12805_v51, %s18662_s26  ;;  %v818_v51 = vrot.slane %v13065_v29, 1  ;;  %v13087_v42 = vpack.c.bf16 %v801_v45, %v801_v45  ;;  %v13499_v29 = vpack.c.bf16 %v13128_v3, %v13128_v3  ;;  %v18665_v3 = vmov 0 }
  0x90   : > { %v18666_v3 = vsel %vm13512_vm3, 4294967295, %v18665_v3 }
  0x91   : > { %v13097_v47 = vsel %vm771_vm0, %v817_v41, %v818_v51  ;;  %18667 = vst [vmem:[#allocation10_spill] sm:$0xff] %v18666_v3 }
  0x92   : > { %1889 = vrot.lane.b32.xlu1 %v12818_v55, %s18662_s26 }
  0x93   : > { %1887 = vrot.lane.b32.xlu0 %v12834_v60, %s18662_s26 }
  0x96   : > { %2030 = vrot.lane.b32.xlu1 %v10969_v22, %s18663_s2 }
  0x97   : > { %2028 = vrot.lane.b32.xlu0 %v10968_v23, %s18663_s2 }
  0x98   : > { %v985_v56 = vpop.permute.xlu1 %984 }
  0x99   : > { %1079 = vst.msk [vmem:[#allocation2 + $0x8] sm:$0xf] %vm1076_vm4, %v985_v56  ;;  %v981_v48 = vpop.permute.xlu0 %980  ;;  %v13195_v56 = vpack.c.bf16 %v12896_v20, %v12896_v20 }
  0x9a   : > { %1077 = vst.msk [vmem:[#allocation2] sm:$0xf] %vm1076_vm4, %v981_v48  ;;  %2034 = vrot.lane.b32.xlu1 %v13087_v42, %s18663_s2 }
  0x9b   : > { %2032 = vrot.lane.b32.xlu0 %v13092_v44, %s18663_s2 }
  0x9c   : > { %v987_v4 = vpop.permute.xlu1 %986 }
  0x9d   : > { %1080 = vst.msk [vmem:[#allocation2 + $0xc] sm:$0xf] %vm1076_vm4, %v987_v4  ;;  %v983_v53 = vpop.permute.xlu0 %982 }
  0x9e   : > { %1078 = vst.msk [vmem:[#allocation2 + $0x4] sm:$0xf] %vm1076_vm4, %v983_v53  ;;  %2172 = vrot.lane.b32.xlu1 %v13043_v57, %s18664_s20  ;;  %v1161_v53 = vrot.slane %v13162_v27, 2 }
  0x9f   : > { %2170 = vrot.lane.b32.xlu0 %v13048_v28, %s18664_s20 }
  0xa0   : > { %v1321_v31 = vpop.permute.xlu1 %1320 }
  0xa1   : > { %1416 = vst.msk [vmem:[#allocation2 + $0x4] sm:$0xf] %vm18568_vm5, %v1321_v31  ;;  %v1319_v37 = vpop.permute.xlu0 %1318 }
  0xa2   : > { %1415 = vst.msk [vmem:[#allocation2] sm:$0xf] %vm18568_vm5, %v1319_v37  ;;  %998 = vrot.lane.b32.xlu1 %v10969_v22, %s18657_s16  ;;  %v528_v22 = vld [vmem:[%s12712_s25 + $0xa0] sm:$0x3] }
  0xa3   : > { %996 = vrot.lane.b32.xlu0 %v10968_v23, %s18657_s16  ;;  %v805_v16 = vrot.slane %v528_v22, 1  ;;  %v1143_v48 = vrot.slane %v528_v22, 2 }
  0xa4   : > { %v1325_v59 = vpop.permute.xlu1 %1324 }
  0xa5   : > { %1418 = vst.msk [vmem:[#allocation2 + $0xc] sm:$0xf] %vm18568_vm5, %v1325_v59  ;;  %v1323_v2 = vpop.permute.xlu0 %1322  ;;  %v1144_v20 = vsel %vm1109_vm2, %v1141_v21, %v1143_v48 }
  0xa6   : > { %1417 = vst.msk [vmem:[#allocation2 + $0x8] sm:$0xf] %vm18568_vm5, %v1323_v2  ;;  %2176 = vrot.lane.b32.xlu1 %v13118_v1, %s18664_s20  ;;  %v13216_v0 = vpack.c.bf16 %v1144_v20, %v1144_v20 }
  0xa7   : > { %2174 = vrot.lane.b32.xlu0 %v13123_v46, %s18664_s20 }
  0xa8   : > { %v1456_v6 = vpop.permute.xlu1 %1455 }
  0xa9   : > { %1551 = vst.msk [vmem:[#allocation2 + $0x4] sm:$0xf] %vm1549_vm6, %v1456_v6  ;;  %v1454_v7 = vpop.permute.xlu0 %1453 }
  0xaa   : > { %1550 = vst.msk [vmem:[#allocation2] sm:$0xf] %vm1549_vm6, %v1454_v7  ;;  %1002 = vrot.lane.b32.xlu1 %v13087_v42, %s18657_s16  ;;  %v13243_v7 = vld [vmem:[%s12712_s25 + $0x110] sm:$0xff] }
  0xab   : > { %1000 = vrot.lane.b32.xlu0 %v13092_v44, %s18657_s16 }
  0xac   : > { %v1460_v12 = vpop.permute.xlu1 %1459 }
  0xad   : > { %1553 = vst.msk [vmem:[#allocation2 + $0xc] sm:$0xf] %vm1549_vm6, %v1460_v12  ;;  %v1458_v13 = vpop.permute.xlu0 %1457  ;;  %v541_v12 = vld [vmem:[%s12712_s25 + $0x108] sm:$0xff] }
  0xae   : > { %1552 = vst.msk [vmem:[#allocation2 + $0x8] sm:$0xf] %vm1549_vm6, %v1458_v13  ;;  %1336 = vrot.lane.b32.xlu1 %v13043_v57, %s18658_s0  ;;  %v538_v57 = vld [vmem:[%s12712_s25 + $0xf0] sm:$0xff]  ;;  %v827_v22 = vrot.slane %v541_v12, 1 }
  0xaf   : > { %1334 = vrot.lane.b32.xlu0 %v13048_v28, %s18658_s0  ;;  %v13170_v58 = vpack.c.bf16 %v538_v57, %v538_v57  ;;  %v822_v45 = vrot.slane %v538_v57, 1  ;;  %v1160_v61 = vrot.slane %v538_v57, 2 }
  0xb0   : > { %v1601_v15 = vpop.permute.xlu1 %1600 }
  0xb1   : > { %1696 = vst.msk [vmem:[#allocation2 + $0x4] sm:$0xf] %vm1694_vm7, %v1601_v15  ;;  %v1599_v36 = vpop.permute.xlu0 %1598  ;;  %v13200_v4 = vsel %vm771_vm0, %v822_v45, %v823_v32  ;;  %v13227_v37 = vsel %vm1109_vm2, %v1160_v61, %v1161_v53  ;;  %v13249_v15 = vpack.c.bf16 %v13243_v7, %v13243_v7 }
  0xb2   : > { %1695 = vst.msk [vmem:[#allocation2] sm:$0xf] %vm1694_vm7, %v1599_v36  ;;  %1340 = vrot.lane.b32.xlu1 %v13118_v1, %s18658_s0  ;;  %v13251_v36 = vpack.c.bf16 %v541_v12, %v541_v12  ;;  %v13618_v27 = vpack.c.bf16 %v13227_v37, %v13227_v37 }
  0xb3   : > { %1338 = vrot.lane.b32.xlu0 %v13123_v46, %s18658_s0  ;;  %711 = vst.msk [vmem:[#allocation2 + $0x50] sm:$0xf] %vm690_vm1, %v13170_v58  ;;  %714 = vst.msk [vmem:[#allocation2 + $0x5c] sm:$0xf] %vm690_vm1, %v13249_v15 }
  0xb4   : > { %v1605_v19 = vpop.permute.xlu1 %1604  ;;  %713 = vst.msk [vmem:[#allocation2 + $0x58] sm:$0xf] %vm690_vm1, %v13251_v36 }
  0xb5   : > { %1698 = vst.msk [vmem:[#allocation2 + $0xc] sm:$0xf] %vm1694_vm7, %v1605_v19  ;;  %v1603_v23 = vpop.permute.xlu0 %1602  ;;  %v828_v19 = vrot.slane %v13243_v7, 1 }
  0xb6   : > { %1697 = vst.msk [vmem:[#allocation2 + $0x8] sm:$0xf] %vm1694_vm7, %v1603_v23  ;;  %1471 = vrot.lane.b32.xlu1 %v12818_v55, %s18659_s23  ;;  %v806_v55 = vsel %vm771_vm0, %v803_v11, %v805_v16 }
  0xb7   : > { %1469 = vrot.lane.b32.xlu0 %v12834_v60, %s18659_s23  ;;  %v13189_v11 = vpack.c.bf16 %v806_v55, %v806_v55  ;;  %v13281_v57 = vsel %vm771_vm0, %v827_v22, %v828_v19 }
  0xb8   : > { %v1743_v24 = vpop.permute.xlu1 %1742 }
  0xb9   : > { %1838 = vst.msk [vmem:[#allocation2 + $0x4] sm:$0xf] %vm1836_vm8, %v1743_v24  ;;  %v1741_v28 = vpop.permute.xlu0 %1740 }
  0xba   : > { %1837 = vst.msk [vmem:[#allocation2] sm:$0xf] %vm1836_vm8, %v1741_v28  ;;  %1475 = vrot.lane.b32.xlu1 %v12867_v8, %s18659_s23 }
  0xbb   : > { %1473 = vrot.lane.b32.xlu0 %v12871_v9, %s18659_s23 }
  0xbc   : > { %v1747_v60 = vpop.permute.xlu1 %1746 }
  0xbd   : > { %1840 = vst.msk [vmem:[#allocation2 + $0xc] sm:$0xf] %vm1836_vm8, %v1747_v60  ;;  %v1745_v41 = vpop.permute.xlu0 %1744 }
  0xbe   : > { %1839 = vst.msk [vmem:[#allocation2 + $0x8] sm:$0xf] %vm1836_vm8, %v1745_v41  ;;  %1616 = vrot.lane.b32.xlu1 %v13087_v42, %s18660_s17 }
  0xbf   : > { %1614 = vrot.lane.b32.xlu0 %v13092_v44, %s18660_s17 }
  0xc0   : > { %v1878_v52 = vpop.permute.xlu1 %1877 }
  0xc1   : > { %1973 = vst.msk [vmem:[#allocation2 + $0x4] sm:$0xf] %vm1971_vm9, %v1878_v52  ;;  %v1876_v42 = vpop.permute.xlu0 %1875  ;;  %v1166_v52 = vrot.slane %v13243_v7, 2 }
  0xc2   : > { %1972 = vst.msk [vmem:[#allocation2] sm:$0xf] %vm1971_vm9, %v1876_v42  ;;  %1620 = vrot.lane.b32.xlu1 %v13189_v11, %s18660_s17  ;;  %v1165_v42 = vrot.slane %v541_v12, 2  ;;  %v13350_v12 = vld [vmem:[%s12712_s25 + $0x128] sm:$0xff] }
  0xc3   : > { %1618 = vrot.lane.b32.xlu0 %v13195_v56, %s18660_s17 }
  0xc4   : > { %v1882_v44 = vpop.permute.xlu1 %1881 }
  0xc5   : > { %1975 = vst.msk [vmem:[#allocation2 + $0xc] sm:$0xf] %vm1971_vm9, %v1882_v44  ;;  %v1880_v31 = vpop.permute.xlu0 %1879 }
  0xc6   : > { %1974 = vst.msk [vmem:[#allocation2 + $0x8] sm:$0xf] %vm1971_vm9, %v1880_v31  ;;  %1758 = vrot.lane.b32.xlu1 %v13118_v1, %s18661_s27  ;;  %v13316_v31 = vsel %vm1109_vm2, %v1165_v42, %v1166_v52 }
  0xc7   : > { %1756 = vrot.lane.b32.xlu0 %v13123_v46, %s18661_s27  ;;  %v531_v46 = vld [vmem:[%s12712_s25 + $0xb8] sm:$0x3]  ;;  %v13707_v7 = vpack.c.bf16 %v13316_v31, %v13316_v31 }
  0xc8   : > { %v2023_v21 = vpop.permute.xlu1 %2022  ;;  %v810_v2 = vrot.slane %v531_v46, 1 }
  0xc9   : > { %2118 = vst.msk [vmem:[#allocation2 + $0x4] sm:$0xf] %vm2116_vm10, %v2023_v21  ;;  %v2021_v1 = vpop.permute.xlu0 %2020 }
  0xca   : > { %2117 = vst.msk [vmem:[#allocation2] sm:$0xf] %vm2116_vm10, %v2021_v1  ;;  %1762 = vrot.lane.b32.xlu1 %v13216_v0, %s18661_s27 }
  0xcb   : > { %1760 = vrot.lane.b32.xlu0 %v13222_v5, %s18661_s27 }
  0xcc   : > { %v2027_v26 = vpop.permute.xlu1 %2026 }
  0xcd   : > { %2120 = vst.msk [vmem:[#allocation2 + $0xc] sm:$0xf] %vm2116_vm10, %v2027_v26  ;;  %v2025_v59 = vpop.permute.xlu0 %2024 }
  0xce   : > { %2119 = vst.msk [vmem:[#allocation2 + $0x8] sm:$0xf] %vm2116_vm10, %v2025_v59  ;;  %1893 = vrot.lane.b32.xlu1 %v12867_v8, %s18662_s26  ;;  %v811_v8 = vsel %vm771_vm0, %v808_v30, %v810_v2  ;;  %v13276_v30 = vpack.c.bf16 %v12962_v54, %v12962_v54  ;;  %v1148_v54 = vrot.slane %v531_v46, 2  ;;  %v534_v2 = vld [vmem:[%s12712_s25 + $0xd0] sm:$0x3] }
  0xcf   : > { %1891 = vrot.lane.b32.xlu0 %v12871_v9, %s18662_s26  ;;  %v13270_v16 = vpack.c.bf16 %v811_v8, %v811_v8 }
  0xd0   : > { %v2165_v6 = vpop.permute.xlu1 %2164  ;;  %v1149_v41 = vsel %vm1109_vm2, %v1146_v63, %v1148_v54  ;;  %v1153_v54 = vrot.slane %v534_v2, 2 }
  0xd1   : > { %2260 = vst.msk [vmem:[#allocation2 + $0x4] sm:$0xf] %vm2258_vm11, %v2165_v6  ;;  %v2163_v13 = vpop.permute.xlu0 %2162  ;;  %v13304_v61 = vpack.c.bf16 %v1149_v41, %v1149_v41 }
  0xd2   : > { %2259 = vst.msk [vmem:[#allocation2] sm:$0xf] %vm2258_vm11, %v2163_v13  ;;  %1897 = vrot.lane.b32.xlu1 %v12934_v38, %s18662_s26  ;;  %v544_v13 = vld [vmem:[%s12712_s25 + $0x120] sm:$0xff] }
  0xd3   : > { %1895 = vrot.lane.b32.xlu0 %v12936_v39, %s18662_s26  ;;  %v13358_v22 = vpack.c.bf16 %v544_v13, %v544_v13 }
  0xd4   : > { %v991_v9 = vpop.permute.xlu1 %990 }
  0xd5   : > { %1082 = vst.msk [vmem:[#allocation2 + $0x14] sm:$0xf] %vm1076_vm4, %v991_v9  ;;  %v989_v23 = vpop.permute.xlu0 %988  ;;  %v13356_v9 = vpack.c.bf16 %v13350_v12, %v13350_v12 }
  0xd6   : > { %1081 = vst.msk [vmem:[#allocation2 + $0x10] sm:$0xf] %vm1076_vm4, %v989_v23  ;;  %2038 = vrot.lane.b32.xlu1 %v13189_v11, %s18663_s2  ;;  %v833_v23 = vrot.slane %v13350_v12, 1 }
  0xd7   : > { %2036 = vrot.lane.b32.xlu0 %v13195_v56, %s18663_s2  ;;  %716 = vst.msk [vmem:[#allocation2 + $0x64] sm:$0xf] %vm690_vm1, %v13356_v9  ;;  %715 = vst.msk [vmem:[#allocation2 + $0x60] sm:$0xf] %vm690_vm1, %v13358_v22 }
  0xd8   : > { %v2169_v24 = vpop.permute.xlu1 %2168 }
  0xd9   : > { %2262 = vst.msk [vmem:[#allocation2 + $0xc] sm:$0xf] %vm2258_vm11, %v2169_v24  ;;  %v2167_v28 = vpop.permute.xlu0 %2166  ;;  %v12015_v55 = vld [vmem:[#allocation2] sm:$0xff]   ;;  %v832_v24 = vrot.slane %v544_v13, 1 }
  0xda   : > { %2261 = vst.msk [vmem:[#allocation2 + $0x8] sm:$0xf] %vm2258_vm11, %v2167_v28  ;;  %2042 = vrot.lane.b32.xlu1 %v13270_v16, %s18663_s2  ;;  %11590 = vmatprep.mubr.msk.bf16.mxu0 %vm2430_vm12, %v12015_v55 }
  0xdb   : > { %2040 = vrot.lane.b32.xlu0 %v13276_v30, %s18663_s2 }
  0xdc   : > { %v995_v60 = vpop.permute.xlu1 %994 }
  0xdd   : > { %1084 = vst.msk [vmem:[#allocation2 + $0x1c] sm:$0xf] %vm1076_vm4, %v995_v60  ;;  %v993_v45 = vpop.permute.xlu0 %992 }
  0xde   : > { %1083 = vst.msk [vmem:[#allocation2 + $0x18] sm:$0xf] %vm1076_vm4, %v993_v45  ;;  %2180 = vrot.lane.b32.xlu1 %v13216_v0, %s18664_s20  ;;  %v13388_v45 = vsel %vm771_vm0, %v832_v24, %v833_v23 }
  0xdf   : > { %2178 = vrot.lane.b32.xlu0 %v13222_v5, %s18664_s20 }
  0xe0   : > { %v1329_v48 = vpop.permute.xlu1 %1328 }
  0xe1   : > { %1420 = vst.msk [vmem:[#allocation2 + $0x14] sm:$0xf] %vm18568_vm5, %v1329_v48  ;;  %v1327_v20 = vpop.permute.xlu0 %1326  ;;  %v12017_v44 = vld [vmem:[#allocation2 + $0x8] sm:$0xff]   ;;  %v1170_v48 = vrot.slane %v544_v13, 2 }
  0xe2   : > { %1419 = vst.msk [vmem:[#allocation2 + $0x10] sm:$0xf] %vm18568_vm5, %v1327_v20  ;;  %1006 = vrot.lane.b32.xlu1 %v13189_v11, %s18657_s16  ;;  %11591 = vmatmul.mubr.msk.bf16.vlgmr.msra.gmra.mxu0 %vm2430_vm12, %v12017_v44 }
  0xe3   : > { %1004 = vrot.lane.b32.xlu0 %v13195_v56, %s18657_s16 }
  0xe4   : > { %v1333_v63 = vpop.permute.xlu1 %1332 }
  0xe5   : > { %1422 = vst.msk [vmem:[#allocation2 + $0x1c] sm:$0xf] %vm18568_vm5, %v1333_v63  ;;  %v1331_v11 = vpop.permute.xlu0 %1330 }
  0xe6   : > { %1421 = vst.msk [vmem:[#allocation2 + $0x18] sm:$0xf] %vm18568_vm5, %v1331_v11  ;;  %2184 = vrot.lane.b32.xlu1 %v13304_v61, %s18664_s20 }
  0xe7   : > { %2182 = vrot.lane.b32.xlu0 %v13311_v33, %s18664_s20 }
  0xe8   : > { %v1464_v56 = vpop.permute.xlu1 %1463 }
  0xe9   : > { %1555 = vst.msk [vmem:[#allocation2 + $0x14] sm:$0xf] %vm1549_vm6, %v1464_v56  ;;  %v1462_v10 = vpop.permute.xlu0 %1461 }
  0xea   : > { %1554 = vst.msk [vmem:[#allocation2 + $0x10] sm:$0xf] %vm1549_vm6, %v1462_v10  ;;  %1010 = vrot.lane.b32.xlu1 %v13270_v16, %s18657_s16  ;;  %v13431_v10 = vld [vmem:[%s12712_s25 + $0x140] sm:$0xff] }
  0xeb   : > { %1008 = vrot.lane.b32.xlu0 %v13276_v30, %s18657_s16 }
  0xec   : > { %v1468_v21 = vpop.permute.xlu1 %1467 }
  0xed   : > { %1557 = vst.msk [vmem:[#allocation2 + $0x1c] sm:$0xf] %vm1549_vm6, %v1468_v21  ;;  %v1466_v1 = vpop.permute.xlu0 %1465  ;;  %v547_v21 = vld [vmem:[%s12712_s25 + $0x138] sm:$0xff] }
  0xee   : > { %1556 = vst.msk [vmem:[#allocation2 + $0x18] sm:$0xf] %vm1549_vm6, %v1466_v1  ;;  %1344 = vrot.lane.b32.xlu1 %v13216_v0, %s18658_s0 }
  0xef   : > { %1342 = vrot.lane.b32.xlu0 %v13222_v5, %s18658_s0  ;;  %v815_v5 = vrot.slane %v534_v2, 1  ;;  %v837_v2 = vrot.slane %v547_v21, 1 }
  0xf0   : > { %v1609_v26 = vpop.permute.xlu1 %1608 }
  0xf1   : > { %1700 = vst.msk [vmem:[#allocation2 + $0x14] sm:$0xf] %vm1694_vm7, %v1609_v26  ;;  %v1607_v46 = vpop.permute.xlu0 %1606  ;;  %v13437_v26 = vpack.c.bf16 %v13431_v10, %v13431_v10 }
  0xf2   : > { %1699 = vst.msk [vmem:[#allocation2 + $0x10] sm:$0xf] %vm1694_vm7, %v1607_v46  ;;  %1348 = vrot.lane.b32.xlu1 %v13304_v61, %s18658_s0  ;;  %v13439_v46 = vpack.c.bf16 %v547_v21, %v547_v21 }
  0xf3   : > { %1346 = vrot.lane.b32.xlu0 %v13311_v33, %s18658_s0  ;;  %718 = vst.msk [vmem:[#allocation2 + $0x6c] sm:$0xf] %vm690_vm1, %v13437_v26 }
  0xf4   : > { %v1613_v59 = vpop.permute.xlu1 %1612  ;;  %717 = vst.msk [vmem:[#allocation2 + $0x68] sm:$0xf] %vm690_vm1, %v13439_v46 }
  0xf5   : > { %1702 = vst.msk [vmem:[#allocation2 + $0x1c] sm:$0xf] %vm1694_vm7, %v1613_v59  ;;  %v1611_v0 = vpop.permute.xlu0 %1610  ;;  %v838_v59 = vrot.slane %v13431_v10, 1 }
  0xf6   : > { %1701 = vst.msk [vmem:[#allocation2 + $0x18] sm:$0xf] %vm1694_vm7, %v1611_v0  ;;  %1479 = vrot.lane.b32.xlu1 %v12934_v38, %s18659_s23  ;;  %v816_v38 = vsel %vm771_vm0, %v813_v43, %v815_v5  ;;  %v13383_v43 = vpack.c.bf16 %v13034_v49, %v13034_v49  ;;  %v1154_v49 = vsel %vm1109_vm2, %v1151_v25, %v1153_v54 }
  0xf7   : > { %1477 = vrot.lane.b32.xlu0 %v12936_v39, %s18659_s23  ;;  %v13377_v55 = vpack.c.bf16 %v816_v38, %v816_v38  ;;  %v13404_v20 = vpack.c.bf16 %v1154_v49, %v1154_v49  ;;  %v13469_v13 = vsel %vm771_vm0, %v837_v2, %v838_v59 }
  0xf8   : > { %v1751_v6 = vpop.permute.xlu1 %1750 }
  0xf9   : > { %1842 = vst.msk [vmem:[#allocation2 + $0x14] sm:$0xf] %vm1836_vm8, %v1751_v6  ;;  %v1749_v8 = vpop.permute.xlu0 %1748 }
  0xfa   : > { %1841 = vst.msk [vmem:[#allocation2 + $0x10] sm:$0xf] %vm1836_vm8, %v1749_v8  ;;  %1483 = vrot.lane.b32.xlu1 %v13011_v17, %s18659_s23 }
  0xfb   : > { %1481 = vrot.lane.b32.xlu0 %v13013_v18, %s18659_s23 }
  0xfc   : > { %v1755_v39 = vpop.permute.xlu1 %1754 }
  0xfd   : > { %1844 = vst.msk [vmem:[#allocation2 + $0x1c] sm:$0xf] %vm1836_vm8, %v1755_v39  ;;  %v1753_v28 = vpop.permute.xlu0 %1752 }
  0xfe   : > { %1843 = vst.msk [vmem:[#allocation2 + $0x18] sm:$0xf] %vm1836_vm8, %v1753_v28  ;;  %1624 = vrot.lane.b32.xlu1 %v13270_v16, %s18660_s17 }
  0xff   : > { %1622 = vrot.lane.b32.xlu0 %v13276_v30, %s18660_s17  ;;  %v1171_v30 = vrot.slane %v13350_v12, 2 }
 0x100   : > { %v1886_v60 = vpop.permute.xlu1 %1885 }
 0x101   : > { %1977 = vst.msk [vmem:[#allocation2 + $0x14] sm:$0xf] %vm1971_vm9, %v1886_v60  ;;  %v1884_v41 = vpop.permute.xlu0 %1883  ;;  %v13415_v44 = vsel %vm1109_vm2, %v1170_v48, %v1171_v30  ;;  %v1176_v60 = vrot.slane %v13431_v10, 2 }
 0x102   : > { %1976 = vst.msk [vmem:[#allocation2 + $0x10] sm:$0xf] %vm1971_vm9, %v1884_v41  ;;  %1628 = vrot.lane.b32.xlu1 %v13377_v55, %s18660_s17  ;;  %v1175_v41 = vrot.slane %v547_v21, 2  ;;  %v13793_v12 = vpack.c.bf16 %v13415_v44, %v13415_v44 }
 0x103   : > { %1626 = vrot.lane.b32.xlu0 %v13383_v43, %s18660_s17 }
 0x104   : > { %v1890_v16 = vpop.permute.xlu1 %1889 }
 0x105   : > { %1979 = vst.msk [vmem:[#allocation2 + $0x1c] sm:$0xf] %vm1971_vm9, %v1890_v16  ;;  %v1888_v42 = vpop.permute.xlu0 %1887 }
 0x106   : > { %1978 = vst.msk [vmem:[#allocation2 + $0x18] sm:$0xf] %vm1971_vm9, %v1888_v42  ;;  %1766 = vrot.lane.b32.xlu1 %v13304_v61, %s18661_s27  ;;  %v13504_v42 = vsel %vm1109_vm2, %v1175_v41, %v1176_v60 }
 0x107   : > { %1764 = vrot.lane.b32.xlu0 %v13311_v33, %s18661_s27  ;;  %v537_v33 = vld [vmem:[%s12712_s25 + $0xe8] sm:$0x3]  ;;  %v13856_v10 = vpack.c.bf16 %v13504_v42, %v13504_v42  ;;  %v3415_v42 = vld [vmem:[#allocation3 + $0x3c] sm:$0x1] }
 0x108   : > { %v2031_v25 = vpop.permute.xlu1 %2030  ;;  %v820_v11 = vrot.slane %v537_v33, 1 }
 0x109   : > { %2122 = vst.msk [vmem:[#allocation2 + $0x14] sm:$0xf] %vm2116_vm10, %v2031_v25  ;;  %v2029_v61 = vpop.permute.xlu0 %2028  ;;  %v3406_v25 = vld [vmem:[#allocation3 + $0x18] sm:$0x1] }
 0x10a   : > { %2121 = vst.msk [vmem:[#allocation2 + $0x10] sm:$0xf] %vm2116_vm10, %v2029_v61  ;;  %1770 = vrot.lane.b32.xlu1 %v13404_v20, %s18661_s27  ;;  %v3407_v61 = vsel %vm13512_vm3, 0, %v3406_v25 }
 0x10b   : > { %1768 = vrot.lane.b32.xlu0 %v13410_v14, %s18661_s27  ;;  %3408 = vst [vmem:[#allocation3 + $0x18] sm:$0x1] %v3407_v61 }
 0x10c   : > { %v2035_v40 = vpop.permute.xlu1 %2034 }
 0x10d   : > { %2124 = vst.msk [vmem:[#allocation2 + $0x1c] sm:$0xf] %vm2116_vm10, %v2035_v40  ;;  %v2033_v63 = vpop.permute.xlu0 %2032 }
 0x10e   : > { %2123 = vst.msk [vmem:[#allocation2 + $0x18] sm:$0xf] %vm2116_vm10, %v2033_v63  ;;  %1901 = vrot.lane.b32.xlu1 %v13011_v17, %s18662_s26  ;;  %v821_v17 = vsel %vm771_vm0, %v818_v51, %v820_v11  ;;  %v13464_v51 = vpack.c.bf16 %v13097_v47, %v13097_v47  ;;  %v1158_v47 = vrot.slane %v537_v33, 2  ;;  %v18668_v63 = vmov 0  ;;  %v3462_v11 = vld [vmem:[#allocation3 + $0x20] sm:$0x1] }
 0x10f   : > { %1899 = vrot.lane.b32.xlu0 %v13013_v18, %s18662_s26  ;;  %v13458_v5 = vpack.c.bf16 %v821_v17, %v821_v17 }
 0x110   : > { %v2173_v56 = vpop.permute.xlu1 %2172  ;;  %v1159_v28 = vsel %vm1109_vm2, %v1156_v62, %v1158_v47 }
 0x111   : > { %2264 = vst.msk [vmem:[#allocation2 + $0x14] sm:$0xf] %vm2258_vm11, %v2173_v56  ;;  %v2171_v1 = vpop.permute.xlu0 %2170  ;;  %v13492_v48 = vpack.c.bf16 %v1159_v28, %v1159_v28 }
 0x112   : > { %2263 = vst.msk [vmem:[#allocation2 + $0x10] sm:$0xf] %vm2258_vm11, %v2171_v1  ;;  %1905 = vrot.lane.b32.xlu1 %v13070_v35, %s18662_s26 }
 0x113   : > { %1903 = vrot.lane.b32.xlu0 %v13072_v34, %s18662_s26 }
 0x114   : > { %v999_v18 = vpop.permute.xlu1 %998 }
 0x115   : > { %1086 = vst.msk [vmem:[#allocation2 + $0x24] sm:$0xf] %vm1076_vm4, %v999_v18  ;;  %v997_v0 = vpop.permute.xlu0 %996  ;;  %v3459_v18 = vld [vmem:[#allocation3 + $0x14] sm:$0x1] }
 0x116   : > { %1085 = vst.msk [vmem:[#allocation2 + $0x20] sm:$0xf] %vm1076_vm4, %v997_v0  ;;  %2046 = vrot.lane.b32.xlu1 %v13377_v55, %s18663_s2 }
 0x117   : > { %2044 = vrot.lane.b32.xlu0 %v13383_v43, %s18663_s2 }
 0x118   : > { %v2177_v6 = vpop.permute.xlu1 %2176 }
 0x119   : > { %2266 = vst.msk [vmem:[#allocation2 + $0x1c] sm:$0xf] %vm2258_vm11, %v2177_v6  ;;  %v2175_v8 = vpop.permute.xlu0 %2174  ;;  %v12018_v38 = vld [vmem:[#allocation2 + $0x10] sm:$0xff]  }
 0x11a   : > { %2265 = vst.msk [vmem:[#allocation2 + $0x18] sm:$0xf] %vm2258_vm11, %v2175_v8  ;;  %2050 = vrot.lane.b32.xlu1 %v13458_v5, %s18663_s2  ;;  %11594 = vmatprep.mubr.msk.bf16.mxu0 %vm2430_vm12, %v12018_v38 }
 0x11b   : > { %2048 = vrot.lane.b32.xlu0 %v13464_v51, %s18663_s2 }
 0x11c   : > { %v1003_v39 = vpop.permute.xlu1 %1002 }
 0x11d   : > { %1088 = vst.msk [vmem:[#allocation2 + $0x2c] sm:$0xf] %vm1076_vm4, %v1003_v39  ;;  %v1001_v24 = vpop.permute.xlu0 %1000  ;;  %v13558_v39 = vld [vmem:[%s12712_s25 + $0x158] sm:$0xff] }
 0x11e   : > { %1087 = vst.msk [vmem:[#allocation2 + $0x28] sm:$0xf] %vm1076_vm4, %v1001_v24  ;;  %2188 = vrot.lane.b32.xlu1 %v13404_v20, %s18664_s20  ;;  %v550_v24 = vld [vmem:[%s12712_s25 + $0x150] sm:$0xff] }
 0x11f   : > { %2186 = vrot.lane.b32.xlu0 %v13410_v14, %s18664_s20  ;;  %v13566_v41 = vpack.c.bf16 %v550_v24, %v550_v24 }
 0x120   : > { %v1337_v54 = vpop.permute.xlu1 %1336 }
 0x121   : > { %1424 = vst.msk [vmem:[#allocation2 + $0x24] sm:$0xf] %vm18568_vm5, %v1337_v54  ;;  %v1335_v49 = vpop.permute.xlu0 %1334  ;;  %v12019_v16 = vld [vmem:[#allocation2 + $0x18] sm:$0xff]   ;;  %v13564_v54 = vpack.c.bf16 %v13558_v39, %v13558_v39 }
 0x122   : > { %1423 = vst.msk [vmem:[#allocation2 + $0x20] sm:$0xf] %vm18568_vm5, %v1335_v49  ;;  %1014 = vrot.lane.b32.xlu1 %v13377_v55, %s18657_s16  ;;  %11595 = vmatmul.mubr.msk.bf16.gmra.mxu0 %vm2430_vm12, %v12019_v16  ;;  %v843_v49 = vrot.slane %v13558_v39, 1  ;;  %v842_v16 = vrot.slane %v550_v24, 1 }
 0x123   : > { %1012 = vrot.lane.b32.xlu0 %v13383_v43, %s18657_s16  ;;  %v3403_v43 = vld [vmem:[#allocation3 + $0xc] sm:$0x1]  ;;  %720 = vst.msk [vmem:[#allocation2 + $0x74] sm:$0xf] %vm690_vm1, %v13564_v54  ;;  %719 = vst.msk [vmem:[#allocation2 + $0x70] sm:$0xf] %vm690_vm1, %v13566_v41 }
 0x124   : > { %v1341_v62 = vpop.permute.xlu1 %1340  ;;  %v3404_v40 = vsel %vm13512_vm3, 0, %v3403_v43  ;;  %v13596_v61 = vsel %vm771_vm0, %v842_v16, %v843_v49 }
 0x125   : > { %1426 = vst.msk [vmem:[#allocation2 + $0x2c] sm:$0xf] %vm18568_vm5, %v1341_v62  ;;  %v1339_v55 = vpop.permute.xlu0 %1338  ;;  %3405 = vst [vmem:[#allocation3 + $0xc] sm:$0x1] %v3404_v40 }
 0x126   : > { %1425 = vst.msk [vmem:[#allocation2 + $0x28] sm:$0xf] %vm18568_vm5, %v1339_v55  ;;  %2192 = vrot.lane.b32.xlu1 %v13492_v48, %s18664_s20  ;;  %vm13524_vm5 = vmand %vm3397_vm13, %vm3454_vm15 }
 0x127   : > { %2190 = vrot.lane.b32.xlu0 %v13499_v29, %s18664_s20  ;;  %v18669_v63 = vsel %vm13524_vm5, 4294967295, %v18668_v63  ;;  %v3463_v21 = vsel %vm13524_vm5, 0, %v3462_v11  ;;  %v3460_v2 = vsel %vm13524_vm5, 0, %v3459_v18 }
 0x128   : > { %v1472_v33 = vpop.permute.xlu1 %1471  ;;  %18670 = vst [vmem:[#allocation11_spill] sm:$0xff] %v18669_v63  ;;  %3464 = vst [vmem:[#allocation3 + $0x20] sm:$0x1] %v3463_v21 }
 0x129   : > { %1559 = vst.msk [vmem:[#allocation2 + $0x24] sm:$0xf] %vm1549_vm6, %v1472_v33  ;;  %v1470_v56 = vpop.permute.xlu0 %1469  ;;  %3461 = vst [vmem:[#allocation3 + $0x14] sm:$0x1] %v3460_v2  ;;  %v1180_v33 = vrot.slane %v550_v24, 2  ;;  %v13639_v2 = vld [vmem:[%s12712_s25 + $0x170] sm:$0xff] }
 0x12a   : > { %1558 = vst.msk [vmem:[#allocation2 + $0x20] sm:$0xf] %vm1549_vm6, %v1470_v56  ;;  %1018 = vrot.lane.b32.xlu1 %v13458_v5, %s18657_s16 }
 0x12b   : > { %1016 = vrot.lane.b32.xlu0 %v13464_v51, %s18657_s16 }
 0x12c   : > { %v1476_v1 = vpop.permute.xlu1 %1475 }
 0x12d   : > { %1561 = vst.msk [vmem:[#allocation2 + $0x2c] sm:$0xf] %vm1549_vm6, %v1476_v1  ;;  %v1474_v17 = vpop.permute.xlu0 %1473 }
 0x12e   : > { %1560 = vst.msk [vmem:[#allocation2 + $0x28] sm:$0xf] %vm1549_vm6, %v1474_v17  ;;  %1352 = vrot.lane.b32.xlu1 %v13404_v20, %s18658_s0 }
 0x12f   : > { %1350 = vrot.lane.b32.xlu0 %v13410_v14, %s18658_s0  ;;  %v540_v14 = vld [vmem:[%s12712_s25 + $0x100] sm:$0x3] }
 0x130   : > { %v1617_v0 = vpop.permute.xlu1 %1616  ;;  %v825_v38 = vrot.slane %v540_v14, 1  ;;  %v1163_v25 = vrot.slane %v540_v14, 2 }
 0x131   : > { %1704 = vst.msk [vmem:[#allocation2 + $0x24] sm:$0xf] %vm1694_vm7, %v1617_v0  ;;  %v1615_v6 = vpop.permute.xlu0 %1614  ;;  %v553_v0 = vld [vmem:[%s12712_s25 + $0x168] sm:$0xff] }
 0x132   : > { %1703 = vst.msk [vmem:[#allocation2 + $0x20] sm:$0xf] %vm1694_vm7, %v1615_v6  ;;  %1356 = vrot.lane.b32.xlu1 %v13492_v48, %s18658_s0  ;;  %v13647_v14 = vpack.c.bf16 %v553_v0, %v553_v0 }
 0x133   : > { %1354 = vrot.lane.b32.xlu0 %v13499_v29, %s18658_s0 }
 0x134   : > { %v1621_v20 = vpop.permute.xlu1 %1620  ;;  %721 = vst.msk [vmem:[#allocation2 + $0x78] sm:$0xf] %vm690_vm1, %v13647_v14 }
 0x135   : > { %1706 = vst.msk [vmem:[#allocation2 + $0x2c] sm:$0xf] %vm1694_vm7, %v1621_v20  ;;  %v1619_v8 = vpop.permute.xlu0 %1618  ;;  %v13645_v20 = vpack.c.bf16 %v13639_v2, %v13639_v2 }
 0x136   : > { %1705 = vst.msk [vmem:[#allocation2 + $0x28] sm:$0xf] %vm1694_vm7, %v1619_v8  ;;  %1487 = vrot.lane.b32.xlu1 %v13070_v35, %s18659_s23  ;;  %v826_v35 = vsel %vm771_vm0, %v823_v32, %v825_v38  ;;  %v13591_v32 = vpack.c.bf16 %v13200_v4, %v13200_v4  ;;  %v1164_v4 = vsel %vm1109_vm2, %v1161_v53, %v1163_v25  ;;  %v848_v8 = vrot.slane %v13639_v2, 1 }
 0x137   : > { %1485 = vrot.lane.b32.xlu0 %v13072_v34, %s18659_s23  ;;  %v13585_v55 = vpack.c.bf16 %v826_v35, %v826_v35  ;;  %v13612_v56 = vpack.c.bf16 %v1164_v4, %v1164_v4  ;;  %722 = vst.msk [vmem:[#allocation2 + $0x7c] sm:$0xf] %vm690_vm1, %v13645_v20  ;;  %v847_v38 = vrot.slane %v553_v0, 1  ;;  %v1186_v4 = vrot.slane %v13639_v2, 2 }
 0x138   : > { %v1759_v47 = vpop.permute.xlu1 %1758  ;;  %vm18671_vm1 = vcmask 93248  }
 0x139   : > { %1846 = vst.msk [vmem:[#allocation2 + $0x24] sm:$0xf] %vm1836_vm8, %v1759_v47  ;;  %v1757_v28 = vpop.permute.xlu0 %1756  ;;  %v13677_v35 = vsel %vm771_vm0, %v847_v38, %v848_v8  ;;  %vm18672_vm13 = vmmov %vm18671_vm1 }
 0x13a   : > { %1845 = vst.msk [vmem:[#allocation2 + $0x20] sm:$0xf] %vm1836_vm8, %v1757_v28  ;;  %1491 = vrot.lane.b32.xlu1 %v13168_v50, %s18659_s23 }
 0x13b   : > { %1489 = vrot.lane.b32.xlu0 %v13170_v58, %s18659_s23 }
 0x13c   : > { %v1763_v34 = vpop.permute.xlu1 %1762 }
 0x13d   : > { %1848 = vst.msk [vmem:[#allocation2 + $0x2c] sm:$0xf] %vm1836_vm8, %v1763_v34  ;;  %v1761_v62 = vpop.permute.xlu0 %1760 }
 0x13e   : > { %1847 = vst.msk [vmem:[#allocation2 + $0x28] sm:$0xf] %vm1836_vm8, %v1761_v62  ;;  %1632 = vrot.lane.b32.xlu1 %v13458_v5, %s18660_s17 }
 0x13f   : > { %1630 = vrot.lane.b32.xlu0 %v13464_v51, %s18660_s17  ;;  %v1181_v51 = vrot.slane %v13558_v39, 2 }
 0x140   : > { %v1894_v43 = vpop.permute.xlu1 %1893 }
 0x141   : > { %1981 = vst.msk [vmem:[#allocation2 + $0x24] sm:$0xf] %vm1971_vm9, %v1894_v43  ;;  %v1892_v40 = vpop.permute.xlu0 %1891  ;;  %v13623_v21 = vsel %vm1109_vm2, %v1180_v33, %v1181_v51 }
 0x142   : > { %1980 = vst.msk [vmem:[#allocation2 + $0x20] sm:$0xf] %vm1971_vm9, %v1892_v40  ;;  %1636 = vrot.lane.b32.xlu1 %v13585_v55, %s18660_s17  ;;  %v13937_v39 = vpack.c.bf16 %v13623_v21, %v13623_v21 }
 0x143   : > { %1634 = vrot.lane.b32.xlu0 %v13591_v32, %s18660_s17 }
 0x144   : > { %v1898_v5 = vpop.permute.xlu1 %1897 }
 0x145   : > { %1983 = vst.msk [vmem:[#allocation2 + $0x2c] sm:$0xf] %vm1971_vm9, %v1898_v5  ;;  %v1896_v11 = vpop.permute.xlu0 %1895  ;;  %v1185_v5 = vrot.slane %v553_v0, 2 }
 0x146   : > { %1982 = vst.msk [vmem:[#allocation2 + $0x28] sm:$0xf] %vm1971_vm9, %v1896_v11  ;;  %1774 = vrot.lane.b32.xlu1 %v13492_v48, %s18661_s27 }
 0x147   : > { %1772 = vrot.lane.b32.xlu0 %v13499_v29, %s18661_s27  ;;  %v543_v29 = vld [vmem:[%s12712_s25 + $0x118] sm:$0x3] }
 0x148   : > { %v2039_v53 = vpop.permute.xlu1 %2038  ;;  %v830_v17 = vrot.slane %v543_v29, 1 }
 0x149   : > { %2126 = vst.msk [vmem:[#allocation2 + $0x24] sm:$0xf] %vm2116_vm10, %v2039_v53  ;;  %v2037_v48 = vpop.permute.xlu0 %2036 }
 0x14a   : > { %2125 = vst.msk [vmem:[#allocation2 + $0x20] sm:$0xf] %vm2116_vm10, %v2037_v48  ;;  %1778 = vrot.lane.b32.xlu1 %v13612_v56, %s18661_s27  ;;  %v3412_v48 = vld [vmem:[#allocation3 + $0x30] sm:$0x1] }
 0x14b   : > { %1776 = vrot.lane.b32.xlu0 %v13618_v27, %s18661_s27 }
 0x14c   : > { %v2043_v37 = vpop.permute.xlu1 %2042 }
 0x14d   : > { %2128 = vst.msk [vmem:[#allocation2 + $0x2c] sm:$0xf] %vm2116_vm10, %v2043_v37  ;;  %v2041_v1 = vpop.permute.xlu0 %2040  ;;  %v13712_v37 = vsel %vm1109_vm2, %v1185_v5, %v1186_v4 }
 0x14e   : > { %2127 = vst.msk [vmem:[#allocation2 + $0x28] sm:$0xf] %vm2116_vm10, %v2041_v1  ;;  %1909 = vrot.lane.b32.xlu1 %v13168_v50, %s18662_s26  ;;  %v831_v50 = vsel %vm771_vm0, %v828_v19, %v830_v17  ;;  %v13672_v19 = vpack.c.bf16 %v13281_v57, %v13281_v57  ;;  %v1168_v57 = vrot.slane %v543_v29, 2  ;;  %v3413_v29 = vsel %vm13512_vm3, 0, %v3412_v48  ;;  %v3468_v1 = vld [vmem:[#allocation3 + $0x38] sm:$0x1] }
 0x14f   : > { %1907 = vrot.lane.b32.xlu0 %v13170_v58, %s18662_s26  ;;  %v13666_v24 = vpack.c.bf16 %v831_v50, %v831_v50  ;;  %3414 = vst [vmem:[#allocation3 + $0x30] sm:$0x1] %v3413_v29  ;;  %v3469_v0 = vsel %vm13524_vm5, 0, %v3468_v1  ;;  %v549_v48 = vld [vmem:[%s12712_s25 + $0x148] sm:$0x3]  ;;  %v13827_v1 = vpack.c.bf16 %v13469_v13, %v13469_v13  ;;  %v14000_v2 = vpack.c.bf16 %v13712_v37, %v13712_v37 }
 0x150   : > { %v2181_v18 = vpop.permute.xlu1 %2180  ;;  %v1169_v43 = vsel %vm1109_vm2, %v1166_v52, %v1168_v57  ;;  %3470 = vst [vmem:[#allocation3 + $0x38] sm:$0x1] %v3469_v0  ;;  %v840_v44 = vrot.slane %v549_v48, 1  ;;  %v1178_v0 = vrot.slane %v549_v48, 2  ;;  %v13916_v48 = vpack.c.bf16 %v13596_v61, %v13596_v61  ;;  %v3421_v37 = vld [vmem:[#allocation3 + $0x54] sm:$0x1] }
 0x151   : > { %2268 = vst.msk [vmem:[#allocation2 + $0x24] sm:$0xf] %vm2258_vm11, %v2181_v18  ;;  %v2179_v6 = vpop.permute.xlu0 %2178  ;;  %v13700_v53 = vpack.c.bf16 %v1169_v43, %v1169_v43 }
 0x152   : > { %2267 = vst.msk [vmem:[#allocation2 + $0x20] sm:$0xf] %vm2258_vm11, %v2179_v6  ;;  %1913 = vrot.lane.b32.xlu1 %v13249_v15, %s18662_s26 }
 0x153   : > { %1911 = vrot.lane.b32.xlu0 %v13251_v36, %s18662_s26 }
 0x154   : > { %v1007_v58 = vpop.permute.xlu1 %1006 }
 0x155   : > { %1090 = vst.msk [vmem:[#allocation2 + $0x34] sm:$0xf] %vm1076_vm4, %v1007_v58  ;;  %v1005_v47 = vpop.permute.xlu0 %1004  ;;  %v3465_v58 = vld [vmem:[#allocation3 + $0x2c] sm:$0x1] }
 0x156   : > { %1089 = vst.msk [vmem:[#allocation2 + $0x30] sm:$0xf] %vm1076_vm4, %v1005_v47  ;;  %2054 = vrot.lane.b32.xlu1 %v13585_v55, %s18663_s2  ;;  %v3466_v38 = vsel %vm13524_vm5, 0, %v3465_v58 }
 0x157   : > { %2052 = vrot.lane.b32.xlu0 %v13591_v32, %s18663_s2  ;;  %3467 = vst [vmem:[#allocation3 + $0x2c] sm:$0x1] %v3466_v38 }
 0x158   : > { %v2185_v28 = vpop.permute.xlu1 %2184 }
 0x159   : > { %2270 = vst.msk [vmem:[#allocation2 + $0x2c] sm:$0xf] %vm2258_vm11, %v2185_v28  ;;  %v2183_v34 = vpop.permute.xlu0 %2182  ;;  %v12020_v16 = vld [vmem:[#allocation2 + $0x20] sm:$0xff]  }
 0x15a   : > { %2269 = vst.msk [vmem:[#allocation2 + $0x28] sm:$0xf] %vm2258_vm11, %v2183_v34  ;;  %2058 = vrot.lane.b32.xlu1 %v13666_v24, %s18663_s2  ;;  %11598 = vmatprep.mubr.msk.bf16.mxu0 %vm2430_vm12, %v12020_v16  ;;  %v546_v34 = vld [vmem:[%s12712_s25 + $0x130] sm:$0x3] }
 0x15b   : > { %2056 = vrot.lane.b32.xlu0 %v13672_v19, %s18663_s2  ;;  %v835_v16 = vrot.slane %v546_v34, 1  ;;  %v1173_v5 = vrot.slane %v546_v34, 2 }
 0x15c   : > { %v1011_v62 = vpop.permute.xlu1 %1010 }
 0x15d   : > { %1092 = vst.msk [vmem:[#allocation2 + $0x3c] sm:$0xf] %vm1076_vm4, %v1011_v62  ;;  %v1009_v25 = vpop.permute.xlu0 %1008 }
 0x15e   : > { %1091 = vst.msk [vmem:[#allocation2 + $0x38] sm:$0xf] %vm1076_vm4, %v1009_v25  ;;  %2196 = vrot.lane.b32.xlu1 %v13612_v56, %s18664_s20 }
 0x15f   : > { %2194 = vrot.lane.b32.xlu0 %v13618_v27, %s18664_s20 }
 0x160   : > { %v1345_v40 = vpop.permute.xlu1 %1344 }
 0x161   : > { %1428 = vst.msk [vmem:[#allocation2 + $0x34] sm:$0xf] %vm18671_vm1, %v1345_v40  ;;  %v1343_v33 = vpop.permute.xlu0 %1342  ;;  %v12021_v11 = vld [vmem:[#allocation2 + $0x28] sm:$0xff]   ;;  %v13772_v40 = vpack.c.bf16 %v13388_v45, %v13388_v45 }
 0x162   : > { %1427 = vst.msk [vmem:[#allocation2 + $0x30] sm:$0xf] %vm18672_vm13, %v1343_v33  ;;  %1022 = vrot.lane.b32.xlu1 %v13585_v55, %s18657_s16  ;;  %11599 = vmatmul.mubr.msk.bf16.gmra.mxu0 %vm2430_vm12, %v12021_v11  ;;  %vm18673_vm13 = vmmov %vm18671_vm1 }
 0x163   : > { %1020 = vrot.lane.b32.xlu0 %v13591_v32, %s18657_s16  ;;  %v3409_v32 = vld [vmem:[#allocation3 + $0x24] sm:$0x1] }
 0x164   : > { %v1349_v52 = vpop.permute.xlu1 %1348  ;;  %v3410_v18 = vsel %vm13512_vm3, 0, %v3409_v32 }
 0x165   : > { %1430 = vst.msk [vmem:[#allocation2 + $0x3c] sm:$0xf] %vm18671_vm1, %v1349_v52  ;;  %v1347_v55 = vpop.permute.xlu0 %1346  ;;  %3411 = vst [vmem:[#allocation3 + $0x24] sm:$0x1] %v3410_v18 }
 0x166   : > { %1429 = vst.msk [vmem:[#allocation2 + $0x38] sm:$0xf] %vm18673_vm13, %v1347_v55  ;;  %2200 = vrot.lane.b32.xlu1 %v13700_v53, %s18664_s20  ;;  %vm18674_vm13 = vmmov %vm18671_vm1 }
 0x167   : > { %2198 = vrot.lane.b32.xlu0 %v13707_v7, %s18664_s20 }
 0x168   : > { %v1480_v31 = vpop.permute.xlu1 %1479 }
 0x169   : > { %1563 = vst.msk [vmem:[#allocation2 + $0x34] sm:$0xf] %vm1549_vm6, %v1480_v31  ;;  %v1478_v17 = vpop.permute.xlu0 %1477 }
 0x16a   : > { %1562 = vst.msk [vmem:[#allocation2 + $0x30] sm:$0xf] %vm1549_vm6, %v1478_v17  ;;  %1026 = vrot.lane.b32.xlu1 %v13666_v24, %s18657_s16 }
 0x16b   : > { %1024 = vrot.lane.b32.xlu0 %v13672_v19, %s18657_s16 }
 0x16c   : > { %v1484_v6 = vpop.permute.xlu1 %1483 }
 0x16d   : > { %1565 = vst.msk [vmem:[#allocation2 + $0x3c] sm:$0xf] %vm1549_vm6, %v1484_v6  ;;  %v1482_v50 = vpop.permute.xlu0 %1481 }
 0x16e   : > { %1564 = vst.msk [vmem:[#allocation2 + $0x38] sm:$0xf] %vm1549_vm6, %v1482_v50  ;;  %1360 = vrot.lane.b32.xlu1 %v13612_v56, %s18658_s0  ;;  %v1179_v50 = vsel %vm1109_vm2, %v1176_v60, %v1178_v0 }
 0x16f   : > { %1358 = vrot.lane.b32.xlu0 %v13618_v27, %s18658_s0 }
 0x170   : > { %v1625_v47 = vpop.permute.xlu1 %1624 }
 0x171   : > { %1708 = vst.msk [vmem:[#allocation2 + $0x34] sm:$0xf] %vm1694_vm7, %v1625_v47  ;;  %v1623_v28 = vpop.permute.xlu0 %1622 }
 0x172   : > { %1707 = vst.msk [vmem:[#allocation2 + $0x30] sm:$0xf] %vm1694_vm7, %v1623_v28  ;;  %1364 = vrot.lane.b32.xlu1 %v13700_v53, %s18658_s0  ;;  %v13849_v28 = vpack.c.bf16 %v1179_v50, %v1179_v50 }
 0x173   : > { %1362 = vrot.lane.b32.xlu0 %v13707_v7, %s18658_s0 }
 0x174   : > { %v1629_v56 = vpop.permute.xlu1 %1628 }
 0x175   : > { %1710 = vst.msk [vmem:[#allocation2 + $0x3c] sm:$0xf] %vm1694_vm7, %v1629_v56  ;;  %v1627_v27 = vpop.permute.xlu0 %1626  ;;  %v3418_v56 = vld [vmem:[#allocation3 + $0x48] sm:$0x1] }
 0x176   : > { %1709 = vst.msk [vmem:[#allocation2 + $0x38] sm:$0xf] %vm1694_vm7, %v1627_v27  ;;  %1495 = vrot.lane.b32.xlu1 %v13249_v15, %s18659_s23  ;;  %v836_v15 = vsel %vm771_vm0, %v833_v23, %v835_v16  ;;  %v3419_v27 = vsel %vm13512_vm3, 0, %v3418_v56 }
 0x177   : > { %1493 = vrot.lane.b32.xlu0 %v13251_v36, %s18659_s23  ;;  %v13766_v43 = vpack.c.bf16 %v836_v15, %v836_v15  ;;  %3420 = vst [vmem:[#allocation3 + $0x48] sm:$0x1] %v3419_v27  ;;  %v3416_v15 = vsel %vm13512_vm3, 0, %v3415_v42 }
 0x178   : > { %v1767_v57 = vpop.permute.xlu1 %1766  ;;  %3417 = vst [vmem:[#allocation3 + $0x3c] sm:$0x1] %v3416_v15  ;;  %v3422_v15 = vsel %vm13512_vm3, 0, %v3421_v37 }
 0x179   : > { %1850 = vst.msk [vmem:[#allocation2 + $0x34] sm:$0xf] %vm1836_vm8, %v1767_v57  ;;  %v1765_v62 = vpop.permute.xlu0 %1764  ;;  %v3474_v57 = vld [vmem:[#allocation3 + $0x50] sm:$0x1]  ;;  %3423 = vst [vmem:[#allocation3 + $0x54] sm:$0x1] %v3422_v15 }
 0x17a   : > { %1849 = vst.msk [vmem:[#allocation2 + $0x30] sm:$0xf] %vm1836_vm8, %v1765_v62  ;;  %1499 = vrot.lane.b32.xlu1 %v13356_v9, %s18659_s23 }
 0x17b   : > { %1497 = vrot.lane.b32.xlu0 %v13358_v22, %s18659_s23 }
 0x17c   : > { %v1771_v25 = vpop.permute.xlu1 %1770 }
 0x17d   : > { %1852 = vst.msk [vmem:[#allocation2 + $0x3c] sm:$0xf] %vm1836_vm8, %v1771_v25  ;;  %v1769_v36 = vpop.permute.xlu0 %1768  ;;  %v3475_v25 = vsel %vm13524_vm5, 0, %v3474_v57  ;;  %v3480_v57 = vld [vmem:[#allocation3 + $0x68] sm:$0x1] }
 0x17e   : > { %1851 = vst.msk [vmem:[#allocation2 + $0x38] sm:$0xf] %vm1836_vm8, %v1769_v36  ;;  %1640 = vrot.lane.b32.xlu1 %v13666_v24, %s18660_s17  ;;  %v1174_v24 = vsel %vm1109_vm2, %v1171_v30, %v1173_v5  ;;  %3476 = vst [vmem:[#allocation3 + $0x50] sm:$0x1] %v3475_v25  ;;  %v3481_v25 = vsel %vm13524_vm5, 0, %v3480_v57 }
 0x17f   : > { %1638 = vrot.lane.b32.xlu0 %v13672_v19, %s18660_s17  ;;  %v13787_v11 = vpack.c.bf16 %v1174_v24, %v1174_v24  ;;  %3482 = vst [vmem:[#allocation3 + $0x68] sm:$0x1] %v3481_v25 }
 0x180   : > { %v1902_v23 = vpop.permute.xlu1 %1901 }
 0x181   : > { %1985 = vst.msk [vmem:[#allocation2 + $0x34] sm:$0xf] %vm1971_vm9, %v1902_v23  ;;  %v1900_v33 = vpop.permute.xlu0 %1899 }
 0x182   : > { %1984 = vst.msk [vmem:[#allocation2 + $0x30] sm:$0xf] %vm1971_vm9, %v1900_v33  ;;  %1644 = vrot.lane.b32.xlu1 %v13766_v43, %s18660_s17 }
 0x183   : > { %1642 = vrot.lane.b32.xlu0 %v13772_v40, %s18660_s17 }
 0x184   : > { %v1906_v45 = vpop.permute.xlu1 %1905 }
 0x185   : > { %1987 = vst.msk [vmem:[#allocation2 + $0x3c] sm:$0xf] %vm1971_vm9, %v1906_v45  ;;  %v1904_v19 = vpop.permute.xlu0 %1903  ;;  %v552_v45 = vld [vmem:[%s12712_s25 + $0x160] sm:$0x3] }
 0x186   : > { %1986 = vst.msk [vmem:[#allocation2 + $0x38] sm:$0xf] %vm1971_vm9, %v1904_v19  ;;  %1782 = vrot.lane.b32.xlu1 %v13700_v53, %s18661_s27 }
 0x187   : > { %1780 = vrot.lane.b32.xlu0 %v13707_v7, %s18661_s27 }
 0x188   : > { %v2047_v30 = vpop.permute.xlu1 %2046 }
 0x189   : > { %2130 = vst.msk [vmem:[#allocation2 + $0x34] sm:$0xf] %vm2116_vm10, %v2047_v30  ;;  %v2045_v52 = vpop.permute.xlu0 %2044 }
 0x18a   : > { %2129 = vst.msk [vmem:[#allocation2 + $0x30] sm:$0xf] %vm2116_vm10, %v2045_v52  ;;  %1786 = vrot.lane.b32.xlu1 %v13787_v11, %s18661_s27 }
 0x18b   : > { %1784 = vrot.lane.b32.xlu0 %v13793_v12, %s18661_s27 }
 0x18c   : > { %v2051_v53 = vpop.permute.xlu1 %2050 }
 0x18d   : > { %2132 = vst.msk [vmem:[#allocation2 + $0x3c] sm:$0xf] %vm2116_vm10, %v2051_v53  ;;  %v2049_v7 = vpop.permute.xlu0 %2048 }
 0x18e   : > { %2131 = vst.msk [vmem:[#allocation2 + $0x38] sm:$0xf] %vm2116_vm10, %v2049_v7  ;;  %1917 = vrot.lane.b32.xlu1 %v13356_v9, %s18662_s26  ;;  %v841_v9 = vsel %vm771_vm0, %v838_v59, %v840_v44  ;;  %v1183_v7 = vrot.slane %v552_v45, 2 }
 0x18f   : > { %1915 = vrot.lane.b32.xlu0 %v13358_v22, %s18662_s26  ;;  %v13821_v32 = vpack.c.bf16 %v841_v9, %v841_v9 }
 0x190   : > { %v2189_v55 = vpop.permute.xlu1 %2188 }
 0x191   : > { %2272 = vst.msk [vmem:[#allocation2 + $0x34] sm:$0xf] %vm2258_vm11, %v2189_v55  ;;  %v2187_v29 = vpop.permute.xlu0 %2186  ;;  %v1184_v55 = vsel %vm1109_vm2, %v1181_v51, %v1183_v7 }
 0x192   : > { %2271 = vst.msk [vmem:[#allocation2 + $0x30] sm:$0xf] %vm2258_vm11, %v2187_v29  ;;  %1921 = vrot.lane.b32.xlu1 %v13437_v26, %s18662_s26  ;;  %v13931_v9 = vpack.c.bf16 %v1184_v55, %v1184_v55 }
 0x193   : > { %1919 = vrot.lane.b32.xlu0 %v13439_v46, %s18662_s26 }
 0x194   : > { %v1015_v31 = vpop.permute.xlu1 %1014 }
 0x195   : > { %1094 = vst.msk [vmem:[#allocation2 + $0x44] sm:$0xf] %vm1076_vm4, %v1015_v31  ;;  %v1013_v22 = vpop.permute.xlu0 %1012 }
 0x196   : > { %1093 = vst.msk [vmem:[#allocation2 + $0x40] sm:$0xf] %vm1076_vm4, %v1013_v22  ;;  %2062 = vrot.lane.b32.xlu1 %v13766_v43, %s18663_s2 }
 0x197   : > { %2060 = vrot.lane.b32.xlu0 %v13772_v40, %s18663_s2 }
 0x198   : > { %v2193_v17 = vpop.permute.xlu1 %2192 }
 0x199   : > { %2274 = vst.msk [vmem:[#allocation2 + $0x3c] sm:$0xf] %vm2258_vm11, %v2193_v17  ;;  %v2191_v59 = vpop.permute.xlu0 %2190  ;;  %v12022_v18 = vld [vmem:[#allocation2 + $0x30] sm:$0xff]  }
 0x19a   : > { %2273 = vst.msk [vmem:[#allocation2 + $0x38] sm:$0xf] %vm2258_vm11, %v2191_v59  ;;  %2066 = vrot.lane.b32.xlu1 %v13821_v32, %s18663_s2  ;;  %11602 = vmatprep.mubr.msk.bf16.mxu0 %vm2430_vm12, %v12022_v18 }
 0x19b   : > { %2064 = vrot.lane.b32.xlu0 %v13827_v1, %s18663_s2 }
 0x19c   : > { %v1019_v6 = vpop.permute.xlu1 %1018 }
 0x19d   : > { %1096 = vst.msk [vmem:[#allocation2 + $0x4c] sm:$0xf] %vm1076_vm4, %v1019_v6  ;;  %v1017_v13 = vpop.permute.xlu0 %1016  ;;  %v13971_v6 = vpack.c.bf16 %v13677_v35, %v13677_v35 }
 0x19e   : > { %1095 = vst.msk [vmem:[#allocation2 + $0x48] sm:$0xf] %vm1076_vm4, %v1017_v13  ;;  %2204 = vrot.lane.b32.xlu1 %v13787_v11, %s18664_s20 }
 0x19f   : > { %2202 = vrot.lane.b32.xlu0 %v13793_v12, %s18664_s20 }
 0x1a0   : > { %v1353_v58 = vpop.permute.xlu1 %1352 }
 0x1a1   : > { %1432 = vst.msk [vmem:[#allocation2 + $0x44] sm:$0xf] %vm18671_vm1, %v1353_v58  ;;  %v1351_v38 = vpop.permute.xlu0 %1350  ;;  %v12023_v47 = vld [vmem:[#allocation2 + $0x38] sm:$0xff]  }
 0x1a2   : > { %1431 = vst.msk [vmem:[#allocation2 + $0x40] sm:$0xf] %vm18674_vm13, %v1351_v38  ;;  %1030 = vrot.lane.b32.xlu1 %v13766_v43, %s18657_s16  ;;  %11603 = vmatmul.mubr.msk.bf16.gmra.mxu0 %vm2430_vm12, %v12023_v47  ;;  %vm18675_vm13 = vmmov %vm18671_vm1 }
 0x1a3   : > { %1028 = vrot.lane.b32.xlu0 %v13772_v40, %s18657_s16  ;;  %v3471_v40 = vld [vmem:[#allocation3 + $0x44] sm:$0x1] }
 0x1a4   : > { %v1357_v60 = vpop.permute.xlu1 %1356  ;;  %v3472_v5 = vsel %vm13524_vm5, 0, %v3471_v40  ;;  %v3477_v40 = vld [vmem:[#allocation3 + $0x5c] sm:$0x1] }
 0x1a5   : > { %1434 = vst.msk [vmem:[#allocation2 + $0x4c] sm:$0xf] %vm18671_vm1, %v1357_v60  ;;  %v1355_v34 = vpop.permute.xlu0 %1354  ;;  %3473 = vst [vmem:[#allocation3 + $0x44] sm:$0x1] %v3472_v5  ;;  %v3478_v5 = vsel %vm13524_vm5, 0, %v3477_v40 }
 0x1a6   : > { %1433 = vst.msk [vmem:[#allocation2 + $0x48] sm:$0xf] %vm18675_vm13, %v1355_v34  ;;  %2208 = vrot.lane.b32.xlu1 %v13849_v28, %s18664_s20  ;;  %vm18676_vm13 = vmmov %vm18671_vm1  ;;  %v3424_v34 = vld [vmem:[#allocation3 + $0x60] sm:$0x1] }
 0x1a7   : > { %2206 = vrot.lane.b32.xlu0 %v13856_v10, %s18664_s20  ;;  %3479 = vst [vmem:[#allocation3 + $0x5c] sm:$0x1] %v3478_v5 }
 0x1a8   : > { %v1488_v16 = vpop.permute.xlu1 %1487 }
 0x1a9   : > { %1567 = vst.msk [vmem:[#allocation2 + $0x44] sm:$0xf] %vm1549_vm6, %v1488_v16  ;;  %v1486_v62 = vpop.permute.xlu0 %1485  ;;  %v3425_v16 = vsel %vm13512_vm3, 0, %v3424_v34 }
 0x1aa   : > { %1566 = vst.msk [vmem:[#allocation2 + $0x40] sm:$0xf] %vm1549_vm6, %v1486_v62  ;;  %1034 = vrot.lane.b32.xlu1 %v13821_v32, %s18657_s16  ;;  %3426 = vst [vmem:[#allocation3 + $0x60] sm:$0x1] %v3425_v16 }
 0x1ab   : > { %1032 = vrot.lane.b32.xlu0 %v13827_v1, %s18657_s16 }
 0x1ac   : > { %v1492_v36 = vpop.permute.xlu1 %1491 }
 0x1ad   : > { %1569 = vst.msk [vmem:[#allocation2 + $0x4c] sm:$0xf] %vm1549_vm6, %v1492_v36  ;;  %v1490_v43 = vpop.permute.xlu0 %1489 }
 0x1ae   : > { %1568 = vst.msk [vmem:[#allocation2 + $0x48] sm:$0xf] %vm1549_vm6, %v1490_v43  ;;  %1368 = vrot.lane.b32.xlu1 %v13787_v11, %s18658_s0  ;;  %v845_v11 = vrot.slane %v552_v45, 1 }
 0x1af   : > { %1366 = vrot.lane.b32.xlu0 %v13793_v12, %s18658_s0 }
 0x1b0   : > { %v1633_v23 = vpop.permute.xlu1 %1632 }
 0x1b1   : > { %1712 = vst.msk [vmem:[#allocation2 + $0x44] sm:$0xf] %vm1694_vm7, %v1633_v23  ;;  %v1631_v33 = vpop.permute.xlu0 %1630 }
 0x1b2   : > { %1711 = vst.msk [vmem:[#allocation2 + $0x40] sm:$0xf] %vm1694_vm7, %v1631_v33  ;;  %1372 = vrot.lane.b32.xlu1 %v13849_v28, %s18658_s0 }
 0x1b3   : > { %1370 = vrot.lane.b32.xlu0 %v13856_v10, %s18658_s0 }
 0x1b4   : > { %v1637_v24 = vpop.permute.xlu1 %1636 }
 0x1b5   : > { %1714 = vst.msk [vmem:[#allocation2 + $0x4c] sm:$0xf] %vm1694_vm7, %v1637_v24  ;;  %v1635_v19 = vpop.permute.xlu0 %1634  ;;  %v557_v24 = vld [vmem:[%s12712_s25 + $0x188] sm:$0xff] }
 0x1b6   : > { %1713 = vst.msk [vmem:[#allocation2 + $0x48] sm:$0xf] %vm1694_vm7, %v1635_v19  ;;  %1503 = vrot.lane.b32.xlu1 %v13437_v26, %s18659_s23  ;;  %v846_v26 = vsel %vm771_vm0, %v843_v49, %v845_v11  ;;  %v556_v19 = vld [vmem:[%s12712_s25 + $0x180] sm:$0xff]  ;;  %v558_v11 = vld [vmem:[%s12712_s25 + $0x190] sm:$0x3] }
 0x1b7   : > { %1501 = vrot.lane.b32.xlu0 %v13439_v46, %s18659_s23  ;;  %v13910_v53 = vpack.c.bf16 %v846_v26, %v846_v26  ;;  %v1586_v26 = vrot.slane %v557_v24, 1 }
 0x1b8   : > { %v1775_v12 = vpop.permute.xlu1 %1774 }
 0x1b9   : > { %1854 = vst.msk [vmem:[#allocation2 + $0x44] sm:$0xf] %vm1836_vm8, %v1775_v12  ;;  %v1773_v30 = vpop.permute.xlu0 %1772 }
 0x1ba   : > { %1853 = vst.msk [vmem:[#allocation2 + $0x40] sm:$0xf] %vm1836_vm8, %v1773_v30  ;;  %1507 = vrot.lane.b32.xlu1 %v13564_v54, %s18659_s23  ;;  %v11025_v30 = vpack.c.bf16 %v557_v24, %v557_v24 }
 0x1bb   : > { %1505 = vrot.lane.b32.xlu0 %v13566_v41, %s18659_s23 }
 0x1bc   : > { %v1779_v52 = vpop.permute.xlu1 %1778 }
 0x1bd   : > { %1856 = vst.msk [vmem:[#allocation2 + $0x4c] sm:$0xf] %vm1836_vm8, %v1779_v52  ;;  %v1777_v46 = vpop.permute.xlu0 %1776  ;;  %v11024_v52 = vpack.c.bf16 %v556_v19, %v556_v19 }
 0x1be   : > { %1855 = vst.msk [vmem:[#allocation2 + $0x48] sm:$0xf] %vm1836_vm8, %v1777_v46  ;;  %1648 = vrot.lane.b32.xlu1 %v13821_v32, %s18660_s17  ;;  %v555_v32 = vld [vmem:[%s12712_s25 + $0x178] sm:$0x3]  ;;  %v1588_v46 = vrot.slane %v558_v11, 1 }
 0x1bf   : > { %1646 = vrot.lane.b32.xlu0 %v13827_v1, %s18660_s17  ;;  %v850_v21 = vrot.slane %v555_v32, 1  ;;  %v1188_v58 = vrot.slane %v555_v32, 2 }
 0x1c0   : > { %v1910_v49 = vpop.permute.xlu1 %1909 }
 0x1c1   : > { %1989 = vst.msk [vmem:[#allocation2 + $0x44] sm:$0xf] %vm1971_vm9, %v1910_v49  ;;  %v1908_v44 = vpop.permute.xlu0 %1907  ;;  %v1189_v47 = vsel %vm1109_vm2, %v1186_v4, %v1188_v58 }
 0x1c2   : > { %1988 = vst.msk [vmem:[#allocation2 + $0x40] sm:$0xf] %vm1971_vm9, %v1908_v44  ;;  %1652 = vrot.lane.b32.xlu1 %v13910_v53, %s18660_s17  ;;  %v13993_v56 = vpack.c.bf16 %v1189_v47, %v1189_v47 }
 0x1c3   : > { %1650 = vrot.lane.b32.xlu0 %v13916_v48, %s18660_s17 }
 0x1c4   : > { %v1914_v61 = vpop.permute.xlu1 %1913 }
 0x1c5   : > { %1991 = vst.msk [vmem:[#allocation2 + $0x4c] sm:$0xf] %vm1971_vm9, %v1914_v61  ;;  %v1912_v29 = vpop.permute.xlu0 %1911  ;;  %v1728_v61 = vrot.slane %v557_v24, 2 }
 0x1c6   : > { %1990 = vst.msk [vmem:[#allocation2 + $0x48] sm:$0xf] %vm1971_vm9, %v1912_v29  ;;  %1790 = vrot.lane.b32.xlu1 %v13849_v28, %s18661_s27 }
 0x1c7   : > { %1788 = vrot.lane.b32.xlu0 %v13856_v10, %s18661_s27 }
 0x1c8   : > { %v2055_v51 = vpop.permute.xlu1 %2054 }
 0x1c9   : > { %2134 = vst.msk [vmem:[#allocation2 + $0x44] sm:$0xf] %vm2116_vm10, %v2055_v51  ;;  %v2053_v31 = vpop.permute.xlu0 %2052 }
 0x1ca   : > { %2133 = vst.msk [vmem:[#allocation2 + $0x40] sm:$0xf] %vm2116_vm10, %v2053_v31  ;;  %1794 = vrot.lane.b32.xlu1 %v13931_v9, %s18661_s27 }
 0x1cb   : > { %1792 = vrot.lane.b32.xlu0 %v13937_v39, %s18661_s27 }
 0x1cc   : > { %v2059_v22 = vpop.permute.xlu1 %2058 }
 0x1cd   : > { %2136 = vst.msk [vmem:[#allocation2 + $0x4c] sm:$0xf] %vm2116_vm10, %v2059_v22  ;;  %v2057_v1 = vpop.permute.xlu0 %2056 }
 0x1ce   : > { %2135 = vst.msk [vmem:[#allocation2 + $0x48] sm:$0xf] %vm2116_vm10, %v2057_v1  ;;  %1925 = vrot.lane.b32.xlu1 %v13564_v54, %s18662_s26  ;;  %v851_v54 = vsel %vm771_vm0, %v848_v8, %v850_v21 }
 0x1cf   : > { %1923 = vrot.lane.b32.xlu0 %v13566_v41, %s18662_s26  ;;  %v13965_v0 = vpack.c.bf16 %v851_v54, %v851_v54 }
 0x1d0   : > { %v2197_v17 = vpop.permute.xlu1 %2196 }
 0x1d1   : > { %2276 = vst.msk [vmem:[#allocation2 + $0x44] sm:$0xf] %vm2258_vm11, %v2197_v17  ;;  %v2195_v59 = vpop.permute.xlu0 %2194 }
 0x1d2   : > { %2275 = vst.msk [vmem:[#allocation2 + $0x40] sm:$0xf] %vm2258_vm11, %v2195_v59  ;;  %1929 = vrot.lane.b32.xlu1 %v13645_v20, %s18662_s26 }
 0x1d3   : > { %1927 = vrot.lane.b32.xlu0 %v13647_v14, %s18662_s26 }
 0x1d4   : > { %v1023_v18 = vpop.permute.xlu1 %1022 }
 0x1d5   : > { %1098 = vst.msk [vmem:[#allocation2 + $0x54] sm:$0xf] %vm1076_vm4, %v1023_v18  ;;  %v1021_v41 = vpop.permute.xlu0 %1020 }
 0x1d6   : > { %1097 = vst.msk [vmem:[#allocation2 + $0x50] sm:$0xf] %vm1076_vm4, %v1021_v41  ;;  %2070 = vrot.lane.b32.xlu1 %v13910_v53, %s18663_s2  ;;  %v560_v41 = vld [vmem:[%s12712_s25 + $0x1a0] sm:$0xff] }
 0x1d7   : > { %2068 = vrot.lane.b32.xlu0 %v13916_v48, %s18663_s2  ;;  %v2008_v58 = vrot.slane %v560_v41, 1 }
 0x1d8   : > { %v2201_v13 = vpop.permute.xlu1 %2200 }
 0x1d9   : > { %2278 = vst.msk [vmem:[#allocation2 + $0x4c] sm:$0xf] %vm2258_vm11, %v2201_v13  ;;  %v2199_v8 = vpop.permute.xlu0 %2198  ;;  %v12024_v50 = vld [vmem:[#allocation2 + $0x40] sm:$0xff]   ;;  %v561_v13 = vld [vmem:[%s12712_s25 + $0x1a8] sm:$0x3] }
 0x1da   : > { %2277 = vst.msk [vmem:[#allocation2 + $0x48] sm:$0xf] %vm2258_vm11, %v2199_v8  ;;  %2074 = vrot.lane.b32.xlu1 %v13965_v0, %s18663_s2  ;;  %11606 = vmatprep.mubr.msk.bf16.mxu1 %vm2430_vm12, %v12024_v50  ;;  %v11031_v50 = vpack.c.bf16 %v560_v41, %v560_v41 }
 0x1db   : > { %2072 = vrot.lane.b32.xlu0 %v13971_v6, %s18663_s2 }
 0x1dc   : > { %v1027_v38 = vpop.permute.xlu1 %1026 }
 0x1dd   : > { %1100 = vst.msk [vmem:[#allocation2 + $0x5c] sm:$0xf] %vm1076_vm4, %v1027_v38  ;;  %v1025_v35 = vpop.permute.xlu0 %1024 }
 0x1de   : > { %1099 = vst.msk [vmem:[#allocation2 + $0x58] sm:$0xf] %vm1076_vm4, %v1025_v35  ;;  %2212 = vrot.lane.b32.xlu1 %v13931_v9, %s18664_s20  ;;  %v2010_v35 = vrot.slane %v561_v13, 1 }
 0x1df   : > { %2210 = vrot.lane.b32.xlu0 %v13937_v39, %s18664_s20 }
 0x1e0   : > { %v1361_v28 = vpop.permute.xlu1 %1360 }
 0x1e1   : > { %1436 = vst.msk [vmem:[#allocation2 + $0x54] sm:$0xf] %vm18671_vm1, %v1361_v28  ;;  %v1359_v10 = vpop.permute.xlu0 %1358  ;;  %v12025_v60 = vld [vmem:[#allocation2 + $0x48] sm:$0xff]  }
 0x1e2   : > { %1435 = vst.msk [vmem:[#allocation2 + $0x50] sm:$0xf] %vm18676_vm13, %v1359_v10  ;;  %1038 = vrot.lane.b32.xlu1 %v13910_v53, %s18657_s16  ;;  %11607 = vmatmul.mubr.msk.bf16.vlgmr.msra.gmra.mxu1 %vm2430_vm12, %v12025_v60  ;;  %vm18677_vm13 = vmmov %vm18671_vm1  ;;  %v2011_v60 = vsel %vm771_vm0, %v2008_v58, %v2010_v35 }
 0x1e3   : > { %1036 = vrot.lane.b32.xlu0 %v13916_v48, %s18657_s16  ;;  %v1585_v48 = vrot.slane %v556_v19, 1  ;;  %v11033_v34 = vpack.c.bf16 %v2011_v60, %v2011_v60 }
 0x1e4   : > { %v1365_v4 = vpop.permute.xlu1 %1364 }
 0x1e5   : > { %1438 = vst.msk [vmem:[#allocation2 + $0x5c] sm:$0xf] %vm18671_vm1, %v1365_v4  ;;  %v1363_v27 = vpop.permute.xlu0 %1362  ;;  %v1587_v44 = vsel %vm771_vm0, %v1585_v48, %v1586_v26  ;;  %v3427_v48 = vld [vmem:[#allocation3 + $0x6c] sm:$0x1] }
 0x1e6   : > { %1437 = vst.msk [vmem:[#allocation2 + $0x58] sm:$0xf] %vm18677_vm13, %v1363_v27  ;;  %2216 = vrot.lane.b32.xlu1 %v13993_v56, %s18664_s20  ;;  %v11026_v29 = vpack.c.bf16 %v1587_v44, %v1587_v44  ;;  %v2150_v27 = vrot.slane %v560_v41, 2  ;;  %v3428_v44 = vsel %vm13512_vm3, 0, %v3427_v48 }
 0x1e7   : > { %2214 = vrot.lane.b32.xlu0 %v14000_v2, %s18664_s20  ;;  %3429 = vst [vmem:[#allocation3 + $0x6c] sm:$0x1] %v3428_v44 }
 0x1e8   : > { %v1496_v42 = vpop.permute.xlu1 %1495 }
 0x1e9   : > { %1571 = vst.msk [vmem:[#allocation2 + $0x54] sm:$0xf] %vm1549_vm6, %v1496_v42  ;;  %v1494_v62 = vpop.permute.xlu0 %1493  ;;  %v2152_v42 = vrot.slane %v561_v13, 2 }
 0x1ea   : > { %1570 = vst.msk [vmem:[#allocation2 + $0x50] sm:$0xf] %vm1549_vm6, %v1494_v62  ;;  %1042 = vrot.lane.b32.xlu1 %v13965_v0, %s18657_s16 }
 0x1eb   : > { %1040 = vrot.lane.b32.xlu0 %v13971_v6, %s18657_s16  ;;  %v2153_v25 = vsel %vm1109_vm2, %v2150_v27, %v2152_v42  ;;  %s506_s16 = scalar_lea.vmem %s18688_s1, %s12706_s30 }
 0x1ec   : > { %v1500_v36 = vpop.permute.xlu1 %1499  ;;  %v11035_v5 = vpack.c.bf16 %v2153_v25, %v2153_v25 }
 0x1ed   : > { %1573 = vst.msk [vmem:[#allocation2 + $0x5c] sm:$0xf] %vm1549_vm6, %v1500_v36  ;;  %v1498_v43 = vpop.permute.xlu0 %1497 }
 0x1ee   : > { %1572 = vst.msk [vmem:[#allocation2 + $0x58] sm:$0xf] %vm1549_vm6, %v1498_v43  ;;  %1376 = vrot.lane.b32.xlu1 %v13931_v9, %s18658_s0  ;;  %v1730_v9 = vrot.slane %v558_v11, 2  ;;  %v12028_v11 = vld [vmem:[#allocation2 + $0x8] sm:$0xff]  }
 0x1ef   : > { %1374 = vrot.lane.b32.xlu0 %v13937_v39, %s18658_s0  ;;  %v1727_v39 = vrot.slane %v556_v19, 2 }
 0x1f0   : > { %v1641_v23 = vpop.permute.xlu1 %1640  ;;  %v1731_v22 = vsel %vm1109_vm2, %v1728_v61, %v1730_v9  ;;  %v12033_v9 = vld [vmem:[#allocation2 + $0x20] sm:$0xff]  }
 0x1f1   : > { %1716 = vst.msk [vmem:[#allocation2 + $0x54] sm:$0xf] %vm1694_vm7, %v1641_v23  ;;  %v1639_v33 = vpop.permute.xlu0 %1638  ;;  %v1729_v1 = vsel %vm1109_vm2, %v1727_v39, %v1728_v61  ;;  %v11029_v17 = vpack.c.bf16 %v1731_v22, %v1731_v22  ;;  %v12032_v61 = vld [vmem:[#allocation2 + $0x28] sm:$0xff]   ;;  %v3483_v39 = vld [vmem:[#allocation3 + $0x74] sm:$0x1]  ;;  %v12034_v22 = vld [vmem:[#allocation2 + $0x38] sm:$0xff]  }
 0x1f2   : > { %1715 = vst.msk [vmem:[#allocation2 + $0x50] sm:$0xf] %vm1694_vm7, %v1639_v33  ;;  %1380 = vrot.lane.b32.xlu1 %v13993_v56, %s18658_s0  ;;  %v11028_v59 = vpack.c.bf16 %v1729_v1, %v1729_v1  ;;  %v12035_v1 = vld [vmem:[#allocation2 + $0x30] sm:$0xff]  }
 0x1f3   : > { %1378 = vrot.lane.b32.xlu0 %v14000_v2, %s18658_s0 }
 0x1f4   : > { %v1645_v45 = vpop.permute.xlu1 %1644 }
 0x1f5   : > { %1718 = vst.msk [vmem:[#allocation2 + $0x5c] sm:$0xf] %vm1694_vm7, %v1645_v45  ;;  %v1643_v12 = vpop.permute.xlu0 %1642 }
 0x1f6   : > { %1717 = vst.msk [vmem:[#allocation2 + $0x58] sm:$0xf] %vm1694_vm7, %v1643_v12  ;;  %1511 = vrot.lane.b32.xlu1 %v13645_v20, %s18659_s23  ;;  %v1589_v20 = vsel %vm771_vm0, %v1586_v26, %v1588_v46  ;;  %v3430_v12 = vld [vmem:[#allocation3 + $0x78] sm:$0x1]  ;;  %v12029_v26 = vld [vmem:[#allocation2] sm:$0xff]  }
 0x1f7   : > { %1509 = vrot.lane.b32.xlu0 %v13647_v14, %s18659_s23  ;;  %v11027_v55 = vpack.c.bf16 %v1589_v20, %v1589_v20 }
 0x1f8   : > { %v1783_v53 = vpop.permute.xlu1 %1782 }
 0x1f9   : > { %1858 = vst.msk [vmem:[#allocation2 + $0x54] sm:$0xf] %vm1836_vm8, %v1783_v53  ;;  %v1781_v7 = vpop.permute.xlu0 %1780  ;;  %v12030_v53 = vld [vmem:[#allocation2 + $0x18] sm:$0xff]  }
 0x1fa   : > { %1857 = vst.msk [vmem:[#allocation2 + $0x50] sm:$0xf] %vm1836_vm8, %v1781_v7  ;;  %1515 = vrot.lane.b32.xlu1 %v11025_v30, %s18659_s23  ;;  %v3486_v7 = vld [vmem:[#allocation3 + $0x80] sm:$0x1] }
 0x1fb   : > { %1513 = vrot.lane.b32.xlu0 %v11024_v52, %s18659_s23 }
 0x1fc   : > { %v1787_v49 = vpop.permute.xlu1 %1786 }
 0x1fd   : > { %1860 = vst.msk [vmem:[#allocation2 + $0x5c] sm:$0xf] %vm1836_vm8, %v1787_v49  ;;  %v1785_v14 = vpop.permute.xlu0 %1784  ;;  %v12031_v49 = vld [vmem:[#allocation2 + $0x10] sm:$0xff]  }
 0x1fe   : > { %1859 = vst.msk [vmem:[#allocation2 + $0x58] sm:$0xf] %vm1836_vm8, %v1785_v14  ;;  %1656 = vrot.lane.b32.xlu1 %v13965_v0, %s18660_s17  ;;  %v3487_v14 = vsel %vm13524_vm5, 0, %v3486_v7 }
 0x1ff   : > { %1654 = vrot.lane.b32.xlu0 %v13971_v6, %s18660_s17  ;;  %v559_v6 = vld [vmem:[%s12712_s25 + $0x198] sm:$0xff]  ;;  %3488 = vst [vmem:[#allocation3 + $0x80] sm:$0x1] %v3487_v14 }
 0x200   : > { %v1918_v51 = vpop.permute.xlu1 %1917  ;;  %v11030_v38 = vpack.c.bf16 %v559_v6, %v559_v6  ;;  %v2007_v28 = vrot.slane %v559_v6, 1  ;;  %v2149_v37 = vrot.slane %v559_v6, 2 }
 0x201   : > { %1993 = vst.msk [vmem:[#allocation2 + $0x54] sm:$0xf] %vm1971_vm9, %v1918_v51  ;;  %v1916_v31 = vpop.permute.xlu0 %1915  ;;  %v3484_v51 = vsel %vm13524_vm5, 0, %v3483_v39 }
 0x202   : > { %1992 = vst.msk [vmem:[#allocation2 + $0x50] sm:$0xf] %vm1971_vm9, %v1916_v31  ;;  %1660 = vrot.lane.b32.xlu1 %v11027_v55, %s18660_s17  ;;  %v2151_v43 = vsel %vm1109_vm2, %v2149_v37, %v2150_v27  ;;  %3485 = vst [vmem:[#allocation3 + $0x74] sm:$0x1] %v3484_v51 }
 0x203   : > { %1658 = vrot.lane.b32.xlu0 %v11026_v29, %s18660_s17  ;;  %v11034_v23 = vpack.c.bf16 %v2151_v43, %v2151_v43  ;;  %s496_s17 = sand.u32 1, %s12552_s19  }
 0x204   : > { %v1922_v32 = vpop.permute.xlu1 %1921 }
 0x205   : > { %1995 = vst.msk [vmem:[#allocation2 + $0x5c] sm:$0xf] %vm1971_vm9, %v1922_v32  ;;  %v1920_v21 = vpop.permute.xlu0 %1919 }
 0x206   : > { %1994 = vst.msk [vmem:[#allocation2 + $0x58] sm:$0xf] %vm1971_vm9, %v1920_v21  ;;  %1798 = vrot.lane.b32.xlu1 %v13993_v56, %s18661_s27 }
 0x207   : > { %1796 = vrot.lane.b32.xlu0 %v14000_v2, %s18661_s27  ;;  %v2009_v2 = vsel %vm771_vm0, %v2007_v28, %v2008_v58  ;;  %vm18678_vm0 = vmmov %vm18671_vm1 }
 0x208   : > { %v2063_v54 = vpop.permute.xlu1 %2062  ;;  %v11032_v16 = vpack.c.bf16 %v2009_v2, %v2009_v2  ;;  %vm18679_vm1 = vmmov %vm18678_vm0 }
 0x209   : > { %2138 = vst.msk [vmem:[#allocation2 + $0x54] sm:$0xf] %vm2116_vm10, %v2063_v54  ;;  %v2061_v18 = vpop.permute.xlu0 %2060  ;;  %vm18680_vm2 = vmmov %vm18678_vm0  ;;  %v12037_v54 = vld [vmem:[#allocation2 + $0x40] sm:$0xff]  }
 0x20a   : > { %2137 = vst.msk [vmem:[#allocation2 + $0x50] sm:$0xf] %vm2116_vm10, %v2061_v18  ;;  %1802 = vrot.lane.b32.xlu1 %v11029_v17, %s18661_s27  ;;  %vm18681_vm13 = vmmov %vm18678_vm0 }
 0x20b   : > { %1800 = vrot.lane.b32.xlu0 %v11028_v59, %s18661_s27  ;;  %s11068_s27 = sshll.u32 %s12677_s22, 12  ;;  %s18493_s22 = scalar_lea.sflag [#allocation6], %s496_s17 }
 0x20c   : > { %v2067_v0 = vpop.permute.xlu1 %2066  ;;  %s18484_s30 = scalar_lea.hbm %s18549_s15, %s11068_s27 }
 0x20d   : > { %2140 = vst.msk [vmem:[#allocation2 + $0x5c] sm:$0xf] %vm2116_vm10, %v2067_v0  ;;  %v2065_v8 = vpop.permute.xlu0 %2064 }
 0x20e   : > { %2139 = vst.msk [vmem:[#allocation2 + $0x58] sm:$0xf] %vm2116_vm10, %v2065_v8  ;;  %1933 = vrot.lane.b32.xlu1 %v11025_v30, %s18662_s26 }
 0x20f   : > { %1931 = vrot.lane.b32.xlu0 %v11024_v52, %s18662_s26  ;;  %v3431_v52 = vsel %vm13512_vm3, 0, %v3430_v12 }
 0x210   : > { %v2205_v47 = vpop.permute.xlu1 %2204  ;;  %3432 = vst [vmem:[#allocation3 + $0x78] sm:$0x1] %v3431_v52 }
 0x211   : > { %2280 = vst.msk [vmem:[#allocation2 + $0x54] sm:$0xf] %vm2258_vm11, %v2205_v47  ;;  %v2203_v10 = vpop.permute.xlu0 %2202 }
 0x212   : > { %2279 = vst.msk [vmem:[#allocation2 + $0x50] sm:$0xf] %vm2258_vm11, %v2203_v10  ;;  %1937 = vrot.lane.b32.xlu1 %v11031_v50, %s18662_s26 }
 0x213   : > { %1935 = vrot.lane.b32.xlu0 %v11030_v38, %s18662_s26 }
 0x214   : > { %v1031_v56 = vpop.permute.xlu1 %1030 }
 0x215   : > { %1102 = vst.msk [vmem:[#allocation2 + $0x64] sm:$0xf] %vm1076_vm4, %v1031_v56  ;;  %v1029_v4 = vpop.permute.xlu0 %1028 }
 0x216   : > { %1101 = vst.msk [vmem:[#allocation2 + $0x60] sm:$0xf] %vm1076_vm4, %v1029_v4  ;;  %2078 = vrot.lane.b32.xlu1 %v11027_v55, %s18663_s2 }
 0x217   : > { %2076 = vrot.lane.b32.xlu0 %v11026_v29, %s18663_s2 }
 0x218   : > { %v2209_v57 = vpop.permute.xlu1 %2208 }
 0x219   : > { %2282 = vst.msk [vmem:[#allocation2 + $0x5c] sm:$0xf] %vm2258_vm11, %v2209_v57  ;;  %v2207_v62 = vpop.permute.xlu0 %2206  ;;  %v12026_v15 = vld [vmem:[#allocation2 + $0x50] sm:$0xff]  }
 0x21a   : > { %2281 = vst.msk [vmem:[#allocation2 + $0x58] sm:$0xf] %vm2258_vm11, %v2207_v62  ;;  %2082 = vrot.lane.b32.xlu1 %v11033_v34, %s18663_s2  ;;  %11610 = vmatprep.mubr.msk.bf16.mxu1 %vm2430_vm12, %v12026_v15  ;;  %v12039_v6 = vld [vmem:[#allocation2 + $0x50] sm:$0xff]  }
 0x21b   : > { %2080 = vrot.lane.b32.xlu0 %v11032_v16, %s18663_s2  ;;  %s12570_s2 = smov 112  }
 0x21c   : > { %v1035_v36 = vpop.permute.xlu1 %1034 }
 0x21d   : > { %1104 = vst.msk [vmem:[#allocation2 + $0x6c] sm:$0xf] %vm1076_vm4, %v1035_v36  ;;  %v1033_v40 = vpop.permute.xlu0 %1032 }
 0x21e   : > { %1103 = vst.msk [vmem:[#allocation2 + $0x68] sm:$0xf] %vm1076_vm4, %v1033_v40  ;;  %2220 = vrot.lane.b32.xlu1 %v11029_v17, %s18664_s20  ;;  %v12036_v17 = vld [vmem:[#allocation2 + $0x48] sm:$0xff]  }
 0x21f   : > { %2218 = vrot.lane.b32.xlu0 %v11028_v59, %s18664_s20 }
 0x220   : > { %v1369_v33 = vpop.permute.xlu1 %1368 }
 0x221   : > { %1440 = vst.msk [vmem:[#allocation2 + $0x64] sm:$0xf] %vm18678_vm0, %v1369_v33  ;;  %v1367_v24 = vpop.permute.xlu0 %1366  ;;  %v12027_v45 = vld [vmem:[#allocation2 + $0x58] sm:$0xff]  }
 0x222   : > { %1439 = vst.msk [vmem:[#allocation2 + $0x60] sm:$0xf] %vm18679_vm1, %v1367_v24  ;;  %2224 = vrot.lane.b32.xlu1 %v11035_v5, %s18664_s20  ;;  %11611 = vmatmul.mubr.msk.bf16.gmra.mxu1 %vm2430_vm12, %v12027_v45  ;;  %v12038_v41 = vld [vmem:[#allocation2 + $0x58] sm:$0xff]   ;;  %vm18682_vm1 = vmmov %vm18678_vm0  ;;  %v3436_v5 = vld [vmem:[#allocation3 + $0x90] sm:$0x1] }
 0x223   : > { %2222 = vrot.lane.b32.xlu0 %v11034_v23, %s18664_s20  ;;  %v3437_v33 = vsel %vm13512_vm3, 0, %v3436_v5  ;;  %v3433_v45 = vld [vmem:[#allocation3 + $0x84] sm:$0x1]  ;;  %v14286_v5 = vld [vmem:[%s18548_s14 + $0x28] sm:$0xff] }
 0x224   : > { %v1373_v19 = vpop.permute.xlu1 %1372  ;;  %3438 = vst [vmem:[#allocation3 + $0x90] sm:$0x1] %v3437_v33  ;;  %v3434_v12 = vsel %vm13512_vm3, 0, %v3433_v45  ;;  %v14300_v33 = vld [vmem:[%s18548_s14 + $0x18] sm:$0xff] }
 0x225   : > { %1442 = vst.msk [vmem:[#allocation2 + $0x6c] sm:$0xf] %vm18680_vm2, %v1373_v19  ;;  %v1371_v30 = vpop.permute.xlu0 %1370  ;;  %vm18683_vm2 = vmmov %vm18678_vm0  ;;  %v3492_v19 = vld [vmem:[#allocation3 + $0x98] sm:$0x1]  ;;  %v3501_v45 = vld [vmem:[#allocation3 + $0xbc] sm:$0x1] }
 0x226   : > { %1441 = vst.msk [vmem:[#allocation2 + $0x68] sm:$0xf] %vm18681_vm13, %v1371_v30  ;;  %9883 = vrot.lane.b32.xlu1 %v12028_v11, %s12570_s2  ;;  %v3493_v30 = vsel %vm13524_vm5, 0, %v3492_v19  ;;  %3435 = vst [vmem:[#allocation3 + $0x84] sm:$0x1] %v3434_v12  ;;  %v14314_v19 = vld [vmem:[%s18548_s14 + $0x8] sm:$0xff] }
 0x227   : > { %9881 = vrot.lane.b32.xlu0 %v12029_v26, %s12570_s2  ;;  %3494 = vst [vmem:[#allocation3 + $0x98] sm:$0x1] %v3493_v30  ;;  %v3502_v12 = vsel %vm13524_vm5, 0, %v3501_v45  ;;  %v11592_v30 = vpop.f32.mrf.mxu0 }
 0x228   : > { %v1504_v46 = vpop.permute.xlu1 %1503  ;;  %3503 = vst [vmem:[#allocation3 + $0xbc] sm:$0x1] %v3502_v12 }
 0x229   : > { %1575 = vst.msk [vmem:[#allocation2 + $0x64] sm:$0xf] %vm1549_vm6, %v1504_v46  ;;  %v1502_v20 = vpop.permute.xlu0 %1501  ;;  %v3489_v46 = vld [vmem:[#allocation3 + $0x8c] sm:$0x1] }
 0x22a   : > { %1574 = vst.msk [vmem:[#allocation2 + $0x60] sm:$0xf] %vm1549_vm6, %v1502_v20  ;;  %9887 = vrot.lane.b32.xlu1 %v12030_v53, %s12570_s2  ;;  %v3490_v53 = vsel %vm13524_vm5, 0, %v3489_v46 }
 0x22b   : > { %9885 = vrot.lane.b32.xlu0 %v12031_v49, %s12570_s2  ;;  %3491 = vst [vmem:[#allocation3 + $0x8c] sm:$0x1] %v3490_v53 }
 0x22c   : > { %v1508_v55 = vpop.permute.xlu1 %1507 }
 0x22d   : > { %1577 = vst.msk [vmem:[#allocation2 + $0x6c] sm:$0xf] %vm1549_vm6, %v1508_v55  ;;  %v1506_v29 = vpop.permute.xlu0 %1505 }
 0x22e   : > { %1576 = vst.msk [vmem:[#allocation2 + $0x68] sm:$0xf] %vm1549_vm6, %v1506_v29  ;;  %9891 = vrot.lane.b32.xlu1 %v12032_v61, %s12570_s2 }
 0x22f   : > { %9889 = vrot.lane.b32.xlu0 %v12033_v9, %s12570_s2 }
 0x230   : > { %v1649_v31 = vpop.permute.xlu1 %1648 }
 0x231   : > { %1720 = vst.msk [vmem:[#allocation2 + $0x64] sm:$0xf] %vm1694_vm7, %v1649_v31  ;;  %v1647_v32 = vpop.permute.xlu0 %1646 }
 0x232   : > { %1719 = vst.msk [vmem:[#allocation2 + $0x60] sm:$0xf] %vm1694_vm7, %v1647_v32  ;;  %9895 = vrot.lane.b32.xlu1 %v12034_v22, %s12570_s2 }
 0x233   : > { %9893 = vrot.lane.b32.xlu0 %v12035_v1, %s12570_s2 }
 0x234   : > { %v1653_v21 = vpop.permute.xlu1 %1652 }
 0x235   : > { %1722 = vst.msk [vmem:[#allocation2 + $0x6c] sm:$0xf] %vm1694_vm7, %v1653_v21  ;;  %v1651_v59 = vpop.permute.xlu0 %1650 }
 0x236   : > { %1721 = vst.msk [vmem:[#allocation2 + $0x68] sm:$0xf] %vm1694_vm7, %v1651_v59  ;;  %9899 = vrot.lane.b32.xlu1 %v12036_v17, %s12570_s2 }
 0x237   : > { %9897 = vrot.lane.b32.xlu0 %v12037_v54, %s12570_s2 }
 0x238   : > { %v1791_v18 = vpop.permute.xlu1 %1790 }
 0x239   : > { %1862 = vst.msk [vmem:[#allocation2 + $0x64] sm:$0xf] %vm1836_vm8, %v1791_v18  ;;  %v1789_v0 = vpop.permute.xlu0 %1788 }
 0x23a   : > { %1861 = vst.msk [vmem:[#allocation2 + $0x60] sm:$0xf] %vm1836_vm8, %v1789_v0  ;;  %9903 = vrot.lane.b32.xlu1 %v12038_v41, %s12570_s2 }
 0x23b   : > { %9901 = vrot.lane.b32.xlu0 %v12039_v6, %s12570_s2 }
 0x23c   : > { %v1795_v13 = vpop.permute.xlu1 %1794 }
 0x23d   : > { %1864 = vst.msk [vmem:[#allocation2 + $0x6c] sm:$0xf] %vm1836_vm8, %v1795_v13  ;;  %v1793_v8 = vpop.permute.xlu0 %1792  ;;  %v3442_v13 = vld [vmem:[#allocation3 + $0xa8] sm:$0x1] }
 0x23e   : > { %1863 = vst.msk [vmem:[#allocation2 + $0x68] sm:$0xf] %vm1836_vm8, %v1793_v8  ;;  %v3443_v8 = vsel %vm13512_vm3, 0, %v3442_v13 }
 0x23f   : > { %3444 = vst [vmem:[#allocation3 + $0xa8] sm:$0x1] %v3443_v8 }
 0x240   : > { %v1926_v50 = vpop.permute.xlu1 %1925 }
 0x241   : > { %1997 = vst.msk [vmem:[#allocation2 + $0x64] sm:$0xf] %vm1971_vm9, %v1926_v50  ;;  %v1924_v58 = vpop.permute.xlu0 %1923  ;;  %v3439_v50 = vld [vmem:[#allocation3 + $0x9c] sm:$0x1] }
 0x242   : > { %1996 = vst.msk [vmem:[#allocation2 + $0x60] sm:$0xf] %vm1971_vm9, %v1924_v58  ;;  %v3498_v58 = vld [vmem:[#allocation3 + $0xb0] sm:$0x1] }
 0x244   : > { %v1930_v38 = vpop.permute.xlu1 %1929 }
 0x245   : > { %1999 = vst.msk [vmem:[#allocation2 + $0x6c] sm:$0xf] %vm1971_vm9, %v1930_v38  ;;  %v1928_v35 = vpop.permute.xlu0 %1927  ;;  %v3440_v38 = vsel %vm13512_vm3, 0, %v3439_v50 }
 0x246   : > { %1998 = vst.msk [vmem:[#allocation2 + $0x68] sm:$0xf] %vm1971_vm9, %v1928_v35  ;;  %v3499_v35 = vsel %vm13524_vm5, 0, %v3498_v58  ;;  %3441 = vst [vmem:[#allocation3 + $0x9c] sm:$0x1] %v3440_v38 }
 0x247   : > { %3500 = vst [vmem:[#allocation3 + $0xb0] sm:$0x1] %v3499_v35 }
 0x248   : > { %v2071_v47 = vpop.permute.xlu1 %2070 }
 0x249   : > { %2142 = vst.msk [vmem:[#allocation2 + $0x64] sm:$0xf] %vm2116_vm10, %v2071_v47  ;;  %v2069_v28 = vpop.permute.xlu0 %2068  ;;  %v3495_v47 = vld [vmem:[#allocation3 + $0xa4] sm:$0x1] }
 0x24a   : > { %2141 = vst.msk [vmem:[#allocation2 + $0x60] sm:$0xf] %vm2116_vm10, %v2069_v28  ;;  %v14207_v28 = vld [vmem:[%s18548_s14 + $0x78] sm:$0xff] }
 0x24c   : > { %v2075_v10 = vpop.permute.xlu1 %2074 }
 0x24d   : > { %2144 = vst.msk [vmem:[#allocation2 + $0x6c] sm:$0xf] %vm2116_vm10, %v2075_v10  ;;  %v2073_v60 = vpop.permute.xlu0 %2072  ;;  %v3496_v10 = vsel %vm13524_vm5, 0, %v3495_v47 }
 0x24e   : > { %2143 = vst.msk [vmem:[#allocation2 + $0x68] sm:$0xf] %vm2116_vm10, %v2073_v60  ;;  %v18569_v60 = vmov 0.0   ;;  %3497 = vst [vmem:[#allocation3 + $0xa4] sm:$0x1] %v3496_v10 }
 0x24f   : > { %11622 = vmatprep.subr.mxu1 %v18569_v60 }
 0x250   : > { %v2213_v56 = vpop.permute.xlu1 %2212  ;;  %11623 = vmatpush3.msra.mxu1 %v14207_v28 }
 0x251   : > { %2284 = vst.msk [vmem:[#allocation2 + $0x64] sm:$0xf] %vm2258_vm11, %v2213_v56  ;;  %v2211_v2 = vpop.permute.xlu0 %2210  ;;  %v14215_v56 = vld [vmem:[%s18548_s14 + $0x70] sm:$0xff]  ;;  %11624 = vmatprep.subr.mxu1 %v18569_v60 }
 0x252   : > { %2283 = vst.msk [vmem:[#allocation2 + $0x60] sm:$0xf] %vm2258_vm11, %v2211_v2  ;;  %v14222_v2 = vld [vmem:[%s18548_s14 + $0x68] sm:$0xff]  ;;  %11625 = vmatpush3.msra.mxu1 %v14215_v56 }
 0x253   : > { %11626 = vmatprep.subr.mxu1 %v18569_v60 }
 0x254   : > { %v1039_v4 = vpop.permute.xlu1 %1038  ;;  %11627 = vmatpush3.msra.mxu1 %v14222_v2 }
 0x255   : > { %1106 = vst.msk [vmem:[#allocation2 + $0x74] sm:$0xf] %vm1076_vm4, %v1039_v4  ;;  %v1037_v34 = vpop.permute.xlu0 %1036  ;;  %11628 = vmatprep.subr.mxu1 %v18569_v60  ;;  %v3448_v4 = vld [vmem:[#allocation3 + $0xc0] sm:$0x1] }
 0x256   : > { %1105 = vst.msk [vmem:[#allocation2 + $0x70] sm:$0xf] %vm1076_vm4, %v1037_v34  ;;  %v14231_v34 = vld [vmem:[%s18548_s14 + $0x60] sm:$0xff] }
 0x257   : > { %11629 = vmatpush3.msra.mxu1 %v14231_v34 }
 0x258   : > { %v2217_v27 = vpop.permute.xlu1 %2216  ;;  %11630 = vmatprep.subr.mxu1 %v18569_v60 }
 0x259   : > { %2286 = vst.msk [vmem:[#allocation2 + $0x6c] sm:$0xf] %vm2258_vm11, %v2217_v27  ;;  %v2215_v16 = vpop.permute.xlu0 %2214  ;;  %v12040_v42 = vld [vmem:[#allocation2 + $0x60] sm:$0xff]   ;;  %v3449_v27 = vsel %vm13512_vm3, 0, %v3448_v4 }
 0x25a   : > { %2285 = vst.msk [vmem:[#allocation2 + $0x68] sm:$0xf] %vm2258_vm11, %v2215_v16  ;;  %v12041_v37 = vld [vmem:[#allocation2 + $0x60] sm:$0xff]   ;;  %11614 = vmatprep.mubr.msk.bf16.mxu1 %vm2430_vm12, %v12040_v42  ;;  %3450 = vst [vmem:[#allocation3 + $0xc0] sm:$0x1] %v3449_v27  ;;  %v14240_v16 = vld [vmem:[%s18548_s14 + $0x58] sm:$0xff] }
 0x25b   : > { %9905 = vrot.lane.b32.xlu0 %v12041_v37, %s12570_s2  ;;  %11631 = vmatpush3.msra.mxu1 %v14240_v16  ;;  %v3445_v42 = vld [vmem:[#allocation3 + $0xb4] sm:$0x1]  ;;  %v3504_v37 = vld [vmem:[#allocation3 + $0xc8] sm:$0x1] }
 0x25c   : > { %v1043_v57 = vpop.permute.xlu1 %1042  ;;  %11632 = vmatprep.subr.mxu1 %v18569_v60 }
 0x25d   : > { %1108 = vst.msk [vmem:[#allocation2 + $0x7c] sm:$0xf] %vm1076_vm4, %v1043_v57  ;;  %v1041_v62 = vpop.permute.xlu0 %1040  ;;  %v14247_v57 = vld [vmem:[%s18548_s14 + $0x50] sm:$0xff] }
 0x25e   : > { %1107 = vst.msk [vmem:[#allocation2 + $0x78] sm:$0xf] %vm1076_vm4, %v1041_v62  ;;  %vm18684_vm4 = vmmov %vm18678_vm0  ;;  %v3446_v62 = vsel %vm13512_vm3, 0, %v3445_v42  ;;  %11633 = vmatpush3.msra.mxu1 %v14247_v57 }
 0x25f   : > { %3447 = vst [vmem:[#allocation3 + $0xb4] sm:$0x1] %v3446_v62  ;;  %11634 = vmatprep.subr.mxu1 %v18569_v60 }
 0x260   : > { %v1377_v15 = vpop.permute.xlu1 %1376 }
 0x261   : > { %1444 = vst.msk [vmem:[#allocation2 + $0x74] sm:$0xf] %vm18678_vm0, %v1377_v15  ;;  %v1375_v25 = vpop.permute.xlu0 %1374  ;;  %v12042_v36 = vld [vmem:[#allocation2 + $0x68] sm:$0xff]   ;;  %v3505_v15 = vsel %vm13524_vm5, 0, %v3504_v37  ;;  %vm3606_vm0 = vsmask.f32 4368 }
 0x262   : > { %1443 = vst.msk [vmem:[#allocation2 + $0x70] sm:$0xf] %vm18682_vm1, %v1375_v25  ;;  %v12043_v43 = vld [vmem:[#allocation2 + $0x68] sm:$0xff]   ;;  %11615 = vmatmul.mubr.msk.bf16.gmra.mxu1 %vm2430_vm12, %v12042_v36  ;;  %3506 = vst [vmem:[#allocation3 + $0xc8] sm:$0x1] %v3505_v15  ;;  %v14265_v36 = vld [vmem:[%s18548_s14 + $0x40] sm:$0xff] }
 0x263   : > { %9907 = vrot.lane.b32.xlu0 %v12043_v43, %s12570_s2  ;;  %v14258_v25 = vld [vmem:[%s18548_s14 + $0x48] sm:$0xff]  ;;  %v14272_v43 = vld [vmem:[%s18548_s14 + $0x38] sm:$0xff]  ;;  %vm15330_vm1 = vmor %vm3398_vm14, %vm3606_vm0  ;;  %vm3929_vm14 = vcmask 1043456  }
 0x264   : > { %v1381_v40 = vpop.permute.xlu1 %1380  ;;  %11635 = vmatpush3.msra.mxu1 %v14258_v25 }
 0x265   : > { %1446 = vst.msk [vmem:[#allocation2 + $0x7c] sm:$0xf] %vm18683_vm2, %v1381_v40  ;;  %v1379_v23 = vpop.permute.xlu0 %1378  ;;  %11636 = vmatprep.subr.mxu1 %v18569_v60  ;;  %v14279_v40 = vld [vmem:[%s18548_s14 + $0x30] sm:$0xff]  ;;  %vm15491_vm2 = vmand %vm3929_vm14, %vm3454_vm15  ;;  %vm9913_vm15 = vcmask 31744  }
 0x266   : > { %1445 = vst.msk [vmem:[#allocation2 + $0x78] sm:$0xf] %vm18684_vm4, %v1379_v23  ;;  %11637 = vmatpush3.msra.mxu1 %v14265_v36  ;;  %v14293_v23 = vld [vmem:[%s18548_s14 + $0x20] sm:$0xff] }
 0x267   : > { %11638 = vmatprep.subr.mxu1 %v18569_v60 }
 0x268   : > { %v1512_v24 = vpop.permute.xlu1 %1511  ;;  %11639 = vmatpush3.msra.mxu1 %v14272_v43 }
 0x269   : > { %1579 = vst.msk [vmem:[#allocation2 + $0x74] sm:$0xf] %vm1549_vm6, %v1512_v24  ;;  %v1510_v11 = vpop.permute.xlu0 %1509  ;;  %11640 = vmatprep.subr.mxu1 %v18569_v60  ;;  %v14307_v24 = vld [vmem:[%s18548_s14 + $0x10] sm:$0xff] }
 0x26a   : > { %1578 = vst.msk [vmem:[#allocation2 + $0x70] sm:$0xf] %vm1549_vm6, %v1510_v11  ;;  %11641 = vmatpush3.msra.mxu1 %v14279_v40  ;;  %v14319_v11 = vld [vmem:[%s18548_s14] sm:$0xff] }
 0x26b   : > { %11642 = vmatprep.subr.mxu1 %v18569_v60 }
 0x26c   : > { %v1516_v26 = vpop.permute.xlu1 %1515  ;;  %11643 = vmatpush3.msra.mxu1 %v14286_v5 }
 0x26d   : > { %1581 = vst.msk [vmem:[#allocation2 + $0x7c] sm:$0xf] %vm1549_vm6, %v1516_v26  ;;  %v1514_v52 = vpop.permute.xlu0 %1513  ;;  %11644 = vmatprep.subr.mxu1 %v18569_v60  ;;  %v2517_v26 = vpop.f32.mrf.mxu0 }
 0x26e   : > { %1580 = vst.msk [vmem:[#allocation2 + $0x78] sm:$0xf] %vm1549_vm6, %v1514_v52  ;;  %11645 = vmatpush3.msra.mxu1 %v14293_v23  ;;  %vm12572_vm6 = vmmov 0  }
 0x26f   : > { %11646 = vmatprep.subr.mxu1 %v18569_v60  ;;  %v11593_v52 = vpop.f32.mrf.mxu0 }
 0x270   : > { %v1657_v48 = vpop.permute.xlu1 %1656  ;;  %11647 = vmatpush3.msra.mxu1 %v14300_v33 }
 0x271   : > { %1724 = vst.msk [vmem:[#allocation2 + $0x74] sm:$0xf] %vm1694_vm7, %v1657_v48  ;;  %v1655_v7 = vpop.permute.xlu0 %1654  ;;  %11648 = vmatprep.subr.mxu1 %v18569_v60  ;;  %v2520_v46 = vpop.f32.mrf.mxu0 }
 0x272   : > { %1723 = vst.msk [vmem:[#allocation2 + $0x70] sm:$0xf] %vm1694_vm7, %v1655_v7  ;;  %11649 = vmatpush3.msra.mxu1 %v14307_v24  ;;  %v14332_v7 = vld [vmem:[%s18685_s3] ss:$0 sm:$0xff] }
 0x273   : > { %11650 = vmatprep.subr.mxu1 %v18569_v60  ;;  %v11596_v53 = vpop.f32.mrf.mxu0 }
 0x274   : > { %v1661_v20 = vpop.permute.xlu1 %1660  ;;  %11651 = vmatpush3.msra.mxu1 %v14314_v19 }
 0x275   : > { %1726 = vst.msk [vmem:[#allocation2 + $0x7c] sm:$0xf] %vm1694_vm7, %v1661_v20  ;;  %v1659_v49 = vpop.permute.xlu0 %1658  ;;  %11652 = vmatprep.subr.mxu1 %v18569_v60  ;;  %v2533_v48 = vpop.f32.mrf.mxu0  ;;  %v14335_v20 = vadd.f32 %v14332_v7, %v2520_v46 }
 0x276   : > { %1725 = vst.msk [vmem:[#allocation2 + $0x78] sm:$0xf] %vm1694_vm7, %v1659_v49  ;;  %11653 = vmatpush3.msra.mxu1 %v14319_v11  ;;  %vm3310_vm7 = vcmask 261120  }
 0x277   : > { %11657 = vmatprep.subr.mxu1 %v18569_v60  ;;  %v11597_v49 = vpop.f32.mrf.mxu0 }
 0x278   : > { %v1799_v44 = vpop.permute.xlu1 %1798 }
 0x279   : > { %1866 = vst.msk [vmem:[#allocation2 + $0x74] sm:$0xf] %vm1836_vm8, %v1799_v44  ;;  %v1797_v14 = vpop.permute.xlu0 %1796  ;;  %v14338_v44 = vadd.f32 %v14332_v7, %v2517_v26 }
 0x27a   : > { %1865 = vst.msk [vmem:[#allocation2 + $0x70] sm:$0xf] %vm1836_vm8, %v1797_v14 }
 0x27b   : > { %v2646_v14 = vadd.f32 %v14335_v20, %v14338_v44 }
 0x27c   : > { %v1803_v55 = vpop.permute.xlu1 %1802 }
 0x27d   : > { %1868 = vst.msk [vmem:[#allocation2 + $0x7c] sm:$0xf] %vm1836_vm8, %v1803_v55  ;;  %v1801_v61 = vpop.permute.xlu0 %1800  ;;  %v2536_v55 = vpop.f32.mrf.mxu0 }
 0x27e   : > { %1867 = vst.msk [vmem:[#allocation2 + $0x78] sm:$0xf] %vm1836_vm8, %v1801_v61  ;;  %v14343_v61 = vadd.f32 %v11592_v30, %v14332_v7  ;;  %vm4702_vm8 = vcmask 1042432  }
 0x280   : > { %v1934_v29 = vpop.permute.xlu1 %1933 }
 0x281   : > { %2001 = vst.msk [vmem:[#allocation2 + $0x74] sm:$0xf] %vm1971_vm9, %v1934_v29  ;;  %v1932_v9 = vpop.permute.xlu0 %1931  ;;  %v11600_v29 = vpop.f32.mrf.mxu0 }
 0x282   : > { %2000 = vst.msk [vmem:[#allocation2 + $0x70] sm:$0xf] %vm1971_vm9, %v1932_v9  ;;  %v2647_v9 = vadd.f32 %v2646_v14, %v14343_v61  ;;  %v14375_v10 = vadd.f32 %v11600_v29, %v14332_v7 }
 0x284   : > { %v1938_v39 = vpop.permute.xlu1 %1937 }
 0x285   : > { %2003 = vst.msk [vmem:[#allocation2 + $0x7c] sm:$0xf] %vm1971_vm9, %v1938_v39  ;;  %v1936_v51 = vpop.permute.xlu0 %1935  ;;  %v14347_v39 = vadd.f32 %v11593_v52, %v14332_v7 }
 0x286   : > { %2002 = vst.msk [vmem:[#allocation2 + $0x78] sm:$0xf] %vm1971_vm9, %v1936_v51  ;;  %v14350_v51 = vadd.f32 %v14332_v7, %v2533_v48  ;;  %vm4703_vm9 = vcmask 1046532  }
 0x288   : > { %v2079_v31 = vpop.permute.xlu1 %2078 }
 0x289   : > { %2146 = vst.msk [vmem:[#allocation2 + $0x74] sm:$0xf] %vm2116_vm10, %v2079_v31  ;;  %v2077_v22 = vpop.permute.xlu0 %2076  ;;  %v2549_v31 = vpop.f32.mrf.mxu0 }
 0x28a   : > { %2145 = vst.msk [vmem:[#allocation2 + $0x70] sm:$0xf] %vm2116_vm10, %v2077_v22  ;;  %v2648_v22 = vadd.f32 %v2647_v9, %v14347_v39 }
 0x28c   : > { %v2083_v32 = vpop.permute.xlu1 %2082 }
 0x28d   : > { %2148 = vst.msk [vmem:[#allocation2 + $0x7c] sm:$0xf] %vm2116_vm10, %v2083_v32  ;;  %v2081_v1 = vpop.permute.xlu0 %2080  ;;  %v14354_v32 = vadd.f32 %v14332_v7, %v2536_v55 }
 0x28e   : > { %2147 = vst.msk [vmem:[#allocation2 + $0x78] sm:$0xf] %vm2116_vm10, %v2081_v1  ;;  %v2649_v1 = vadd.f32 %v2648_v22, %v14350_v51  ;;  %vm14938_vm10 = vmor %vm4702_vm8, %vm4703_vm9 }
 0x290   : > { %v2221_v21 = vpop.permute.xlu1 %2220 }
 0x291   : > { %2288 = vst.msk [vmem:[#allocation2 + $0x74] sm:$0xf] %vm2258_vm11, %v2221_v21  ;;  %v2219_v17 = vpop.permute.xlu0 %2218  ;;  %v11601_v21 = vpop.f32.mrf.mxu0 }
 0x292   : > { %2287 = vst.msk [vmem:[#allocation2 + $0x70] sm:$0xf] %vm2258_vm11, %v2219_v17  ;;  %v2650_v17 = vadd.f32 %v2649_v1, %v14354_v32  ;;  %v14379_v37 = vadd.f32 %v11601_v21, %v14332_v7 }
 0x294   : > { %v2225_v59 = vpop.permute.xlu1 %2224 }
 0x295   : > { %2290 = vst.msk [vmem:[#allocation2 + $0x7c] sm:$0xf] %vm2258_vm11, %v2225_v59  ;;  %v2223_v54 = vpop.permute.xlu0 %2222  ;;  %v14359_v59 = vadd.f32 %v11596_v53, %v14332_v7 }
 0x296   : > { %2289 = vst.msk [vmem:[#allocation2 + $0x78] sm:$0xf] %vm2258_vm11, %v2223_v54  ;;  %v2552_v54 = vpop.f32.mrf.mxu0  ;;  %vm4155_vm11 = vsmask.f32 3328 }
 0x297   : > { %v14370_v8 = vadd.f32 %v14332_v7, %v2552_v54 }
 0x299   : > { %v12044_v18 = vld [vmem:[#allocation2 + $0x70] sm:$0xff]  }
 0x29a   : > { %v12045_v41 = vld [vmem:[#allocation2 + $0x70] sm:$0xff]   ;;  %9909 = vrot.lane.b32.xlu1 %v12044_v18, %s12570_s2  ;;  %v2651_v18 = vadd.f32 %v2650_v17, %v14359_v59 }
 0x29b   : > { %11618 = vmatprep.mubr.msk.bf16.mxu1 %vm2430_vm12, %v12045_v41  ;;  %v11604_v41 = vpop.f32.mrf.mxu0 }
 0x29c   : > { %v14391_v46 = vadd.f32 %v11604_v41, %v14332_v7 }
 0x29d   : > { %v12046_v0 = vld [vmem:[#allocation2 + $0x78] sm:$0xff]   ;;  %v2565_v50 = vpop.f32.mrf.mxu0 }
 0x29e   : > { %v12047_v6 = vld [vmem:[#allocation2 + $0x78] sm:$0xff]   ;;  %9911 = vrot.lane.b32.xlu1 %v12046_v0, %s12570_s2  ;;  %v14363_v0 = vadd.f32 %v11597_v49, %v14332_v7  ;;  %v14382_v62 = vadd.f32 %v14332_v7, %v2565_v50  ;;  %s18328_s2 = sshll.u32 %s496_s17, 8 }
 0x29f   : > { %11619 = vmatmul.mubr.msk.bf16.gmra.mxu1 %vm2430_vm12, %v12047_v6  ;;  %v14366_v6 = vadd.f32 %v14332_v7, %v2549_v31  ;;  %v11605_v35 = vpop.f32.mrf.mxu0  ;;  %vm4156_vm12 = vsmask.f32 7440  ;;  %s18368_s20 = scalar_lea.vmem [#allocation5], %s18328_s2  ;;  %s12574_s2 = smov [#allocation5]  }
 0x2a0   : > { %11654 = vmatprep.mubr.msk.f32.mxu1 %vm12572_vm6, %v18569_v60  ;;  %v2652_v13 = vadd.f32 %v2651_v18, %v14363_v0  ;;  %v14395_v49 = vadd.f32 %v11605_v35, %v14332_v7  ;;  %vm15002_vm13 = vmor %vm4155_vm11, %vm4156_vm12  ;;  %s10204_s25 = sshll.u32 %s18368_s20, 4  ;;  %s12504_s27 = sshll.u32 %s12574_s2, 4  ;;  %s18487_s25 = int_to_ptr.vmem [resolvable:$true] %s10204_s25  ;;  %s12505_s27 = int_to_ptr.vmem [resolvable:$false] %s12504_s27 }
 0x2a1   : > { %v2568_v27 = vpop.f32.mrf.mxu0  ;;  %s12500_s23 = scalar_lea.vmem %s18487_s25, 4096  ;;  %s12506_s26 = scalar_lea.vmem %s12505_s27, 8192 }
 0x2a2   : > { %v2653_v58 = vadd.f32 %v2652_v13, %v14366_v6  ;;  %v11608_v47 = vpop.f32.mrf.mxu1  ;;  %v14386_v45 = vadd.f32 %v14332_v7, %v2568_v27  ;;  %p12501_p11 = scmp.ne.s32.totalorder %s18487_s25, %s12500_s23  ;;  %p12507_p0 = scmp.lt.s32.totalorder %s18487_s25, %s12505_s27 }
 0x2a3   : > { %v14407_v21 = vadd.f32 %v11608_v47, %v14332_v7  ;;  %p12508_p1 = scmp.lt.s32.totalorder %s12506_s26, %s12500_s23 }
 0x2a4   : > { %v2654_v38 = vadd.f32 %v2653_v58, %v14370_v8  ;;  %v2581_v42 = vpop.f32.mrf.mxu1  ;;  %p12502_p12 = pnand %p12501_p11, %p12694_p5 }
 0x2a5   : > { %v14398_v14 = vadd.f32 %v14332_v7, %v2581_v42  ;;  %p12509_p2 = por %p12508_p1, %p12507_p0 }
 0x2a6   : > { %v2655_v4 = vadd.f32 %v2654_v38, %v14375_v10  ;;  %v11609_v12 = vpop.f32.mrf.mxu1  ;;  %p12503_p13 = pneg %p12502_p12 }
 0x2a7   : > { %v14411_v41 = vadd.f32 %v11609_v12, %v14332_v7 }
 0x2a8   : > { %v2656_v15 = vadd.f32 %v2655_v4, %v14379_v37  ;;  %v2584_v52 = vpop.f32.mrf.mxu1  ;;  %p12510_p3 = pnand %p12509_p2, %p12503_p13 }
 0x2a9   : > { %v14402_v9 = vadd.f32 %v14332_v7, %v2584_v52 }
 0x2aa   : > { %v2657_v30 = vadd.f32 %v2656_v15, %v14382_v62 }
 0x2ac   : > { %v2658_v26 = vadd.f32 %v2657_v30, %v14386_v45 }
 0x2ae   : > { %v2659_v48 = vadd.f32 %v2658_v26, %v14391_v46 }
 0x2b0   : > { %v2660_v29 = vadd.f32 %v2659_v48, %v14395_v49 }
 0x2b2   : > { %v2661_v31 = vadd.f32 %v2660_v29, %v14398_v14 }
 0x2b4   : > { %v2662_v1 = vadd.f32 %v2661_v31, %v14402_v9 }
 0x2b6   : > { %v2663_v54 = vadd.f32 %v2662_v1, %v14407_v21 }
 0x2b8   : > { %v2664_v50 = vadd.f32 %v2663_v54, %v14411_v41 }
 0x2e2   : > { %v11612_v53 = vpop.f32.mrf.mxu1 }
 0x2e3   : > { %v14423_v27 = vadd.f32 %v11612_v53, %v14332_v7 }
 0x2e4   : > { %v2597_v55 = vpop.f32.mrf.mxu1 }
 0x2e5   : > { %v14414_v13 = vadd.f32 %v14332_v7, %v2597_v55 }
 0x2e6   : > { %v11613_v22 = vpop.f32.mrf.mxu1 }
 0x2e7   : > { %v2665_v35 = vadd.f32 %v2664_v50, %v14414_v13  ;;  %v14427_v12 = vadd.f32 %v11613_v22, %v14332_v7 }
 0x2e8   : > { %v2600_v17 = vpop.f32.mrf.mxu1 }
 0x2e9   : > { %v14418_v58 = vadd.f32 %v14332_v7, %v2600_v17 }
 0x2eb   : > { %v2666_v47 = vadd.f32 %v2665_v35, %v14418_v58 }
 0x2ed   : > { %v2667_v42 = vadd.f32 %v2666_v47, %v14423_v27 }
 0x2ef   : > { %v2668_v26 = vadd.f32 %v2667_v42, %v14427_v12 }
 0x322   : > { %v11616_v18 = vpop.f32.mrf.mxu1 }
 0x323   : > { %v14439_v53 = vadd.f32 %v11616_v18, %v14332_v7 }
 0x324   : > { %v2613_v38 = vpop.f32.mrf.mxu1 }
 0x325   : > { %v14430_v30 = vadd.f32 %v14332_v7, %v2613_v38 }
 0x326   : > { %v11617_v4 = vpop.f32.mrf.mxu1 }
 0x327   : > { %v2669_v48 = vadd.f32 %v2668_v26, %v14430_v30  ;;  %v14443_v1 = vadd.f32 %v11617_v4, %v14332_v7 }
 0x328   : > { %v2616_v15 = vpop.f32.mrf.mxu1 }
 0x329   : > { %v14434_v52 = vadd.f32 %v14332_v7, %v2616_v15 }
 0x32b   : > { %v2670_v55 = vadd.f32 %v2669_v48, %v14434_v52 }
 0x32d   : > { %v2671_v31 = vadd.f32 %v2670_v55, %v14439_v53 }
 0x32f   : > { %v2672_v50 = vadd.f32 %v2671_v31, %v14443_v1 }
 0x35f   : > { %v11620_v29 = vpop.f32.mrf.mxu1 }
 0x360   : > { %v14454_v18 = vadd.f32 %v11620_v29, %v14332_v7  ;;  %v18686_v29 = vmov 0.0  }
 0x361   : > { %v2629_v22 = vpop.f32.mrf.mxu1 }
 0x362   : > { %v14446_v17 = vadd.f32 %v14332_v7, %v2629_v22 }
 0x363   : > { %v11621_v54 = vpop.f32.mrf.mxu1 }
 0x364   : > { %v2673_v35 = vadd.f32 %v2672_v50, %v14446_v17  ;;  %v14458_v4 = vadd.f32 %v11621_v54, %v14332_v7 }
 0x365   : > { %v2632_v38 = vpop.f32.mrf.mxu1 }
 0x366   : > { %v14451_v47 = vadd.f32 %v14332_v7, %v2632_v38 }
 0x368   : > { %v2674_v42 = vadd.f32 %v2673_v35, %v14451_v47 }
 0x36a   : > { %v2675_v15 = vadd.f32 %v2674_v42, %v14454_v18 }
 0x36c   : > { %v2676_v26 = vadd.f32 %v2675_v15, %v14458_v4 }
 0x36e   : > { %v2677_v48 = vrot.slane %v2676_v26, 4 }
 0x370   : > { %v2678_v55 = vadd.f32 %v2677_v48, %v2676_v26 }
 0x372   : > { %v2679_v31 = vrot.slane %v2678_v55, 2 }
 0x374   : > { %v2680_v22 = vadd.f32 %v2679_v31, %v2678_v55 }
 0x376   : > { %v2681_v50 = vrot.slane %v2680_v22, 1 }
 0x378   : > { %v2682_v60 = vadd.f32 %v2681_v50, %v2680_v22 }
 0x37a   : > { %11655 = vmatmul.mubr.f32.vlgmr.msra.gmra.mxu1 %v2682_v60 }
 0x37b   : > { %11658 = vmatpush3.msra.mxu1 %v14207_v28  ;;  %11689 = vmatprep.mubr.msk.f32.mxu1 %vm12572_vm6, %v18686_v29  ;;  %v2770_v28 = vlaneseq }
 0x37c   : > { %11659 = vmatprep.subr.mxu1 %v18686_v29 }
 0x37d   : > { %11660 = vmatpush3.msra.mxu1 %v14215_v56  ;;  %v2771_v56 = vshrl.u32 %v2770_v28, 7 }
 0x37e   : > { %11661 = vmatprep.subr.mxu1 %v18686_v29 }
 0x37f   : > { %11662 = vmatpush3.msra.mxu1 %v14222_v2 }
 0x380   : > { %11663 = vmatprep.subr.mxu1 %v18686_v29 }
 0x381   : > { %11664 = vmatpush3.msra.mxu1 %v14231_v34 }
 0x382   : > { %11665 = vmatprep.subr.mxu1 %v18686_v29 }
 0x383   : > { %11666 = vmatpush3.msra.mxu1 %v14240_v16  ;;  %v14496_v16 = vsub.s32 0, %v2771_v56 }
 0x384   : > { %11667 = vmatprep.subr.mxu1 %v18686_v29 }
 0x385   : > { %11668 = vmatpush3.msra.mxu1 %v14247_v57  ;;  %18687 = vst [vmem:[#allocation12_spill] sm:$0xff] %v14496_v16 }
 0x386   : > { %11669 = vmatprep.subr.mxu1 %v18686_v29 }
 0x387   : > { %11670 = vmatpush3.msra.mxu1 %v14258_v25 }
 0x388   : > { %11671 = vmatprep.subr.mxu1 %v18686_v29 }
 0x389   : > { %11672 = vmatpush3.msra.mxu1 %v14265_v36 }
 0x38a   : > { %11673 = vmatprep.subr.mxu1 %v18686_v29 }
 0x38b   : > { %11674 = vmatpush3.msra.mxu1 %v14272_v43 }
 0x38c   : > { %11675 = vmatprep.subr.mxu1 %v18686_v29 }
 0x38d   : > { %11676 = vmatpush3.msra.mxu1 %v14279_v40 }
 0x38e   : > { %11677 = vmatprep.subr.mxu1 %v18686_v29 }
 0x38f   : > { %11678 = vmatpush3.msra.mxu1 %v14286_v5 }
 0x390   : > { %11679 = vmatprep.subr.mxu1 %v18686_v29 }
 0x391   : > { %11680 = vmatpush3.msra.mxu1 %v14293_v23 }
 0x392   : > { %11681 = vmatprep.subr.mxu1 %v18686_v29 }
 0x393   : > { %11682 = vmatpush3.msra.mxu1 %v14300_v33 }
 0x394   : > { %11683 = vmatprep.subr.mxu1 %v18686_v29 }
 0x395   : > { %11684 = vmatpush3.msra.mxu1 %v14307_v24 }
 0x396   : > { %11685 = vmatprep.subr.mxu1 %v18686_v29 }
 0x397   : > { %11686 = vmatpush3.msra.mxu1 %v14314_v19 }
 0x398   : > { %11687 = vmatprep.subr.mxu1 %v18686_v29 }
 0x399   : > { %11688 = vmatpush3.msra.mxu1 %v14319_v11 }
 0x39a   : > { %11692 = vmatprep.subr.bf16.mxu1 %v18686_v29 }
 0x43a   : > { %v2765_v60 = vpop.f32.mrf.mxu1 }
 0x43b   : > { %v2769_v34 = vmul.f32 0.001953125, %v2765_v60 }
 0x43c   : > { %v11656_v2 = vpop.f32.mrf.mxu1 }
 0x43d   : > { %v14499_v57 = vrot.slane %v2769_v34, %v14496_v16 }
 0x43f   : > { %v14503_v25 = vsub.f32 %v14338_v44, %v14499_v57  ;;  %v14507_v36 = vsub.f32 %v14335_v20, %v14499_v57  ;;  %v14511_v43 = vsub.f32 %v14343_v61, %v14499_v57  ;;  %v14519_v23 = vsub.f32 %v14347_v39, %v14499_v57 }
 0x440   : > { %v14523_v33 = vsub.f32 %v14350_v51, %v14499_v57  ;;  %v14529_v11 = vsub.f32 %v14354_v32, %v14499_v57  ;;  %v14535_v44 = vsub.f32 %v14359_v59, %v14499_v57  ;;  %v14541_v51 = vsub.f32 %v14363_v0, %v14499_v57 }
 0x441   : > { %v2806_v40 = vmul.f32 %v14503_v25, %v14503_v25  ;;  %v2807_v5 = vmul.f32 %v14507_v36, %v14507_v36  ;;  %v2808_v24 = vmul.f32 %v14511_v43, %v14511_v43  ;;  %v2809_v7 = vmul.f32 %v14519_v23, %v14519_v23 }
 0x442   : > { %v2810_v61 = vmul.f32 %v14523_v33, %v14523_v33  ;;  %v2811_v32 = vmul.f32 %v14529_v11, %v14529_v11  ;;  %v14547_v38 = vsub.f32 %v14366_v6, %v14499_v57  ;;  %v2812_v59 = vmul.f32 %v14535_v44, %v14535_v44 }
 0x443   : > { %v2838_v19 = vadd.f32 %v2807_v5, %v2806_v40  ;;  %v14553_v42 = vsub.f32 %v14370_v8, %v14499_v57  ;;  %v2813_v0 = vmul.f32 %v14541_v51, %v14541_v51  ;;  %v14559_v26 = vsub.f32 %v14375_v10, %v14499_v57 }
 0x444   : > { %v2814_v6 = vmul.f32 %v14547_v38, %v14547_v38  ;;  %v14565_v55 = vsub.f32 %v14379_v37, %v14499_v57  ;;  %v14571_v22 = vsub.f32 %v14382_v62, %v14499_v57  ;;  %v14577_v28 = vsub.f32 %v14386_v45, %v14499_v57 }
 0x445   : > { %v2839_v20 = vadd.f32 %v2838_v19, %v2808_v24  ;;  %v2815_v8 = vmul.f32 %v14553_v42, %v14553_v42  ;;  %v2816_v10 = vmul.f32 %v14559_v26, %v14559_v26  ;;  %v14583_v56 = vsub.f32 %v14391_v46, %v14499_v57 }
 0x446   : > { %v2817_v37 = vmul.f32 %v14565_v55, %v14565_v55  ;;  %v2818_v62 = vmul.f32 %v14571_v22, %v14571_v22  ;;  %v14589_v34 = vsub.f32 %v14395_v49, %v14499_v57  ;;  %v2819_v45 = vmul.f32 %v14577_v28, %v14577_v28 }
 0x447   : > { %v2840_v39 = vadd.f32 %v2839_v20, %v2809_v7  ;;  %v14595_v5 = vsub.f32 %v14398_v14, %v14499_v57  ;;  %v2820_v46 = vmul.f32 %v14583_v56, %v14583_v56  ;;  %v14601_v19 = vsub.f32 %v14402_v9, %v14499_v57 }
 0x448   : > { %v2821_v49 = vmul.f32 %v14589_v34, %v14589_v34  ;;  %v14607_v20 = vsub.f32 %v14407_v21, %v14499_v57  ;;  %v14617_v9 = vsub.f32 %v14411_v41, %v14499_v57  ;;  %v14623_v21 = vsub.f32 %v14414_v13, %v14499_v57 }
 0x449   : > { %v2841_v54 = vadd.f32 %v2840_v39, %v2810_v61  ;;  %v2822_v14 = vmul.f32 %v14595_v5, %v14595_v5  ;;  %v2823_v39 = vmul.f32 %v14601_v19, %v14601_v19 }
 0x44a   : > { %v2825_v41 = vmul.f32 %v14617_v9, %v14617_v9  ;;  %v2826_v13 = vmul.f32 %v14623_v21, %v14623_v21 }
 0x44b   : > { %v2842_v35 = vadd.f32 %v2841_v54, %v2811_v32  ;;  %v3284_v54 = vld [vmem:[%s506_s16] sm:$0x1] }
 0x44d   : > { %v2843_v15 = vadd.f32 %v2842_v35, %v2812_v59  ;;  %v2824_v59 = vmul.f32 %v14607_v20, %v14607_v20 }
 0x44f   : > { %v2844_v48 = vadd.f32 %v2843_v15, %v2813_v0  ;;  %v14629_v0 = vsub.f32 %v14418_v58, %v14499_v57 }
 0x451   : > { %v2845_v31 = vadd.f32 %v2844_v48, %v2814_v6  ;;  %v10459_v6 = vmul.f32 -1.442695, %v3284_v54  ;;  %v14635_v48 = vsub.f32 %v14423_v27, %v14499_v57  ;;  %v2827_v58 = vmul.f32 %v14629_v0, %v14629_v0 }
 0x453   : > { %v2846_v50 = vadd.f32 %v2845_v31, %v2815_v8  ;;  %v14641_v31 = vsub.f32 %v14427_v12, %v14499_v57  ;;  %12234 = vpow2.f32 %v10459_v6  ;;  %v2828_v27 = vmul.f32 %v14635_v48, %v14635_v48 }
 0x455   : > { %v2847_v60 = vadd.f32 %v2846_v50, %v2816_v10  ;;  %v14647_v50 = vsub.f32 %v14430_v30, %v14499_v57  ;;  %v2829_v12 = vmul.f32 %v14641_v31, %v14641_v31 }
 0x457   : > { %v2848_v2 = vadd.f32 %v2847_v60, %v2817_v37  ;;  %v14653_v60 = vsub.f32 %v14434_v52, %v14499_v57  ;;  %v2830_v30 = vmul.f32 %v14647_v50, %v14647_v50 }
 0x459   : > { %v2849_v40 = vadd.f32 %v2848_v2, %v2818_v62  ;;  %v14659_v2 = vsub.f32 %v14439_v53, %v14499_v57  ;;  %v2831_v52 = vmul.f32 %v14653_v60, %v14653_v60 }
 0x45b   : > { %v2850_v24 = vadd.f32 %v2849_v40, %v2819_v45  ;;  %v14665_v40 = vsub.f32 %v14443_v1, %v14499_v57  ;;  %v2832_v53 = vmul.f32 %v14659_v2, %v14659_v2 }
 0x45d   : > { %v2851_v7 = vadd.f32 %v2850_v24, %v2820_v46  ;;  %v14671_v24 = vsub.f32 %v14446_v17, %v14499_v57  ;;  %v2833_v1 = vmul.f32 %v14665_v40, %v14665_v40 }
 0x45f   : > { %v2852_v61 = vadd.f32 %v2851_v7, %v2821_v49  ;;  %v14677_v7 = vsub.f32 %v14451_v47, %v14499_v57  ;;  %v2834_v17 = vmul.f32 %v14671_v24, %v14671_v24 }
 0x461   : > { %v2853_v32 = vadd.f32 %v2852_v61, %v2822_v14  ;;  %v12235_v61 = vpop.eup %12234  ;;  %v2835_v47 = vmul.f32 %v14677_v7, %v14677_v7 }
 0x463   : > { %v2854_v35 = vadd.f32 %v2853_v32, %v2823_v39  ;;  %v14683_v39 = vsub.f32 %v14454_v18, %v14499_v57 }
 0x465   : > { %v2855_v15 = vadd.f32 %v2854_v35, %v2824_v59  ;;  %v14689_v59 = vsub.f32 %v14458_v4, %v14499_v57 }
 0x467   : > { %v2856_v8 = vadd.f32 %v2855_v15, %v2825_v41  ;;  %v3288_v41 = vadd.f32 1.0, %v12235_v61  ;;  %v2836_v15 = vmul.f32 %v14683_v39, %v14683_v39  ;;  %v2837_v18 = vmul.f32 %v14689_v59, %v14689_v59 }
 0x469   : > { %v2857_v10 = vadd.f32 %v2856_v8, %v2826_v13  ;;  %12236 = vrcp.f32 %v3288_v41 }
 0x46b   : > { %v2858_v37 = vadd.f32 %v2857_v10, %v2827_v58 }
 0x46d   : > { %v2859_v62 = vadd.f32 %v2858_v37, %v2828_v27 }
 0x46f   : > { %v2860_v45 = vadd.f32 %v2859_v62, %v2829_v12  ;;  %v12048_v12 = vld [vmem:[%s18540_s6 + $0x8] sm:$0xff]  }
 0x471   : > { %v2861_v46 = vadd.f32 %v2860_v45, %v2830_v30  ;;  %v12049_v45 = vld [vmem:[%s18540_s6] sm:$0xff]  }
 0x473   : > { %v2862_v49 = vadd.f32 %v2861_v46, %v2831_v52 }
 0x475   : > { %v2863_v14 = vadd.f32 %v2862_v49, %v2832_v53 }
 0x476   : > { %v12237_v37 = vpop.eup %12236 }
 0x477   : > { %v2864_v32 = vadd.f32 %v2863_v14, %v2833_v1  ;;  %v3291_v30 = vmul.f32 %v12237_v37, %v3284_v54 }
 0x479   : > { %v2865_v35 = vadd.f32 %v2864_v32, %v2834_v17  ;;  %v3292_v52 = vpack.c.bf16 %v3291_v30, %v3291_v30 }
 0x47b   : > { %v2866_v6 = vadd.f32 %v2865_v35, %v2835_v47  ;;  %v12573_v47 = vmov 0  }
 0x47c   : > { %3390 = vst [vmem:[#allocation3] sm:$0xf] %v12573_v47  ;;  %3391 = vst [vmem:[#allocation3 + $0x4] sm:$0xf] %v12573_v47 }
 0x47d   : > { %v2867_v13 = vadd.f32 %v2866_v6, %v2836_v15  ;;  %3392 = vst [vmem:[#allocation3 + $0x8] sm:$0x1] %v12573_v47  ;;  %3394 = vst [vmem:[#allocation3 + $0xcc] sm:$0xf] %v12573_v47 }
 0x47e   : > { %3395 = vst [vmem:[#allocation3 + $0xd0] sm:$0xf] %v12573_v47  ;;  %3396 = vst [vmem:[#allocation3 + $0xd4] sm:$0x1] %v12573_v47 }
 0x47f   : > { %v2868_v8 = vadd.f32 %v2867_v13, %v2837_v18 }
 0x481   : > { %v2869_v58 = vrot.slane %v2868_v8, 4 }
 0x483   : > { %v2870_v10 = vadd.f32 %v2869_v58, %v2868_v8 }
 0x485   : > { %v2871_v27 = vrot.slane %v2870_v10, 2 }
 0x487   : > { %v2872_v4 = vadd.f32 %v2871_v27, %v2870_v10 }
 0x489   : > { %v2873_v57 = vrot.slane %v2872_v4, 1 }
 0x48b   : > { %v2874_v62 = vadd.f32 %v2873_v57, %v2872_v4 }
 0x48d   : > { %11690 = vmatmul.mubr.f32.vlgmr.msra.gmra.mxu1 %v2874_v62 }
 0x48e   : > { %11693 = vmatpush3.bf16.msra.mxu1 %v12048_v12  ;;  %11696 = vmatprep.mubr.msk.bf16.mxu1 %vm12572_vm6, %v18686_v29 }
 0x48f   : > { %11694 = vmatprep.subr.bf16.mxu1 %v18686_v29 }
 0x492   : > { %11695 = vmatpush3.bf16.msra.mxu1 %v12049_v45 }
 0x495   : > { %11697 = vmatmul.mubr.msk.bf16.vlgmr.msra.gmra.mxu1 %vm3310_vm7, %v3292_v52 }
 0x54d   : > { %v2941_v46 = vpop.f32.mrf.mxu1 }
 0x54e   : > { %v2945_v53 = vmul.f32 0.001953125, %v2941_v46 }
 0x54f   : > { %v11691_v49 = vpop.f32.mrf.mxu1 }
 0x550   : > { %v2946_v1 = vadd.f32 1e-05, %v2945_v53 }
 0x552   : > { %12238 = vrsqrt.f32 %v2946_v1 }
 0x555   : > { %v14706_v54 = vpop.f32.mrf.mxu1 }
 0x557   : > { %v11698_v14 = vpop.f32.mrf.mxu1 }
 0x559   : > { %v3351_v61 = vpop.f32.mrf.mxu1 }
 0x55a   : > { %v12050_v61 = vld [vmem:[%s18542_s8 + $0x138] sm:$0xff]  }
 0x55b   : > { %v11699_v17 = vpop.f32.mrf.mxu1  ;;  %11125 = vmatprep.subr.bf16.mxu0 %v12050_v61  ;;  %v12054_v61 = vld [vmem:[%s18542_s8 + $0xf0] sm:$0xff]  }
 0x55f   : > { %v12239_v32 = vpop.eup %12238 }
 0x560   : > { %v2951_v35 = vrot.slane %v12239_v32, %v14496_v16 }
 0x562   : > { %v2952_v41 = vmul.f32 %v2951_v35, %v14503_v25  ;;  %v2953_v15 = vmul.f32 %v2951_v35, %v14507_v36  ;;  %v2954_v6 = vmul.f32 %v2951_v35, %v14511_v43  ;;  %v2955_v18 = vmul.f32 %v2951_v35, %v14519_v23 }
 0x563   : > { %v2956_v13 = vmul.f32 %v2951_v35, %v14523_v33  ;;  %v2957_v8 = vmul.f32 %v2951_v35, %v14529_v11  ;;  %v2958_v58 = vmul.f32 %v2951_v35, %v14535_v44  ;;  %v2959_v10 = vmul.f32 %v2951_v35, %v14541_v51 }
 0x564   : > { %v2960_v27 = vmul.f32 %v2951_v35, %v14547_v38  ;;  %v2961_v4 = vmul.f32 %v2951_v35, %v14553_v42  ;;  %v2962_v25 = vmul.f32 %v2951_v35, %v14559_v26  ;;  %v2963_v36 = vmul.f32 %v2951_v35, %v14565_v55  ;;  %v10425_v26 = vld [vmem:[%s18538_s4] ss:$0 sm:$0xff] }
 0x565   : > { %v2964_v43 = vmul.f32 %v2951_v35, %v14571_v22  ;;  %v2965_v23 = vmul.f32 %v2951_v35, %v14577_v28  ;;  %v2966_v33 = vmul.f32 %v2951_v35, %v14583_v56  ;;  %v2967_v11 = vmul.f32 %v2951_v35, %v14589_v34 }
 0x566   : > { %v2968_v44 = vmul.f32 %v2951_v35, %v14595_v5  ;;  %v2969_v51 = vmul.f32 %v2951_v35, %v14601_v19  ;;  %v2970_v38 = vmul.f32 %v2951_v35, %v14607_v20  ;;  %v2971_v42 = vmul.f32 %v2951_v35, %v14617_v9 }
 0x567   : > { %v2972_v55 = vmul.f32 %v2951_v35, %v14623_v21  ;;  %v2973_v22 = vmul.f32 %v2951_v35, %v14629_v0  ;;  %v2974_v28 = vmul.f32 %v2951_v35, %v14635_v48  ;;  %v2975_v56 = vmul.f32 %v2951_v35, %v14641_v31 }
 0x568   : > { %v2976_v34 = vmul.f32 %v2951_v35, %v14647_v50  ;;  %v2977_v5 = vmul.f32 %v2951_v35, %v14653_v60  ;;  %v2978_v19 = vmul.f32 %v2951_v35, %v14659_v2  ;;  %v2979_v20 = vmul.f32 %v2951_v35, %v14665_v40  ;;  %v14747_v2 = vld [vmem:[%s18539_s5] ss:$0 sm:$0xff] }
 0x569   : > { %v2980_v9 = vmul.f32 %v2951_v35, %v14671_v24  ;;  %v2981_v57 = vmul.f32 %v2951_v35, %v14677_v7  ;;  %v2982_v21 = vmul.f32 %v2951_v35, %v14683_v39  ;;  %v2983_v0 = vmul.f32 %v2951_v35, %v14689_v59 }
 0x56a   : > { %v2990_v37 = vmul.f32 %v10425_v26, %v2952_v41  ;;  %v2991_v48 = vmul.f32 %v10425_v26, %v2953_v15  ;;  %v2992_v12 = vmul.f32 %v10425_v26, %v2954_v6  ;;  %v2993_v31 = vmul.f32 %v10425_v26, %v2955_v18  ;;  %v12051_v41 = vld [vmem:[%s18542_s8 + $0xf8] sm:$0xff]  }
 0x56b   : > { %v2994_v62 = vmul.f32 %v10425_v26, %v2956_v13  ;;  %v2995_v50 = vmul.f32 %v10425_v26, %v2957_v8  ;;  %v2996_v30 = vmul.f32 %v10425_v26, %v2958_v58  ;;  %v2997_v60 = vmul.f32 %v10425_v26, %v2959_v10  ;;  %11126 = vmatpush3.bf16.msra.mxu0 %v12051_v41 }
 0x56c   : > { %v2998_v40 = vmul.f32 %v10425_v26, %v2960_v27  ;;  %v2999_v24 = vmul.f32 %v10425_v26, %v2961_v4  ;;  %v3000_v7 = vmul.f32 %v10425_v26, %v2962_v25  ;;  %v3001_v45 = vmul.f32 %v10425_v26, %v2963_v36  ;;  %v12053_v4 = vld [vmem:[%s18542_s8 + $0x178] sm:$0xff]  }
 0x56d   : > { %v3002_v39 = vmul.f32 %v10425_v26, %v2964_v43  ;;  %v3003_v52 = vmul.f32 %v10425_v26, %v2965_v23  ;;  %v3004_v59 = vmul.f32 %v10425_v26, %v2966_v33  ;;  %v3005_v46 = vmul.f32 %v10425_v26, %v2967_v11  ;;  %v12052_v33 = vld [vmem:[%s18542_s8 + $0x130] sm:$0xff]   ;;  %11700 = vmatprep.subr.bf16.mxu1 %v12053_v4 }
 0x56e   : > { %v3006_v53 = vmul.f32 %v10425_v26, %v2968_v44  ;;  %v3007_v49 = vmul.f32 %v10425_v26, %v2969_v51  ;;  %v3008_v1 = vmul.f32 %v10425_v26, %v2970_v38  ;;  %v3009_v14 = vmul.f32 %v10425_v26, %v2971_v42  ;;  %11127 = vmatprep.subr.bf16.mxu0 %v12052_v33 }
 0x56f   : > { %v3010_v17 = vmul.f32 %v10425_v26, %v2972_v55  ;;  %v14753_v32 = vadd.f32 %v14747_v2, %v2990_v37  ;;  %v14756_v47 = vadd.f32 %v14747_v2, %v2991_v48  ;;  %v14759_v35 = vadd.f32 %v14747_v2, %v2992_v12  ;;  %11701 = vmatpush3.bf16.msra.mxu1 %v12053_v4 }
 0x570   : > { %v3011_v15 = vmul.f32 %v10425_v26, %v2973_v22  ;;  %v3012_v6 = vmul.f32 %v10425_v26, %v2974_v28  ;;  %v3013_v18 = vmul.f32 %v10425_v26, %v2975_v56  ;;  %v14765_v13 = vadd.f32 %v14747_v2, %v2993_v31  ;;  %11128 = vmatpush3.bf16.msra.mxu0 %v12054_v61 }
 0x571   : > { %v14767_v8 = vmul.f32 %v10425_v26, %v2976_v34  ;;  %v14769_v58 = vmul.f32 %v10425_v26, %v2977_v5  ;;  %v14771_v10 = vmul.f32 %v10425_v26, %v2978_v19  ;;  %v14774_v27 = vadd.f32 %v14747_v2, %v2994_v62 }
 0x572   : > { %v14779_v25 = vmul.f32 %v10425_v26, %v2979_v20  ;;  %v14781_v36 = vmul.f32 %v10425_v26, %v2980_v9  ;;  %v14783_v43 = vmul.f32 %v10425_v26, %v2981_v57  ;;  %v14786_v23 = vadd.f32 %v14747_v2, %v2995_v50 }
 0x573   : > { %v14792_v11 = vadd.f32 %v14747_v2, %v2996_v30  ;;  %v10427_v44 = vmul.f32 -1.442695, %v14753_v32  ;;  %v10428_v51 = vmul.f32 -1.442695, %v14756_v47  ;;  %v10429_v38 = vmul.f32 -1.442695, %v14759_v35 }
 0x574   : > { %v14797_v42 = vmul.f32 %v10425_v26, %v2982_v21  ;;  %v14799_v55 = vmul.f32 %v10425_v26, %v2983_v0  ;;  %v14802_v22 = vadd.f32 %v14747_v2, %v2997_v60  ;;  %v10430_v28 = vmul.f32 -1.442695, %v14765_v13 }
 0x575   : > { %v14806_v56 = vadd.f32 %v14747_v2, %v2998_v40  ;;  %v14809_v34 = vadd.f32 %v14747_v2, %v2999_v24  ;;  %12240 = vpow2.f32 %v10427_v44  ;;  %v10431_v5 = vmul.f32 -1.442695, %v14774_v27  ;;  %v12057_v44 = vld [vmem:[%s18542_s8 + $0xe8] sm:$0xff]  }
 0x576   : > { %v14813_v19 = vadd.f32 %v14747_v2, %v3000_v7  ;;  %v14816_v26 = vadd.f32 %v14747_v2, %v3001_v45  ;;  %12242 = vpow2.f32 %v10428_v51  ;;  %v10432_v20 = vmul.f32 -1.442695, %v14786_v23  ;;  %v3456_v45 = vld [vmem:[#allocation3 + $0x8] sm:$0x1] }
 0x577   : > { %v14820_v9 = vadd.f32 %v14747_v2, %v3002_v39  ;;  %v14823_v57 = vadd.f32 %v14747_v2, %v3003_v52  ;;  %12244 = vpow2.f32 %v10429_v38  ;;  %v10433_v21 = vmul.f32 -1.442695, %v14792_v11  ;;  %v3400_v39 = vld [vmem:[#allocation3] sm:$0x1]  ;;  %v12059_v51 = vld [vmem:[%s18542_s8 + $0x168] sm:$0xff]  }
 0x578   : > { %v14827_v0 = vadd.f32 %v14747_v2, %v3004_v59  ;;  %v14830_v37 = vadd.f32 %v14747_v2, %v3005_v46  ;;  %12246 = vpow2.f32 %v10430_v28  ;;  %v10434_v48 = vmul.f32 -1.442695, %v14802_v22 }
 0x579   : > { %v14834_v12 = vadd.f32 %v14747_v2, %v3006_v53  ;;  %v14837_v31 = vadd.f32 %v14747_v2, %v3007_v49  ;;  %12248 = vpow2.f32 %v10431_v5  ;;  %v10435_v62 = vmul.f32 -1.442695, %v14806_v56  ;;  %v14859_v53 = vld [vmem:[#allocation3 + $0x4] sm:$0xf] }
 0x57a   : > { %v14841_v50 = vadd.f32 %v14747_v2, %v3008_v1  ;;  %v14844_v30 = vadd.f32 %v14747_v2, %v3009_v14  ;;  %12250 = vpow2.f32 %v10432_v20  ;;  %v10436_v60 = vmul.f32 -1.442695, %v14809_v34  ;;  %v12058_v5 = vld [vmem:[%s18542_s8 + $0x120] sm:$0xff]  }
 0x57b   : > { %v14848_v40 = vadd.f32 %v14747_v2, %v3010_v17  ;;  %v14851_v24 = vadd.f32 %v14747_v2, %v3011_v15  ;;  %12252 = vpow2.f32 %v10433_v21  ;;  %v10437_v7 = vmul.f32 -1.442695, %v14813_v19  ;;  %v12055_v17 = vld [vmem:[%s18542_s8 + $0x128] sm:$0xff]  }
 0x57c   : > { %v14855_v52 = vadd.f32 %v14747_v2, %v3012_v6  ;;  %12254 = vpow2.f32 %v10434_v48  ;;  %v10438_v59 = vmul.f32 -1.442695, %v14816_v26  ;;  %v10439_v46 = vmul.f32 -1.442695, %v14820_v9  ;;  %v12056_v6 = vld [vmem:[%s18542_s8 + $0x170] sm:$0xff]   ;;  %11129 = vmatprep.subr.bf16.mxu0 %v12055_v17 }
 0x57d   : > { %v14862_v49 = vadd.f32 %v14747_v2, %v3013_v18  ;;  %12256 = vpow2.f32 %v10435_v62  ;;  %v10440_v1 = vmul.f32 -1.442695, %v14823_v57  ;;  %v10441_v14 = vmul.f32 -1.442695, %v14827_v0  ;;  %11702 = vmatprep.subr.bf16.mxu1 %v12056_v6  ;;  %11130 = vmatpush3.bf16.msra.mxu0 %v12057_v44  ;;  %v4044_v44 = vld [vmem:[#allocation3 + $0x4] sm:$0xf] }
 0x57e   : > { %12258 = vpow2.f32 %v10436_v60  ;;  %v10442_v41 = vmul.f32 -1.442695, %v14830_v37  ;;  %v10443_v15 = vmul.f32 -1.442695, %v14834_v12  ;;  %v3457_v18 = vsel %vm13524_vm5, 0, %v3456_v45  ;;  %11703 = vmatpush3.bf16.msra.mxu1 %v12056_v6  ;;  %v12062_v45 = vld [vmem:[%s18542_s8 + $0x160] sm:$0xff]   ;;  %11131 = vmatprep.subr.bf16.mxu0 %v12058_v5 }
 0x57f   : > { %18689 = vst [vmem:[#allocation13_spill] sm:$0xff] %v14862_v49  ;;  %v14881_v4 = vadd.f32 %v14747_v2, %v14767_v8  ;;  %12260 = vpow2.f32 %v10437_v7  ;;  %v10444_v33 = vmul.f32 -1.442695, %v14837_v31  ;;  %3458 = vst [vmem:[#allocation3 + $0x8] sm:$0x1] %v3457_v18  ;;  %v3401_v38 = vsel %vm13512_vm3, 0, %v3400_v39  ;;  %11704 = vmatprep.subr.bf16.mxu1 %v12059_v51 }
 0x580   : > { %12262 = vpow2.f32 %v10438_v59  ;;  %v10445_v8 = vmul.f32 -1.442695, %v14841_v50  ;;  %v14894_v28 = vmul.f32 -1.442695, %v14844_v30  ;;  %3402 = vst [vmem:[#allocation3] sm:$0x1] %v3401_v38  ;;  %v14905_v62 = vadd.f32 %v14747_v2, %v14769_v58 }
 0x581   : > { %18690 = vst [vmem:[#allocation14_spill] sm:$0xff] %v14881_v4  ;;  %v4168_v20 = vshll.u32 %v14859_v53, 16  ;;  %12264 = vpow2.f32 %v10439_v46  ;;  %v4172_v21 = vshrl.u32 %v14859_v53, 16  ;;  %v10447_v60 = vmul.f32 -1.442695, %v14848_v40  ;;  %v12060_v46 = vld [vmem:[%s18542_s8 + $0xe0] sm:$0xff]  }
 0x582   : > { %v14901_v48 = vpop.eup %12240  ;;  %18691 = vst [vmem:[#allocation15_spill] sm:$0xff] %v14905_v62  ;;  %12266 = vpow2.f32 %v10440_v1  ;;  %v10448_v7 = vmul.f32 -1.442695, %v14851_v24  ;;  %v14916_v59 = vadd.f32 %v14747_v2, %v14771_v10  ;;  %v14920_v58 = vadd.f32 %v14747_v2, %v14779_v25  ;;  %v4606_v53 = vld [vmem:[#allocation3] sm:$0xe]  ;;  %v12061_v25 = vld [vmem:[%s18542_s8 + $0x118] sm:$0xff]   ;;  %11705 = vmatpush3.bf16.msra.mxu1 %v12059_v51  ;;  %11132 = vmatpush3.bf16.msra.mxu0 %v12060_v46 }
 0x583   : > { %v14912_v39 = vpop.eup %12242  ;;  %12268 = vpow2.f32 %v10441_v14  ;;  %v4607_v1 = vld [vmem:[#allocation3 + $0x4] sm:$0xf]  ;;  %v14925_v61 = vrot.slane %v4168_v20, 5  ;;  %v14931_v10 = vadd.f32 %v14747_v2, %v14781_v36  ;;  %v18693_v14 = vmov 0  ;;  %4076 = vst [vmem:[#allocation4 + $0xc] sm:$0xf] %v4044_v44  ;;  %11706 = vmatprep.subr.bf16.mxu1 %v12062_v45  ;;  %11133 = vmatprep.subr.bf16.mxu0 %v12061_v25 }
 0x584   : > { %18692 = vst [vmem:[#allocation16_spill] sm:$0xff] %v14920_v58  ;;  %v14927_v17 = vpop.eup %12244  ;;  %12270 = vpow2.f32 %v10442_v41  ;;  %v18694_v14 = vsel %vm14938_vm10, 4294967295, %v18693_v14  ;;  %v10495_v6 = vrot.slane %v4606_v53, 9  ;;  %v4707_v18 = vrot.slane %v4607_v1, 5  ;;  %v12065_v53 = vld [vmem:[%s18542_s8 + $0x158] sm:$0xff]   ;;  %v12068_v25 = vld [vmem:[%s18542_s8 + $0x150] sm:$0xff]  }
 0x585   : > { %18695 = vst [vmem:[#allocation17_spill] sm:$0xff] %v18694_v14  ;;  %v14942_v38 = vpop.eup %12246  ;;  %12272 = vpow2.f32 %v10443_v15  ;;  %v10449_v36 = vmul.f32 -1.442695, %v14855_v52  ;;  %v10450_v41 = vmul.f32 -1.442695, %v14862_v49  ;;  %v4174_v5 = vrot.slane %v4172_v21, 4 }
 0x586   : > { %v14946_v20 = vpop.eup %12248  ;;  %12274 = vpow2.f32 %v10444_v33  ;;  %v10451_v29 = vmul.f32 -1.442695, %v14881_v4  ;;  %v4608_v1 = vld [vmem:[#allocation3 + $0x8] sm:$0x1]  ;;  %v4708_v15 = vsel %vm14938_vm10, %v10495_v6, %v4707_v18  ;;  %v4709_v63 = vrot.slane %v4707_v18, 4  ;;  %v12063_v33 = vld [vmem:[%s18542_s8 + $0xd8] sm:$0xff]   ;;  %11707 = vmatpush3.bf16.msra.mxu1 %v12062_v45 }
 0x587   : > { %v14954_v3 = vpop.eup %12250  ;;  %v14958_v51 = vadd.f32 %v14747_v2, %v14783_v43  ;;  %12276 = vpow2.f32 %v10445_v8  ;;  %v4710_v21 = vrot.slane %v4608_v1, 5  ;;  %4849 = vst [vmem:[#allocation4 + $0x8] sm:$0xf] %v4708_v15  ;;  %v4043_v44 = vld [vmem:[#allocation3] sm:$0xf]  ;;  %v4175_v49 = vor.u32 %v4174_v5, %v14925_v61  ;;  %v12064_v43 = vld [vmem:[%s18542_s8 + $0x110] sm:$0xff]   ;;  %11708 = vmatprep.subr.bf16.mxu1 %v12065_v53  ;;  %11134 = vmatpush3.bf16.msra.mxu0 %v12063_v33 }
 0x588   : > { %v4107_v4 = vld [vmem:[#allocation3] sm:$0xf]  ;;  %v14964_v6 = vpop.eup %12252  ;;  %v14968_v18 = vadd.f32 %v14747_v2, %v14797_v42  ;;  %12278 = vpow2.f32 %v14894_v28  ;;  %4075 = vst [vmem:[#allocation4] sm:$0xf] %v4043_v44  ;;  %v4109_v8 = vld [vmem:[#allocation3 + $0x8] sm:$0x1]  ;;  %11135 = vmatprep.subr.bf16.mxu0 %v12064_v43 }
 0x589   : > { %v4159_v46 = vshrl.u32 %v4107_v4, 16  ;;  %v4162_v1 = vshll.u32 %v4107_v4, 16  ;;  %v14974_v15 = vpop.eup %12254  ;;  %12280 = vpow2.f32 %v10447_v60  ;;  %v4711_v5 = vsel %vm14938_vm10, %v4709_v63, %v4710_v21 }
 0x58a   : > { %v14978_v42 = vpop.eup %12256  ;;  %12282 = vpow2.f32 %v10448_v7  ;;  %v10452_v28 = vmul.f32 -1.442695, %v14905_v62  ;;  %4850 = vst [vmem:[#allocation4 + $0x14] sm:$0xf] %v4711_v5  ;;  %v10453_v63 = vmul.f32 -1.442695, %v14916_v59  ;;  %v14994_v62 = vadd.f32 %v14747_v2, %v14799_v55  ;;  %11709 = vmatpush3.bf16.msra.mxu1 %v12065_v53 }
 0x58b   : > { %v4161_v4 = vrot.slane %v4159_v46, 4  ;;  %v4164_v44 = vrot.slane %v4162_v1, 5  ;;  %v14984_v60 = vpop.eup %12258  ;;  %12284 = vpow2.f32 %v10449_v36  ;;  %v12066_v7 = vld [vmem:[%s18542_s8 + $0xd0] sm:$0xff]   ;;  %v4176_v45 = vrot.slane %v4175_v49, 4  ;;  %v12067_v36 = vld [vmem:[%s18542_s8 + $0x108] sm:$0xff]   ;;  %11710 = vmatprep.subr.bf16.mxu1 %v12068_v25 }
 0x58c   : > { %v4178_v21 = vshll.u32 %v4109_v8, 16  ;;  %v14990_v14 = vpop.eup %12260  ;;  %18696 = vst [vmem:[#allocation18_spill] sm:$0xff] %v14994_v62  ;;  %12286 = vpow2.f32 %v10450_v41  ;;  %v10454_v46 = vmul.f32 -1.442695, %v14920_v58  ;;  %v18697_v33 = vmov 0  ;;  %v12071_v1 = vld [vmem:[%s18542_s8 + $0x148] sm:$0xff]   ;;  %11136 = vmatpush3.bf16.msra.mxu0 %v12066_v7 }
 0x58d   : > { %v18698_v33 = vsel %vm15002_vm13, 4294967295, %v18697_v33  ;;  %v4165_v49 = vor.u32 %v4164_v44, %v4161_v4  ;;  %v15006_v8 = vpop.eup %12262  ;;  %12288 = vpow2.f32 %v10451_v29  ;;  %v10455_v2 = vmul.f32 -1.442695, %v14931_v10  ;;  %v12069_v53 = vld [vmem:[%s18542_s8 + $0xc8] sm:$0xff]   ;;  %11137 = vmatprep.subr.bf16.mxu0 %v12067_v36  ;;  %v12076_v36 = vld [vmem:[%s18542_s8 + $0x140] sm:$0xff]  }
 0x58e   : > { %18699 = vst [vmem:[#allocation19_spill] sm:$0xff] %v18698_v33  ;;  %v4180_v55 = vrot.slane %v4178_v21, 5  ;;  %v15009_v41 = vpop.eup %12264  ;;  %12290 = vpow2.f32 %v10452_v28  ;;  %v10456_v43 = vmul.f32 -1.442695, %v14958_v51  ;;  %v10457_v29 = vmul.f32 -1.442695, %v14968_v18  ;;  %11711 = vmatpush3.bf16.msra.mxu1 %v12068_v25 }
 0x58f   : > { %v4166_v5 = vrot.slane %v4165_v49, 4  ;;  %v15015_v58 = vpop.eup %12266  ;;  %12292 = vpow2.f32 %v10453_v63  ;;  %v10458_v44 = vmul.f32 -1.442695, %v14994_v62  ;;  %v12070_v63 = vld [vmem:[%s18542_s8 + $0x100] sm:$0xff]   ;;  %v3156_v49 = vadd.f32 1.0, %v14901_v48  ;;  %11712 = vmatprep.subr.bf16.mxu1 %v12071_v1 }
 0x590   : > { %v4181_v28 = vsel %vm15002_vm13, %v4176_v45, %v4180_v55  ;;  %v15023_v4 = vpop.eup %12268  ;;  %12294 = vpow2.f32 %v10454_v46  ;;  %v3157_v46 = vadd.f32 1.0, %v14912_v39  ;;  %11138 = vmatpush3.bf16.msra.mxu0 %v12069_v53  ;;  %v12073_v48 = vld [vmem:[%s18542_s8 + $0xc0] sm:$0xff]   ;;  %v12077_v39 = vld [vmem:[%s18542_s8 + $0xb8] sm:$0xff]  }
 0x591   : > { %v4171_v7 = vsel %vm15002_vm13, %v4166_v5, %v14925_v61  ;;  %4575 = vst [vmem:[#allocation4 + $0x10] sm:$0xf] %v4181_v28  ;;  %v12271_v21 = vpop.eup %12270  ;;  %12296 = vpow2.f32 %v10455_v2  ;;  %v3158_v61 = vadd.f32 1.0, %v14927_v17  ;;  %v3159_v2 = vadd.f32 1.0, %v14942_v38  ;;  %11139 = vmatprep.subr.bf16.mxu0 %v12070_v63  ;;  %v3297_v38 = vld [vmem:[%s18541_s7] sm:$0x1] }
 0x592   : > { %4574 = vst [vmem:[#allocation4 + $0x4] sm:$0xf] %v4171_v7  ;;  %v12273_v45 = vpop.eup %12272  ;;  %12298 = vpow2.f32 %v10456_v43  ;;  %v3160_v5 = vadd.f32 1.0, %v14946_v20  ;;  %11713 = vmatpush3.bf16.msra.mxu1 %v12071_v1  ;;  %v3162_v28 = vadd.f32 1.0, %v14964_v6  ;;  %v3163_v63 = vadd.f32 1.0, %v14974_v15 }
 0x593   : > { %v12275_v55 = vpop.eup %12274  ;;  %12300 = vpow2.f32 %v10457_v29  ;;  %v3161_v29 = vadd.f32 1.0, %v14954_v3  ;;  %11714 = vmatprep.subr.bf16.mxu1 %v12076_v36  ;;  %v3164_v1 = vadd.f32 1.0, %v14978_v42  ;;  %v3165_v7 = vadd.f32 1.0, %v14984_v60 }
 0x594   : > { %v12277_v25 = vpop.eup %12276  ;;  %12302 = vpow2.f32 %v10458_v44  ;;  %11140 = vmatpush3.bf16.msra.mxu0 %v12073_v48  ;;  %v3349_v6 = vadd.f32 %v14706_v54, %v3297_v38  ;;  %v3167_v15 = vadd.f32 1.0, %v15006_v8  ;;  %v3173_v8 = vadd.f32 1.0, %v12275_v55 }
 0x595   : > { %v12279_v43 = vpop.eup %12278  ;;  %12304 = vrcp.f32 %v3156_v49  ;;  %11748 = vmatprep.subr.bf16.mxu0 %v12077_v39  ;;  %v3170_v39 = vadd.f32 1.0, %v15023_v4 }
 0x596   : > { %v12281_v17 = vpop.eup %12280  ;;  %12306 = vrcp.f32 %v3157_v46  ;;  %11715 = vmatpush3.bf16.msra.mxu1 %v12076_v36  ;;  %v3166_v46 = vadd.f32 1.0, %v14990_v14  ;;  %v3169_v36 = vadd.f32 1.0, %v15015_v58  ;;  %v15060_v60 = vrot.slane %v3349_v6, %v14496_v16 }
 0x597   : > { %v12283_v53 = vpop.eup %12282  ;;  %12308 = vrcp.f32 %v3158_v61  ;;  %v3171_v14 = vadd.f32 1.0, %v12271_v21  ;;  %v3175_v38 = vadd.f32 1.0, %v12279_v43 }
 0x598   : > { %v12285_v44 = vpop.eup %12284  ;;  %12310 = vrcp.f32 %v3159_v2  ;;  %v3168_v2 = vadd.f32 1.0, %v15009_v41 }
 0x599   : > { %v12287_v20 = vpop.eup %12286  ;;  %12312 = vrcp.f32 %v3160_v5  ;;  %v3172_v5 = vadd.f32 1.0, %v12273_v45  ;;  %v3178_v33 = vadd.f32 1.0, %v12285_v44 }
 0x59a   : > { %v12289_v3 = vpop.eup %12288  ;;  %12314 = vrcp.f32 %v3161_v29 }
 0x59b   : > { %v12291_v49 = vpop.eup %12290  ;;  %12316 = vrcp.f32 %v3162_v28  ;;  %v3174_v28 = vadd.f32 1.0, %v12277_v25  ;;  %v3180_v6 = vadd.f32 1.0, %v12289_v3 }
 0x59c   : > { %v12293_v61 = vpop.eup %12292  ;;  %12318 = vrcp.f32 %v3163_v63  ;;  %v3176_v63 = vadd.f32 1.0, %v12281_v17  ;;  %v3181_v16 = vadd.f32 1.0, %v12291_v49 }
 0x59d   : > { %v12295_v48 = vpop.eup %12294  ;;  %12320 = vrcp.f32 %v3164_v1  ;;  %v3177_v1 = vadd.f32 1.0, %v12283_v53  ;;  %v3182_v4 = vadd.f32 1.0, %v12293_v61 }
 0x59e   : > { %v12297_v42 = vpop.eup %12296  ;;  %12322 = vrcp.f32 %v3165_v7  ;;  %v3179_v7 = vadd.f32 1.0, %v12287_v20  ;;  %v15063_v21 = vadd.f32 1.0, %v12295_v48 }
 0x59f   : > { %v12299_v54 = vpop.eup %12298  ;;  %12324 = vrcp.f32 %v3166_v46  ;;  %v15066_v25 = vadd.f32 1.0, %v12297_v42 }
 0x5a0   : > { %v12301_v29 = vpop.eup %12300  ;;  %12326 = vrcp.f32 %v3167_v15  ;;  %v15068_v43 = vadd.f32 1.0, %v12299_v54 }
 0x5a1   : > { %v12303_v41 = vpop.eup %12302  ;;  %12328 = vrcp.f32 %v3168_v2  ;;  %v15071_v44 = vadd.f32 1.0, %v12301_v29 }
 0x5a2   : > { %v12305_v58 = vpop.eup %12304  ;;  %12330 = vrcp.f32 %v3169_v36  ;;  %v15075_v46 = vadd.f32 1.0, %v12303_v41 }
 0x5a3   : > { %v12307_v62 = vpop.eup %12306  ;;  %12332 = vrcp.f32 %v3170_v39  ;;  %v3252_v45 = vmul.f32 %v12305_v58, %v14753_v32 }
 0x5a4   : > { %v12309_v55 = vpop.eup %12308  ;;  %12334 = vrcp.f32 %v3171_v14  ;;  %v3253_v17 = vmul.f32 %v12307_v62, %v14756_v47 }
 0x5a5   : > { %v12311_v53 = vpop.eup %12310  ;;  %12336 = vrcp.f32 %v3172_v5  ;;  %v3254_v20 = vmul.f32 %v12309_v55, %v14759_v35  ;;  %v3358_v3 = vadd.f32 %v15060_v60, %v3252_v45 }
 0x5a6   : > { %v12313_v49 = vpop.eup %12312  ;;  %12338 = vrcp.f32 %v3173_v8  ;;  %v3255_v32 = vmul.f32 %v12311_v53, %v14765_v13  ;;  %v3359_v61 = vadd.f32 %v15060_v60, %v3253_v17 }
 0x5a7   : > { %v12315_v15 = vpop.eup %12314  ;;  %12340 = vrcp.f32 %v3174_v28  ;;  %v3256_v47 = vmul.f32 %v12313_v49, %v14774_v27  ;;  %v3360_v62 = vadd.f32 %v15060_v60, %v3254_v20  ;;  %v15081_v48 = vpack.c.bf16 %v3358_v3, %v3358_v3 }
 0x5a8   : > { %v12317_v2 = vpop.eup %12316  ;;  %12342 = vrcp.f32 %v3175_v38  ;;  %v3257_v35 = vmul.f32 %v12315_v15, %v14786_v23  ;;  %v3361_v42 = vadd.f32 %v15060_v60, %v3255_v32  ;;  %v15085_v36 = vpack.c.bf16 %v3359_v61, %v3359_v61 }
 0x5a9   : > { %v12319_v54 = vpop.eup %12318  ;;  %12344 = vrcp.f32 %v3176_v63  ;;  %v3258_v13 = vmul.f32 %v12317_v2, %v14792_v11  ;;  %v3362_v39 = vadd.f32 %v15060_v60, %v3256_v47  ;;  %v15089_v14 = vpack.c.bf16 %v3360_v62, %v3360_v62 }
 0x5aa   : > { %v12321_v27 = vpop.eup %12320  ;;  %12346 = vrcp.f32 %v3177_v1  ;;  %v3259_v5 = vmul.f32 %v12319_v54, %v14802_v22  ;;  %v3363_v29 = vadd.f32 %v15060_v60, %v3257_v35  ;;  %v15093_v8 = vpack.c.bf16 %v3361_v42, %v3361_v42 }
 0x5ab   : > { %v12323_v23 = vpop.eup %12322  ;;  %12348 = vrcp.f32 %v3178_v33  ;;  %v3260_v28 = vmul.f32 %v12321_v27, %v14806_v56  ;;  %v3364_v38 = vadd.f32 %v15060_v60, %v3258_v13  ;;  %v15097_v41 = vpack.c.bf16 %v3362_v39, %v3362_v39 }
 0x5ac   : > { %v12325_v11 = vpop.eup %12324  ;;  %12350 = vrcp.f32 %v3179_v7  ;;  %v3261_v63 = vmul.f32 %v12323_v23, %v14809_v34  ;;  %v3365_v1 = vadd.f32 %v15060_v60, %v3259_v5  ;;  %v15101_v58 = vpack.c.bf16 %v3363_v29, %v3363_v29 }
 0x5ad   : > { %v12327_v22 = vpop.eup %12326  ;;  %12352 = vrcp.f32 %v3180_v6  ;;  %v3262_v45 = vmul.f32 %v12325_v11, %v14813_v19  ;;  %v3366_v33 = vadd.f32 %v15060_v60, %v3260_v28  ;;  %v15105_v55 = vpack.c.bf16 %v3364_v38, %v3364_v38 }
 0x5ae   : > { %v12329_v56 = vpop.eup %12328  ;;  %12354 = vrcp.f32 %v3181_v16  ;;  %v3263_v17 = vmul.f32 %v12327_v22, %v14816_v26  ;;  %v3367_v7 = vadd.f32 %v15060_v60, %v3261_v63  ;;  %v15109_v53 = vpack.c.bf16 %v3365_v1, %v3365_v1 }
 0x5af   : > { %v12331_v34 = vpop.eup %12330  ;;  %12356 = vrcp.f32 %v3182_v4  ;;  %v3264_v20 = vmul.f32 %v12329_v56, %v14820_v9  ;;  %v3368_v6 = vadd.f32 %v15060_v60, %v3262_v45  ;;  %v15113_v3 = vpack.c.bf16 %v3366_v33, %v3366_v33 }
 0x5b0   : > { %v12333_v19 = vpop.eup %12332  ;;  %12358 = vrcp.f32 %v15063_v21  ;;  %v3265_v49 = vmul.f32 %v12331_v34, %v14823_v57  ;;  %v3369_v16 = vadd.f32 %v15060_v60, %v3263_v17  ;;  %v15118_v26 = vpack.c.bf16 %v3367_v7, %v3367_v7 }
 0x5b1   : > { %v12335_v32 = vpop.eup %12334  ;;  %12360 = vrcp.f32 %v15066_v25  ;;  %v3266_v4 = vmul.f32 %v12333_v19, %v14827_v0  ;;  %v3370_v9 = vadd.f32 %v15060_v60, %v3264_v20  ;;  %v15123_v61 = vpack.c.bf16 %v3368_v6, %v3368_v6  ;;  %v18700_v20 = vld [vmem:[#allocation13_spill] sm:$0xff] }
 0x5b2   : > { %v12337_v15 = vpop.eup %12336  ;;  %12362 = vrcp.f32 %v15068_v43  ;;  %v3267_v21 = vmul.f32 %v12335_v32, %v14830_v37  ;;  %v3371_v57 = vadd.f32 %v15060_v60, %v3265_v49  ;;  %v15128_v47 = vpack.c.bf16 %v3369_v16, %v3369_v16  ;;  %v18701_v32 = vld [vmem:[#allocation14_spill] sm:$0xff] }
 0x5b3   : > { %v12339_v62 = vpop.eup %12338  ;;  %12364 = vrcp.f32 %v15071_v44  ;;  %v3268_v25 = vmul.f32 %v12337_v15, %v14834_v12  ;;  %v3372_v0 = vadd.f32 %v15060_v60, %v3266_v4  ;;  %v15133_v2 = vpack.c.bf16 %v3370_v9, %v3370_v9 }
 0x5b4   : > { %v12341_v35 = vpop.eup %12340  ;;  %12366 = vrcp.f32 %v15075_v46  ;;  %v3269_v43 = vmul.f32 %v12339_v62, %v14837_v31  ;;  %v3373_v37 = vadd.f32 %v15060_v60, %v3267_v21  ;;  %v15138_v42 = vpack.c.bf16 %v3371_v57, %v3371_v57  ;;  %v18703_v57 = vld [vmem:[#allocation15_spill] sm:$0xff] }
 0x5b5   : > { %v12343_v54 = vpop.eup %12342  ;;  %v3270_v13 = vmul.f32 %v12341_v35, %v14841_v50  ;;  %v3374_v44 = vadd.f32 %v15060_v60, %v3268_v25  ;;  %v15142_v39 = vpack.c.bf16 %v3372_v0, %v3372_v0  ;;  %v3609_v12 = vshrl.u32 %v15081_v48, 16 }
 0x5b6   : > { %v12345_v27 = vpop.eup %12344  ;;  %v3271_v5 = vmul.f32 %v12343_v54, %v14844_v30  ;;  %v3375_v46 = vadd.f32 %v15060_v60, %v3269_v43  ;;  %v15147_v29 = vpack.c.bf16 %v3373_v37, %v3373_v37 }
 0x5b7   : > { %v12347_v23 = vpop.eup %12346  ;;  %v3272_v28 = vmul.f32 %v12345_v27, %v14848_v40  ;;  %v3376_v50 = vadd.f32 %v15060_v60, %v3270_v13  ;;  %v15152_v38 = vpack.c.bf16 %v3374_v44, %v3374_v44  ;;  %v3611_v11 = vrot.slane %v3609_v12, 7 }
 0x5b8   : > { %v12349_v63 = vpop.eup %12348  ;;  %v3273_v1 = vmul.f32 %v12347_v23, %v14851_v24  ;;  %v3377_v30 = vadd.f32 %v15060_v60, %v3271_v5  ;;  %v15157_v22 = vpack.c.bf16 %v3375_v46, %v3375_v46  ;;  %v18706_v5 = vld [vmem:[#allocation16_spill] sm:$0xff]  ;;  %v18722_v12 = vshrl.u32 %v15105_v55, 16 }
 0x5b9   : > { %v12351_v33 = vpop.eup %12350  ;;  %v3274_v56 = vmul.f32 %v12349_v63, %v14855_v52  ;;  %v3378_v40 = vadd.f32 %v15060_v60, %v3272_v28  ;;  %v15162_v17 = vpack.c.bf16 %v3376_v50, %v3376_v50 }
 0x5ba   : > { %v12353_v34 = vpop.eup %12352  ;;  %v3275_v6 = vmul.f32 %v12351_v33, %v18700_v20  ;;  %v3379_v24 = vadd.f32 %v15060_v60, %v3273_v1  ;;  %v15167_v19 = vpack.c.bf16 %v3377_v30, %v3377_v30 }
 0x5bb   : > { %v12355_v16 = vpop.eup %12354  ;;  %v3276_v4 = vmul.f32 %v12353_v34, %v18701_v32  ;;  %v3380_v52 = vadd.f32 %v15060_v60, %v3274_v56  ;;  %v15172_v9 = vpack.c.bf16 %v3378_v40, %v3378_v40 }
 0x5bc   : > { %v12357_v21 = vpop.eup %12356  ;;  %v3277_v62 = vmul.f32 %v12355_v16, %v18703_v57  ;;  %v3381_v25 = vadd.f32 %v15060_v60, %v3275_v6  ;;  %v15177_v0 = vpack.c.bf16 %v3379_v24, %v3379_v24 }
 0x5bd   : > { %18702 = vst [vmem:[#allocation13_spill] sm:$0xff] %v15172_v9  ;;  %v12359_v43 = vpop.eup %12358  ;;  %v3278_v37 = vmul.f32 %v12357_v21, %v14916_v59  ;;  %v3382_v54 = vadd.f32 %v15060_v60, %v3276_v4  ;;  %v15182_v13 = vpack.c.bf16 %v3380_v52, %v3380_v52  ;;  %v18711_v52 = vld [vmem:[#allocation18_spill] sm:$0xff] }
 0x5be   : > { %18704 = vst [vmem:[#allocation14_spill] sm:$0xff] %v15177_v0  ;;  %v12361_v27 = vpop.eup %12360  ;;  %v3279_v46 = vmul.f32 %v12359_v43, %v18706_v5  ;;  %v3383_v23 = vadd.f32 %v15060_v60, %v3277_v62  ;;  %v15187_v28 = vpack.c.bf16 %v3381_v25, %v3381_v25  ;;  %v3677_v5 = vshrl.u32 %v15113_v3, 16 }
 0x5bf   : > { %18705 = vst [vmem:[#allocation15_spill] sm:$0xff] %v15182_v13  ;;  %v12363_v63 = vpop.eup %12362  ;;  %v3280_v1 = vmul.f32 %v12361_v27, %v14931_v10  ;;  %v3384_v59 = vadd.f32 %v15060_v60, %v3278_v37  ;;  %v15192_v30 = vpack.c.bf16 %v3382_v54, %v3382_v54  ;;  %v3770_v37 = vshrl.u32 %v15167_v19, 16 }
 0x5c0   : > { %18707 = vst [vmem:[#allocation16_spill] sm:$0xff] %v15187_v28  ;;  %v12365_v56 = vpop.eup %12364  ;;  %v3281_v40 = vmul.f32 %v12363_v63, %v14958_v51  ;;  %v3385_v34 = vadd.f32 %v15060_v60, %v3279_v46  ;;  %v15197_v20 = vpack.c.bf16 %v3383_v23, %v3383_v23  ;;  %v3685_v63 = vshrl.u32 %v15118_v26, 16 }
 0x5c1   : > { %18708 = vst [vmem:[#allocation20_spill] sm:$0xff] %v15192_v30  ;;  %v12367_v24 = vpop.eup %12366  ;;  %v3282_v16 = vmul.f32 %v12365_v56, %v14968_v18  ;;  %v3386_v10 = vadd.f32 %v15060_v60, %v3280_v1  ;;  %v15202_v32 = vpack.c.bf16 %v3384_v59, %v3384_v59  ;;  %v3668_v18 = vshrl.u32 %v15109_v53, 16 }
 0x5c2   : > { %18709 = vst [vmem:[#allocation21_spill] sm:$0xff] %v15197_v20  ;;  %v3283_v21 = vmul.f32 %v12367_v24, %v18711_v52  ;;  %v3387_v57 = vadd.f32 %v15060_v60, %v3281_v40  ;;  %v15207_v51 = vpack.c.bf16 %v3385_v34, %v3385_v34  ;;  %v3694_v59 = vshrl.u32 %v15123_v61, 16 }
 0x5c3   : > { %18710 = vst [vmem:[#allocation22_spill] sm:$0xff] %v15202_v32  ;;  %v3388_v25 = vadd.f32 %v15060_v60, %v3282_v16  ;;  %v15211_v43 = vpack.c.bf16 %v3386_v10, %v3386_v10  ;;  %v3711_v24 = vshrl.u32 %v15133_v2, 16  ;;  %v3719_v10 = vshrl.u32 %v15138_v42, 16 }
 0x5c4   : > { %18712 = vst [vmem:[#allocation18_spill] sm:$0xff] %v15207_v51  ;;  %v3389_v54 = vadd.f32 %v15060_v60, %v3283_v21  ;;  %v15216_v27 = vpack.c.bf16 %v3387_v57, %v3387_v57  ;;  %v3702_v60 = vshrl.u32 %v15128_v47, 16  ;;  %v3728_v21 = vshrl.u32 %v15142_v39, 16 }
 0x5c5   : > { %18713 = vst [vmem:[#allocation23_spill] sm:$0xff] %v15211_v43  ;;  %v15220_v23 = vpack.c.bf16 %v3388_v25, %v3388_v25  ;;  %v3736_v25 = vshrl.u32 %v15147_v29, 16  ;;  %v3745_v40 = vshrl.u32 %v15152_v38, 16  ;;  %v3753_v1 = vshrl.u32 %v15157_v22, 16 }
 0x5c6   : > { %18714 = vst [vmem:[#allocation24_spill] sm:$0xff] %v15216_v27  ;;  %v15225_v56 = vpack.c.bf16 %v3389_v54, %v3389_v54  ;;  %v3762_v46 = vshrl.u32 %v15162_v17, 16  ;;  %v3779_v62 = vshrl.u32 %v15172_v9, 16  ;;  %v3787_v6 = vshrl.u32 %v15177_v0, 16 }
 0x5c7   : > { %18715 = vst [vmem:[#allocation25_spill] sm:$0xff] %v15220_v23  ;;  %v3796_v50 = vshrl.u32 %v15182_v13, 16  ;;  %v3804_v35 = vshrl.u32 %v15187_v28, 16  ;;  %v3813_v49 = vshrl.u32 %v15192_v30, 16  ;;  %v3821_v45 = vshrl.u32 %v15197_v20, 16 }
 0x5c8   : > { %18716 = vst [vmem:[#allocation26_spill] sm:$0xff] %v15225_v56  ;;  %v3830_v31 = vshrl.u32 %v15202_v32, 16  ;;  %v3838_v4 = vshrl.u32 %v15207_v51, 16  ;;  %v3847_v33 = vshrl.u32 %v15211_v43, 16  ;;  %v3855_v44 = vshrl.u32 %v15216_v27, 16 }
 0x5c9   : > { %v3864_v15 = vshrl.u32 %v15220_v23, 16  ;;  %v3872_v7 = vshrl.u32 %v15225_v56, 16  ;;  %v18717_v16 = vshrl.u32 %v15085_v36, 16  ;;  %v18718_v52 = vshrl.u32 %v15089_v14, 16 }
 0x5ca   : > { %v18719_v57 = vshrl.u32 %v15093_v8, 16  ;;  %v18720_v54 = vshrl.u32 %v15097_v41, 16  ;;  %v18721_v32 = vshrl.u32 %v15101_v58, 16  ;;  %v3662_v56 = vrot.slane %v18722_v12, 7 }
 0x5cb   : > { %v15274_v51 = vrot.slane %v18717_v16, 7  ;;  %v3628_v43 = vrot.slane %v18718_v52, 7  ;;  %v15290_v20 = vrot.slane %v3668_v18, 7  ;;  %v3679_v16 = vrot.slane %v3677_v5, 7 }
 0x5cc   : > { %v15280_v27 = vrot.slane %v18719_v57, 7  ;;  %v3645_v23 = vrot.slane %v18720_v54, 7  ;;  %v15286_v34 = vrot.slane %v18721_v32, 7  ;;  %v15292_v30 = vrot.slane %v3685_v63, 7 }
 0x5cd   : > { %v3696_v52 = vrot.slane %v3694_v59, 7  ;;  %v15294_v28 = vrot.slane %v3702_v60, 7  ;;  %v15296_v57 = vrot.slane %v3711_v24, 7  ;;  %v15298_v13 = vrot.slane %v3719_v10, 7 }
 0x5ce   : > { %v15300_v54 = vrot.slane %v3728_v21, 7  ;;  %v15302_v0 = vrot.slane %v3736_v25, 7  ;;  %v15304_v32 = vrot.slane %v3745_v40, 7  ;;  %v15306_v9 = vrot.slane %v3753_v1, 7 }
 0x5cf   : > { %v15308_v18 = vrot.slane %v3762_v46, 7  ;;  %v15310_v5 = vrot.slane %v3770_v37, 7  ;;  %v15312_v63 = vrot.slane %v3779_v62, 7  ;;  %v15314_v59 = vrot.slane %v3787_v6, 7  ;;  %v4022_v37 = vld [vmem:[#allocation3 + $0xa8] sm:$0xf] }
 0x5d0   : > { %v15316_v60 = vrot.slane %v3796_v50, 7  ;;  %v15318_v24 = vrot.slane %v3804_v35, 7  ;;  %v15320_v10 = vrot.slane %v3813_v49, 7  ;;  %v15322_v21 = vrot.slane %v3821_v45, 7 }
 0x5d1   : > { %v15324_v40 = vrot.slane %v3830_v31, 7  ;;  %v15326_v1 = vrot.slane %v3838_v4, 7  ;;  %v15334_v6 = vrot.slane %v3847_v33, 7  ;;  %v15336_v50 = vrot.slane %v3855_v44, 7 }
 0x5d2   : > { %v15338_v35 = vrot.slane %v3864_v15, 7  ;;  %v15340_v49 = vrot.slane %v3872_v7, 7  ;;  %v18726_v45 = vshll.u32 %v15081_v48, 16  ;;  %v3615_v4 = vrot.slane %v3611_v11, 4 }
 0x5d3   : > { %18723 = vst [vmem:[#allocation27_spill] sm:$0xff] %v15326_v1  ;;  %v18727_v62 = vshll.u32 %v15085_v36, 16  ;;  %v18728_v33 = vshll.u32 %v15089_v14, 16  ;;  %v3632_v44 = vrot.slane %v3628_v43, 4  ;;  %v18729_v7 = vshll.u32 %v15093_v8, 16 }
 0x5d4   : > { %v15344_v31 = vor.u32 %v18726_v45, %v3611_v11  ;;  %v18730_v45 = vshll.u32 %v15097_v41, 16  ;;  %v18731_v14 = vshll.u32 %v15101_v58, 16  ;;  %v3666_v25 = vrot.slane %v3662_v56, 4  ;;  %v3973_v58 = vld [vmem:[#allocation3 + $0x54] sm:$0xf] }
 0x5d5   : > { %v3622_v46 = vor.u32 %v18727_v62, %v15274_v51  ;;  %v15352_v12 = vor.u32 %v18728_v33, %v3628_v43  ;;  %v3639_v15 = vor.u32 %v18729_v7, %v15280_v27  ;;  %v3649_v62 = vrot.slane %v3645_v23, 4  ;;  %v3984_v8 = vld [vmem:[#allocation3 + $0x68] sm:$0x1] }
 0x5d6   : > { %v15362_v36 = vor.u32 %v18730_v45, %v3645_v23  ;;  %v3656_v33 = vor.u32 %v18731_v14, %v15286_v34  ;;  %v18732_v7 = vshll.u32 %v15105_v55, 16  ;;  %v18733_v23 = vshll.u32 %v15109_v53, 16 }
 0x5d7   : > { %v3623_v11 = vsel %vm15330_vm1, %v3615_v4, %v3622_v46  ;;  %v3640_v43 = vsel %vm15330_vm1, %v3632_v44, %v3639_v15  ;;  %v18734_v46 = vshll.u32 %v15113_v3, 16  ;;  %v3683_v55 = vrot.slane %v3679_v16, 4 }
 0x5d8   : > { %v15372_v48 = vor.u32 %v18732_v7, %v3662_v56  ;;  %3934 = vst [vmem:[#allocation3 + $0x10] sm:$0xf] %v3623_v11  ;;  %v3657_v41 = vsel %vm15330_vm1, %v3649_v62, %v3656_v33  ;;  %v3673_v4 = vor.u32 %v18733_v23, %v15290_v20  ;;  %3941 = vst [vmem:[#allocation3 + $0x1c] sm:$0xf] %v3640_v43  ;;  %v18735_v56 = vshll.u32 %v15118_v26, 16 }
 0x5d9   : > { %v15382_v44 = vor.u32 %v18734_v46, %v3679_v16  ;;  %v18736_v45 = vshll.u32 %v15123_v61, 16  ;;  %3948 = vst [vmem:[#allocation3 + $0x28] sm:$0xf] %v3657_v41  ;;  %v3700_v3 = vrot.slane %v3696_v52, 4  ;;  %v18737_v14 = vshll.u32 %v15128_v47, 16  ;;  %v15418_v46 = vld [vmem:[#allocation4 + $0xc] sm:$0xff] }
 0x5da   : > { %v3690_v15 = vor.u32 %v18735_v56, %v15292_v30  ;;  %v3674_v53 = vsel %vm15330_vm1, %v3666_v25, %v3673_v4  ;;  %v18738_v43 = vshll.u32 %v15133_v2, 16  ;;  %v3717_v7 = vrot.slane %v15296_v57, 4  ;;  %18741 = vst [vmem:[#allocation28_spill] sm:$0xff] %v15418_v46  ;;  %v3963_v56 = vld [vmem:[#allocation3 + $0x44] sm:$0x1] }
 0x5db   : > { %v15390_v62 = vor.u32 %v18736_v45, %v3696_v52  ;;  %v3707_v33 = vor.u32 %v18737_v14, %v15294_v28  ;;  %v18739_v25 = vshll.u32 %v15138_v42, 16  ;;  %3955 = vst [vmem:[#allocation3 + $0x34] sm:$0xf] %v3674_v53  ;;  %v18740_v23 = vshll.u32 %v15142_v39, 16  ;;  %v18765_v16 = vld [vmem:[#allocation23_spill] sm:$0xff] }
 0x5dc   : > { %v3691_v26 = vsel %vm15330_vm1, %v3683_v55, %v3690_v15  ;;  %v15403_v61 = vor.u32 %v18738_v43, %v15296_v57  ;;  %v3734_v2 = vrot.slane %v15300_v54, 4  ;;  %v18742_v57 = vshll.u32 %v15147_v29, 16  ;;  %v15515_v11 = vld [vmem:[#allocation3 + $0x60] sm:$0xf]  ;;  %v3977_v46 = vld [vmem:[#allocation3 + $0x5c] sm:$0x1] }
 0x5dd   : > { %v3724_v52 = vor.u32 %v18739_v25, %v15298_v13  ;;  %v3708_v47 = vsel %vm15330_vm1, %v3700_v3, %v3707_v33  ;;  %v15415_v4 = vor.u32 %v18740_v23, %v15300_v54  ;;  %3962 = vst [vmem:[#allocation3 + $0x40] sm:$0xf] %v3691_v26  ;;  %v18743_v15 = vshll.u32 %v15152_v38, 16  ;;  %v18749_v23 = vld [vmem:[#allocation14_spill] sm:$0xff]  ;;  %v3970_v3 = vld [vmem:[#allocation3 + $0x50] sm:$0x1] }
 0x5de   : > { %v3741_v55 = vor.u32 %v18742_v57, %v15302_v0  ;;  %3969 = vst [vmem:[#allocation3 + $0x4c] sm:$0xf] %v3708_v47  ;;  %v3751_v54 = vrot.slane %v15304_v32, 4  ;;  %v18744_v45 = vshll.u32 %v15157_v22, 16  ;;  %v18745_v29 = vshll.u32 %v15162_v17, 16  ;;  %v18747_v17 = vld [vmem:[#allocation13_spill] sm:$0xff] }
 0x5df   : > { %v3725_v42 = vsel %vm15330_vm1, %v3717_v7, %v3724_v52  ;;  %v15429_v39 = vor.u32 %v18743_v15, %v15304_v32  ;;  %v4994_v33 = vld [vmem:[#allocation3 + $0x10] sm:$0xf]  ;;  %v3768_v26 = vrot.slane %v15308_v18, 4  ;;  %v18746_v32 = vshll.u32 %v15167_v19, 16  ;;  %v18751_v57 = vld [vmem:[#allocation15_spill] sm:$0xff] }
 0x5e0   : > { %v3758_v53 = vor.u32 %v18744_v45, %v15306_v9  ;;  %v15439_v14 = vor.u32 %v18745_v29, %v15308_v18  ;;  %3976 = vst [vmem:[#allocation3 + $0x58] sm:$0xf] %v3725_v42  ;;  %v3742_v38 = vsel %vm15330_vm1, %v3734_v2, %v3741_v55  ;;  %5026 = vst [vmem:[#allocation4 + $0xc] sm:$0xf] %v4994_v33  ;;  %v18748_v25 = vshll.u32 %v18747_v17, 16 }
 0x5e1   : > { %v3775_v43 = vor.u32 %v18746_v32, %v15310_v5  ;;  %v3785_v47 = vrot.slane %v15312_v63, 4  ;;  %v18750_v18 = vshll.u32 %v18749_v23, 16  ;;  %3983 = vst [vmem:[#allocation3 + $0x64] sm:$0xf] %v3742_v38  ;;  %v18752_v55 = vshll.u32 %v18751_v57, 16  ;;  %v18763_v57 = vld [vmem:[#allocation18_spill] sm:$0xff] }
 0x5e2   : > { %v3759_v7 = vsel %vm15330_vm1, %v3751_v54, %v3758_v53  ;;  %v15453_v52 = vor.u32 %v18748_v25, %v15312_v63  ;;  %v3802_v54 = vrot.slane %v15316_v60, 4  ;;  %v3931_v45 = vld [vmem:[#allocation3 + $0xc] sm:$0xf]  ;;  %v3938_v17 = vld [vmem:[#allocation3 + $0x18] sm:$0xf]  ;;  %v3819_v23 = vrot.slane %v15320_v10, 4 }
 0x5e3   : > { %v3792_v2 = vor.u32 %v18750_v18, %v15314_v59  ;;  %v3776_v19 = vsel %vm15330_vm1, %v3768_v26, %v3775_v43  ;;  %v15465_v15 = vor.u32 %v18752_v55, %v15316_v60  ;;  %3990 = vst [vmem:[#allocation3 + $0x70] sm:$0xf] %v3759_v7  ;;  %v18753_v53 = vld [vmem:[#allocation16_spill] sm:$0xff]  ;;  %v3942_v25 = vld [vmem:[#allocation3 + $0x20] sm:$0x1]  ;;  %v18759_v55 = vld [vmem:[#allocation22_spill] sm:$0xff] }
 0x5e4   : > { %v18754_v29 = vshll.u32 %v18753_v53, 16  ;;  %v18755_v26 = vld [vmem:[#allocation20_spill] sm:$0xff]  ;;  %3997 = vst [vmem:[#allocation3 + $0x7c] sm:$0xf] %v3776_v19  ;;  %v3935_v60 = vld [vmem:[#allocation3 + $0x14] sm:$0x1] }
 0x5e5   : > { %v3793_v63 = vsel %vm15330_vm1, %v3785_v47, %v3792_v2  ;;  %v18756_v32 = vshll.u32 %v18755_v26, 16  ;;  %v3945_v7 = vld [vmem:[#allocation3 + $0x24] sm:$0xf]  ;;  %v18757_v47 = vld [vmem:[#allocation21_spill] sm:$0xff]  ;;  %v18760_v53 = vshll.u32 %v18759_v55, 16  ;;  %v18764_v55 = vshll.u32 %v18763_v57, 16 }
 0x5e6   : > { %v3809_v33 = vor.u32 %v18754_v29, %v15318_v24  ;;  %v18758_v18 = vshll.u32 %v18757_v47, 16  ;;  %4004 = vst [vmem:[#allocation3 + $0x88] sm:$0xf] %v3793_v63  ;;  %v3952_v26 = vld [vmem:[#allocation3 + $0x30] sm:$0xf]  ;;  %v18768_v57 = vld [vmem:[#allocation24_spill] sm:$0xff] }
 0x5e7   : > { %v15477_v43 = vor.u32 %v18756_v32, %v15320_v10  ;;  %v15487_v29 = vor.u32 %v18760_v53, %v15324_v40  ;;  %v3956_v10 = vld [vmem:[#allocation3 + $0x38] sm:$0x1]  ;;  %v3949_v32 = vld [vmem:[#allocation3 + $0x2c] sm:$0x1]  ;;  %v3843_v53 = vor.u32 %v18764_v55, %v15326_v1  ;;  %v4046_v38 = vld [vmem:[#allocation3 + $0x10] sm:$0xf] }
 0x5e8   : > { %v3826_v2 = vor.u32 %v18758_v18, %v15322_v21  ;;  %v3810_v47 = vsel %vm15330_vm1, %v3802_v54, %v3809_v33  ;;  %v3836_v18 = vrot.slane %v15324_v40, 4  ;;  %v15502_v42 = vld [vmem:[#allocation3 + $0x48] sm:$0xf]  ;;  %v3959_v22 = vld [vmem:[#allocation3 + $0x3c] sm:$0xf]  ;;  %v18766_v54 = vshll.u32 %v18765_v16, 16 }
 0x5e9   : > { %v3853_v40 = vrot.slane %v15334_v6, 4  ;;  %v18769_v55 = vshll.u32 %v18768_v57, 16  ;;  %4011 = vst [vmem:[#allocation3 + $0x94] sm:$0xf] %v3810_v47  ;;  %4078 = vst [vmem:[#allocation4 + $0x24] sm:$0xf] %v4046_v38 }
 0x5ea   : > { %v3827_v41 = vsel %vm15330_vm1, %v3819_v23, %v3826_v2  ;;  %v15509_v33 = vor.u32 %v18766_v54, %v15334_v6  ;;  %v3844_v23 = vsel %vm15330_vm1, %v3836_v18, %v3843_v53  ;;  %v18770_v2 = vld [vmem:[#allocation25_spill] sm:$0xff]  ;;  %v3870_v57 = vrot.slane %v15338_v35, 4  ;;  %v15526_v47 = vld [vmem:[#allocation3 + $0x78] sm:$0xf]  ;;  %v3987_v38 = vld [vmem:[#allocation3 + $0x6c] sm:$0xf] }
 0x5eb   : > { %v3860_v63 = vor.u32 %v18769_v55, %v15336_v50  ;;  %v18771_v54 = vshll.u32 %v18770_v2, 16  ;;  %4018 = vst [vmem:[#allocation3 + $0xa0] sm:$0xf] %v3827_v41  ;;  %v3879_v53 = vrot.slane %v15340_v49, 4  ;;  %v3932_v2 = vsel %vm15491_vm2, %v15344_v31, %v3931_v45  ;;  %4025 = vst [vmem:[#allocation3 + $0xac] sm:$0xf] %v3844_v23 }
 0x5ec   : > { %18767 = vst [vmem:[#allocation13_spill] sm:$0xff] %v15509_v33  ;;  %v18773_v33 = vld [vmem:[#allocation26_spill] sm:$0xff]  ;;  %v3991_v41 = vld [vmem:[#allocation3 + $0x74] sm:$0x1]  ;;  %v15537_v16 = vld [vmem:[#allocation3 + $0x90] sm:$0xf]  ;;  %v3946_v45 = vsel %vm15491_vm2, %v15362_v36, %v3945_v7  ;;  %v3953_v36 = vsel %vm15491_vm2, %v15372_v48, %v3952_v26 }
 0x5ed   : > { %v15523_v6 = vor.u32 %v18771_v54, %v15338_v35  ;;  %v3861_v55 = vsel %vm15330_vm1, %v3853_v40, %v3860_v63  ;;  %v18774_v1 = vshll.u32 %v18773_v33, 16  ;;  %v4048_v54 = vld [vmem:[#allocation3 + $0x1c] sm:$0xf]  ;;  %v3998_v35 = vld [vmem:[#allocation3 + $0x80] sm:$0x1]  ;;  %v18777_v33 = vrot.slane %v15280_v27, 4 }
 0x5ee   : > { %3933 = vst [vmem:[#allocation3 + $0xc] sm:$0xf] %v3932_v2  ;;  %4032 = vst [vmem:[#allocation3 + $0xb8] sm:$0xf] %v3861_v55  ;;  %v4001_v23 = vld [vmem:[#allocation3 + $0x84] sm:$0xf] }
 0x5ef   : > { %18772 = vst [vmem:[#allocation14_spill] sm:$0xff] %v15523_v6  ;;  %v3877_v18 = vor.u32 %v18774_v1, %v15340_v49  ;;  %v18775_v6 = vrot.slane %v15274_v51, 4  ;;  %v3939_v1 = vsel %vm15491_vm2, %v15352_v12, %v3938_v17  ;;  %v3943_v31 = vsel %vm13512_vm3, %v18777_v33, %v3942_v25  ;;  %4080 = vst [vmem:[#allocation4 + $0x3c] sm:$0xf] %v4048_v54  ;;  %v4012_v51 = vld [vmem:[#allocation3 + $0x98] sm:$0x1] }
 0x5f0   : > { %v4005_v2 = vld [vmem:[#allocation3 + $0x8c] sm:$0x1]  ;;  %3940 = vst [vmem:[#allocation3 + $0x18] sm:$0xf] %v3939_v1  ;;  %3944 = vst [vmem:[#allocation3 + $0x20] sm:$0x1] %v3943_v31 }
 0x5f1   : > { %v3936_v40 = vsel %vm13512_vm3, %v18775_v6, %v3935_v60  ;;  %v3878_v60 = vsel %vm15330_vm1, %v3870_v57, %v3877_v18  ;;  %3947 = vst [vmem:[#allocation3 + $0x24] sm:$0xf] %v3946_v45  ;;  %v18778_v27 = vrot.slane %v15286_v34, 4  ;;  %v18779_v17 = vrot.slane %v15290_v20, 4  ;;  %v4015_v7 = vld [vmem:[#allocation3 + $0x9c] sm:$0xf] }
 0x5f2   : > { %3937 = vst [vmem:[#allocation3 + $0x14] sm:$0x1] %v3936_v40  ;;  %v4026_v6 = vld [vmem:[#allocation3 + $0xb0] sm:$0x1]  ;;  %3954 = vst [vmem:[#allocation3 + $0x30] sm:$0xf] %v3953_v36  ;;  %v3960_v34 = vsel %vm15491_vm2, %v15382_v44, %v3959_v22  ;;  %v3967_v20 = vsel %vm15491_vm2, %v15390_v62, %v15502_v42 }
 0x5f3   : > { %v3950_v12 = vsel %vm13512_vm3, %v18778_v27, %v3949_v32  ;;  %v3957_v25 = vsel %vm13512_vm3, %v18779_v17, %v3956_v10  ;;  %v18780_v32 = vrot.slane %v15292_v30, 4  ;;  %v18781_v26 = vrot.slane %v15294_v28, 4  ;;  %4039 = vst [vmem:[#allocation3 + $0xc4] sm:$0xf] %v3878_v60  ;;  %v4019_v57 = vld [vmem:[#allocation3 + $0xa4] sm:$0x1] }
 0x5f4   : > { %3951 = vst [vmem:[#allocation3 + $0x2c] sm:$0x1] %v3950_v12  ;;  %3958 = vst [vmem:[#allocation3 + $0x38] sm:$0x1] %v3957_v25  ;;  %v4036_v55 = vld [vmem:[#allocation3 + $0xc0] sm:$0xf]  ;;  %v3974_v30 = vsel %vm15491_vm2, %v15403_v61, %v3973_v58  ;;  %v3981_v28 = vsel %vm15491_vm2, %v15415_v4, %v15515_v11 }
 0x5f5   : > { %v3964_v48 = vsel %vm13512_vm3, %v18780_v32, %v3963_v56  ;;  %v3971_v10 = vsel %vm13512_vm3, %v18781_v26, %v3970_v3  ;;  %3961 = vst [vmem:[#allocation3 + $0x3c] sm:$0xf] %v3960_v34  ;;  %3968 = vst [vmem:[#allocation3 + $0x48] sm:$0xf] %v3967_v20  ;;  %v18782_v44 = vrot.slane %v15298_v13, 4  ;;  %v18783_v56 = vrot.slane %v15302_v0, 4 }
 0x5f6   : > { %3965 = vst [vmem:[#allocation3 + $0x44] sm:$0x1] %v3964_v48  ;;  %3972 = vst [vmem:[#allocation3 + $0x50] sm:$0x1] %v3971_v10  ;;  %v4050_v22 = vld [vmem:[#allocation3 + $0x28] sm:$0xf]  ;;  %v3988_v13 = vsel %vm15491_vm2, %v15429_v39, %v3987_v38 }
 0x5f7   : > { %v3978_v62 = vsel %vm13512_vm3, %v18782_v44, %v3977_v46  ;;  %v3985_v3 = vsel %vm13512_vm3, %v18783_v56, %v3984_v8  ;;  %v4029_v42 = vld [vmem:[#allocation3 + $0xb4] sm:$0xf]  ;;  %v4040_v18 = vld [vmem:[#allocation3 + $0xc8] sm:$0x1]  ;;  %v4033_v54 = vld [vmem:[#allocation3 + $0xbc] sm:$0x1]  ;;  %v3995_v8 = vsel %vm15491_vm2, %v15439_v14, %v15526_v47 }
 0x5f8   : > { %3975 = vst [vmem:[#allocation3 + $0x54] sm:$0xf] %v3974_v30  ;;  %3979 = vst [vmem:[#allocation3 + $0x5c] sm:$0x1] %v3978_v62  ;;  %v18784_v58 = vrot.slane %v15306_v9, 4  ;;  %v18785_v11 = vrot.slane %v15310_v5, 4  ;;  %v4002_v9 = vsel %vm15491_vm2, %v15453_v52, %v4001_v23  ;;  %v4009_v5 = vsel %vm15491_vm2, %v15465_v15, %v15537_v16 }
 0x5f9   : > { %3982 = vst [vmem:[#allocation3 + $0x60] sm:$0xf] %v3981_v28  ;;  %3986 = vst [vmem:[#allocation3 + $0x68] sm:$0x1] %v3985_v3  ;;  %v18786_v4 = vrot.slane %v15314_v59, 4  ;;  %v18787_v39 = vrot.slane %v15318_v24, 4  ;;  %v4016_v59 = vsel %vm15491_vm2, %v15477_v43, %v4015_v7  ;;  %v4023_v24 = vsel %vm15491_vm2, %v15487_v29, %v4022_v37 }
 0x5fa   : > { %v3992_v0 = vsel %vm13512_vm3, %v18784_v58, %v3991_v41  ;;  %v3999_v61 = vsel %vm13512_vm3, %v18785_v11, %v3998_v35  ;;  %4082 = vst [vmem:[#allocation4 + $0x54] sm:$0xf] %v4050_v22  ;;  %3989 = vst [vmem:[#allocation3 + $0x6c] sm:$0xf] %v3988_v13  ;;  %v5554_v47 = vld [vmem:[#allocation3 + $0x10] sm:$0xf] }
 0x5fb   : > { %3993 = vst [vmem:[#allocation3 + $0x74] sm:$0x1] %v3992_v0  ;;  %3996 = vst [vmem:[#allocation3 + $0x78] sm:$0xf] %v3995_v8  ;;  %v4006_v46 = vsel %vm13512_vm3, %v18786_v4, %v4005_v2  ;;  %v4013_v14 = vsel %vm13512_vm3, %v18787_v39, %v4012_v51  ;;  %v15626_v38 = vld [vmem:[#allocation4] sm:$0xff]  ;;  %v18788_v52 = vrot.slane %v15322_v21, 4  ;;  %v4041_v51 = vsel %vm13512_vm3, %v3879_v53, %v4040_v18 }
 0x5fc   : > { %4000 = vst [vmem:[#allocation3 + $0x80] sm:$0x1] %v3999_v61  ;;  %4003 = vst [vmem:[#allocation3 + $0x84] sm:$0xf] %v4002_v9  ;;  %v18789_v16 = vld [vmem:[#allocation27_spill] sm:$0xff]  ;;  %v18791_v21 = vld [vmem:[#allocation13_spill] sm:$0xff] }
 0x5fd   : > { %4007 = vst [vmem:[#allocation3 + $0x8c] sm:$0x1] %v4006_v46  ;;  %4010 = vst [vmem:[#allocation3 + $0x90] sm:$0xf] %v4009_v5  ;;  %v4020_v15 = vsel %vm13512_vm3, %v18788_v52, %v4019_v57  ;;  %v18790_v35 = vrot.slane %v18789_v16, 4  ;;  %v4030_v43 = vsel %vm15491_vm2, %v18791_v21, %v4029_v42  ;;  %v18792_v31 = vrot.slane %v15336_v50, 4 }
 0x5fe   : > { %4014 = vst [vmem:[#allocation3 + $0x98] sm:$0x1] %v4013_v14  ;;  %v15642_v40 = vld [vmem:[#allocation4 + $0x8] sm:$0xf]  ;;  %v7944_v1 = vld [vmem:[#allocation3 + $0x1c] sm:$0xf] }
 0x5ff   : > { %v4027_v41 = vsel %vm13512_vm3, %v18790_v35, %v4026_v6  ;;  %v5058_v33 = vld [vmem:[#allocation3 + $0x10] sm:$0xf]  ;;  %4017 = vst [vmem:[#allocation3 + $0x9c] sm:$0xf] %v4016_v59  ;;  %4021 = vst [vmem:[#allocation3 + $0xa4] sm:$0x1] %v4020_v15  ;;  %v4034_v29 = vsel %vm13512_vm3, %v18792_v31, %v4033_v54 }
 0x600   : > { %4024 = vst [vmem:[#allocation3 + $0xa8] sm:$0xf] %v4023_v24  ;;  %4028 = vst [vmem:[#allocation3 + $0xb0] sm:$0x1] %v4027_v41  ;;  %v18793_v45 = vld [vmem:[#allocation14_spill] sm:$0xff]  ;;  %v5651_v17 = vrot.slane %v5554_v47, 5 }
 0x601   : > { %v4037_v23 = vsel %vm15491_vm2, %v18793_v45, %v4036_v55  ;;  %v5553_v2 = vld [vmem:[#allocation3 + $0xc] sm:$0xe]  ;;  %4031 = vst [vmem:[#allocation3 + $0xb4] sm:$0xf] %v4030_v43  ;;  %4035 = vst [vmem:[#allocation3 + $0xbc] sm:$0x1] %v4034_v29 }
 0x602   : > { %v4993_v60 = vld [vmem:[#allocation3 + $0xc] sm:$0xf]  ;;  %4038 = vst [vmem:[#allocation3 + $0xc0] sm:$0xf] %v4037_v23  ;;  %4042 = vst [vmem:[#allocation3 + $0xc8] sm:$0x1] %v4041_v51 }
 0x603   : > { %v5057_v27 = vld [vmem:[#allocation3 + $0xc] sm:$0xf]  ;;  %v5555_v12 = vld [vmem:[#allocation3 + $0x14] sm:$0x1]  ;;  %v10511_v36 = vrot.slane %v5553_v2, 9  ;;  %v8041_v49 = vrot.slane %v7944_v1, 5 }
 0x604   : > { %v15658_v50 = vld [vmem:[#allocation4 + $0x14] sm:$0xf]  ;;  %v7943_v25 = vld [vmem:[#allocation3 + $0x18] sm:$0xe]  ;;  %5025 = vst [vmem:[#allocation4] sm:$0xf] %v4993_v60 }
 0x605   : > { %v7945_v19 = vld [vmem:[#allocation3 + $0x20] sm:$0x1]  ;;  %v10719_v37 = vrot.slane %v7943_v25, 9  ;;  %v5106_v7 = vshrl.u32 %v5057_v27, 16  ;;  %v5652_v53 = vsel %vm14938_vm10, %v10511_v36, %v5651_v17  ;;  %v5653_v34 = vrot.slane %v5651_v17, 4 }
 0x606   : > { %v5654_v32 = vrot.slane %v5555_v12, 5  ;;  %v5059_v48 = vld [vmem:[#allocation3 + $0x14] sm:$0x1]  ;;  %v5109_v20 = vshll.u32 %v5057_v27, 16  ;;  %5793 = vst [vmem:[#allocation4 + $0x8] sm:$0xf] %v5652_v53 }
 0x607   : > { %v8044_v26 = vrot.slane %v7945_v19, 5  ;;  %v5108_v10 = vrot.slane %v5106_v7, 4  ;;  %v5115_v57 = vshll.u32 %v5058_v33, 16  ;;  %v7448_v55 = vld [vmem:[#allocation3 + $0x1c] sm:$0xf]  ;;  %v8042_v44 = vsel %vm14938_vm10, %v10719_v37, %v8041_v49 }
 0x608   : > { %v5655_v30 = vsel %vm14938_vm10, %v5653_v34, %v5654_v32  ;;  %v5111_v62 = vrot.slane %v5109_v20, 5  ;;  %v5119_v28 = vshrl.u32 %v5058_v33, 16  ;;  %v7447_v56 = vld [vmem:[#allocation3 + $0x18] sm:$0xf]  ;;  %v4610_v3 = vld [vmem:[#allocation3 + $0x10] sm:$0xf] }
 0x609   : > { %5794 = vst [vmem:[#allocation4 + $0x14] sm:$0xf] %v5655_v30  ;;  %v5117_v22 = vrot.slane %v5115_v57, 5  ;;  %v5125_v42 = vshll.u32 %v5059_v48, 16  ;;  %v7449_v18 = vld [vmem:[#allocation3 + $0x20] sm:$0x1] }
 0x60a   : > { %v7496_v54 = vshrl.u32 %v7447_v56, 16  ;;  %v7499_v13 = vshll.u32 %v7447_v56, 16  ;;  %v8043_v58 = vrot.slane %v8041_v49, 4  ;;  %v5112_v0 = vor.u32 %v5111_v62, %v5108_v10  ;;  %v4609_v61 = vld [vmem:[#allocation3 + $0xc] sm:$0xe] }
 0x60b   : > { %v5121_v8 = vrot.slane %v5119_v28, 4  ;;  %v7505_v11 = vshll.u32 %v7448_v55, 16  ;;  %v7509_v46 = vshrl.u32 %v7448_v55, 16  ;;  %v7515_v5 = vshll.u32 %v7449_v18, 16  ;;  %v4611_v39 = vld [vmem:[#allocation3 + $0x14] sm:$0x1] }
 0x60c   : > { %v7498_v9 = vrot.slane %v7496_v54, 4  ;;  %v7501_v4 = vrot.slane %v7499_v13, 5  ;;  %v5557_v14 = vld [vmem:[#allocation3 + $0x1c] sm:$0xf]  ;;  %v5113_v47 = vrot.slane %v5112_v0, 4  ;;  %v10496_v15 = vrot.slane %v4609_v61, 9 }
 0x60d   : > { %v5122_v59 = vor.u32 %v5121_v8, %v5117_v22  ;;  %v15666_v52 = vrot.slane %v7505_v11, 5  ;;  %v5556_v24 = vld [vmem:[#allocation3 + $0x18] sm:$0xe]  ;;  %v5127_v16 = vrot.slane %v5125_v42, 5  ;;  %v7511_v41 = vrot.slane %v7509_v46, 4 }
 0x60e   : > { %v7502_v35 = vor.u32 %v7501_v4, %v7498_v9  ;;  %v4714_v1 = vrot.slane %v4610_v3, 5  ;;  %v15668_v33 = vld [vmem:[#allocation3 + $0x28] sm:$0xf]  ;;  %v5118_v43 = vsel %vm15002_vm13, %v5113_v47, %v5117_v22  ;;  %v15672_v29 = vrot.slane %v7515_v5, 5  ;;  %v4613_v23 = vld [vmem:[#allocation3 + $0x1c] sm:$0xf] }
 0x60f   : > { %v5123_v31 = vrot.slane %v5122_v59, 4  ;;  %v4717_v45 = vrot.slane %v4611_v39, 5  ;;  %5521 = vst [vmem:[#allocation4 + $0x4] sm:$0xf] %v5118_v43  ;;  %v7512_v51 = vor.u32 %v7511_v41, %v15666_v52  ;;  %v5558_v27 = vld [vmem:[#allocation3 + $0x20] sm:$0x1]  ;;  %v8045_v25 = vsel %vm14938_vm10, %v8043_v58, %v8044_v26 }
 0x610   : > { %v4715_v2 = vsel %vm14938_vm10, %v10496_v15, %v4714_v1  ;;  %v4716_v60 = vrot.slane %v4714_v1, 4  ;;  %v10512_v12 = vrot.slane %v5556_v24, 9  ;;  %v7946_v36 = vld [vmem:[#allocation3 + $0x24] sm:$0xe]  ;;  %v12072_v17 = vld [vmem:[#allocation4 + $0x8] ss:$12 sps:$4 sm:$0xff]  }
 0x611   : > { %v5128_v19 = vsel %vm15002_vm13, %v5123_v31, %v5127_v16  ;;  %v15681_v37 = vrot.slane %v7502_v35, 4  ;;  %4851 = vst [vmem:[#allocation4 + $0x20] sm:$0xf] %v4715_v2  ;;  %v5658_v49 = vrot.slane %v5557_v14, 5  ;;  %8183 = vst [vmem:[#allocation4 + $0x8] sm:$0xf] %v8042_v44  ;;  %11716 = vmatprep.mubr.bf16.mxu1 %v12072_v17 }
 0x612   : > { %8184 = vst [vmem:[#allocation4 + $0x14] sm:$0xf] %v8045_v25  ;;  %5522 = vst [vmem:[#allocation4 + $0x10] sm:$0xf] %v5128_v19  ;;  %v4718_v7 = vsel %vm14938_vm10, %v4716_v60, %v4717_v45  ;;  %v15685_v53 = vld [vmem:[#allocation3 + $0x2c] sm:$0x1] }
 0x613   : > { %v4612_v34 = vld [vmem:[#allocation3 + $0x18] sm:$0xe]  ;;  %v4614_v32 = vld [vmem:[#allocation3 + $0x20] sm:$0x1]  ;;  %v15687_v48 = vld [vmem:[#allocation3 + $0x28] sm:$0xf]  ;;  %v7508_v22 = vsel %vm15002_vm13, %v15681_v37, %v15666_v52  ;;  %v5659_v58 = vsel %vm14938_vm10, %v10512_v12, %v5658_v49 }
 0x614   : > { %v7513_v20 = vrot.slane %v7512_v51, 4  ;;  %4852 = vst [vmem:[#allocation4 + $0x2c] sm:$0xf] %v4718_v7  ;;  %v5660_v26 = vrot.slane %v5658_v49, 4  ;;  %v5661_v10 = vrot.slane %v5558_v27, 5  ;;  %v8048_v57 = vrot.slane %v15668_v33, 5 }
 0x615   : > { %v12099_v55 = vld [vmem:[%s18542_s8 + $0x78] sm:$0xff]   ;;  %v10497_v30 = vrot.slane %v4612_v34, 9  ;;  %v4721_v44 = vrot.slane %v4613_v23, 5  ;;  %v15693_v62 = vld [vmem:[#allocation3 + $0x24] sm:$0xe]  ;;  %v10720_v42 = vrot.slane %v7946_v36, 9 }
 0x616   : > { %v15695_v28 = vld [vmem:[#allocation3 + $0x2c] sm:$0x1]  ;;  %v15697_v56 = vld [vmem:[#allocation3 + $0x34] sm:$0xf]  ;;  %v4111_v3 = vld [vmem:[#allocation3 + $0x10] sm:$0xf]  ;;  %11261 = vmatprep.subr.bf16.mxu1 %v12099_v55  ;;  %v7518_v39 = vsel %vm15002_vm13, %v7513_v20, %v15672_v29  ;;  %v5662_v16 = vsel %vm14938_vm10, %v5660_v26, %v5661_v10 }
 0x617   : > { %v8051_v18 = vrot.slane %v15685_v53, 5  ;;  %v4724_v54 = vrot.slane %v4614_v32, 5  ;;  %v15704_v13 = vld [vmem:[#allocation3 + $0x30] sm:$0xe]  ;;  %v15708_v0 = vrot.slane %v8048_v57, 4  ;;  %v4722_v8 = vsel %vm14938_vm10, %v10497_v30, %v4721_v44  ;;  %v5825_v4 = vld [vmem:[#allocation4] sm:$0xff] }
 0x618   : > { %v4723_v11 = vrot.slane %v4721_v44, 4  ;;  %v15712_v61 = vld [vmem:[#allocation3 + $0x38] sm:$0x1]  ;;  %v4045_v9 = vld [vmem:[#allocation3 + $0xc] sm:$0xf]  ;;  %v10513_v14 = vrot.slane %v15693_v62, 9  ;;  %v15729_v29 = vsel %vm14938_vm10, %v10720_v42, %v8048_v57 }
 0x619   : > { %v7383_v46 = vld [vmem:[#allocation3 + $0x18] sm:$0xf]  ;;  %v7384_v5 = vld [vmem:[#allocation3 + $0x1c] sm:$0xf]  ;;  %4853 = vst [vmem:[#allocation4 + $0x38] sm:$0xf] %v4722_v8 }
 0x61a   : > { %v5665_v47 = vrot.slane %v15687_v48, 5  ;;  %v5668_v59 = vrot.slane %v15695_v28, 5  ;;  %4077 = vst [vmem:[#allocation4 + $0x18] sm:$0xf] %v4045_v9  ;;  %v4110_v52 = vld [vmem:[#allocation3 + $0xc] sm:$0xf]  ;;  %v4725_v35 = vsel %vm14938_vm10, %v4723_v11, %v4724_v54  ;;  %v8052_v28 = vsel %vm14938_vm10, %v15708_v0, %v8051_v18 }
 0x61b   : > { %v5061_v15 = vld [vmem:[#allocation3 + $0x1c] sm:$0xf]  ;;  %v15720_v24 = vld [vmem:[#allocation4 + $0x20] sm:$0xf]  ;;  %v10721_v41 = vrot.slane %v15704_v13, 9  ;;  %v4183_v33 = vshrl.u32 %v4110_v52, 16 }
 0x61c   : > { %v4112_v1 = vld [vmem:[#allocation3 + $0x14] sm:$0x1]  ;;  %v5827_v43 = vld [vmem:[#allocation4 + $0xc] sm:$0xff]  ;;  %5795 = vst [vmem:[#allocation4 + $0x20] sm:$0xf] %v5659_v58  ;;  %v8055_v45 = vrot.slane %v15697_v56, 5  ;;  %v5666_v57 = vsel %vm14938_vm10, %v10513_v14, %v5665_v47 }
 0x61d   : > { %v12074_v31 = vld [vmem:[#allocation4 + $0x4] ss:$12 sps:$4 sm:$0xff]   ;;  %4854 = vst [vmem:[#allocation4 + $0x44] sm:$0xf] %v4725_v35  ;;  %v4186_v23 = vshll.u32 %v4110_v52, 16  ;;  %v4192_v51 = vshll.u32 %v4111_v3, 16  ;;  %v10575_v2 = vcombine.low %v5825_v4, %v5827_v43 }
 0x61e   : > { %7415 = vst [vmem:[#allocation4] sm:$0xf] %v7383_v46  ;;  %7416 = vst [vmem:[#allocation4 + $0xc] sm:$0xf] %v7384_v5  ;;  %v15732_v60 = vld [vmem:[#allocation4 + $0x2c] sm:$0xf]  ;;  %6370 = vmatprep.mubr.bf16.mxu0 %v12074_v31 }
 0x61f   : > { %7911 = vst [vmem:[#allocation4 + $0x4] sm:$0xf] %v7508_v22  ;;  %7912 = vst [vmem:[#allocation4 + $0x10] sm:$0xf] %v7518_v39  ;;  %v8058_v27 = vrot.slane %v15712_v61, 5  ;;  %v4185_v12 = vrot.slane %v4183_v33, 4  ;;  %6371 = vmatmul.mubr.bf16.vlgmr.msra.gmra.mxu0 %v10575_v2 }
 0x620   : > { %v4196_v36 = vshrl.u32 %v4111_v3, 16  ;;  %v12086_v17 = vld [vmem:[%s18542_s8 + $0xb0] sm:$0xff]   ;;  %5796 = vst [vmem:[#allocation4 + $0x2c] sm:$0xf] %v5662_v16  ;;  %v5667_v25 = vrot.slane %v5665_v47, 4  ;;  %v4188_v19 = vrot.slane %v4186_v23, 5 }
 0x621   : > { %v4194_v37 = vrot.slane %v4192_v51, 5  ;;  %v4202_v49 = vshll.u32 %v4112_v1, 16  ;;  %v5060_v7 = vld [vmem:[#allocation3 + $0x18] sm:$0xf]  ;;  %v5139_v20 = vshll.u32 %v5061_v15, 16  ;;  %v8057_v55 = vrot.slane %v8055_v45, 4 }
 0x622   : > { %v4198_v34 = vrot.slane %v4196_v36, 4  ;;  %v5130_v32 = vshrl.u32 %v5060_v7, 16  ;;  %v5133_v48 = vshll.u32 %v5060_v7, 16  ;;  %v7451_v26 = vld [vmem:[#allocation3 + $0x28] sm:$0xf]  ;;  %v12498_v10 = vld [vmem:[%s18542_s8 + $0xb8] sm:$0xff]   ;;  %v4189_v30 = vor.u32 %v4188_v19, %v4185_v12 }
 0x623   : > { %11749 = vmatpush3.bf16.msra.mxu0 %v12498_v10  ;;  %v15745_v44 = vld [vmem:[#allocation3 + $0x20] sm:$0x1]  ;;  %v5143_v62 = vshrl.u32 %v5061_v15, 16  ;;  %v15747_v3 = vld [vmem:[#allocation4 + $0x38] sm:$0xf]  ;;  %v15749_v58 = vrot.slane %v5139_v20, 5  ;;  %v5669_v52 = vsel %vm14938_vm10, %v5667_v25, %v5668_v59  ;;  %v8056_v59 = vsel %vm14938_vm10, %v10721_v41, %v8055_v45 }
 0x624   : > { %18796 = vst [vmem:[#allocation15_spill] sm:$0xff] %v15747_v3  ;;  %v4199_v22 = vor.u32 %v4198_v34, %v4194_v37  ;;  %v5132_v42 = vrot.slane %v5130_v32, 4  ;;  %v5135_v54 = vrot.slane %v5133_v48, 5  ;;  %11750 = vmatprep.subr.bf16.mxu0 %v12086_v17  ;;  %v12095_v8 = vld [vmem:[%s18542_s8 + $0xa8] sm:$0xff]   ;;  %5797 = vst [vmem:[#allocation4 + $0x38] sm:$0xf] %v5666_v57  ;;  %v8059_v45 = vsel %vm14938_vm10, %v8057_v55, %v8058_v27 }
 0x625   : > { %v4190_v11 = vrot.slane %v4189_v30, 4  ;;  %v4204_v9 = vrot.slane %v4202_v49, 5  ;;  %v5145_v4 = vrot.slane %v5143_v62, 4  ;;  %v7450_v46 = vld [vmem:[#allocation3 + $0x24] sm:$0xf]  ;;  %v7529_v5 = vshll.u32 %v7451_v26, 16 }
 0x626   : > { %v4114_v39 = vld [vmem:[#allocation3 + $0x1c] sm:$0xf]  ;;  %v4200_v15 = vrot.slane %v4199_v22, 4  ;;  %v5136_v16 = vor.u32 %v5135_v54, %v5132_v42  ;;  %v7520_v35 = vshrl.u32 %v7450_v46, 16  ;;  %v5149_v43 = vshll.u32 %v15745_v44, 16  ;;  %v12102_v53 = vld [vmem:[%s18542_s8 + $0x70] sm:$0xff]  }
 0x627   : > { %v12101_v14 = vld [vmem:[%s18542_s8 + $0x38] sm:$0xff]   ;;  %v4195_v1 = vsel %vm15002_vm13, %v4190_v11, %v4194_v37  ;;  %v5146_v33 = vor.u32 %v5145_v4, %v15749_v58  ;;  %v7452_v31 = vld [vmem:[#allocation3 + $0x2c] sm:$0x1]  ;;  %v7523_v23 = vshll.u32 %v7450_v46, 16  ;;  %11751 = vmatpush3.bf16.msra.mxu0 %v12086_v17  ;;  %v15784_v13 = vrot.slane %v7529_v5, 5  ;;  %v12103_v20 = vld [vmem:[%s18542_s8 + $0x30] sm:$0xff]  }
 0x628   : > { %v15757_v47 = vld [vmem:[#allocation4 + $0x44] sm:$0xf]  ;;  %v4047_v51 = vld [vmem:[#allocation3 + $0x18] sm:$0xf]  ;;  %v4205_v12 = vsel %vm15002_vm13, %v4200_v15, %v4204_v9  ;;  %4576 = vst [vmem:[#allocation4 + $0x1c] sm:$0xf] %v4195_v1  ;;  %11752 = vmatprep.subr.bf16.mxu0 %v12095_v8 }
 0x629   : > { %18797 = vst [vmem:[#allocation16_spill] sm:$0xff] %v15757_v47  ;;  %5798 = vst [vmem:[#allocation4 + $0x44] sm:$0xf] %v5669_v52  ;;  %v12078_v2 = vld [vmem:[#allocation4 + $0x20] ss:$12 sps:$4 sm:$0xff]   ;;  %v7522_v36 = vrot.slane %v7520_v35, 4 }
 0x62a   : > { %4079 = vst [vmem:[#allocation4 + $0x30] sm:$0xf] %v4047_v51  ;;  %8185 = vst [vmem:[#allocation4 + $0x20] sm:$0xf] %v15729_v29  ;;  %v5137_v56 = vrot.slane %v5136_v16, 4  ;;  %v7525_v18 = vrot.slane %v7523_v23, 5  ;;  %11717 = vmatmul.mubr.bf16.vlgmr.msra.gmra.mxu1 %v12078_v2 }
 0x62b   : > { %8186 = vst [vmem:[#allocation4 + $0x2c] sm:$0xf] %v8052_v28  ;;  %4577 = vst [vmem:[#allocation4 + $0x28] sm:$0xf] %v4205_v12  ;;  %v7533_v0 = vshrl.u32 %v7451_v26, 16  ;;  %v4216_v37 = vshll.u32 %v4114_v39, 16  ;;  %11753 = vmatpush3.bf16.msra.mxu0 %v12095_v8  ;;  %11262 = vmatpush3.bf16.msra.mxu1 %v12101_v14 }
 0x62c   : > { %v4113_v41 = vld [vmem:[#allocation3 + $0x18] sm:$0xf]  ;;  %v4115_v17 = vld [vmem:[#allocation3 + $0x20] sm:$0x1]  ;;  %v5147_v49 = vrot.slane %v5146_v33, 4  ;;  %v7526_v29 = vor.u32 %v7525_v18, %v7522_v36  ;;  %v7539_v34 = vshll.u32 %v7452_v31, 16  ;;  %11263 = vmatprep.subr.bf16.mxu1 %v12102_v53  ;;  %v5142_v54 = vsel %vm15002_vm13, %v5137_v56, %v15749_v58 }
 0x62d   : > { %v4207_v25 = vshrl.u32 %v4113_v41, 16  ;;  %v4210_v19 = vshll.u32 %v4113_v41, 16  ;;  %v7535_v7 = vrot.slane %v7533_v0, 4  ;;  %v5063_v32 = vld [vmem:[#allocation3 + $0x24] sm:$0xf]  ;;  %v4218_v10 = vrot.slane %v4216_v37, 5 }
 0x62e   : > { %v5064_v48 = vld [vmem:[#allocation3 + $0x28] sm:$0xf]  ;;  %v4220_v27 = vshrl.u32 %v4114_v39, 16  ;;  %v4995_v57 = vld [vmem:[#allocation3 + $0x18] sm:$0xf]  ;;  %v5151_v55 = vrot.slane %v5149_v43, 5 }
 0x62f   : > { %v4209_v61 = vrot.slane %v4207_v25, 4  ;;  %v4212_v26 = vrot.slane %v4210_v19, 5  ;;  %v7536_v30 = vor.u32 %v7535_v7, %v15784_v13  ;;  %v4226_v44 = vshll.u32 %v4115_v17, 16  ;;  %v4996_v42 = vld [vmem:[#allocation3 + $0x1c] sm:$0xf]  ;;  %v15797_v4 = vld [vmem:[#allocation4 + $0x18] sm:$0xff]  ;;  %11264 = vmatpush3.bf16.msra.mxu1 %v12103_v20 }
 0x630   : > { %v5154_v62 = vshrl.u32 %v5063_v32, 16  ;;  %v12079_v22 = vld [vmem:[#allocation4 + $0x38] ss:$12 sps:$4 sm:$0xff]   ;;  %v4222_v11 = vrot.slane %v4220_v27, 4  ;;  %v5157_v9 = vshll.u32 %v5063_v32, 16  ;;  %v5152_v46 = vsel %vm15002_vm13, %v5147_v49, %v5151_v55 }
 0x631   : > { %v4213_v8 = vor.u32 %v4212_v26, %v4209_v61  ;;  %8187 = vst [vmem:[#allocation4 + $0x38] sm:$0xf] %v8056_v59  ;;  %8188 = vst [vmem:[#allocation4 + $0x44] sm:$0xf] %v8059_v45  ;;  %v15801_v5 = vrot.slane %v7526_v29, 4  ;;  %v15803_v39 = vrot.slane %v7539_v34, 5  ;;  %11720 = vmatprep.mubr.bf16.mxu1 %v12079_v22 }
 0x632   : > { %v5065_v14 = vld [vmem:[#allocation3 + $0x2c] sm:$0x1]  ;;  %v5156_v52 = vrot.slane %v5154_v62, 4  ;;  %v15805_v15 = vld [vmem:[#allocation4 + $0x24] sm:$0xff]  ;;  %5027 = vst [vmem:[#allocation4 + $0x18] sm:$0xf] %v4995_v57  ;;  %v4223_v16 = vor.u32 %v4222_v11, %v4218_v10 }
 0x633   : > { %5523 = vst [vmem:[#allocation4 + $0x1c] sm:$0xf] %v5142_v54  ;;  %v4214_v58 = vrot.slane %v4213_v8, 4  ;;  %v5159_v35 = vrot.slane %v5157_v9, 5  ;;  %v5163_v1 = vshll.u32 %v5064_v48, 16  ;;  %v7537_v43 = vrot.slane %v7536_v30, 4 }
 0x634   : > { %v7453_v33 = vld [vmem:[#allocation3 + $0x30] sm:$0xf]  ;;  %5028 = vst [vmem:[#allocation4 + $0x24] sm:$0xf] %v4996_v42  ;;  %5524 = vst [vmem:[#allocation4 + $0x28] sm:$0xf] %v5152_v46  ;;  %v7532_v25 = vsel %vm15002_vm13, %v15801_v5, %v15784_v13 }
 0x635   : > { %v4228_v31 = vrot.slane %v4226_v44, 5  ;;  %v5167_v23 = vshrl.u32 %v5064_v48, 16  ;;  %v7454_v51 = vld [vmem:[#allocation3 + $0x34] sm:$0xf]  ;;  %v7544_v2 = vshrl.u32 %v7453_v33, 16  ;;  %v4219_v28 = vsel %vm15002_vm13, %v4214_v58, %v4218_v10  ;;  %v12107_v29 = vld [vmem:[%s18542_s8 + $0x68] sm:$0xff]  }
 0x636   : > { %v4224_v59 = vrot.slane %v4223_v16, 4  ;;  %v5160_v12 = vor.u32 %v5159_v35, %v5156_v52  ;;  %v15809_v36 = vrot.slane %v5163_v1, 5  ;;  %v4615_v53 = vld [vmem:[#allocation3 + $0x24] sm:$0xe]  ;;  %v4616_v56 = vld [vmem:[#allocation3 + $0x28] sm:$0xf]  ;;  %11265 = vmatprep.subr.bf16.mxu1 %v12107_v29  ;;  %v7542_v62 = vsel %vm15002_vm13, %v7537_v43, %v15803_v39 }
 0x637   : > { %4578 = vst [vmem:[#allocation4 + $0x34] sm:$0xf] %v4219_v28  ;;  %v5169_v18 = vrot.slane %v5167_v23, 4  ;;  %v5173_v0 = vshll.u32 %v5065_v14, 16  ;;  %v7455_v41 = vld [vmem:[#allocation3 + $0x38] sm:$0x1] }
 0x638   : > { %v7546_v45 = vrot.slane %v7544_v2, 4  ;;  %v7547_v17 = vshll.u32 %v7453_v33, 16  ;;  %v4229_v19 = vsel %vm15002_vm13, %v4224_v59, %v4228_v31  ;;  %v7553_v37 = vshll.u32 %v7454_v51, 16  ;;  %v4617_v48 = vld [vmem:[#allocation3 + $0x2c] sm:$0x1] }
 0x639   : > { %v7557_v49 = vshrl.u32 %v7454_v51, 16  ;;  %4579 = vst [vmem:[#allocation4 + $0x40] sm:$0xf] %v4229_v19  ;;  %v5161_v7 = vrot.slane %v5160_v12, 4  ;;  %v5170_v34 = vor.u32 %v5169_v18, %v15809_v36  ;;  %v10498_v20 = vrot.slane %v4615_v53, 9 }
 0x63a   : > { %v7549_v32 = vrot.slane %v7547_v17, 5  ;;  %v15821_v61 = vld [vmem:[#allocation3 + $0x34] sm:$0xf]  ;;  %v7385_v26 = vld [vmem:[#allocation3 + $0x24] sm:$0xf]  ;;  %v15823_v10 = vrot.slane %v7553_v37, 5 }
 0x63b   : > { %v7386_v13 = vld [vmem:[#allocation3 + $0x28] sm:$0xf]  ;;  %v7559_v27 = vrot.slane %v7557_v49, 4  ;;  %v7563_v57 = vshll.u32 %v7455_v41, 16  ;;  %v4728_v55 = vrot.slane %v4616_v56, 5  ;;  %v5829_v44 = vld [vmem:[#allocation4 + $0x18] sm:$0xff]  ;;  %v5166_v35 = vsel %vm15002_vm13, %v5161_v7, %v15809_v36 }
 0x63c   : > { %v15825_v30 = vld [vmem:[#allocation3 + $0x40] sm:$0xf]  ;;  %v5171_v22 = vrot.slane %v5170_v34, 4  ;;  %v5175_v42 = vrot.slane %v5173_v0, 5  ;;  %v7550_v54 = vor.u32 %v7549_v32, %v7546_v45  ;;  %v15830_v8 = vld [vmem:[#allocation3 + $0x30] sm:$0xe] }
 0x63d   : > { %v4619_v11 = vld [vmem:[#allocation3 + $0x34] sm:$0xf]  ;;  %v5831_v9 = vld [vmem:[#allocation4 + $0x24] sm:$0xff]  ;;  %v4997_v5 = vld [vmem:[#allocation3 + $0x24] sm:$0xf]  ;;  %v7560_v14 = vor.u32 %v7559_v27, %v15823_v10  ;;  %v4729_v52 = vsel %vm14938_vm10, %v10498_v20, %v4728_v55  ;;  %v4730_v58 = vrot.slane %v4728_v55, 4 }
 0x63e   : > { %v12080_v46 = vld [vmem:[#allocation4 + $0x1c] ss:$12 sps:$4 sm:$0xff]   ;;  %v4731_v16 = vrot.slane %v4617_v48, 5  ;;  %7417 = vst [vmem:[#allocation4 + $0x18] sm:$0xf] %v7385_v26  ;;  %v10578_v39 = vcombine.low %v5829_v44, %v5831_v9  ;;  %v15842_v31 = vld [vmem:[#allocation4 + $0x30] sm:$0xff]  ;;  %v5176_v45 = vsel %vm15002_vm13, %v5171_v22, %v5175_v42 }
 0x63f   : > { %7418 = vst [vmem:[#allocation4 + $0x24] sm:$0xf] %v7386_v13  ;;  %7913 = vst [vmem:[#allocation4 + $0x1c] sm:$0xf] %v7532_v25  ;;  %v15838_v1 = vld [vmem:[#allocation3 + $0x38] sm:$0x1]  ;;  %6378 = vmatprep.mubr.bf16.mxu0 %v12080_v46 }
 0x640   : > { %7914 = vst [vmem:[#allocation4 + $0x28] sm:$0xf] %v7542_v62  ;;  %4855 = vst [vmem:[#allocation4 + $0x50] sm:$0xf] %v4729_v52  ;;  %v15840_v33 = vld [vmem:[#allocation3 + $0x3c] sm:$0xe]  ;;  %v4732_v2 = vsel %vm14938_vm10, %v4730_v58, %v4731_v16  ;;  %6379 = vmatmul.mubr.bf16.gmra.mxu0 %v10578_v39 }
 0x641   : > { %v4618_v43 = vld [vmem:[#allocation3 + $0x30] sm:$0xe]  ;;  %v4998_v23 = vld [vmem:[#allocation3 + $0x28] sm:$0xf]  ;;  %v15844_v51 = vrot.slane %v7563_v57, 5  ;;  %v10514_v28 = vrot.slane %v15830_v8, 9 }
 0x642   : > { %v5672_v59 = vrot.slane %v15821_v61, 5  ;;  %v15850_v12 = vld [vmem:[#allocation3 + $0x44] sm:$0x1]  ;;  %5029 = vst [vmem:[#allocation4 + $0x30] sm:$0xf] %v4997_v5  ;;  %v15852_v36 = vrot.slane %v7550_v54, 4 }
 0x643   : > { %5525 = vst [vmem:[#allocation4 + $0x34] sm:$0xf] %v5166_v35  ;;  %4856 = vst [vmem:[#allocation4 + $0x5c] sm:$0xf] %v4732_v2  ;;  %v8062_v53 = vrot.slane %v15825_v30, 5  ;;  %v15859_v41 = vld [vmem:[#allocation4 + $0x3c] sm:$0xff] }
 0x644   : > { %v4620_v56 = vld [vmem:[#allocation3 + $0x38] sm:$0x1]  ;;  %v15855_v18 = vld [vmem:[#allocation3 + $0x3c] sm:$0xe]  ;;  %v15857_v0 = vld [vmem:[#allocation3 + $0x40] sm:$0xf]  ;;  %v7556_v55 = vsel %vm15002_vm13, %v15852_v36, %v15823_v10 }
 0x645   : > { %v15863_v17 = vrot.slane %v7560_v14, 4  ;;  %v10499_v25 = vrot.slane %v4618_v43, 9  ;;  %v4735_v19 = vrot.slane %v4619_v11, 5  ;;  %v15865_v37 = vld [vmem:[#allocation3 + $0x4c] sm:$0xf]  ;;  %v5675_v29 = vrot.slane %v15838_v1, 5 }
 0x646   : > { %v4049_v49 = vld [vmem:[#allocation3 + $0x24] sm:$0xf]  ;;  %5030 = vst [vmem:[#allocation4 + $0x3c] sm:$0xf] %v4998_v23  ;;  %5526 = vst [vmem:[#allocation4 + $0x40] sm:$0xf] %v5176_v45  ;;  %v5673_v11 = vsel %vm14938_vm10, %v10514_v28, %v5672_v59 }
 0x647   : > { %v10722_v7 = vrot.slane %v15840_v33, 9  ;;  %v15869_v34 = vld [vmem:[#allocation3 + $0x44] sm:$0x1]  ;;  %v15871_v32 = vld [vmem:[#allocation3 + $0x48] sm:$0xe]  ;;  %v5674_v20 = vrot.slane %v5672_v59, 4  ;;  %v4736_v61 = vsel %vm14938_vm10, %v10499_v25, %v4735_v19 }
 0x648   : > { %4081 = vst [vmem:[#allocation4 + $0x48] sm:$0xf] %v4049_v49  ;;  %v4117_v48 = vld [vmem:[#allocation3 + $0x28] sm:$0xf]  ;;  %v4737_v26 = vrot.slane %v4735_v19, 4  ;;  %v4738_v13 = vrot.slane %v4620_v56, 5 }
 0x649   : > { %v4116_v27 = vld [vmem:[#allocation3 + $0x24] sm:$0xf]  ;;  %v12109_v57 = vld [vmem:[%s18542_s8 + $0x28] sm:$0xff]   ;;  %v15884_v44 = vrot.slane %v8062_v53, 4  ;;  %v8065_v62 = vrot.slane %v15850_v12, 5  ;;  %v10515_v22 = vrot.slane %v15855_v18, 9  ;;  %v5676_v28 = vsel %vm14938_vm10, %v5674_v20, %v5675_v29 }
 0x64a   : > { %4857 = vst [vmem:[#allocation4 + $0x68] sm:$0xf] %v4736_v61  ;;  %v4118_v42 = vld [vmem:[#allocation3 + $0x2c] sm:$0x1]  ;;  %v12110_v54 = vld [vmem:[%s18542_s8 + $0x60] sm:$0xff]   ;;  %v4739_v10 = vsel %vm14938_vm10, %v4737_v26, %v4738_v13  ;;  %v5679_v9 = vrot.slane %v15857_v0, 5  ;;  %11266 = vmatpush3.bf16.msra.mxu1 %v12109_v57  ;;  %v7566_v18 = vsel %vm15002_vm13, %v15863_v17, %v15844_v51 }
 0x64b   : > { %v15891_v8 = vld [vmem:[#allocation4 + $0x50] sm:$0xf]  ;;  %v5682_v46 = vrot.slane %v15869_v34, 5  ;;  %v5066_v5 = vld [vmem:[#allocation3 + $0x30] sm:$0xf]  ;;  %v10723_v14 = vrot.slane %v15871_v32, 9  ;;  %11267 = vmatprep.subr.bf16.mxu1 %v12110_v54  ;;  %v8066_v34 = vsel %vm14938_vm10, %v15884_v44, %v8065_v62 }
 0x64c   : > { %18798 = vst [vmem:[#allocation20_spill] sm:$0xff] %v15891_v8  ;;  %5799 = vst [vmem:[#allocation4 + $0x50] sm:$0xf] %v5673_v11  ;;  %v8069_v52 = vrot.slane %v15865_v37, 5  ;;  %v4231_v58 = vshrl.u32 %v4116_v27, 16  ;;  %v4234_v16 = vshll.u32 %v4116_v27, 16 }
 0x64d   : > { %4858 = vst [vmem:[#allocation4 + $0x74] sm:$0xf] %v4739_v10  ;;  %v5067_v39 = vld [vmem:[#allocation3 + $0x34] sm:$0xf]  ;;  %v12111_v35 = vld [vmem:[%s18542_s8 + $0xa0] sm:$0xff]   ;;  %v5833_v1 = vld [vmem:[#allocation4 + $0x30] sm:$0xff] }
 0x64e   : > { %v7387_v43 = vld [vmem:[#allocation3 + $0x30] sm:$0xf]  ;;  %v7388_v23 = vld [vmem:[#allocation3 + $0x34] sm:$0xf]  ;;  %v4240_v59 = vshll.u32 %v4117_v48, 16  ;;  %v4244_v36 = vshrl.u32 %v4117_v48, 16  ;;  %11754 = vmatprep.subr.bf16.mxu0 %v12111_v35  ;;  %v5680_v48 = vsel %vm14938_vm10, %v10515_v22, %v5679_v9 }
 0x64f   : > { %v15904_v2 = vld [vmem:[#allocation4 + $0x5c] sm:$0xf]  ;;  %v4250_v56 = vshll.u32 %v4118_v42, 16  ;;  %v4233_v0 = vrot.slane %v4231_v58, 4  ;;  %v4236_v45 = vrot.slane %v4234_v16, 5  ;;  %v5178_v25 = vshrl.u32 %v5066_v5, 16  ;;  %11755 = vmatpush3.bf16.msra.mxu0 %v12111_v35 }
 0x650   : > { %18799 = vst [vmem:[#allocation21_spill] sm:$0xff] %v15904_v2  ;;  %5800 = vst [vmem:[#allocation4 + $0x5c] sm:$0xf] %v5676_v28  ;;  %v7456_v19 = vld [vmem:[#allocation3 + $0x3c] sm:$0xf]  ;;  %v12112_v49 = vld [vmem:[%s18542_s8 + $0x20] sm:$0xff]  }
 0x651   : > { %v5835_v61 = vld [vmem:[#allocation4 + $0x3c] sm:$0xff]  ;;  %v5681_v20 = vrot.slane %v5679_v9, 4  ;;  %v4242_v26 = vrot.slane %v4240_v59, 5  ;;  %v4246_v13 = vrot.slane %v4244_v36, 4  ;;  %7419 = vst [vmem:[#allocation4 + $0x30] sm:$0xf] %v7387_v43  ;;  %v4237_v27 = vor.u32 %v4236_v45, %v4233_v0  ;;  %11268 = vmatpush3.bf16.msra.mxu1 %v12112_v49 }
 0x652   : > { %v12082_v29 = vld [vmem:[#allocation4 + $0x34] ss:$12 sps:$4 sm:$0xff]   ;;  %7420 = vst [vmem:[#allocation4 + $0x3c] sm:$0xf] %v7388_v23  ;;  %v15917_v51 = vld [vmem:[#allocation3 + $0x50] sm:$0x1]  ;;  %v10581_v17 = vcombine.low %v5833_v1, %v5835_v61 }
 0x653   : > { %7915 = vst [vmem:[#allocation4 + $0x34] sm:$0xf] %v7556_v55  ;;  %7916 = vst [vmem:[#allocation4 + $0x40] sm:$0xf] %v7566_v18  ;;  %v5180_v57 = vrot.slane %v5178_v25, 4  ;;  %v5181_v42 = vshll.u32 %v5066_v5, 16  ;;  %6386 = vmatprep.mubr.bf16.mxu0 %v12082_v29  ;;  %v4247_v11 = vor.u32 %v4246_v13, %v4242_v26  ;;  %v8063_v5 = vsel %vm14938_vm10, %v10722_v7, %v8062_v53 }
 0x654   : > { %v15919_v54 = vld [vmem:[#allocation4 + $0x68] sm:$0xf]  ;;  %v4252_v22 = vrot.slane %v4250_v56, 5  ;;  %v5187_v10 = vshll.u32 %v5067_v39, 16  ;;  %v5191_v9 = vshrl.u32 %v5067_v39, 16  ;;  %6387 = vmatmul.mubr.bf16.gmra.mxu0 %v10581_v17  ;;  %v4238_v16 = vrot.slane %v4237_v27, 4 }
 0x655   : > { %18800 = vst [vmem:[#allocation22_spill] sm:$0xff] %v15919_v54  ;;  %v7457_v58 = vld [vmem:[#allocation3 + $0x40] sm:$0xf]  ;;  %5801 = vst [vmem:[#allocation4 + $0x68] sm:$0xf] %v5680_v48  ;;  %v5183_v35 = vrot.slane %v5181_v42, 5  ;;  %v5683_v39 = vsel %vm14938_vm10, %v5681_v20, %v5682_v46 }
 0x656   : > { %v5068_v55 = vld [vmem:[#allocation3 + $0x38] sm:$0x1]  ;;  %v7568_v43 = vshrl.u32 %v7456_v19, 16  ;;  %v7571_v23 = vshll.u32 %v7456_v19, 16  ;;  %v4622_v1 = vld [vmem:[#allocation3 + $0x40] sm:$0xf]  ;;  %v4243_v30 = vsel %vm15002_vm13, %v4238_v16, %v4242_v26 }
 0x657   : > { %v15927_v28 = vld [vmem:[#allocation4 + $0x74] sm:$0xf]  ;;  %v4248_v59 = vrot.slane %v4247_v11, 4  ;;  %v15933_v36 = vrot.slane %v5187_v10, 5  ;;  %v8072_v56 = vrot.slane %v15917_v51, 5  ;;  %v5184_v33 = vor.u32 %v5183_v35, %v5180_v57 }
 0x658   : > { %18801 = vst [vmem:[#allocation18_spill] sm:$0xff] %v15927_v28  ;;  %5802 = vst [vmem:[#allocation4 + $0x74] sm:$0xf] %v5683_v39  ;;  %v5193_v18 = vrot.slane %v5191_v9, 4  ;;  %v7458_v0 = vld [vmem:[#allocation3 + $0x44] sm:$0x1] }
 0x659   : > { %v4621_v53 = vld [vmem:[#allocation3 + $0x3c] sm:$0xe]  ;;  %v12084_v7 = vld [vmem:[#allocation4 + $0x50] ss:$12 sps:$4 sm:$0xff]   ;;  %v4253_v46 = vsel %vm15002_vm13, %v4248_v59, %v4252_v22  ;;  %4580 = vst [vmem:[#allocation4 + $0x4c] sm:$0xf] %v4243_v30 }
 0x65a   : > { %v7570_v45 = vrot.slane %v7568_v43, 4  ;;  %v7573_v25 = vrot.slane %v7571_v23, 5  ;;  %8189 = vst [vmem:[#allocation4 + $0x50] sm:$0xf] %v8063_v5  ;;  %8190 = vst [vmem:[#allocation4 + $0x5c] sm:$0xf] %v8066_v34  ;;  %v5194_v49 = vor.u32 %v5193_v18, %v15933_v36  ;;  %11721 = vmatmul.mubr.bf16.gmra.mxu1 %v12084_v7  ;;  %v8070_v5 = vsel %vm14938_vm10, %v10723_v14, %v8069_v52 }
 0x65b   : > { %v8071_v19 = vrot.slane %v8069_v52, 4  ;;  %4581 = vst [vmem:[#allocation4 + $0x58] sm:$0xf] %v4253_v46  ;;  %v7577_v61 = vshll.u32 %v7457_v58, 16  ;;  %v7581_v12 = vshrl.u32 %v7457_v58, 16  ;;  %v5197_v44 = vshll.u32 %v5068_v55, 16 }
 0x65c   : > { %v15948_v29 = vld [vmem:[#allocation3 + $0x4c] sm:$0xf]  ;;  %v4623_v62 = vld [vmem:[#allocation3 + $0x44] sm:$0x1]  ;;  %v10500_v48 = vrot.slane %v4621_v53, 9  ;;  %v4742_v20 = vrot.slane %v4622_v1, 5  ;;  %v7574_v51 = vor.u32 %v7573_v25, %v7570_v45 }
 0x65d   : > { %v5185_v26 = vrot.slane %v5184_v33, 4  ;;  %v5195_v13 = vrot.slane %v5194_v49, 4  ;;  %v7587_v17 = vshll.u32 %v7458_v0, 16  ;;  %v5568_v27 = vld [vmem:[#allocation3 + $0x48] sm:$0xe]  ;;  %v15950_v57 = vrot.slane %v7577_v61, 5 }
 0x65e   : > { %v7583_v42 = vrot.slane %v7581_v12, 4  ;;  %v4743_v11 = vsel %vm14938_vm10, %v10500_v48, %v4742_v20  ;;  %v4744_v22 = vrot.slane %v4742_v20, 4  ;;  %v15954_v10 = vld [vmem:[#allocation3 + $0x58] sm:$0xf]  ;;  %v4625_v9 = vld [vmem:[#allocation3 + $0x4c] sm:$0xf]  ;;  %v8073_v39 = vsel %vm14938_vm10, %v8071_v19, %v8072_v56 }
 0x65f   : > { %v12116_v58 = vld [vmem:[%s18542_s8 + $0x58] sm:$0xff]   ;;  %v4999_v16 = vld [vmem:[#allocation3 + $0x30] sm:$0xf]  ;;  %v4745_v55 = vrot.slane %v4623_v62, 5  ;;  %4859 = vst [vmem:[#allocation4 + $0x80] sm:$0xf] %v4743_v11  ;;  %v5190_v37 = vsel %vm15002_vm13, %v5185_v26, %v15933_v36 }
 0x660   : > { %v15959_v35 = vld [vmem:[#allocation3 + $0x50] sm:$0x1]  ;;  %v4624_v43 = vld [vmem:[#allocation3 + $0x48] sm:$0xe]  ;;  %v15961_v23 = vld [vmem:[#allocation3 + $0x58] sm:$0xf]  ;;  %11269 = vmatprep.subr.bf16.mxu1 %v12116_v58  ;;  %v7584_v36 = vor.u32 %v7583_v42, %v15950_v57 }
 0x661   : > { %v12085_v1 = vld [vmem:[#allocation4 + $0x68] ss:$12 sps:$4 sm:$0xff]   ;;  %v5000_v59 = vld [vmem:[#allocation3 + $0x34] sm:$0xf]  ;;  %v5199_v30 = vrot.slane %v5197_v44, 5  ;;  %v5686_v33 = vrot.slane %v15948_v29, 5  ;;  %v4746_v14 = vsel %vm14938_vm10, %v4744_v22, %v4745_v55 }
 0x662   : > { %8191 = vst [vmem:[#allocation4 + $0x68] sm:$0xf] %v8070_v5  ;;  %8192 = vst [vmem:[#allocation4 + $0x74] sm:$0xf] %v8073_v39  ;;  %v15972_v18 = vld [vmem:[#allocation4 + $0x48] sm:$0xff]  ;;  %v15977_v32 = vrot.slane %v7574_v51, 4  ;;  %11724 = vmatprep.mubr.bf16.mxu1 %v12085_v1 }
 0x663   : > { %v15979_v0 = vrot.slane %v7587_v17, 5  ;;  %v15983_v52 = vld [vmem:[#allocation3 + $0x54] sm:$0xe]  ;;  %v15985_v56 = vld [vmem:[#allocation3 + $0x5c] sm:$0x1]  ;;  %v15987_v53 = vld [vmem:[#allocation4 + $0x54] sm:$0xff]  ;;  %v5200_v7 = vsel %vm15002_vm13, %v5195_v13, %v5199_v30 }
 0x664   : > { %5031 = vst [vmem:[#allocation4 + $0x48] sm:$0xf] %v4999_v16  ;;  %5527 = vst [vmem:[#allocation4 + $0x4c] sm:$0xf] %v5190_v37  ;;  %v10516_v34 = vrot.slane %v5568_v27, 9  ;;  %v10501_v45 = vrot.slane %v4624_v43, 9 }
 0x665   : > { %4860 = vst [vmem:[#allocation4 + $0x8c] sm:$0xf] %v4746_v14  ;;  %v4626_v46 = vld [vmem:[#allocation3 + $0x50] sm:$0x1]  ;;  %5032 = vst [vmem:[#allocation4 + $0x54] sm:$0xf] %v5000_v59 }
 0x666   : > { %5528 = vst [vmem:[#allocation4 + $0x58] sm:$0xf] %v5200_v7  ;;  %v8076_v25 = vrot.slane %v15954_v10, 5  ;;  %v4749_v19 = vrot.slane %v4625_v9, 5  ;;  %v15993_v49 = vld [vmem:[#allocation3 + $0x54] sm:$0xe]  ;;  %v5687_v11 = vsel %vm14938_vm10, %v10516_v34, %v5686_v33 }
 0x667   : > { %v15995_v61 = vld [vmem:[#allocation3 + $0x5c] sm:$0x1]  ;;  %v5688_v12 = vrot.slane %v5686_v33, 4  ;;  %v5689_v29 = vrot.slane %v15959_v35, 5  ;;  %v5693_v44 = vrot.slane %v15961_v23, 5  ;;  %v4752_v13 = vrot.slane %v4626_v46, 5 }
 0x668   : > { %v4051_v62 = vld [vmem:[#allocation3 + $0x30] sm:$0xf]  ;;  %v12118_v48 = vld [vmem:[%s18542_s8 + $0x18] sm:$0xff]   ;;  %v4750_v20 = vsel %vm14938_vm10, %v10501_v45, %v4749_v19  ;;  %v4751_v26 = vrot.slane %v4749_v19, 4  ;;  %v4052_v51 = vld [vmem:[#allocation3 + $0x34] sm:$0xf] }
 0x669   : > { %4083 = vst [vmem:[#allocation4 + $0x60] sm:$0xf] %v4051_v62  ;;  %v4119_v17 = vld [vmem:[#allocation3 + $0x30] sm:$0xf]  ;;  %v7585_v27 = vrot.slane %v7584_v36, 4  ;;  %v10724_v22 = vrot.slane %v15983_v52, 9  ;;  %11270 = vmatpush3.bf16.msra.mxu1 %v12118_v48  ;;  %v5690_v34 = vsel %vm14938_vm10, %v5688_v12, %v5689_v29 }
 0x66a   : > { %v16004_v42 = vld [vmem:[#allocation4 + $0x80] sm:$0xf]  ;;  %v8079_v9 = vrot.slane %v15985_v56, 5  ;;  %4861 = vst [vmem:[#allocation4 + $0x98] sm:$0xf] %v4750_v20  ;;  %v12119_v58 = vld [vmem:[%s18542_s8 + $0x50] sm:$0xff]   ;;  %v4753_v55 = vsel %vm14938_vm10, %v4751_v26, %v4752_v13 }
 0x66b   : > { %18802 = vst [vmem:[#allocation23_spill] sm:$0xff] %v16004_v42  ;;  %4084 = vst [vmem:[#allocation4 + $0x6c] sm:$0xf] %v4052_v51  ;;  %v16015_v16 = vrot.slane %v8076_v25, 4  ;;  %v4120_v35 = vld [vmem:[#allocation3 + $0x34] sm:$0xf]  ;;  %11271 = vmatprep.subr.bf16.mxu1 %v12119_v58  ;;  %v7590_v48 = vsel %vm15002_vm13, %v7585_v27, %v15979_v0 }
 0x66c   : > { %5803 = vst [vmem:[#allocation4 + $0x80] sm:$0xf] %v5687_v11  ;;  %v4121_v43 = vld [vmem:[#allocation3 + $0x38] sm:$0x1]  ;;  %v4255_v1 = vshrl.u32 %v4119_v17, 16  ;;  %v10517_v59 = vrot.slane %v15993_v49, 9 }
 0x66d   : > { %v7389_v5 = vld [vmem:[#allocation3 + $0x3c] sm:$0xf]  ;;  %v7390_v39 = vld [vmem:[#allocation3 + $0x40] sm:$0xf]  ;;  %4862 = vst [vmem:[#allocation4 + $0xa4] sm:$0xf] %v4753_v55 }
 0x66e   : > { %v5695_v30 = vrot.slane %v5693_v44, 4  ;;  %v5696_v33 = vrot.slane %v15995_v61, 5  ;;  %v16023_v37 = vld [vmem:[#allocation3 + $0x64] sm:$0xf]  ;;  %v4258_v14 = vshll.u32 %v4119_v17, 16  ;;  %v4257_v46 = vrot.slane %v4255_v1, 4 }
 0x66f   : > { %v5837_v7 = vld [vmem:[#allocation4 + $0x48] sm:$0xff]  ;;  %v4264_v45 = vshll.u32 %v4120_v35, 16  ;;  %v4268_v19 = vshrl.u32 %v4120_v35, 16  ;;  %v5839_v62 = vld [vmem:[#allocation4 + $0x54] sm:$0xff]  ;;  %v7580_v61 = vsel %vm15002_vm13, %v15977_v32, %v15950_v57  ;;  %v4274_v26 = vshll.u32 %v4121_v43, 16 }
 0x670   : > { %v16025_v36 = vld [vmem:[#allocation4 + $0x8c] sm:$0xf]  ;;  %v4260_v20 = vrot.slane %v4258_v14, 5  ;;  %v12120_v12 = vld [vmem:[%s18542_s8 + $0x10] sm:$0xff]   ;;  %7421 = vst [vmem:[#allocation4 + $0x48] sm:$0xf] %v7389_v5  ;;  %v10584_v13 = vcombine.low %v5837_v7, %v5839_v62  ;;  %v5694_v43 = vsel %vm14938_vm10, %v10517_v59, %v5693_v44  ;;  %v5697_v7 = vsel %vm14938_vm10, %v5695_v30, %v5696_v33 }
 0x671   : > { %18803 = vst [vmem:[#allocation24_spill] sm:$0xff] %v16025_v36  ;;  %v12087_v49 = vld [vmem:[#allocation4 + $0x4c] ss:$12 sps:$4 sm:$0xff]   ;;  %5804 = vst [vmem:[#allocation4 + $0x8c] sm:$0xf] %v5690_v34  ;;  %v4266_v51 = vrot.slane %v4264_v45, 5  ;;  %11272 = vmatpush3.bf16.msra.mxu1 %v12120_v12 }
 0x672   : > { %7422 = vst [vmem:[#allocation4 + $0x54] sm:$0xf] %v7390_v39  ;;  %7917 = vst [vmem:[#allocation4 + $0x4c] sm:$0xf] %v7580_v61  ;;  %v16039_v29 = vld [vmem:[#allocation3 + $0x60] sm:$0xe]  ;;  %6394 = vmatprep.mubr.bf16.mxu0 %v12087_v49  ;;  %v4261_v11 = vor.u32 %v4260_v20, %v4257_v46  ;;  %v8077_v20 = vsel %vm14938_vm10, %v10724_v22, %v8076_v25 }
 0x673   : > { %7918 = vst [vmem:[#allocation4 + $0x58] sm:$0xf] %v7590_v48  ;;  %v4270_v57 = vrot.slane %v4268_v19, 4  ;;  %v5069_v32 = vld [vmem:[#allocation3 + $0x3c] sm:$0xf]  ;;  %v8083_v27 = vrot.slane %v16023_v37, 5  ;;  %6395 = vmatmul.mubr.bf16.gmra.mxu0 %v10584_v13 }
 0x674   : > { %v5070_v17 = vld [vmem:[#allocation3 + $0x40] sm:$0xf]  ;;  %v16041_v0 = vld [vmem:[#allocation3 + $0x68] sm:$0x1]  ;;  %v5202_v58 = vshrl.u32 %v5069_v32, 16  ;;  %v5205_v55 = vshll.u32 %v5069_v32, 16 }
 0x675   : > { %v16044_v35 = vld [vmem:[#allocation4 + $0x98] sm:$0xf]  ;;  %v4271_v1 = vor.u32 %v4270_v57, %v4266_v51  ;;  %v5071_v5 = vld [vmem:[#allocation3 + $0x44] sm:$0x1]  ;;  %v5211_v39 = vshll.u32 %v5070_v17, 16  ;;  %v5215_v14 = vshrl.u32 %v5070_v17, 16 }
 0x676   : > { %18804 = vst [vmem:[#allocation25_spill] sm:$0xff] %v16044_v35  ;;  %5805 = vst [vmem:[#allocation4 + $0x98] sm:$0xf] %v5694_v43  ;;  %v4262_v37 = vrot.slane %v4261_v11, 4  ;;  %v5204_v34 = vrot.slane %v5202_v58, 4  ;;  %v5207_v46 = vrot.slane %v5205_v55, 5 }
 0x677   : > { %v16052_v45 = vld [vmem:[#allocation4 + $0xa4] sm:$0xf]  ;;  %v4272_v19 = vrot.slane %v4271_v1, 4  ;;  %v4276_v62 = vrot.slane %v4274_v26, 5  ;;  %v5213_v23 = vrot.slane %v5211_v39, 5  ;;  %v5217_v49 = vrot.slane %v5215_v14, 4 }
 0x678   : > { %18805 = vst [vmem:[#allocation26_spill] sm:$0xff] %v16052_v45  ;;  %5806 = vst [vmem:[#allocation4 + $0xa4] sm:$0xf] %v5697_v7  ;;  %v10725_v44 = vrot.slane %v16039_v29, 9  ;;  %v8086_v59 = vrot.slane %v16041_v0, 5  ;;  %v4267_v61 = vsel %vm15002_vm13, %v4262_v37, %v4266_v51  ;;  %v5208_v48 = vor.u32 %v5207_v46, %v5204_v34 }
 0x679   : > { %v7459_v30 = vld [vmem:[#allocation3 + $0x48] sm:$0xf]  ;;  %v12089_v33 = vld [vmem:[#allocation4 + $0x80] ss:$12 sps:$4 sm:$0xff]   ;;  %v8080_v26 = vsel %vm14938_vm10, %v16015_v16, %v8079_v9  ;;  %v4277_v12 = vsel %vm15002_vm13, %v4272_v19, %v4276_v62  ;;  %4582 = vst [vmem:[#allocation4 + $0x64] sm:$0xf] %v4267_v61  ;;  %v5218_v29 = vor.u32 %v5217_v49, %v5213_v23 }
 0x67a   : > { %v7460_v13 = vld [vmem:[#allocation3 + $0x4c] sm:$0xf]  ;;  %8193 = vst [vmem:[#allocation4 + $0x80] sm:$0xf] %v8077_v20  ;;  %8194 = vst [vmem:[#allocation4 + $0x8c] sm:$0xf] %v8080_v26  ;;  %11725 = vmatmul.mubr.bf16.gmra.mxu1 %v12089_v33  ;;  %v8084_v34 = vsel %vm14938_vm10, %v10725_v44, %v8083_v27 }
 0x67b   : > { %4583 = vst [vmem:[#allocation4 + $0x70] sm:$0xf] %v4277_v12  ;;  %v5221_v10 = vshll.u32 %v5071_v5, 16  ;;  %v7592_v52 = vshrl.u32 %v7459_v30, 16  ;;  %v7595_v51 = vshll.u32 %v7459_v30, 16  ;;  %v7601_v57 = vshll.u32 %v7460_v13, 16 }
 0x67c   : > { %v8085_v25 = vrot.slane %v8083_v27, 4  ;;  %v5209_v56 = vrot.slane %v5208_v48, 4  ;;  %v7605_v22 = vshrl.u32 %v7460_v13, 16  ;;  %v4627_v32 = vld [vmem:[#allocation3 + $0x54] sm:$0xe]  ;;  %v5219_v17 = vrot.slane %v5218_v29, 4 }
 0x67d   : > { %v7594_v9 = vrot.slane %v7592_v52, 4  ;;  %v7597_v16 = vrot.slane %v7595_v51, 5  ;;  %v4628_v0 = vld [vmem:[#allocation3 + $0x58] sm:$0xf]  ;;  %v16071_v11 = vrot.slane %v7601_v57, 5  ;;  %v5223_v1 = vrot.slane %v5221_v10, 5 }
 0x67e   : > { %v7607_v58 = vrot.slane %v7605_v22, 4  ;;  %v4629_v55 = vld [vmem:[#allocation3 + $0x5c] sm:$0x1]  ;;  %v7461_v39 = vld [vmem:[#allocation3 + $0x50] sm:$0x1]  ;;  %v10502_v14 = vrot.slane %v4627_v32, 9  ;;  %v8087_v46 = vsel %vm14938_vm10, %v8085_v25, %v8086_v59  ;;  %v5214_v61 = vsel %vm15002_vm13, %v5209_v56, %v5213_v23 }
 0x67f   : > { %v5001_v43 = vld [vmem:[#allocation3 + $0x3c] sm:$0xf]  ;;  %v7598_v5 = vor.u32 %v7597_v16, %v7594_v9  ;;  %v4756_v7 = vrot.slane %v4628_v0, 5  ;;  %v5575_v19 = vld [vmem:[#allocation3 + $0x64] sm:$0xf]  ;;  %v4759_v33 = vrot.slane %v4629_v55, 5  ;;  %v5224_v27 = vsel %vm15002_vm13, %v5219_v17, %v5223_v1 }
 0x680   : > { %v12090_v37 = vld [vmem:[#allocation4 + $0x98] ss:$12 sps:$4 sm:$0xff]   ;;  %v5002_v49 = vld [vmem:[#allocation3 + $0x40] sm:$0xf]  ;;  %v7608_v44 = vor.u32 %v7607_v58, %v16071_v11  ;;  %v7611_v59 = vshll.u32 %v7461_v39, 16  ;;  %v5700_v12 = vrot.slane %v5575_v19, 5 }
 0x681   : > { %8195 = vst [vmem:[#allocation4 + $0x98] sm:$0xf] %v8084_v34  ;;  %8196 = vst [vmem:[#allocation4 + $0xa4] sm:$0xf] %v8087_v46  ;;  %v16077_v62 = vld [vmem:[#allocation4 + $0x60] sm:$0xff]  ;;  %v4757_v48 = vsel %vm14938_vm10, %v10502_v14, %v4756_v7  ;;  %v4758_v30 = vrot.slane %v4756_v7, 4  ;;  %11728 = vmatprep.mubr.bf16.mxu1 %v12090_v37 }
 0x682   : > { %v16083_v20 = vld [vmem:[#allocation4 + $0x6c] sm:$0xff]  ;;  %5033 = vst [vmem:[#allocation4 + $0x60] sm:$0xf] %v5001_v43  ;;  %5529 = vst [vmem:[#allocation4 + $0x64] sm:$0xf] %v5214_v61  ;;  %v7599_v23 = vrot.slane %v7598_v5, 4 }
 0x683   : > { %4863 = vst [vmem:[#allocation4 + $0xb0] sm:$0xf] %v4757_v48  ;;  %v5574_v26 = vld [vmem:[#allocation3 + $0x60] sm:$0xe]  ;;  %5034 = vst [vmem:[#allocation4 + $0x6c] sm:$0xf] %v5002_v49  ;;  %v4760_v29 = vsel %vm14938_vm10, %v4758_v30, %v4759_v33 }
 0x684   : > { %5530 = vst [vmem:[#allocation4 + $0x70] sm:$0xf] %v5224_v27  ;;  %v5576_v13 = vld [vmem:[#allocation3 + $0x68] sm:$0x1]  ;;  %v16090_v10 = vld [vmem:[#allocation3 + $0x6c] sm:$0xe]  ;;  %v7604_v30 = vsel %vm15002_vm13, %v7599_v23, %v16071_v11 }
 0x685   : > { %v12124_v52 = vld [vmem:[%s18542_s8 + $0x48] sm:$0xff]   ;;  %4864 = vst [vmem:[#allocation4 + $0xbc] sm:$0xf] %v4760_v29  ;;  %v16095_v51 = vld [vmem:[#allocation3 + $0x70] sm:$0xf]  ;;  %v10518_v56 = vrot.slane %v5574_v26, 9 }
 0x686   : > { %v4630_v57 = vld [vmem:[#allocation3 + $0x60] sm:$0xe]  ;;  %v4631_v25 = vld [vmem:[#allocation3 + $0x64] sm:$0xf]  ;;  %v4632_v22 = vld [vmem:[#allocation3 + $0x68] sm:$0x1]  ;;  %11273 = vmatprep.subr.bf16.mxu1 %v12124_v52 }
 0x687   : > { %v10503_v32 = vrot.slane %v4630_v57, 9  ;;  %v4763_v17 = vrot.slane %v4631_v25, 5  ;;  %v12125_v9 = vld [vmem:[%s18542_s8 + $0x8] sm:$0xff]   ;;  %v7609_v16 = vrot.slane %v7608_v44, 4  ;;  %v5702_v0 = vrot.slane %v5700_v12, 4  ;;  %v12126_v7 = vld [vmem:[%s18542_s8 + $0x40] sm:$0xff]  }
 0x688   : > { %v16100_v58 = vld [vmem:[#allocation3 + $0x74] sm:$0x1]  ;;  %v5578_v55 = vld [vmem:[#allocation3 + $0x70] sm:$0xf]  ;;  %v4766_v39 = vrot.slane %v4632_v22, 5  ;;  %11274 = vmatpush3.bf16.msra.mxu1 %v12125_v9  ;;  %v7613_v46 = vrot.slane %v7611_v59, 5  ;;  %v5701_v27 = vsel %vm14938_vm10, %v10518_v56, %v5700_v12 }
 0x689   : > { %v4764_v43 = vsel %vm14938_vm10, %v10503_v32, %v4763_v17  ;;  %v4765_v1 = vrot.slane %v4763_v17, 4  ;;  %v5577_v5 = vld [vmem:[#allocation3 + $0x6c] sm:$0xe]  ;;  %v5707_v14 = vrot.slane %v5578_v55, 5  ;;  %v7391_v37 = vld [vmem:[#allocation3 + $0x48] sm:$0xf]  ;;  %11275 = vmatprep.subr.bf16.mxu1 %v12126_v7 }
 0x68a   : > { %v7392_v34 = vld [vmem:[#allocation3 + $0x4c] sm:$0xf]  ;;  %v5703_v19 = vrot.slane %v5576_v13, 5  ;;  %v10726_v49 = vrot.slane %v16090_v10, 9  ;;  %4865 = vst [vmem:[#allocation4 + $0xc8] sm:$0xf] %v4764_v43  ;;  %v7614_v57 = vsel %vm15002_vm13, %v7609_v16, %v7613_v46 }
 0x68b   : > { %v12127_v61 = vld [vmem:[%s18542_s8 + $0x98] sm:$0xff]   ;;  %v16114_v33 = vld [vmem:[#allocation4 + $0xb0] sm:$0xf]  ;;  %v8090_v44 = vrot.slane %v16095_v51, 5  ;;  %v4767_v59 = vsel %vm14938_vm10, %v4765_v1, %v4766_v39  ;;  %v5579_v26 = vld [vmem:[#allocation3 + $0x74] sm:$0x1] }
 0x68c   : > { %v5841_v48 = vld [vmem:[#allocation4 + $0x60] sm:$0xff]  ;;  %18806 = vst [vmem:[#allocation10_spill] sm:$0xff] %v16114_v33  ;;  %v5843_v13 = vld [vmem:[#allocation4 + $0x6c] sm:$0xff]  ;;  %5807 = vst [vmem:[#allocation4 + $0xb0] sm:$0xf] %v5701_v27  ;;  %v8093_v11 = vrot.slane %v16100_v58, 5  ;;  %11756 = vmatprep.subr.bf16.mxu0 %v12127_v61  ;;  %v5704_v56 = vsel %vm14938_vm10, %v5702_v0, %v5703_v19 }
 0x68d   : > { %v16121_v29 = vld [vmem:[#allocation3 + $0x7c] sm:$0xf]  ;;  %4866 = vst [vmem:[#allocation4 + $0xd4] sm:$0xf] %v4767_v59  ;;  %v10519_v23 = vrot.slane %v5577_v5, 9  ;;  %v5709_v12 = vrot.slane %v5707_v14, 4  ;;  %v10587_v17 = vcombine.low %v5841_v48, %v5843_v13  ;;  %11757 = vmatpush3.bf16.msra.mxu0 %v12127_v61 }
 0x68e   : > { %v12091_v52 = vld [vmem:[#allocation4 + $0x64] ss:$12 sps:$4 sm:$0xff]   ;;  %7423 = vst [vmem:[#allocation4 + $0x60] sm:$0xf] %v7391_v37  ;;  %7424 = vst [vmem:[#allocation4 + $0x6c] sm:$0xf] %v7392_v34 }
 0x68f   : > { %7919 = vst [vmem:[#allocation4 + $0x64] sm:$0xf] %v7604_v30  ;;  %7920 = vst [vmem:[#allocation4 + $0x70] sm:$0xf] %v7614_v57  ;;  %v16126_v25 = vld [vmem:[#allocation4 + $0xbc] sm:$0xf]  ;;  %6402 = vmatprep.mubr.bf16.mxu0 %v12091_v52  ;;  %v5708_v46 = vsel %vm14938_vm10, %v10519_v23, %v5707_v14 }
 0x690   : > { %18807 = vst [vmem:[#allocation27_spill] sm:$0xff] %v16126_v25  ;;  %v16130_v22 = vld [vmem:[#allocation3 + $0x78] sm:$0xe]  ;;  %v16132_v32 = vld [vmem:[#allocation3 + $0x80] sm:$0x1]  ;;  %v8097_v58 = vrot.slane %v16121_v29, 5  ;;  %6403 = vmatmul.mubr.bf16.gmra.mxu0 %v10587_v17 }
 0x691   : > { %v4053_v9 = vld [vmem:[#allocation3 + $0x3c] sm:$0xf]  ;;  %v4054_v16 = vld [vmem:[#allocation3 + $0x40] sm:$0xf]  ;;  %5808 = vst [vmem:[#allocation4 + $0xbc] sm:$0xf] %v5704_v56 }
 0x692   : > { %4085 = vst [vmem:[#allocation4 + $0x78] sm:$0xf] %v4053_v9  ;;  %4086 = vst [vmem:[#allocation4 + $0x84] sm:$0xf] %v4054_v16  ;;  %v4122_v55 = vld [vmem:[#allocation3 + $0x3c] sm:$0xf] }
 0x693   : > { %v4123_v43 = vld [vmem:[#allocation3 + $0x40] sm:$0xf]  ;;  %v4124_v1 = vld [vmem:[#allocation3 + $0x44] sm:$0x1]  ;;  %v4279_v39 = vshrl.u32 %v4122_v55, 16  ;;  %v4282_v5 = vshll.u32 %v4122_v55, 16 }
 0x694   : > { %v12128_v0 = vld [vmem:[%s18542_s8] sm:$0xff]   ;;  %v4288_v7 = vshll.u32 %v4123_v43, 16  ;;  %v4292_v37 = vshrl.u32 %v4123_v43, 16  ;;  %v8092_v34 = vrot.slane %v8090_v44, 4  ;;  %v5710_v19 = vrot.slane %v5579_v26, 5  ;;  %v12133_v29 = vld [vmem:[%s18542_s8 + $0x90] sm:$0xff]  }
 0x695   : > { %v4298_v61 = vshll.u32 %v4124_v1, 16  ;;  %11276 = vmatpush3.bf16.msra.mxu1 %v12128_v0  ;;  %v16142_v48 = vld [vmem:[#allocation4 + $0xc8] sm:$0xf]  ;;  %v4281_v30 = vrot.slane %v4279_v39, 4  ;;  %v4284_v27 = vrot.slane %v4282_v5, 5  ;;  %v10727_v57 = vrot.slane %v16130_v22, 9  ;;  %11758 = vmatprep.subr.bf16.mxu0 %v12133_v29 }
 0x696   : > { %18808 = vst [vmem:[#allocation13_spill] sm:$0xff] %v16142_v48  ;;  %v4290_v59 = vrot.slane %v4288_v7, 5  ;;  %v4294_v13 = vrot.slane %v4292_v37, 4  ;;  %v5711_v52 = vsel %vm14938_vm10, %v5709_v12, %v5710_v19  ;;  %5809 = vst [vmem:[#allocation4 + $0xc8] sm:$0xf] %v5708_v46  ;;  %v8100_v56 = vrot.slane %v16132_v32, 5  ;;  %11759 = vmatpush3.bf16.msra.mxu0 %v12133_v29 }
 0x697   : > { %v5072_v17 = vld [vmem:[#allocation3 + $0x48] sm:$0xf]  ;;  %v5073_v9 = vld [vmem:[#allocation3 + $0x4c] sm:$0xf]  ;;  %v8099_v26 = vrot.slane %v8097_v58, 4  ;;  %v4285_v23 = vor.u32 %v4284_v27, %v4281_v30  ;;  %v4300_v55 = vrot.slane %v4298_v61, 5  ;;  %v8091_v22 = vsel %vm14938_vm10, %v10726_v49, %v8090_v44 }
 0x698   : > { %v16148_v14 = vld [vmem:[#allocation4 + $0xd4] sm:$0xf]  ;;  %v4295_v16 = vor.u32 %v4294_v13, %v4290_v59  ;;  %v5074_v43 = vld [vmem:[#allocation3 + $0x50] sm:$0x1]  ;;  %v5226_v0 = vshrl.u32 %v5072_v17, 16  ;;  %v5229_v1 = vshll.u32 %v5072_v17, 16  ;;  %v8094_v32 = vsel %vm14938_vm10, %v8092_v34, %v8093_v11 }
 0x699   : > { %18809 = vst [vmem:[#allocation14_spill] sm:$0xff] %v16148_v14  ;;  %5810 = vst [vmem:[#allocation4 + $0xd4] sm:$0xf] %v5711_v52  ;;  %v5235_v12 = vshll.u32 %v5073_v9, 16  ;;  %v5239_v39 = vshrl.u32 %v5073_v9, 16  ;;  %v4286_v7 = vrot.slane %v4285_v23, 4 }
 0x69a   : > { %v12093_v5 = vld [vmem:[#allocation4 + $0xb0] ss:$12 sps:$4 sm:$0xff]   ;;  %v4296_v37 = vrot.slane %v4295_v16, 4  ;;  %v5228_v46 = vrot.slane %v5226_v0, 4  ;;  %v5231_v19 = vrot.slane %v5229_v1, 5  ;;  %v5245_v27 = vshll.u32 %v5074_v43, 16 }
 0x69b   : > { %8197 = vst [vmem:[#allocation4 + $0xb0] sm:$0xf] %v8091_v22  ;;  %8198 = vst [vmem:[#allocation4 + $0xbc] sm:$0xf] %v8094_v32  ;;  %v5237_v61 = vrot.slane %v5235_v12, 5  ;;  %v5241_v30 = vrot.slane %v5239_v39, 4  ;;  %11729 = vmatmul.mubr.bf16.gmra.mxu1 %v12093_v5  ;;  %v4291_v51 = vsel %vm15002_vm13, %v4286_v7, %v4290_v59  ;;  %v8101_v43 = vsel %vm14938_vm10, %v8099_v26, %v8100_v56 }
 0x69c   : > { %v4301_v10 = vsel %vm15002_vm13, %v4296_v37, %v4300_v55  ;;  %v7462_v49 = vld [vmem:[#allocation3 + $0x54] sm:$0xf]  ;;  %v7463_v44 = vld [vmem:[#allocation3 + $0x58] sm:$0xf]  ;;  %4584 = vst [vmem:[#allocation4 + $0x7c] sm:$0xf] %v4291_v51  ;;  %v5232_v11 = vor.u32 %v5231_v19, %v5228_v46  ;;  %v8098_v55 = vsel %vm14938_vm10, %v10727_v57, %v8097_v58 }
 0x69d   : > { %4585 = vst [vmem:[#allocation4 + $0x88] sm:$0xf] %v4301_v10  ;;  %v5242_v34 = vor.u32 %v5241_v30, %v5237_v61  ;;  %v7464_v13 = vld [vmem:[#allocation3 + $0x5c] sm:$0x1]  ;;  %v7616_v52 = vshrl.u32 %v7462_v49, 16  ;;  %v7619_v17 = vshll.u32 %v7462_v49, 16 }
 0x69e   : > { %v7625_v9 = vshll.u32 %v7463_v44, 16  ;;  %v7629_v23 = vshrl.u32 %v7463_v44, 16  ;;  %v4633_v16 = vld [vmem:[#allocation3 + $0x6c] sm:$0xe]  ;;  %v5233_v0 = vrot.slane %v5232_v11, 4  ;;  %v5247_v7 = vrot.slane %v5245_v27, 5 }
 0x69f   : > { %v5243_v1 = vrot.slane %v5242_v34, 4  ;;  %v7618_v12 = vrot.slane %v7616_v52, 4  ;;  %v7621_v59 = vrot.slane %v7619_v17, 5  ;;  %v4634_v39 = vld [vmem:[#allocation3 + $0x70] sm:$0xf]  ;;  %v7635_v46 = vshll.u32 %v7464_v13, 16 }
 0x6a0   : > { %v12094_v5 = vld [vmem:[#allocation4 + $0xc8] ss:$12 sps:$4 sm:$0xff]   ;;  %v16170_v22 = vrot.slane %v7625_v9, 5  ;;  %v7631_v32 = vrot.slane %v7629_v23, 4  ;;  %v4635_v37 = vld [vmem:[#allocation3 + $0x74] sm:$0x1]  ;;  %v5238_v56 = vsel %vm15002_vm13, %v5233_v0, %v5237_v61 }
 0x6a1   : > { %8199 = vst [vmem:[#allocation4 + $0xc8] sm:$0xf] %v8098_v55  ;;  %8200 = vst [vmem:[#allocation4 + $0xd4] sm:$0xf] %v8101_v43  ;;  %11732 = vmatprep.mubr.bf16.mxu1 %v12094_v5  ;;  %v10504_v19 = vrot.slane %v4633_v16, 9  ;;  %v4770_v30 = vrot.slane %v4634_v39, 5  ;;  %v5248_v26 = vsel %vm15002_vm13, %v5243_v1, %v5247_v7  ;;  %v7622_v10 = vor.u32 %v7621_v59, %v7618_v12 }
 0x6a2   : > { %v16172_v51 = vld [vmem:[#allocation3 + $0x7c] sm:$0xf]  ;;  %v5003_v58 = vld [vmem:[#allocation3 + $0x48] sm:$0xf]  ;;  %v5004_v57 = vld [vmem:[#allocation3 + $0x4c] sm:$0xf]  ;;  %v7632_v27 = vor.u32 %v7631_v32, %v16170_v22 }
 0x6a3   : > { %v16182_v49 = vld [vmem:[#allocation4 + $0x78] sm:$0xff]  ;;  %v4771_v11 = vsel %vm14938_vm10, %v10504_v19, %v4770_v30  ;;  %v4772_v34 = vrot.slane %v4770_v30, 4  ;;  %v4773_v13 = vrot.slane %v4635_v37, 5  ;;  %v5714_v52 = vrot.slane %v16172_v51, 5  ;;  %v5580_v61 = vld [vmem:[#allocation3 + $0x78] sm:$0xe] }
 0x6a4   : > { %v16184_v44 = vld [vmem:[#allocation4 + $0x84] sm:$0xff]  ;;  %5035 = vst [vmem:[#allocation4 + $0x78] sm:$0xf] %v5003_v58  ;;  %5531 = vst [vmem:[#allocation4 + $0x7c] sm:$0xf] %v5238_v56  ;;  %v7637_v17 = vrot.slane %v7635_v46, 5 }
 0x6a5   : > { %5036 = vst [vmem:[#allocation4 + $0x84] sm:$0xf] %v5004_v57  ;;  %5532 = vst [vmem:[#allocation4 + $0x88] sm:$0xf] %v5248_v26  ;;  %v4774_v9 = vsel %vm14938_vm10, %v4772_v34, %v4773_v13  ;;  %v4636_v23 = vld [vmem:[#allocation3 + $0x78] sm:$0xe] }
 0x6a6   : > { %4867 = vst [vmem:[#allocation4 + $0xe0] sm:$0xf] %v4771_v11  ;;  %v7623_v16 = vrot.slane %v7622_v10, 4  ;;  %4868 = vst [vmem:[#allocation4 + $0xec] sm:$0xf] %v4774_v9  ;;  %v10505_v12 = vrot.slane %v4636_v23, 9 }
 0x6a7   : > { %v4637_v0 = vld [vmem:[#allocation3 + $0x7c] sm:$0xf]  ;;  %v4638_v1 = vld [vmem:[#allocation3 + $0x80] sm:$0x1]  ;;  %v7633_v59 = vrot.slane %v7632_v27, 4  ;;  %v10520_v5 = vrot.slane %v5580_v61, 9 }
 0x6a8   : > { %v5582_v39 = vld [vmem:[#allocation3 + $0x80] sm:$0x1]  ;;  %v5716_v55 = vrot.slane %v5714_v52, 4  ;;  %v4777_v43 = vrot.slane %v4637_v0, 5  ;;  %v16191_v32 = vld [vmem:[#allocation3 + $0x84] sm:$0xe]  ;;  %v7628_v56 = vsel %vm15002_vm13, %v7623_v16, %v16170_v22 }
 0x6a9   : > { %v16193_v7 = vld [vmem:[#allocation3 + $0x88] sm:$0xf]  ;;  %v7393_v46 = vld [vmem:[#allocation3 + $0x54] sm:$0xf]  ;;  %v4780_v51 = vrot.slane %v4638_v1, 5  ;;  %v5717_v26 = vrot.slane %v5582_v39, 5  ;;  %v7638_v13 = vsel %vm15002_vm13, %v7633_v59, %v7637_v17  ;;  %v5715_v16 = vsel %vm14938_vm10, %v10520_v5, %v5714_v52 }
 0x6aa   : > { %v5584_v37 = vld [vmem:[#allocation3 + $0x88] sm:$0xf]  ;;  %v4778_v19 = vsel %vm14938_vm10, %v10505_v12, %v4777_v43  ;;  %v4779_v30 = vrot.slane %v4777_v43, 4  ;;  %v5583_v29 = vld [vmem:[#allocation3 + $0x84] sm:$0xe]  ;;  %v8104_v9 = vrot.slane %v16193_v7, 5 }
 0x6ab   : > { %v5721_v58 = vrot.slane %v5584_v37, 5  ;;  %v7394_v57 = vld [vmem:[#allocation3 + $0x58] sm:$0xf]  ;;  %v16200_v10 = vld [vmem:[#allocation3 + $0x8c] sm:$0x1]  ;;  %v5845_v27 = vld [vmem:[#allocation4 + $0x78] sm:$0xff]  ;;  %v5718_v43 = vsel %vm14938_vm10, %v5716_v55, %v5717_v26 }
 0x6ac   : > { %4869 = vst [vmem:[#allocation4 + $0xf8] sm:$0xf] %v4778_v19  ;;  %v5847_v11 = vld [vmem:[#allocation4 + $0x84] sm:$0xff]  ;;  %v4781_v23 = vsel %vm14938_vm10, %v4779_v30, %v4780_v51  ;;  %v5585_v0 = vld [vmem:[#allocation3 + $0x8c] sm:$0x1]  ;;  %v10521_v1 = vrot.slane %v5583_v29, 9 }
 0x6ad   : > { %v12096_v34 = vld [vmem:[#allocation4 + $0x7c] ss:$12 sps:$4 sm:$0xff]   ;;  %7425 = vst [vmem:[#allocation4 + $0x78] sm:$0xf] %v7393_v46  ;;  %7426 = vst [vmem:[#allocation4 + $0x84] sm:$0xf] %v7394_v57  ;;  %v10590_v12 = vcombine.low %v5845_v27, %v5847_v11 }
 0x6ae   : > { %7921 = vst [vmem:[#allocation4 + $0x7c] sm:$0xf] %v7628_v56  ;;  %7922 = vst [vmem:[#allocation4 + $0x88] sm:$0xf] %v7638_v13  ;;  %v16208_v22 = vld [vmem:[#allocation4 + $0xe0] sm:$0xf]  ;;  %6410 = vmatprep.mubr.bf16.mxu0 %v12096_v34 }
 0x6af   : > { %4870 = vst [vmem:[#allocation4 + $0x104] sm:$0xf] %v4781_v23  ;;  %v5723_v17 = vrot.slane %v5721_v58, 4  ;;  %v4055_v59 = vld [vmem:[#allocation3 + $0x48] sm:$0xf]  ;;  %6411 = vmatmul.mubr.bf16.gmra.mxu0 %v10590_v12  ;;  %v8106_v30 = vrot.slane %v8104_v9, 4  ;;  %v5722_v23 = vsel %vm14938_vm10, %v10521_v1, %v5721_v58 }
 0x6b0   : > { %v16212_v39 = vld [vmem:[#allocation4 + $0xec] sm:$0xf]  ;;  %5811 = vst [vmem:[#allocation4 + $0xe0] sm:$0xf] %v5715_v16  ;;  %v4056_v7 = vld [vmem:[#allocation3 + $0x4c] sm:$0xf] }
 0x6b1   : > { %18810 = vst [vmem:[#allocation17_spill] sm:$0xff] %v16212_v39  ;;  %4087 = vst [vmem:[#allocation4 + $0x90] sm:$0xf] %v4055_v59  ;;  %v4125_v37 = vld [vmem:[#allocation3 + $0x48] sm:$0xf]  ;;  %v8107_v51 = vrot.slane %v16200_v10, 5 }
 0x6b2   : > { %5812 = vst [vmem:[#allocation4 + $0xec] sm:$0xf] %v5718_v43  ;;  %4088 = vst [vmem:[#allocation4 + $0x9c] sm:$0xf] %v4056_v7  ;;  %v4126_v46 = vld [vmem:[#allocation3 + $0x4c] sm:$0xf] }
 0x6b3   : > { %v4127_v52 = vld [vmem:[#allocation3 + $0x50] sm:$0x1]  ;;  %v4303_v5 = vshrl.u32 %v4125_v37, 16  ;;  %v4306_v19 = vshll.u32 %v4125_v37, 16  ;;  %v16217_v29 = vld [vmem:[#allocation3 + $0x94] sm:$0xf] }
 0x6b4   : > { %v4312_v57 = vshll.u32 %v4126_v46, 16  ;;  %v4316_v56 = vshrl.u32 %v4126_v46, 16  ;;  %v5724_v27 = vrot.slane %v5585_v0, 5  ;;  %v4322_v11 = vshll.u32 %v4127_v52, 16  ;;  %v5075_v34 = vld [vmem:[#allocation3 + $0x54] sm:$0xf] }
 0x6b5   : > { %v4305_v55 = vrot.slane %v4303_v5, 4  ;;  %v4308_v26 = vrot.slane %v4306_v19, 5  ;;  %v16219_v13 = vld [vmem:[#allocation4 + $0xf8] sm:$0xf]  ;;  %v5250_v43 = vshrl.u32 %v5075_v34, 16  ;;  %v8111_v0 = vrot.slane %v16217_v29, 5 }
 0x6b6   : > { %18811 = vst [vmem:[#allocation19_spill] sm:$0xff] %v16219_v13  ;;  %v7973_v16 = vld [vmem:[#allocation3 + $0x90] sm:$0xe]  ;;  %v4314_v12 = vrot.slane %v4312_v57, 5  ;;  %v4318_v59 = vrot.slane %v4316_v56, 4  ;;  %v5725_v10 = vsel %vm14938_vm10, %v5723_v17, %v5724_v27  ;;  %v5253_v52 = vshll.u32 %v5075_v34, 16 }
 0x6b7   : > { %5813 = vst [vmem:[#allocation4 + $0xf8] sm:$0xf] %v5722_v23  ;;  %v7975_v7 = vld [vmem:[#allocation3 + $0x98] sm:$0x1]  ;;  %v4309_v37 = vor.u32 %v4308_v26, %v4305_v55  ;;  %v16226_v5 = vld [vmem:[#allocation4 + $0x104] sm:$0xf]  ;;  %v8108_v29 = vsel %vm14938_vm10, %v8106_v30, %v8107_v51 }
 0x6b8   : > { %v5076_v46 = vld [vmem:[#allocation3 + $0x58] sm:$0xf]  ;;  %18812 = vst [vmem:[#allocation29_spill] sm:$0xff] %v16226_v5  ;;  %v4319_v19 = vor.u32 %v4318_v59, %v4314_v12  ;;  %v5252_v61 = vrot.slane %v5250_v43, 4  ;;  %5814 = vst [vmem:[#allocation4 + $0x104] sm:$0xf] %v5725_v10 }
 0x6b9   : > { %v5259_v48 = vshll.u32 %v5076_v46, 16  ;;  %v5263_v58 = vshrl.u32 %v5076_v46, 16  ;;  %v4310_v1 = vrot.slane %v4309_v37, 4  ;;  %v4324_v57 = vrot.slane %v4322_v11, 5  ;;  %v12098_v14 = vld [vmem:[#allocation4 + $0xe0] ss:$12 sps:$4 sm:$0xff]  }
 0x6ba   : > { %v5255_v56 = vrot.slane %v5253_v52, 5  ;;  %v18813_v17 = vrot.slane %v16191_v32, 9  ;;  %v4320_v55 = vrot.slane %v4319_v19, 4  ;;  %8202 = vst [vmem:[#allocation4 + $0xec] sm:$0xf] %v8108_v29  ;;  %v10729_v34 = vrot.slane %v7973_v16, 9  ;;  %11733 = vmatmul.mubr.bf16.gmra.mxu1 %v12098_v14 }
 0x6bb   : > { %v5261_v26 = vrot.slane %v5259_v48, 5  ;;  %v4315_v23 = vsel %vm15002_vm13, %v4310_v1, %v4314_v12  ;;  %v5077_v59 = vld [vmem:[#allocation3 + $0x5c] sm:$0x1]  ;;  %v5265_v43 = vrot.slane %v5263_v58, 4  ;;  %v8113_v10 = vrot.slane %v8111_v0, 4 }
 0x6bc   : > { %v8105_v27 = vsel %vm14938_vm10, %v18813_v17, %v8104_v9  ;;  %v5256_v11 = vor.u32 %v5255_v56, %v5252_v61  ;;  %v8114_v32 = vrot.slane %v7975_v7, 5  ;;  %v4325_v9 = vsel %vm15002_vm13, %v4320_v55, %v4324_v57  ;;  %4586 = vst [vmem:[#allocation4 + $0x94] sm:$0xf] %v4315_v23  ;;  %v7465_v37 = vld [vmem:[#allocation3 + $0x60] sm:$0xf] }
 0x6bd   : > { %8201 = vst [vmem:[#allocation4 + $0xe0] sm:$0xf] %v8105_v27  ;;  %v7466_v30 = vld [vmem:[#allocation3 + $0x64] sm:$0xf]  ;;  %4587 = vst [vmem:[#allocation4 + $0xa0] sm:$0xf] %v4325_v9  ;;  %v5266_v48 = vor.u32 %v5265_v43, %v5261_v26  ;;  %v8112_v57 = vsel %vm14938_vm10, %v10729_v34, %v8111_v0 }
 0x6be   : > { %v7467_v51 = vld [vmem:[#allocation3 + $0x68] sm:$0x1]  ;;  %v7640_v46 = vshrl.u32 %v7465_v37, 16  ;;  %v7643_v16 = vshll.u32 %v7465_v37, 16  ;;  %v4639_v52 = vld [vmem:[#allocation3 + $0x84] sm:$0xe]  ;;  %v8115_v29 = vsel %vm14938_vm10, %v8113_v10, %v8114_v32 }
 0x6bf   : > { %v5257_v19 = vrot.slane %v5256_v11, 4  ;;  %v5269_v12 = vshll.u32 %v5077_v59, 16  ;;  %v7649_v1 = vshll.u32 %v7466_v30, 16  ;;  %v7653_v61 = vshrl.u32 %v7466_v30, 16  ;;  %v4640_v7 = vld [vmem:[#allocation3 + $0x88] sm:$0xf] }
 0x6c0   : > { %v5267_v58 = vrot.slane %v5266_v48, 4  ;;  %v7642_v14 = vrot.slane %v7640_v46, 4  ;;  %v7645_v56 = vrot.slane %v7643_v16, 5  ;;  %v10506_v17 = vrot.slane %v4639_v52, 9  ;;  %v12100_v27 = vld [vmem:[#allocation4 + $0xf8] ss:$12 sps:$4 sm:$0xff]  }
 0x6c1   : > { %v16242_v55 = vrot.slane %v7649_v1, 5  ;;  %v7655_v23 = vrot.slane %v7653_v61, 4  ;;  %8203 = vst [vmem:[#allocation4 + $0xf8] sm:$0xf] %v8112_v57  ;;  %8204 = vst [vmem:[#allocation4 + $0x104] sm:$0xf] %v8115_v29  ;;  %11736 = vmatprep.mubr.bf16.mxu1 %v12100_v27  ;;  %v5262_v37 = vsel %vm15002_vm13, %v5257_v19, %v5261_v26 }
 0x6c2   : > { %v5005_v59 = vld [vmem:[#allocation3 + $0x54] sm:$0xf]  ;;  %v4641_v11 = vld [vmem:[#allocation3 + $0x8c] sm:$0x1]  ;;  %v4784_v43 = vrot.slane %v4640_v7, 5  ;;  %v5271_v30 = vrot.slane %v5269_v12, 5  ;;  %v7646_v10 = vor.u32 %v7645_v56, %v7642_v14 }
 0x6c3   : > { %v5006_v9 = vld [vmem:[#allocation3 + $0x58] sm:$0xf]  ;;  %v7659_v48 = vshll.u32 %v7467_v51, 16  ;;  %v5586_v46 = vld [vmem:[#allocation3 + $0x90] sm:$0xe]  ;;  %v16246_v34 = vld [vmem:[#allocation4 + $0x90] sm:$0xff]  ;;  %v7656_v51 = vor.u32 %v7655_v23, %v16242_v55 }
 0x6c4   : > { %v5587_v0 = vld [vmem:[#allocation3 + $0x94] sm:$0xf]  ;;  %v4785_v32 = vsel %vm14938_vm10, %v10506_v17, %v4784_v43  ;;  %v4786_v16 = vrot.slane %v4784_v43, 4  ;;  %v4787_v52 = vrot.slane %v4641_v11, 5  ;;  %v16250_v1 = vld [vmem:[#allocation3 + $0x98] sm:$0x1]  ;;  %v5272_v26 = vsel %vm15002_vm13, %v5267_v58, %v5271_v30 }
 0x6c5   : > { %v16252_v61 = vld [vmem:[#allocation4 + $0x9c] sm:$0xff]  ;;  %5037 = vst [vmem:[#allocation4 + $0x90] sm:$0xf] %v5005_v59  ;;  %5533 = vst [vmem:[#allocation4 + $0x94] sm:$0xf] %v5262_v37  ;;  %v5728_v19 = vrot.slane %v5587_v0, 5 }
 0x6c6   : > { %4871 = vst [vmem:[#allocation4 + $0x110] sm:$0xf] %v4785_v32  ;;  %v16257_v12 = vld [vmem:[#allocation3 + $0x9c] sm:$0xe]  ;;  %v16259_v14 = vld [vmem:[#allocation3 + $0xa0] sm:$0xf]  ;;  %v4788_v56 = vsel %vm14938_vm10, %v4786_v16, %v4787_v52 }
 0x6c7   : > { %5038 = vst [vmem:[#allocation4 + $0x9c] sm:$0xf] %v5006_v9  ;;  %5534 = vst [vmem:[#allocation4 + $0xa0] sm:$0xf] %v5272_v26  ;;  %v16263_v7 = vld [vmem:[#allocation3 + $0xa4] sm:$0x1] }
 0x6c8   : > { %v4642_v17 = vld [vmem:[#allocation3 + $0x90] sm:$0xe]  ;;  %v12138_v58 = vld [vmem:[%s18542_s8 + $0x88] sm:$0xff]   ;;  %v7661_v27 = vrot.slane %v7659_v48, 5  ;;  %4872 = vst [vmem:[#allocation4 + $0x11c] sm:$0xf] %v4788_v56 }
 0x6c9   : > { %v18600_v57 = vrot.slane %v16259_v14, 5  ;;  %v4643_v29 = vld [vmem:[#allocation3 + $0x94] sm:$0xf]  ;;  %v4644_v23 = vld [vmem:[#allocation3 + $0x98] sm:$0x1]  ;;  %v7647_v59 = vrot.slane %v7646_v10, 4  ;;  %11760 = vmatprep.subr.bf16.mxu0 %v12138_v58 }
 0x6ca   : > { %v10522_v11 = vrot.slane %v5586_v46, 9  ;;  %v10507_v43 = vrot.slane %v4642_v17, 9  ;;  %v4791_v9 = vrot.slane %v4643_v29, 5  ;;  %v5589_v37 = vld [vmem:[#allocation3 + $0x9c] sm:$0xe]  ;;  %v7657_v30 = vrot.slane %v7656_v51, 4  ;;  %11761 = vmatpush3.bf16.msra.mxu0 %v12138_v58 }
 0x6cb   : > { %v5730_v0 = vrot.slane %v5728_v19, 4  ;;  %v5731_v32 = vrot.slane %v16250_v1, 5  ;;  %v5590_v52 = vld [vmem:[#allocation3 + $0xa0] sm:$0xf]  ;;  %v4794_v10 = vrot.slane %v4644_v23, 5  ;;  %v16278_v51 = vrot.slane %v18600_v57, 4 }
 0x6cc   : > { %v4792_v26 = vsel %vm14938_vm10, %v10507_v43, %v4791_v9  ;;  %v4793_v56 = vrot.slane %v4791_v9, 4  ;;  %v16274_v46 = vld [vmem:[#allocation3 + $0xa4] sm:$0x1]  ;;  %v7395_v17 = vld [vmem:[#allocation3 + $0x60] sm:$0xf]  ;;  %v10523_v1 = vrot.slane %v5589_v37, 9  ;;  %v5729_v23 = vsel %vm14938_vm10, %v10522_v11, %v5728_v19 }
 0x6cd   : > { %v7396_v29 = vld [vmem:[#allocation3 + $0x64] sm:$0xf]  ;;  %4873 = vst [vmem:[#allocation4 + $0x128] sm:$0xf] %v4792_v26  ;;  %v16280_v16 = vld [vmem:[#allocation3 + $0xa8] sm:$0xe]  ;;  %v7652_v37 = vsel %vm15002_vm13, %v7647_v59, %v16242_v55  ;;  %v7662_v26 = vsel %vm15002_vm13, %v7657_v30, %v7661_v27 }
 0x6ce   : > { %v16282_v58 = vld [vmem:[#allocation3 + $0xac] sm:$0xf]  ;;  %v16284_v33 = vld [vmem:[#allocation4 + $0x110] sm:$0xf]  ;;  %v4795_v43 = vsel %vm14938_vm10, %v4793_v56, %v4794_v10  ;;  %v5735_v9 = vrot.slane %v5590_v52, 5  ;;  %v5851_v57 = vld [vmem:[#allocation4 + $0x9c] sm:$0xff]  ;;  %v5732_v52 = vsel %vm14938_vm10, %v5730_v0, %v5731_v32 }
 0x6cf   : > { %v5849_v48 = vld [vmem:[#allocation4 + $0x90] sm:$0xff]  ;;  %18814 = vst [vmem:[#allocation30_spill] sm:$0xff] %v16284_v33  ;;  %v16290_v25 = vld [vmem:[#allocation3 + $0xb0] sm:$0x1]  ;;  %5815 = vst [vmem:[#allocation4 + $0x110] sm:$0xf] %v5729_v23 }
 0x6d0   : > { %v12104_v35 = vld [vmem:[#allocation4 + $0x94] ss:$12 sps:$4 sm:$0xff]   ;;  %4874 = vst [vmem:[#allocation4 + $0x134] sm:$0xf] %v4795_v43  ;;  %v5738_v45 = vrot.slane %v16274_v46, 5  ;;  %v10731_v56 = vrot.slane %v16280_v16, 9  ;;  %v10593_v59 = vcombine.low %v5849_v48, %v5851_v57  ;;  %v5736_v16 = vsel %vm14938_vm10, %v10523_v1, %v5735_v9 }
 0x6d1   : > { %v4057_v19 = vld [vmem:[#allocation3 + $0x54] sm:$0xf]  ;;  %7427 = vst [vmem:[#allocation4 + $0x90] sm:$0xf] %v7395_v17  ;;  %7428 = vst [vmem:[#allocation4 + $0x9c] sm:$0xf] %v7396_v29  ;;  %6418 = vmatprep.mubr.bf16.mxu0 %v12104_v35 }
 0x6d2   : > { %7923 = vst [vmem:[#allocation4 + $0x94] sm:$0xf] %v7652_v37  ;;  %7924 = vst [vmem:[#allocation4 + $0xa0] sm:$0xf] %v7662_v26  ;;  %v16298_v11 = vld [vmem:[#allocation4 + $0x11c] sm:$0xf]  ;;  %6419 = vmatmul.mubr.bf16.gmra.mxu0 %v10593_v59 }
 0x6d3   : > { %18815 = vst [vmem:[#allocation31_spill] sm:$0xff] %v16298_v11  ;;  %v8125_v55 = vrot.slane %v16282_v58, 5  ;;  %v4058_v27 = vld [vmem:[#allocation3 + $0x58] sm:$0xf]  ;;  %4089 = vst [vmem:[#allocation4 + $0xa8] sm:$0xf] %v4057_v19 }
 0x6d4   : > { %5816 = vst [vmem:[#allocation4 + $0x11c] sm:$0xf] %v5732_v52  ;;  %4090 = vst [vmem:[#allocation4 + $0xb4] sm:$0xf] %v4058_v27  ;;  %v4128_v30 = vld [vmem:[#allocation3 + $0x54] sm:$0xf] }
 0x6d5   : > { %v4129_v10 = vld [vmem:[#allocation3 + $0x58] sm:$0xf]  ;;  %v4130_v46 = vld [vmem:[#allocation3 + $0x5c] sm:$0x1]  ;;  %v5737_v29 = vrot.slane %v5735_v9, 4  ;;  %v4327_v23 = vshrl.u32 %v4128_v30, 16 }
 0x6d6   : > { %v4330_v0 = vshll.u32 %v4128_v30, 16  ;;  %v4336_v32 = vshll.u32 %v4129_v10, 16  ;;  %v8128_v57 = vrot.slane %v16290_v25, 5  ;;  %v4340_v48 = vshrl.u32 %v4129_v10, 16  ;;  %v5078_v58 = vld [vmem:[#allocation3 + $0x60] sm:$0xf] }
 0x6d7   : > { %v4346_v35 = vshll.u32 %v4130_v46, 16  ;;  %v16309_v43 = vld [vmem:[#allocation4 + $0x128] sm:$0xf]  ;;  %v4329_v37 = vrot.slane %v4327_v23, 4  ;;  %v5274_v52 = vshrl.u32 %v5078_v58, 16  ;;  %v8127_v27 = vrot.slane %v8125_v55, 4 }
 0x6d8   : > { %18816 = vst [vmem:[#allocation32_spill] sm:$0xff] %v16309_v43  ;;  %v4332_v26 = vrot.slane %v4330_v0, 5  ;;  %v4338_v19 = vrot.slane %v4336_v32, 5  ;;  %5817 = vst [vmem:[#allocation4 + $0x128] sm:$0xf] %v5736_v16  ;;  %v4342_v59 = vrot.slane %v4340_v48, 4  ;;  %v5739_v1 = vsel %vm14938_vm10, %v5737_v29, %v5738_v45 }
 0x6d9   : > { %v5079_v17 = vld [vmem:[#allocation3 + $0x64] sm:$0xf]  ;;  %v5080_v30 = vld [vmem:[#allocation3 + $0x68] sm:$0x1]  ;;  %v16311_v42 = vld [vmem:[#allocation4 + $0x134] sm:$0xf] }
 0x6da   : > { %18817 = vst [vmem:[#allocation33_spill] sm:$0xff] %v16311_v42  ;;  %v4333_v25 = vor.u32 %v4332_v26, %v4329_v37  ;;  %v5276_v9 = vrot.slane %v5274_v52, 4  ;;  %v5277_v10 = vshll.u32 %v5078_v58, 16  ;;  %5818 = vst [vmem:[#allocation4 + $0x134] sm:$0xf] %v5739_v1  ;;  %v4343_v46 = vor.u32 %v4342_v59, %v4338_v19 }
 0x6db   : > { %v4348_v36 = vrot.slane %v4346_v35, 5  ;;  %v5283_v23 = vshll.u32 %v5079_v17, 16  ;;  %v5287_v0 = vshrl.u32 %v5079_v17, 16  ;;  %v12106_v32 = vld [vmem:[#allocation4 + $0x110] ss:$12 sps:$4 sm:$0xff]   ;;  %v18818_v16 = vrot.slane %v16259_v14, 5 }
 0x6dc   : > { %v18819_v48 = vrot.slane %v16257_v12, 9  ;;  %v18820_v28 = vrot.slane %v16263_v7, 5  ;;  %v4334_v29 = vrot.slane %v4333_v25, 4  ;;  %v5279_v58 = vrot.slane %v5277_v10, 5  ;;  %11737 = vmatmul.mubr.bf16.gmra.mxu1 %v12106_v32  ;;  %v7468_v52 = vld [vmem:[#allocation3 + $0x6c] sm:$0xf] }
 0x6dd   : > { %v4344_v35 = vrot.slane %v4343_v46, 4  ;;  %v5285_v17 = vrot.slane %v5283_v23, 5  ;;  %v5289_v37 = vrot.slane %v5287_v0, 4  ;;  %v5293_v26 = vshll.u32 %v5080_v30, 16  ;;  %v7469_v59 = vld [vmem:[#allocation3 + $0x70] sm:$0xf] }
 0x6de   : > { %v8119_v54 = vsel %vm14938_vm10, %v18819_v48, %v18818_v16  ;;  %v8122_v45 = vsel %vm14938_vm10, %v16278_v51, %v18820_v28  ;;  %v8126_v12 = vsel %vm14938_vm10, %v10731_v56, %v8125_v55  ;;  %v4339_v14 = vsel %vm15002_vm13, %v4334_v29, %v4338_v19  ;;  %v7470_v1 = vld [vmem:[#allocation3 + $0x74] sm:$0x1]  ;;  %v4645_v10 = vld [vmem:[#allocation3 + $0x9c] sm:$0xe]  ;;  %v4646_v30 = vld [vmem:[#allocation3 + $0xa0] sm:$0xf] }
 0x6df   : > { %8205 = vst [vmem:[#allocation4 + $0x110] sm:$0xf] %v8119_v54  ;;  %8206 = vst [vmem:[#allocation4 + $0x11c] sm:$0xf] %v8122_v45  ;;  %v5280_v7 = vor.u32 %v5279_v58, %v5276_v9  ;;  %v4349_v28 = vsel %vm15002_vm13, %v4344_v35, %v4348_v36  ;;  %v5290_v54 = vor.u32 %v5289_v37, %v5285_v17  ;;  %v7664_v51 = vshrl.u32 %v7468_v52, 16 }
 0x6e0   : > { %4588 = vst [vmem:[#allocation4 + $0xac] sm:$0xf] %v4339_v14  ;;  %v7667_v25 = vshll.u32 %v7468_v52, 16  ;;  %4589 = vst [vmem:[#allocation4 + $0xb8] sm:$0xf] %v4349_v28  ;;  %v7673_v23 = vshll.u32 %v7469_v59, 16  ;;  %v8129_v36 = vsel %vm14938_vm10, %v8127_v27, %v8128_v57 }
 0x6e1   : > { %v5281_v46 = vrot.slane %v5280_v7, 4  ;;  %v7677_v56 = vshrl.u32 %v7469_v59, 16  ;;  %v7683_v55 = vshll.u32 %v7470_v1, 16  ;;  %v5291_v0 = vrot.slane %v5290_v54, 4  ;;  %v4647_v32 = vld [vmem:[#allocation3 + $0xa4] sm:$0x1] }
 0x6e2   : > { %v7666_v19 = vrot.slane %v7664_v51, 4  ;;  %v7669_v9 = vrot.slane %v7667_v25, 5  ;;  %v10508_v16 = vrot.slane %v4645_v10, 9  ;;  %v12108_v48 = vld [vmem:[#allocation4 + $0x128] ss:$12 sps:$4 sm:$0xff]   ;;  %v16334_v45 = vrot.slane %v7673_v23, 5 }
 0x6e3   : > { %v7679_v29 = vrot.slane %v7677_v56, 4  ;;  %8207 = vst [vmem:[#allocation4 + $0x128] sm:$0xf] %v8126_v12  ;;  %8208 = vst [vmem:[#allocation4 + $0x134] sm:$0xf] %v8129_v36  ;;  %v5295_v35 = vrot.slane %v5293_v26, 5  ;;  %11740 = vmatprep.mubr.bf16.mxu1 %v12108_v48  ;;  %v5286_v56 = vsel %vm15002_vm13, %v5281_v46, %v5285_v17 }
 0x6e4   : > { %v7670_v37 = vor.u32 %v7669_v9, %v7666_v19  ;;  %v4798_v14 = vrot.slane %v4646_v30, 5  ;;  %v16338_v7 = vld [vmem:[#allocation3 + $0xa8] sm:$0xe]  ;;  %v16340_v52 = vld [vmem:[#allocation3 + $0xac] sm:$0xf]  ;;  %v16343_v57 = vrot.slane %v7683_v55, 5 }
 0x6e5   : > { %v5007_v59 = vld [vmem:[#allocation3 + $0x60] sm:$0xf]  ;;  %v7680_v1 = vor.u32 %v7679_v29, %v16334_v45  ;;  %v4801_v27 = vrot.slane %v4647_v32, 5  ;;  %v16345_v28 = vld [vmem:[#allocation3 + $0xb0] sm:$0x1]  ;;  %v5742_v54 = vrot.slane %v16340_v52, 5  ;;  %v5296_v55 = vsel %vm15002_vm13, %v5291_v0, %v5295_v35 }
 0x6e6   : > { %v12143_v26 = vld [vmem:[%s18542_s8 + $0x80] sm:$0xff]   ;;  %v16351_v51 = vrot.slane %v7670_v37, 4  ;;  %v4799_v25 = vsel %vm14938_vm10, %v10508_v16, %v4798_v14  ;;  %v4800_v10 = vrot.slane %v4798_v14, 4  ;;  %v10524_v30 = vrot.slane %v16338_v7, 9  ;;  %v16363_v9 = vld [vmem:[#allocation3 + $0xb4] sm:$0xe] }
 0x6e7   : > { %v5008_v12 = vld [vmem:[#allocation3 + $0x64] sm:$0xf]  ;;  %4875 = vst [vmem:[#allocation4 + $0x140] sm:$0xf] %v4799_v25  ;;  %v5745_v19 = vrot.slane %v16345_v28, 5  ;;  %11762 = vmatprep.subr.bf16.mxu0 %v12143_v26  ;;  %v16367_v16 = vld [vmem:[#allocation4 + $0xb4] sm:$0xff] }
 0x6e8   : > { %v16356_v23 = vld [vmem:[#allocation4 + $0xa8] sm:$0xff]  ;;  %v16365_v32 = vld [vmem:[#allocation3 + $0xb8] sm:$0xf]  ;;  %v7681_v48 = vrot.slane %v7680_v1, 4  ;;  %v4802_v36 = vsel %vm14938_vm10, %v4800_v10, %v4801_v27  ;;  %v5744_v17 = vrot.slane %v5742_v54, 4  ;;  %11763 = vmatpush3.bf16.msra.mxu0 %v12143_v26  ;;  %v10732_v52 = vrot.slane %v16363_v9, 9 }
 0x6e9   : > { %5039 = vst [vmem:[#allocation4 + $0xa8] sm:$0xf] %v5007_v59  ;;  %5535 = vst [vmem:[#allocation4 + $0xac] sm:$0xf] %v5286_v56  ;;  %v4648_v46 = vld [vmem:[#allocation3 + $0xa8] sm:$0xe] }
 0x6ea   : > { %5040 = vst [vmem:[#allocation4 + $0xb4] sm:$0xf] %v5008_v12  ;;  %5536 = vst [vmem:[#allocation4 + $0xb8] sm:$0xf] %v5296_v55  ;;  %v8132_v29 = vrot.slane %v16365_v32, 5  ;;  %v10509_v14 = vrot.slane %v4648_v46, 9 }
 0x6eb   : > { %4876 = vst [vmem:[#allocation4 + $0x14c] sm:$0xf] %v4802_v36  ;;  %v4649_v35 = vld [vmem:[#allocation3 + $0xac] sm:$0xf]  ;;  %v4650_v37 = vld [vmem:[#allocation3 + $0xb0] sm:$0x1] }
 0x6ec   : > { %v7984_v7 = vld [vmem:[#allocation3 + $0xbc] sm:$0x1]  ;;  %v4805_v59 = vrot.slane %v4649_v35, 5  ;;  %v5595_v1 = vld [vmem:[#allocation3 + $0xb4] sm:$0xe]  ;;  %v4808_v27 = vrot.slane %v4650_v37, 5 }
 0x6ed   : > { %v5596_v28 = vld [vmem:[#allocation3 + $0xb8] sm:$0xf]  ;;  %v16375_v25 = vld [vmem:[#allocation3 + $0xbc] sm:$0x1]  ;;  %v16385_v32 = vld [vmem:[#allocation3 + $0xc0] sm:$0xe] }
 0x6ee   : > { %v4806_v56 = vsel %vm14938_vm10, %v10509_v14, %v4805_v59  ;;  %v4807_v55 = vrot.slane %v4805_v59, 4  ;;  %v5749_v9 = vrot.slane %v5596_v28, 5  ;;  %v16387_v36 = vld [vmem:[#allocation3 + $0xc4] sm:$0xf]  ;;  %v8134_v46 = vrot.slane %v8132_v29, 4 }
 0x6ef   : > { %v8135_v35 = vrot.slane %v7984_v7, 5  ;;  %4877 = vst [vmem:[#allocation4 + $0x158] sm:$0xf] %v4806_v56  ;;  %v10525_v37 = vrot.slane %v5595_v1, 9  ;;  %v5752_v26 = vrot.slane %v16375_v25, 5  ;;  %v5743_v14 = vsel %vm14938_vm10, %v10524_v30, %v5742_v54 }
 0x6f0   : > { %v16390_v0 = vld [vmem:[#allocation3 + $0xc8] sm:$0x1]  ;;  %v7397_v12 = vld [vmem:[#allocation3 + $0x6c] sm:$0xf]  ;;  %v7398_v58 = vld [vmem:[#allocation3 + $0x70] sm:$0xf]  ;;  %v4809_v59 = vsel %vm14938_vm10, %v4807_v55, %v4808_v27  ;;  %v7676_v54 = vsel %vm15002_vm13, %v16351_v51, %v16334_v45  ;;  %v7686_v30 = vsel %vm15002_vm13, %v7681_v48, %v16343_v57  ;;  %v5746_v55 = vsel %vm14938_vm10, %v5744_v17, %v5745_v19 }
 0x6f1   : > { %v16392_v10 = vld [vmem:[#allocation4 + $0x140] sm:$0xf]  ;;  %v8139_v7 = vrot.slane %v16387_v36, 5  ;;  %v4059_v56 = vld [vmem:[#allocation3 + $0x60] sm:$0xf]  ;;  %v5751_v25 = vrot.slane %v5749_v9, 4  ;;  %v8136_v45 = vsel %vm14938_vm10, %v8134_v46, %v8135_v35 }
 0x6f2   : > { %18821 = vst [vmem:[#allocation34_spill] sm:$0xff] %v16392_v10  ;;  %v5853_v1 = vld [vmem:[#allocation4 + $0xa8] sm:$0xff]  ;;  %5819 = vst [vmem:[#allocation4 + $0x140] sm:$0xf] %v5743_v14  ;;  %v5855_v3 = vld [vmem:[#allocation4 + $0xb4] sm:$0xff] }
 0x6f3   : > { %4878 = vst [vmem:[#allocation4 + $0x164] sm:$0xf] %v4809_v59  ;;  %v4060_v8 = vld [vmem:[#allocation3 + $0x64] sm:$0xf]  ;;  %4091 = vst [vmem:[#allocation4 + $0xc0] sm:$0xf] %v4059_v56  ;;  %v8133_v59 = vsel %vm14938_vm10, %v10732_v52, %v8132_v29  ;;  %v10596_v51 = vcombine.low %v5853_v1, %v5855_v3  ;;  %v5750_v29 = vsel %vm14938_vm10, %v10525_v37, %v5749_v9 }
 0x6f4   : > { %v4131_v2 = vld [vmem:[#allocation3 + $0x60] sm:$0xf]  ;;  %v12113_v47 = vld [vmem:[#allocation4 + $0xac] ss:$12 sps:$4 sm:$0xff]   ;;  %4092 = vst [vmem:[#allocation4 + $0xcc] sm:$0xf] %v4060_v8  ;;  %v5753_v1 = vsel %vm14938_vm10, %v5751_v25, %v5752_v26 }
 0x6f5   : > { %v16407_v27 = vld [vmem:[#allocation4 + $0x14c] sm:$0xf]  ;;  %v4351_v14 = vshrl.u32 %v4131_v2, 16  ;;  %7429 = vst [vmem:[#allocation4 + $0xa8] sm:$0xf] %v7397_v12  ;;  %v4354_v56 = vshll.u32 %v4131_v2, 16  ;;  %6426 = vmatprep.mubr.bf16.mxu0 %v12113_v47 }
 0x6f6   : > { %18822 = vst [vmem:[#allocation35_spill] sm:$0xff] %v16407_v27  ;;  %7430 = vst [vmem:[#allocation4 + $0xb4] sm:$0xf] %v7398_v58  ;;  %v4132_v57 = vld [vmem:[#allocation3 + $0x64] sm:$0xf]  ;;  %v16418_v8 = vld [vmem:[%s18542_s8 + $0x238] sm:$0xff]   ;;  %6427 = vmatmul.mubr.bf16.gmra.mxu0 %v10596_v51 }
 0x6f7   : > { %7925 = vst [vmem:[#allocation4 + $0xac] sm:$0xf] %v7676_v54  ;;  %7926 = vst [vmem:[#allocation4 + $0xb8] sm:$0xf] %v7686_v30  ;;  %v4133_v48 = vld [vmem:[#allocation3 + $0x68] sm:$0x1]  ;;  %11796 = vmatprep.subr.bf16.mxu1 %v16418_v8 }
 0x6f8   : > { %5820 = vst [vmem:[#allocation4 + $0x14c] sm:$0xf] %v5746_v55  ;;  %v4353_v19 = vrot.slane %v4351_v14, 4  ;;  %v4360_v17 = vshll.u32 %v4132_v57, 16  ;;  %v4364_v12 = vshrl.u32 %v4132_v57, 16  ;;  %v16425_v3 = vrot.slane %v8139_v7, 4 }
 0x6f9   : > { %v4356_v2 = vrot.slane %v4354_v56, 5  ;;  %v4370_v52 = vshll.u32 %v4133_v48, 16  ;;  %v5081_v46 = vld [vmem:[#allocation3 + $0x6c] sm:$0xf]  ;;  %v12147_v47 = vld [vmem:[%s18542_s8 + $0x1f8] sm:$0xff]  }
 0x6fa   : > { %v16431_v35 = vld [vmem:[#allocation4 + $0x158] sm:$0xf]  ;;  %v4362_v9 = vrot.slane %v4360_v17, 5  ;;  %v4366_v37 = vrot.slane %v4364_v12, 4  ;;  %v5298_v54 = vshrl.u32 %v5081_v46, 16  ;;  %v5301_v51 = vshll.u32 %v5081_v46, 16  ;;  %11397 = vmatprep.subr.bf16.mxu0 %v12147_v47 }
 0x6fb   : > { %18823 = vst [vmem:[#allocation36_spill] sm:$0xff] %v16431_v35  ;;  %5821 = vst [vmem:[#allocation4 + $0x158] sm:$0xf] %v5750_v29  ;;  %v4357_v30 = vor.u32 %v4356_v2, %v4353_v19  ;;  %v5082_v55 = vld [vmem:[#allocation3 + $0x70] sm:$0xf]  ;;  %v4372_v17 = vrot.slane %v4370_v52, 5 }
 0x6fc   : > { %v5083_v14 = vld [vmem:[#allocation3 + $0x74] sm:$0x1]  ;;  %v16439_v56 = vld [vmem:[#allocation4 + $0x164] sm:$0xf]  ;;  %v4367_v58 = vor.u32 %v4366_v37, %v4362_v9  ;;  %v5300_v28 = vrot.slane %v5298_v54, 4  ;;  %v5307_v26 = vshll.u32 %v5082_v55, 16 }
 0x6fd   : > { %18824 = vst [vmem:[#allocation37_spill] sm:$0xff] %v16439_v56  ;;  %5822 = vst [vmem:[#allocation4 + $0x164] sm:$0xf] %v5753_v1  ;;  %v4358_v19 = vrot.slane %v4357_v30, 4  ;;  %v5303_v12 = vrot.slane %v5301_v51, 5  ;;  %v5311_v29 = vshrl.u32 %v5082_v55, 16 }
 0x6fe   : > { %v4368_v46 = vrot.slane %v4367_v58, 4  ;;  %v5309_v47 = vrot.slane %v5307_v26, 5  ;;  %v5317_v30 = vshll.u32 %v5083_v14, 16  ;;  %v7471_v52 = vld [vmem:[#allocation3 + $0x78] sm:$0xf] }
 0x6ff   : > { %v12115_v2 = vld [vmem:[#allocation4 + $0x140] ss:$12 sps:$4 sm:$0xff]   ;;  %v4363_v37 = vsel %vm15002_vm13, %v4358_v19, %v4362_v9  ;;  %v5304_v54 = vor.u32 %v5303_v12, %v5300_v28  ;;  %v5313_v1 = vrot.slane %v5311_v29, 4  ;;  %v7472_v55 = vld [vmem:[#allocation3 + $0x7c] sm:$0xf]  ;;  %v7688_v26 = vshrl.u32 %v7471_v52, 16 }
 0x700   : > { %8209 = vst [vmem:[#allocation4 + $0x140] sm:$0xf] %v8133_v59  ;;  %8210 = vst [vmem:[#allocation4 + $0x14c] sm:$0xf] %v8136_v45  ;;  %11741 = vmatmul.mubr.bf16.gmra.mxu1 %v12115_v2  ;;  %v4373_v58 = vsel %vm15002_vm13, %v4368_v46, %v4372_v17  ;;  %v7473_v51 = vld [vmem:[#allocation3 + $0x80] sm:$0x1] }
 0x701   : > { %4590 = vst [vmem:[#allocation4 + $0xc4] sm:$0xf] %v4363_v37  ;;  %v7691_v57 = vshll.u32 %v7471_v52, 16  ;;  %4591 = vst [vmem:[#allocation4 + $0xd0] sm:$0xf] %v4373_v58  ;;  %v5305_v45 = vrot.slane %v5304_v54, 4  ;;  %v5314_v48 = vor.u32 %v5313_v1, %v5309_v47 }
 0x702   : > { %v7697_v9 = vshll.u32 %v7472_v55, 16  ;;  %v7701_v28 = vshrl.u32 %v7472_v55, 16  ;;  %v3507_v19 = vld [vmem:[#allocation3 + $0xd4] sm:$0x1]  ;;  %v7690_v14 = vrot.slane %v7688_v26, 4  ;;  %v7707_v29 = vshll.u32 %v7473_v51, 16 }
 0x703   : > { %v7693_v12 = vrot.slane %v7691_v57, 5  ;;  %v3508_v17 = vsel %vm13524_vm5, 0, %v3507_v19  ;;  %v18826_v46 = vrot.slane %v16385_v32, 9  ;;  %v5315_v52 = vrot.slane %v5314_v48, 4  ;;  %v4651_v1 = vld [vmem:[#allocation3 + $0xb4] sm:$0xe] }
 0x704   : > { %v16461_v58 = vrot.slane %v7697_v9, 5  ;;  %v7703_v54 = vrot.slane %v7701_v28, 4  ;;  %3509 = vst [vmem:[#allocation3 + $0xd4] sm:$0x1] %v3508_v17  ;;  %v12117_v55 = vld [vmem:[#allocation4 + $0x158] ss:$12 sps:$4 sm:$0xff]   ;;  %v5310_v28 = vsel %vm15002_vm13, %v5305_v45, %v5309_v47 }
 0x705   : > { %v8140_v37 = vsel %vm14938_vm10, %v18826_v46, %v8139_v7  ;;  %v18827_v57 = vrot.slane %v16390_v0, 5  ;;  %v5319_v26 = vrot.slane %v5317_v30, 5  ;;  %v7694_v36 = vor.u32 %v7693_v12, %v7690_v14  ;;  %v4652_v7 = vld [vmem:[#allocation3 + $0xb8] sm:$0xf]  ;;  %v4653_v48 = vld [vmem:[#allocation3 + $0xbc] sm:$0x1]  ;;  %11744 = vmatprep.mubr.bf16.mxu1 %v12117_v55 }
 0x706   : > { %v10510_v19 = vrot.slane %v4651_v1, 9  ;;  %8211 = vst [vmem:[#allocation4 + $0x158] sm:$0xf] %v8140_v37  ;;  %v7704_v32 = vor.u32 %v7703_v54, %v16461_v58  ;;  %v16469_v9 = vld [vmem:[#allocation3 + $0xc0] sm:$0xe]  ;;  %v16473_v0 = vrot.slane %v7707_v29, 5 }
 0x707   : > { %v8143_v51 = vsel %vm14938_vm10, %v16425_v3, %v18827_v57  ;;  %v4812_v2 = vrot.slane %v4652_v7, 5  ;;  %v16475_v17 = vld [vmem:[#allocation3 + $0xc4] sm:$0xf]  ;;  %v5009_v30 = vld [vmem:[#allocation3 + $0x6c] sm:$0xf]  ;;  %v5320_v14 = vsel %vm15002_vm13, %v5315_v52, %v5319_v26  ;;  %v16481_v12 = vrot.slane %v7694_v36, 4 }
 0x708   : > { %8212 = vst [vmem:[#allocation4 + $0x164] sm:$0xf] %v8143_v51  ;;  %v16477_v3 = vld [vmem:[#allocation4 + $0xc0] sm:$0xff]  ;;  %v4815_v46 = vrot.slane %v4653_v48, 5  ;;  %v10526_v37 = vrot.slane %v16469_v9, 9  ;;  %v16484_v54 = vld [vmem:[#allocation4 + $0xcc] sm:$0xff] }
 0x709   : > { %v5010_v1 = vld [vmem:[#allocation3 + $0x70] sm:$0xf]  ;;  %5041 = vst [vmem:[#allocation4 + $0xc0] sm:$0xf] %v5009_v30  ;;  %5537 = vst [vmem:[#allocation4 + $0xc4] sm:$0xf] %v5310_v28  ;;  %v4813_v45 = vsel %vm14938_vm10, %v10510_v19, %v4812_v2 }
 0x70a   : > { %v7705_v47 = vrot.slane %v7704_v32, 4  ;;  %v4814_v29 = vrot.slane %v4812_v2, 4  ;;  %v5756_v55 = vrot.slane %v16475_v17, 5  ;;  %5042 = vst [vmem:[#allocation4 + $0xcc] sm:$0xf] %v5010_v1  ;;  %v18828_v17 = vld [vmem:[#allocation28_spill] sm:$0xff]  ;;  %v7700_v1 = vsel %vm15002_vm13, %v16481_v12, %v16461_v58 }
 0x70b   : > { %5538 = vst [vmem:[#allocation4 + $0xd0] sm:$0xf] %v5320_v14  ;;  %4879 = vst [vmem:[#allocation4 + $0x170] sm:$0xf] %v4813_v45  ;;  %v5600_v52 = vld [vmem:[#allocation3 + $0xc8] sm:$0x1] }
 0x70c   : > { %v16489_v57 = vld [vmem:[#allocation3 + $0xd0] sm:$0xf]  ;;  %v4061_v51 = vld [vmem:[#allocation3 + $0x6c] sm:$0xf]  ;;  %v4816_v26 = vsel %vm14938_vm10, %v4814_v29, %v4815_v46  ;;  %v16495_v7 = vld [vmem:[#allocation3 + $0xd4] sm:$0x1]  ;;  %v7710_v58 = vsel %vm15002_vm13, %v7705_v47, %v16473_v0 }
 0x70d   : > { %v16493_v36 = vld [vmem:[#allocation3 + $0xcc] sm:$0xe]  ;;  %v4062_v32 = vld [vmem:[#allocation3 + $0x70] sm:$0xf]  ;;  %4093 = vst [vmem:[#allocation4 + $0xd8] sm:$0xf] %v4061_v51 }
 0x70e   : > { %4880 = vst [vmem:[#allocation4 + $0x17c] sm:$0xf] %v4816_v26  ;;  %v8146_v9 = vrot.slane %v16489_v57, 5  ;;  %4094 = vst [vmem:[#allocation4 + $0xe4] sm:$0xf] %v4062_v32  ;;  %v5758_v45 = vrot.slane %v5756_v55, 4 }
 0x70f   : > { %v4134_v28 = vld [vmem:[#allocation3 + $0x6c] sm:$0xf]  ;;  %v4135_v2 = vld [vmem:[#allocation3 + $0x70] sm:$0xf]  ;;  %v4136_v29 = vld [vmem:[#allocation3 + $0x74] sm:$0x1] }
 0x710   : > { %v4375_v57 = vshrl.u32 %v4134_v28, 16  ;;  %v4378_v51 = vshll.u32 %v4134_v28, 16  ;;  %v5759_v26 = vrot.slane %v5600_v52, 5  ;;  %v10734_v32 = vrot.slane %v16493_v36, 9  ;;  %v7399_v48 = vld [vmem:[#allocation3 + $0x78] sm:$0xf] }
 0x711   : > { %v4384_v59 = vshll.u32 %v4135_v2, 16  ;;  %v4388_v25 = vshrl.u32 %v4135_v2, 16  ;;  %v7400_v19 = vld [vmem:[#allocation3 + $0x7c] sm:$0xf]  ;;  %v8149_v14 = vrot.slane %v16495_v7, 5  ;;  %v4394_v56 = vshll.u32 %v4136_v29, 16 }
 0x712   : > { %v4377_v30 = vrot.slane %v4375_v57, 4  ;;  %v4380_v46 = vrot.slane %v4378_v51, 5  ;;  %v5084_v35 = vld [vmem:[#allocation3 + $0x78] sm:$0xf]  ;;  %v8148_v12 = vrot.slane %v8146_v9, 4  ;;  %v5859_v36 = vld [vmem:[#allocation4 + $0xcc] sm:$0xff]  ;;  %v5757_v7 = vsel %vm14938_vm10, %v10526_v37, %v5756_v55 }
 0x713   : > { %v5857_v27 = vld [vmem:[#allocation4 + $0xc0] sm:$0xff]  ;;  %v4386_v28 = vrot.slane %v4384_v59, 5  ;;  %v4390_v52 = vrot.slane %v4388_v25, 4  ;;  %v16517_v2 = vld [vmem:[#allocation4 + $0x170] sm:$0xf]  ;;  %v5760_v29 = vsel %vm14938_vm10, %v5758_v45, %v5759_v26  ;;  %v5322_v51 = vshrl.u32 %v5084_v35, 16 }
 0x714   : > { %v5085_v10 = vld [vmem:[#allocation3 + $0x7c] sm:$0xf]  ;;  %18829 = vst [vmem:[#allocation11_spill] sm:$0xff] %v16517_v2  ;;  %v4381_v57 = vor.u32 %v4380_v46, %v4377_v30  ;;  %7431 = vst [vmem:[#allocation4 + $0xc0] sm:$0xf] %v7399_v48  ;;  %v10599_v59 = vcombine.low %v5857_v27, %v5859_v36  ;;  %v5325_v0 = vshll.u32 %v5084_v35, 16  ;;  %v8147_v27 = vsel %vm14938_vm10, %v10734_v32, %v8146_v9 }
 0x715   : > { %v12121_v42 = vld [vmem:[#allocation4 + $0xc4] ss:$12 sps:$4 sm:$0xff]   ;;  %7432 = vst [vmem:[#allocation4 + $0xcc] sm:$0xf] %v7400_v19  ;;  %5823 = vst [vmem:[#allocation4 + $0x170] sm:$0xf] %v5757_v7  ;;  %v4391_v25 = vor.u32 %v4390_v52, %v4386_v28  ;;  %v8150_v9 = vsel %vm14938_vm10, %v8148_v12, %v8149_v14 }
 0x716   : > { %7927 = vst [vmem:[#allocation4 + $0xc4] sm:$0xf] %v7700_v1  ;;  %7928 = vst [vmem:[#allocation4 + $0xd0] sm:$0xf] %v7710_v58  ;;  %v5331_v47 = vshll.u32 %v5085_v10, 16  ;;  %6434 = vmatprep.mubr.bf16.mxu0 %v12121_v42  ;;  %v4382_v11 = vrot.slane %v4381_v57, 4 }
 0x717   : > { %v16523_v43 = vld [vmem:[#allocation4 + $0x17c] sm:$0xf]  ;;  %v4396_v33 = vrot.slane %v4394_v56, 5  ;;  %v5324_v37 = vrot.slane %v5322_v51, 4  ;;  %v5335_v55 = vshrl.u32 %v5085_v10, 16  ;;  %6435 = vmatmul.mubr.bf16.gmra.mxu0 %v10599_v59  ;;  %v4392_v30 = vrot.slane %v4391_v25, 4 }
 0x718   : > { %18830 = vst [vmem:[#allocation28_spill] sm:$0xff] %v16523_v43  ;;  %5824 = vst [vmem:[#allocation4 + $0x17c] sm:$0xf] %v5760_v29  ;;  %v5086_v46 = vld [vmem:[#allocation3 + $0x80] sm:$0x1]  ;;  %v5327_v48 = vrot.slane %v5325_v0, 5  ;;  %v4387_v42 = vsel %vm15002_vm13, %v4382_v11, %v4386_v28  ;;  %v10650_v10 = vcombine.low %v15797_v4, %v15805_v15 }
 0x719   : > { %v5333_v19 = vrot.slane %v5331_v47, 5  ;;  %v5337_v35 = vrot.slane %v5335_v55, 4  ;;  %v7474_v45 = vld [vmem:[#allocation3 + $0x84] sm:$0xf]  ;;  %v7475_v56 = vld [vmem:[#allocation3 + $0x88] sm:$0xf]  ;;  %v4397_v26 = vsel %vm15002_vm13, %v4392_v30, %v4396_v33 }
 0x71a   : > { %4592 = vst [vmem:[#allocation4 + $0xdc] sm:$0xf] %v4387_v42  ;;  %v5328_v58 = vor.u32 %v5327_v48, %v5324_v37  ;;  %v7476_v52 = vld [vmem:[#allocation3 + $0x8c] sm:$0x1]  ;;  %v7712_v36 = vshrl.u32 %v7474_v45, 16  ;;  %v7715_v7 = vshll.u32 %v7474_v45, 16 }
 0x71b   : > { %v4063_v29 = vld [vmem:[#allocation3 + $0x78] sm:$0xf]  ;;  %4593 = vst [vmem:[#allocation4 + $0xe8] sm:$0xf] %v4397_v26  ;;  %v5338_v11 = vor.u32 %v5337_v35, %v5333_v19  ;;  %v7721_v32 = vshll.u32 %v7475_v56, 16  ;;  %v7725_v28 = vshrl.u32 %v7475_v56, 16  ;;  %v10654_v35 = vcombine.high %v15842_v31, %v15859_v41 }
 0x71c   : > { %v4064_v57 = vld [vmem:[#allocation3 + $0x7c] sm:$0xf]  ;;  %4095 = vst [vmem:[#allocation4 + $0xf0] sm:$0xf] %v4063_v29  ;;  %v5341_v51 = vshll.u32 %v5086_v46, 16  ;;  %v7714_v59 = vrot.slane %v7712_v36, 4 }
 0x71d   : > { %v7717_v25 = vrot.slane %v7715_v7, 5  ;;  %v7731_v0 = vshll.u32 %v7476_v52, 16  ;;  %4096 = vst [vmem:[#allocation4 + $0xfc] sm:$0xf] %v4064_v57  ;;  %v4137_v33 = vld [vmem:[#allocation3 + $0x78] sm:$0xf] }
 0x71e   : > { %v5329_v47 = vrot.slane %v5328_v58, 4  ;;  %v5339_v37 = vrot.slane %v5338_v11, 4  ;;  %v16537_v55 = vrot.slane %v7721_v32, 5  ;;  %v7727_v30 = vrot.slane %v7725_v28, 4  ;;  %v4138_v6 = vld [vmem:[#allocation3 + $0x7c] sm:$0xf] }
 0x71f   : > { %v7718_v48 = vor.u32 %v7717_v25, %v7714_v59  ;;  %v4139_v14 = vld [vmem:[#allocation3 + $0x80] sm:$0x1]  ;;  %v4399_v12 = vshrl.u32 %v4137_v33, 16  ;;  %v4402_v42 = vshll.u32 %v4137_v33, 16  ;;  %v12123_v45 = vld [vmem:[#allocation4 + $0x170] ss:$12 sps:$4 sm:$0xff]  }
 0x720   : > { %v7728_v46 = vor.u32 %v7727_v30, %v16537_v55  ;;  %v4408_v56 = vshll.u32 %v4138_v6, 16  ;;  %v4412_v26 = vshrl.u32 %v4138_v6, 16  ;;  %8213 = vst [vmem:[#allocation4 + $0x170] sm:$0xf] %v8147_v27  ;;  %8214 = vst [vmem:[#allocation4 + $0x17c] sm:$0xf] %v8150_v9  ;;  %11745 = vmatmul.mubr.bf16.gmra.mxu1 %v12123_v45  ;;  %v5334_v57 = vsel %vm15002_vm13, %v5329_v47, %v5333_v19 }
 0x721   : > { %v5011_v52 = vld [vmem:[#allocation3 + $0x78] sm:$0xf]  ;;  %v5343_v36 = vrot.slane %v5341_v51, 5  ;;  %v4401_v7 = vrot.slane %v4399_v12, 4  ;;  %v4404_v29 = vrot.slane %v4402_v42, 5  ;;  %v4418_v11 = vshll.u32 %v4139_v14, 16 }
 0x722   : > { %v16544_v32 = vld [vmem:[#allocation4 + $0xd8] sm:$0xff]  ;;  %v5012_v28 = vld [vmem:[#allocation3 + $0x7c] sm:$0xf]  ;;  %v16548_v59 = vrot.slane %v7731_v0, 5  ;;  %v4410_v25 = vrot.slane %v4408_v56, 5  ;;  %v4414_v33 = vrot.slane %v4412_v26, 4  ;;  %v18831_v51 = vcombine.high %v15626_v38, %v18828_v17 }
 0x723   : > { %v16550_v30 = vld [vmem:[#allocation4 + $0xe4] sm:$0xff]  ;;  %5043 = vst [vmem:[#allocation4 + $0xd8] sm:$0xf] %v5011_v52  ;;  %v5344_v27 = vsel %vm15002_vm13, %v5339_v37, %v5343_v36  ;;  %5539 = vst [vmem:[#allocation4 + $0xdc] sm:$0xf] %v5334_v57  ;;  %v16554_v9 = vrot.slane %v7718_v48, 4  ;;  %v4405_v6 = vor.u32 %v4404_v29, %v4401_v7 }
 0x724   : > { %7092 = vmatprep.mubr.bf16.mxu1 %v18831_v51  ;;  %v5087_v14 = vld [vmem:[#allocation3 + $0x84] sm:$0xf]  ;;  %v5088_v19 = vld [vmem:[#allocation3 + $0x88] sm:$0xf]  ;;  %5044 = vst [vmem:[#allocation4 + $0xe4] sm:$0xf] %v5012_v28  ;;  %v4415_v12 = vor.u32 %v4414_v33, %v4410_v25 }
 0x725   : > { %5540 = vst [vmem:[#allocation4 + $0xe8] sm:$0xf] %v5344_v27  ;;  %v7729_v47 = vrot.slane %v7728_v46, 4  ;;  %v5089_v42 = vld [vmem:[#allocation3 + $0x8c] sm:$0x1]  ;;  %v5346_v45 = vshrl.u32 %v5087_v14, 16 }
 0x726   : > { %v5349_v37 = vshll.u32 %v5087_v14, 16  ;;  %v4406_v56 = vrot.slane %v4405_v6, 4  ;;  %v4420_v48 = vrot.slane %v4418_v11, 5  ;;  %v5355_v26 = vshll.u32 %v5088_v19, 16  ;;  %v7477_v7 = vld [vmem:[#allocation3 + $0x90] sm:$0xf] }
 0x727   : > { %v5359_v52 = vshrl.u32 %v5088_v19, 16  ;;  %v4416_v36 = vrot.slane %v4415_v12, 4  ;;  %v5348_v57 = vrot.slane %v5346_v45, 4  ;;  %v5365_v33 = vshll.u32 %v5089_v42, 16  ;;  %v7478_v1 = vld [vmem:[#allocation3 + $0x94] sm:$0xf] }
 0x728   : > { %v5351_v51 = vrot.slane %v5349_v37, 5  ;;  %v4411_v28 = vsel %vm15002_vm13, %v4406_v56, %v4410_v25  ;;  %v16565_v27 = vrot.slane %v5355_v26, 5  ;;  %v12151_v11 = vld [vmem:[%s18542_s8 + $0x230] sm:$0xff]   ;;  %v7479_v19 = vld [vmem:[#allocation3 + $0x98] sm:$0x1]  ;;  %v7736_v12 = vshrl.u32 %v7477_v7, 16 }
 0x729   : > { %v5361_v46 = vrot.slane %v5359_v52, 4  ;;  %v4421_v6 = vsel %vm15002_vm13, %v4416_v36, %v4420_v48  ;;  %4594 = vst [vmem:[#allocation4 + $0xf4] sm:$0xf] %v4411_v28  ;;  %v7739_v45 = vshll.u32 %v7477_v7, 16  ;;  %v4065_v37 = vld [vmem:[#allocation3 + $0x84] sm:$0xf]  ;;  %v7724_v48 = vsel %vm15002_vm13, %v16554_v9, %v16537_v55 }
 0x72a   : > { %v5352_v14 = vor.u32 %v5351_v51, %v5348_v57  ;;  %v7401_v29 = vld [vmem:[#allocation3 + $0x84] sm:$0xf]  ;;  %v7402_v25 = vld [vmem:[#allocation3 + $0x88] sm:$0xf]  ;;  %4595 = vst [vmem:[#allocation4 + $0x100] sm:$0xf] %v4421_v6  ;;  %v18832_v36 = vcombine.low %v15626_v38, %v18828_v17  ;;  %v7734_v55 = vsel %vm15002_vm13, %v7729_v47, %v16548_v59  ;;  %v18833_v38 = vcombine.high %v15797_v4, %v15805_v15 }
 0x72b   : > { %v5362_v56 = vor.u32 %v5361_v46, %v16565_v27  ;;  %v7745_v42 = vshll.u32 %v7478_v1, 16  ;;  %v7749_v26 = vshrl.u32 %v7478_v1, 16  ;;  %v7755_v52 = vshll.u32 %v7479_v19, 16  ;;  %v4066_v0 = vld [vmem:[#allocation3 + $0x88] sm:$0xf]  ;;  %v5861_v58 = vld [vmem:[#allocation4 + $0xd8] sm:$0xff] }
 0x72c   : > { %4097 = vst [vmem:[#allocation4 + $0x108] sm:$0xf] %v4065_v37  ;;  %7093 = vmatmul.mubr.bf16.vlgmr.msra.gmra.mxu1 %v18832_v36  ;;  %v7738_v57 = vrot.slane %v7736_v12, 4  ;;  %v7741_v51 = vrot.slane %v7739_v45, 5  ;;  %4098 = vst [vmem:[#allocation4 + $0x114] sm:$0xf] %v4066_v0 }
 0x72d   : > { %v4140_v7 = vld [vmem:[#allocation3 + $0x84] sm:$0xf]  ;;  %v16585_v28 = vld [vmem:[%s18542_s8 + $0x228] sm:$0xff]   ;;  %v5863_v46 = vld [vmem:[#allocation4 + $0xe4] sm:$0xff]  ;;  %7100 = vmatprep.mubr.bf16.mxu1 %v18833_v38  ;;  %v5353_v17 = vrot.slane %v5352_v14, 4  ;;  %v16593_v9 = vrot.slane %v7745_v42, 5  ;;  %11797 = vmatpush3.bf16.msra.mxu1 %v16418_v8 }
 0x72e   : > { %v12129_v6 = vld [vmem:[#allocation4 + $0xdc] ss:$12 sps:$4 sm:$0xff]   ;;  %v7751_v0 = vrot.slane %v7749_v26, 4  ;;  %7433 = vst [vmem:[#allocation4 + $0xd8] sm:$0xf] %v7401_v29  ;;  %v10602_v19 = vcombine.low %v5861_v58, %v5863_v46  ;;  %v5363_v12 = vrot.slane %v5362_v56, 4  ;;  %v7742_v37 = vor.u32 %v7741_v51, %v7738_v57  ;;  %11798 = vmatprep.subr.bf16.mxu1 %v12151_v11 }
 0x72f   : > { %7434 = vst [vmem:[#allocation4 + $0xe4] sm:$0xf] %v7402_v25  ;;  %7929 = vst [vmem:[#allocation4 + $0xdc] sm:$0xf] %v7724_v48  ;;  %v5367_v45 = vrot.slane %v5365_v33, 5  ;;  %6442 = vmatprep.mubr.bf16.mxu0 %v12129_v6  ;;  %v16597_v42 = vrot.slane %v7755_v52, 5  ;;  %v5358_v48 = vsel %vm15002_vm13, %v5353_v17, %v16565_v27 }
 0x730   : > { %7930 = vst [vmem:[#allocation4 + $0xe8] sm:$0xf] %v7734_v55  ;;  %v4141_v36 = vld [vmem:[#allocation3 + $0x88] sm:$0xf]  ;;  %v4142_v59 = vld [vmem:[#allocation3 + $0x8c] sm:$0x1]  ;;  %v7752_v14 = vor.u32 %v7751_v0, %v16593_v9  ;;  %6443 = vmatmul.mubr.bf16.gmra.mxu0 %v10602_v19 }
 0x731   : > { %v5013_v47 = vld [vmem:[#allocation3 + $0x84] sm:$0xf]  ;;  %v4423_v26 = vshrl.u32 %v4140_v7, 16  ;;  %v4426_v38 = vshll.u32 %v4140_v7, 16  ;;  %v16599_v8 = vrot.slane %v7742_v37, 4  ;;  %v4432_v29 = vshll.u32 %v4141_v36, 16  ;;  %11799 = vmatpush3.bf16.msra.mxu1 %v12151_v11 }
 0x732   : > { %v4436_v25 = vshrl.u32 %v4141_v36, 16  ;;  %v4442_v58 = vshll.u32 %v4142_v59, 16  ;;  %v5090_v56 = vld [vmem:[#allocation3 + $0x90] sm:$0xf]  ;;  %v16601_v33 = vld [vmem:[#allocation4 + $0xf0] sm:$0xff]  ;;  %v16606_v57 = vrot.slane %v7752_v14, 4  ;;  %v5368_v55 = vsel %vm15002_vm13, %v5363_v12, %v5367_v45  ;;  %11800 = vmatprep.subr.bf16.mxu1 %v16585_v28 }
 0x733   : > { %v4425_v51 = vrot.slane %v4423_v26, 4  ;;  %v4428_v52 = vrot.slane %v4426_v38, 5  ;;  %v5091_v46 = vld [vmem:[#allocation3 + $0x94] sm:$0xf]  ;;  %v5014_v6 = vld [vmem:[#allocation3 + $0x88] sm:$0xf]  ;;  %v7748_v0 = vsel %vm15002_vm13, %v16599_v8, %v16593_v9 }
 0x734   : > { %v16608_v7 = vld [vmem:[#allocation4 + $0xfc] sm:$0xff]  ;;  %5045 = vst [vmem:[#allocation4 + $0xf0] sm:$0xf] %v5013_v47  ;;  %5541 = vst [vmem:[#allocation4 + $0xf4] sm:$0xf] %v5358_v48  ;;  %v4434_v27 = vrot.slane %v4432_v29, 5  ;;  %v7758_v12 = vsel %vm15002_vm13, %v16606_v57, %v16597_v42  ;;  %7101 = vmatmul.mubr.bf16.gmra.mxu1 %v10650_v10 }
 0x735   : > { %v4438_v17 = vrot.slane %v4436_v25, 4  ;;  %5046 = vst [vmem:[#allocation4 + $0xfc] sm:$0xf] %v5014_v6  ;;  %5542 = vst [vmem:[#allocation4 + $0x100] sm:$0xf] %v5368_v55  ;;  %v4429_v11 = vor.u32 %v4428_v52, %v4425_v51  ;;  %v4444_v19 = vrot.slane %v4442_v58, 5  ;;  %7108 = vmatprep.mubr.bf16.mxu1 %v10654_v35  ;;  %11801 = vmatpush3.bf16.msra.mxu1 %v16585_v28 }
 0x736   : > { %v5092_v37 = vld [vmem:[#allocation3 + $0x98] sm:$0x1]  ;;  %v5370_v36 = vshrl.u32 %v5090_v56, 16  ;;  %v5373_v59 = vshll.u32 %v5090_v56, 16  ;;  %v5379_v45 = vshll.u32 %v5091_v46, 16  ;;  %v5383_v47 = vshrl.u32 %v5091_v46, 16 }
 0x737   : > { %v4439_v9 = vor.u32 %v4438_v17, %v4434_v27  ;;  %v7480_v14 = vld [vmem:[#allocation3 + $0x9c] sm:$0xf]  ;;  %v4430_v26 = vrot.slane %v4429_v11, 4  ;;  %v7481_v29 = vld [vmem:[#allocation3 + $0xa0] sm:$0xf]  ;;  %v5389_v15 = vshll.u32 %v5092_v37, 16 }
 0x738   : > { %v5372_v38 = vrot.slane %v5370_v36, 4  ;;  %v5375_v8 = vrot.slane %v5373_v59, 5  ;;  %v7760_v25 = vshrl.u32 %v7480_v14, 16  ;;  %v16628_v58 = vrot.slane %v5379_v45, 5  ;;  %v7482_v10 = vld [vmem:[#allocation3 + $0xa4] sm:$0x1] }
 0x739   : > { %v4440_v42 = vrot.slane %v4439_v9, 4  ;;  %v5385_v4 = vrot.slane %v5383_v47, 4  ;;  %v4435_v56 = vsel %vm15002_vm13, %v4430_v26, %v4434_v27  ;;  %v7763_v51 = vshll.u32 %v7480_v14, 16  ;;  %v4067_v35 = vld [vmem:[#allocation3 + $0x90] sm:$0xf] }
 0x73a   : > { %v5376_v48 = vor.u32 %v5375_v8, %v5372_v38  ;;  %v7762_v57 = vrot.slane %v7760_v25, 4  ;;  %v4068_v52 = vld [vmem:[#allocation3 + $0x94] sm:$0xf]  ;;  %v7403_v46 = vld [vmem:[#allocation3 + $0x90] sm:$0xf]  ;;  %v7769_v17 = vshll.u32 %v7481_v29, 16 }
 0x73b   : > { %v7404_v6 = vld [vmem:[#allocation3 + $0x94] sm:$0xf]  ;;  %v4445_v55 = vsel %vm15002_vm13, %v4440_v42, %v4444_v19  ;;  %4596 = vst [vmem:[#allocation4 + $0x10c] sm:$0xf] %v4435_v56  ;;  %v5386_v28 = vor.u32 %v5385_v4, %v16628_v58  ;;  %v7773_v11 = vshrl.u32 %v7481_v29, 16  ;;  %v5865_v36 = vld [vmem:[#allocation4 + $0xf0] sm:$0xff] }
 0x73c   : > { %4099 = vst [vmem:[#allocation4 + $0x120] sm:$0xf] %v4067_v35  ;;  %4100 = vst [vmem:[#allocation4 + $0x12c] sm:$0xf] %v4068_v52  ;;  %v4143_v37 = vld [vmem:[#allocation3 + $0x90] sm:$0xf] }
 0x73d   : > { %4597 = vst [vmem:[#allocation4 + $0x118] sm:$0xf] %v4445_v55  ;;  %v5377_v27 = vrot.slane %v5376_v48, 4  ;;  %v7765_v59 = vrot.slane %v7763_v51, 5  ;;  %v7779_v9 = vshll.u32 %v7482_v10, 16  ;;  %v5867_v14 = vld [vmem:[#allocation4 + $0xfc] sm:$0xff]  ;;  %v10656_v10 = vcombine.low %v15972_v18, %v15987_v53 }
 0x73e   : > { %v4144_v45 = vld [vmem:[#allocation3 + $0x94] sm:$0xf]  ;;  %v12131_v26 = vld [vmem:[#allocation4 + $0xf4] ss:$12 sps:$4 sm:$0xff]   ;;  %v5387_v19 = vrot.slane %v5386_v28, 4  ;;  %v16637_v38 = vrot.slane %v7769_v17, 5  ;;  %v10605_v25 = vcombine.low %v5865_v36, %v5867_v14  ;;  %v18834_v51 = vcombine.low %v15842_v31, %v15859_v41 }
 0x73f   : > { %v7775_v8 = vrot.slane %v7773_v11, 4  ;;  %7435 = vst [vmem:[#allocation4 + $0xf0] sm:$0xf] %v7403_v46  ;;  %7436 = vst [vmem:[#allocation4 + $0xfc] sm:$0xf] %v7404_v6  ;;  %v5391_v42 = vrot.slane %v5389_v15, 5  ;;  %v7766_v4 = vor.u32 %v7765_v59, %v7762_v57  ;;  %6450 = vmatprep.mubr.bf16.mxu0 %v12131_v26  ;;  %v10660_v15 = vcombine.high %v16077_v62, %v16083_v20 }
 0x740   : > { %7931 = vst [vmem:[#allocation4 + $0xf4] sm:$0xf] %v7748_v0  ;;  %7932 = vst [vmem:[#allocation4 + $0x100] sm:$0xf] %v7758_v12  ;;  %v12161_v56 = vld [vmem:[%s18542_s8 + $0x220] sm:$0xff]   ;;  %7109 = vmatmul.mubr.bf16.gmra.mxu1 %v18834_v51  ;;  %v4447_v0 = vshrl.u32 %v4143_v37, 16  ;;  %6451 = vmatmul.mubr.bf16.gmra.mxu0 %v10605_v25  ;;  %v5382_v46 = vsel %vm15002_vm13, %v5377_v27, %v16628_v58  ;;  %v18835_v55 = vcombine.high %v15972_v18, %v15987_v53 }
 0x741   : > { %v7776_v48 = vor.u32 %v7775_v8, %v16637_v38  ;;  %v4145_v35 = vld [vmem:[#allocation3 + $0x98] sm:$0x1]  ;;  %v4450_v12 = vshll.u32 %v4143_v37, 16  ;;  %v5093_v52 = vld [vmem:[#allocation3 + $0x9c] sm:$0xf]  ;;  %v16655_v6 = vrot.slane %v7779_v9, 5  ;;  %v5392_v11 = vsel %vm15002_vm13, %v5387_v19, %v5391_v42  ;;  %11802 = vmatprep.subr.bf16.mxu1 %v12161_v56 }
 0x742   : > { %v5015_v57 = vld [vmem:[#allocation3 + $0x90] sm:$0xf]  ;;  %7116 = vmatprep.mubr.bf16.mxu1 %v18835_v55  ;;  %v4456_v31 = vshll.u32 %v4144_v45, 16  ;;  %v4460_v41 = vshrl.u32 %v4144_v45, 16  ;;  %v5094_v28 = vld [vmem:[#allocation3 + $0xa0] sm:$0xf]  ;;  %11803 = vmatpush3.bf16.msra.mxu1 %v12161_v56 }
 0x743   : > { %v5016_v17 = vld [vmem:[#allocation3 + $0x94] sm:$0xf]  ;;  %v4449_v37 = vrot.slane %v4447_v0, 4  ;;  %v4452_v36 = vrot.slane %v4450_v12, 5  ;;  %v5095_v59 = vld [vmem:[#allocation3 + $0xa4] sm:$0x1] }
 0x744   : > { %v5394_v14 = vshrl.u32 %v5093_v52, 16  ;;  %v16662_v26 = vld [vmem:[#allocation4 + $0x108] sm:$0xff]  ;;  %v16664_v58 = vrot.slane %v7766_v4, 4  ;;  %v4458_v27 = vrot.slane %v4456_v31, 5  ;;  %v4462_v9 = vrot.slane %v4460_v41, 4  ;;  %v16666_v53 = vld [vmem:[#allocation4 + $0x114] sm:$0xff] }
 0x745   : > { %v4466_v18 = vshll.u32 %v4145_v35, 16  ;;  %5047 = vst [vmem:[#allocation4 + $0x108] sm:$0xf] %v5015_v57  ;;  %5543 = vst [vmem:[#allocation4 + $0x10c] sm:$0xf] %v5382_v46  ;;  %v16668_v45 = vrot.slane %v7776_v48, 4  ;;  %v4453_v19 = vor.u32 %v4452_v36, %v4449_v37 }
 0x746   : > { %v5396_v8 = vrot.slane %v5394_v14, 4  ;;  %v5397_v25 = vshll.u32 %v5093_v52, 16  ;;  %v7483_v42 = vld [vmem:[#allocation3 + $0xa8] sm:$0xf]  ;;  %5048 = vst [vmem:[#allocation4 + $0x114] sm:$0xf] %v5016_v17  ;;  %v4463_v51 = vor.u32 %v4462_v9, %v4458_v27  ;;  %v16674_v14 = vpop.f32.mrf.mxu0 }
 0x747   : > { %5544 = vst [vmem:[#allocation4 + $0x118] sm:$0xf] %v5392_v11  ;;  %v5403_v0 = vshll.u32 %v5094_v28, 16  ;;  %v5407_v4 = vshrl.u32 %v5094_v28, 16  ;;  %v5413_v12 = vshll.u32 %v5095_v59, 16  ;;  %v4454_v55 = vrot.slane %v4453_v19, 4 }
 0x748   : > { %v5399_v31 = vrot.slane %v5397_v25, 5  ;;  %v7484_v35 = vld [vmem:[#allocation3 + $0xac] sm:$0xf]  ;;  %v7784_v56 = vshrl.u32 %v7483_v42, 16  ;;  %v7787_v41 = vshll.u32 %v7483_v42, 16  ;;  %v4464_v29 = vrot.slane %v4463_v51, 4  ;;  %7117 = vmatmul.mubr.bf16.gmra.mxu1 %v10656_v10 }
 0x749   : > { %v4468_v57 = vrot.slane %v4466_v18, 5  ;;  %v16670_v46 = vrot.slane %v5403_v0, 5  ;;  %v5409_v48 = vrot.slane %v5407_v4, 4  ;;  %v4069_v37 = vld [vmem:[#allocation3 + $0x9c] sm:$0xf]  ;;  %v4459_v52 = vsel %vm15002_vm13, %v4454_v55, %v4458_v27  ;;  %7124 = vmatprep.mubr.bf16.mxu1 %v10660_v15 }
 0x74a   : > { %v5400_v17 = vor.u32 %v5399_v31, %v5396_v8  ;;  %v7786_v11 = vrot.slane %v7784_v56, 4  ;;  %v7789_v36 = vrot.slane %v7787_v41, 5  ;;  %v4070_v28 = vld [vmem:[#allocation3 + $0xa0] sm:$0xf]  ;;  %4101 = vst [vmem:[#allocation4 + $0x138] sm:$0xf] %v4069_v37  ;;  %v7772_v31 = vsel %vm15002_vm13, %v16664_v58, %v16637_v38  ;;  %v16699_v38 = vpop.f32.mrf.mxu0 }
 0x74b   : > { %v4146_v59 = vld [vmem:[#allocation3 + $0x9c] sm:$0xf]  ;;  %v4469_v9 = vsel %vm15002_vm13, %v4464_v29, %v4468_v57  ;;  %4598 = vst [vmem:[#allocation4 + $0x124] sm:$0xf] %v4459_v52  ;;  %v5410_v18 = vor.u32 %v5409_v48, %v16670_v46  ;;  %v16679_v19 = vld [vmem:[#allocation3 + $0xb0] sm:$0x1]  ;;  %v7782_v48 = vsel %vm15002_vm13, %v16668_v45, %v16655_v6 }
 0x74c   : > { %v7793_v25 = vshll.u32 %v7484_v35, 16  ;;  %v7797_v42 = vshrl.u32 %v7484_v35, 16  ;;  %4102 = vst [vmem:[#allocation4 + $0x144] sm:$0xf] %v4070_v28  ;;  %v7405_v27 = vld [vmem:[#allocation3 + $0x9c] sm:$0xf]  ;;  %v7790_v0 = vor.u32 %v7789_v36, %v7786_v11 }
 0x74d   : > { %v7406_v8 = vld [vmem:[#allocation3 + $0xa0] sm:$0xf]  ;;  %4599 = vst [vmem:[#allocation4 + $0x130] sm:$0xf] %v4469_v9  ;;  %v5401_v10 = vrot.slane %v5400_v17, 4  ;;  %v16681_v51 = vrot.slane %v5413_v12, 5  ;;  %v10659_v12 = vcombine.low %v16077_v62, %v16083_v20 }
 0x74e   : > { %v4471_v4 = vshrl.u32 %v4146_v59, 16  ;;  %v12164_v29 = vld [vmem:[%s18542_s8 + $0x218] sm:$0xff]   ;;  %v5869_v55 = vld [vmem:[#allocation4 + $0x108] sm:$0xff]  ;;  %v4474_v56 = vshll.u32 %v4146_v59, 16  ;;  %v5871_v41 = vld [vmem:[#allocation4 + $0x114] sm:$0xff]  ;;  %v5411_v37 = vrot.slane %v5410_v18, 4 }
 0x74f   : > { %v4147_v15 = vld [vmem:[#allocation3 + $0xa0] sm:$0xf]  ;;  %v16690_v35 = vld [vmem:[#allocation3 + $0xa4] sm:$0x1]  ;;  %v7803_v52 = vshll.u32 %v16679_v19, 16  ;;  %11804 = vmatprep.subr.bf16.mxu1 %v12164_v29  ;;  %v10608_v58 = vcombine.low %v5869_v55, %v5871_v41  ;;  %v16701_v62 = vrot.slane %v7793_v25, 5  ;;  %v5406_v45 = vsel %vm15002_vm13, %v5401_v10, %v16670_v46  ;;  %v16711_v19 = vpop.f32.mrf.mxu0 }
 0x750   : > { %v12134_v57 = vld [vmem:[#allocation4 + $0x10c] ss:$12 sps:$4 sm:$0xff]   ;;  %v4473_v17 = vrot.slane %v4471_v4, 4  ;;  %7437 = vst [vmem:[#allocation4 + $0x108] sm:$0xf] %v7405_v27  ;;  %v7799_v20 = vrot.slane %v7797_v42, 4  ;;  %11805 = vmatpush3.bf16.msra.mxu1 %v12164_v29 }
 0x751   : > { %7438 = vst [vmem:[#allocation4 + $0x114] sm:$0xf] %v7406_v8  ;;  %7933 = vst [vmem:[#allocation4 + $0x10c] sm:$0xf] %v7772_v31  ;;  %v4476_v11 = vrot.slane %v4474_v56, 5  ;;  %v12166_v6 = vld [vmem:[%s18542_s8 + $0x210] sm:$0xff]   ;;  %6458 = vmatprep.mubr.bf16.mxu0 %v12134_v57  ;;  %7125 = vmatmul.mubr.bf16.gmra.mxu1 %v10659_v12  ;;  %v16722_v56 = vpop.f32.mrf.mxu0 }
 0x752   : > { %7934 = vst [vmem:[#allocation4 + $0x118] sm:$0xf] %v7782_v48  ;;  %v5096_v36 = vld [vmem:[#allocation3 + $0xa8] sm:$0xf]  ;;  %v16709_v28 = vrot.slane %v7790_v0, 4  ;;  %v4480_v59 = vshll.u32 %v4147_v15, 16  ;;  %6459 = vmatmul.mubr.bf16.gmra.mxu0 %v10608_v58  ;;  %11806 = vmatprep.subr.bf16.mxu1 %v12166_v6  ;;  %v5416_v0 = vsel %vm15002_vm13, %v5411_v37, %v16681_v51  ;;  %v7800_v41 = vor.u32 %v7799_v20, %v16701_v62 }
 0x753   : > { %v4484_v9 = vshrl.u32 %v4147_v15, 16  ;;  %v5097_v18 = vld [vmem:[#allocation3 + $0xac] sm:$0xf]  ;;  %18836 = vst [vmem:[#allocation38_spill] sm:$0xff] %v16711_v19  ;;  %v5017_v25 = vld [vmem:[#allocation3 + $0x9c] sm:$0xf]  ;;  %v4477_v42 = vor.u32 %v4476_v11, %v4473_v17  ;;  %v18838_v11 = vcombine.high %v16182_v49, %v16184_v44  ;;  %v18839_v19 = vcombine.low %v16182_v49, %v16184_v44 }
 0x754   : > { %v4490_v27 = vshll.u32 %v16690_v35, 16  ;;  %v5418_v8 = vshrl.u32 %v5096_v36, 16  ;;  %v5421_v4 = vshll.u32 %v5096_v36, 16  ;;  %v12171_v29 = vld [vmem:[%s18542_s8 + $0x208] sm:$0xff]   ;;  %v16717_v46 = vld [vmem:[#allocation4 + $0x120] sm:$0xff]  ;;  %v4482_v55 = vrot.slane %v4480_v59, 5  ;;  %11807 = vmatpush3.bf16.msra.mxu1 %v12166_v6 }
 0x755   : > { %v5018_v10 = vld [vmem:[#allocation3 + $0xa0] sm:$0xf]  ;;  %v4486_v31 = vrot.slane %v4484_v9, 4  ;;  %v5427_v15 = vshll.u32 %v5097_v18, 16  ;;  %18837 = vst [vmem:[#allocation39_spill] sm:$0xff] %v16722_v56  ;;  %v16724_v35 = vld [vmem:[#allocation4 + $0x12c] sm:$0xff]  ;;  %7132 = vmatprep.mubr.bf16.mxu1 %v18838_v11  ;;  %11808 = vmatprep.subr.bf16.mxu1 %v12171_v29 }
 0x756   : > { %5049 = vst [vmem:[#allocation4 + $0x120] sm:$0xf] %v5017_v25  ;;  %5545 = vst [vmem:[#allocation4 + $0x124] sm:$0xf] %v5406_v45  ;;  %v4478_v57 = vrot.slane %v4477_v42, 4  ;;  %v5420_v17 = vrot.slane %v5418_v8, 4  ;;  %v16737_v45 = vpop.f32.mrf.mxu0 }
 0x757   : > { %v5098_v48 = vld [vmem:[#allocation3 + $0xb0] sm:$0x1]  ;;  %v5423_v58 = vrot.slane %v5421_v4, 5  ;;  %5050 = vst [vmem:[#allocation4 + $0x12c] sm:$0xf] %v5018_v10  ;;  %v16730_v51 = vrot.slane %v7803_v52, 5  ;;  %v4487_v12 = vor.u32 %v4486_v31, %v4482_v55  ;;  %v16743_v31 = vpop.f32.mrf.mxu1 }
 0x758   : > { %5546 = vst [vmem:[#allocation4 + $0x130] sm:$0xf] %v5416_v0  ;;  %v16732_v37 = vrot.slane %v5427_v15, 5  ;;  %v5431_v36 = vshrl.u32 %v5097_v18, 16  ;;  %v12173_v20 = vld [vmem:[%s18542_s8 + $0x200] sm:$0xff]   ;;  %v4483_v59 = vsel %vm15002_vm13, %v4478_v57, %v4482_v55  ;;  %v4492_v9 = vrot.slane %v4490_v27, 5  ;;  %v16745_v15 = vpop.f32.mrf.mxu0  ;;  %11809 = vmatpush3.bf16.msra.mxu1 %v12171_v29 }
 0x759   : > { %v5424_v6 = vor.u32 %v5423_v58, %v5420_v17  ;;  %v7486_v25 = vld [vmem:[#allocation3 + $0xb4] sm:$0xf]  ;;  %v7487_v42 = vld [vmem:[#allocation3 + $0xb8] sm:$0xf]  ;;  %v4488_v8 = vrot.slane %v4487_v12, 4  ;;  %v5437_v4 = vshll.u32 %v5098_v48, 16  ;;  %11810 = vmatprep.subr.bf16.mxu1 %v12173_v20  ;;  %v7796_v29 = vsel %vm15002_vm13, %v16709_v28, %v16701_v62  ;;  %7133 = vmatmul.mubr.bf16.gmra.mxu1 %v18839_v19  ;;  %v16763_v43 = vpop.f32.mrf.mxu1 }
 0x75a   : > { %4600 = vst [vmem:[#allocation4 + $0x13c] sm:$0xf] %v4483_v59  ;;  %v5433_v18 = vrot.slane %v5431_v36, 4  ;;  %v7808_v10 = vshrl.u32 %v7486_v25, 16  ;;  %v4071_v0 = vld [vmem:[#allocation3 + $0xa8] sm:$0xf] }
 0x75b   : > { %v7801_v11 = vrot.slane %v7800_v41, 4  ;;  %v7811_v47 = vshll.u32 %v7486_v25, 16  ;;  %v7817_v55 = vshll.u32 %v7487_v42, 16  ;;  %v7821_v27 = vshrl.u32 %v7487_v42, 16  ;;  %v4072_v57 = vld [vmem:[#allocation3 + $0xac] sm:$0xf]  ;;  %v16752_v41 = vpop.f32.mrf.mxu0 }
 0x75c   : > { %4103 = vst [vmem:[#allocation4 + $0x150] sm:$0xf] %v4071_v0  ;;  %v4493_v17 = vsel %vm15002_vm13, %v4488_v8, %v4492_v9  ;;  %v5425_v58 = vrot.slane %v5424_v6, 4  ;;  %v5434_v12 = vor.u32 %v5433_v18, %v16732_v37  ;;  %v16750_v48 = vld [vmem:[#allocation3 + $0xbc] sm:$0x1]  ;;  %v7810_v36 = vrot.slane %v7808_v10, 4  ;;  %11811 = vmatpush3.bf16.msra.mxu1 %v12173_v20 }
 0x75d   : > { %4104 = vst [vmem:[#allocation4 + $0x15c] sm:$0xf] %v4072_v57  ;;  %v4149_v59 = vld [vmem:[#allocation3 + $0xa8] sm:$0xf]  ;;  %v4150_v52 = vld [vmem:[#allocation3 + $0xac] sm:$0xf]  ;;  %v16765_v2 = vpop.f32.mrf.mxu0 }
 0x75e   : > { %v7407_v25 = vld [vmem:[#allocation3 + $0xa8] sm:$0xf]  ;;  %v7408_v42 = vld [vmem:[#allocation3 + $0xac] sm:$0xf]  ;;  %4601 = vst [vmem:[#allocation4 + $0x148] sm:$0xf] %v4493_v17  ;;  %v5430_v20 = vsel %vm15002_vm13, %v5425_v58, %v16732_v37 }
 0x75f   : > { %v7813_v9 = vrot.slane %v7811_v47, 5  ;;  %v16758_v6 = vrot.slane %v7817_v55, 5  ;;  %v7823_v8 = vrot.slane %v7821_v27, 4  ;;  %v4151_v18 = vld [vmem:[#allocation3 + $0xb0] sm:$0x1]  ;;  %v5873_v10 = vld [vmem:[#allocation4 + $0x120] sm:$0xff]  ;;  %v7806_v47 = vsel %vm15002_vm13, %v7801_v11, %v16730_v51  ;;  %v16774_v5 = vpop.f32.mrf.mxu0 }
 0x760   : > { %v5435_v0 = vrot.slane %v5434_v12, 4  ;;  %v5439_v57 = vrot.slane %v5437_v4, 5  ;;  %v4495_v1 = vshrl.u32 %v4149_v59, 16  ;;  %v4498_v56 = vshll.u32 %v4149_v59, 16  ;;  %v5875_v62 = vld [vmem:[#allocation4 + $0x12c] sm:$0xff] }
 0x761   : > { %v12136_v28 = vld [vmem:[#allocation4 + $0x124] ss:$12 sps:$4 sm:$0xff]   ;;  %v7814_v55 = vor.u32 %v7813_v9, %v7810_v36  ;;  %v4504_v27 = vshll.u32 %v4150_v52, 16  ;;  %v4508_v17 = vshrl.u32 %v4150_v52, 16  ;;  %v18840_v4 = vcombine.high %v16246_v34, %v16252_v61  ;;  %7439 = vst [vmem:[#allocation4 + $0x120] sm:$0xf] %v7407_v25 }
 0x762   : > { %7440 = vst [vmem:[#allocation4 + $0x12c] sm:$0xf] %v7408_v42  ;;  %7935 = vst [vmem:[#allocation4 + $0x124] sm:$0xf] %v7796_v29  ;;  %v10611_v49 = vcombine.low %v5873_v10, %v5875_v62  ;;  %v5019_v44 = vld [vmem:[#allocation3 + $0xa8] sm:$0xf]  ;;  %v7824_v19 = vor.u32 %v7823_v8, %v16758_v6  ;;  %6466 = vmatprep.mubr.bf16.mxu0 %v12136_v28  ;;  %v16783_v8 = vpop.f32.mrf.mxu1  ;;  %v16785_v10 = vpop.f32.mrf.mxu0  ;;  %v5440_v62 = vsel %vm15002_vm13, %v5435_v0, %v5439_v57 }
 0x763   : > { %7140 = vmatprep.mubr.bf16.mxu1 %v18840_v4  ;;  %7936 = vst [vmem:[#allocation4 + $0x130] sm:$0xf] %v7806_v47  ;;  %v4497_v12 = vrot.slane %v4495_v1, 4  ;;  %v4500_v59 = vrot.slane %v4498_v56, 5  ;;  %v18841_v51 = vmov 0.0   ;;  %v16777_v52 = vld [vmem:[#allocation4 + $0x138] sm:$0xff] }
 0x764   : > { %11844 = vmatprep.subr.mxu1 %v18841_v51  ;;  %v7827_v11 = vshll.u32 %v16750_v48, 16  ;;  %v4506_v36 = vrot.slane %v4504_v27, 5  ;;  %v4510_v25 = vrot.slane %v4508_v17, 4  ;;  %6467 = vmatmul.mubr.bf16.gmra.mxu0 %v10611_v49  ;;  %v5020_v42 = vld [vmem:[#allocation3 + $0xac] sm:$0xf]  ;;  %v4514_v56 = vshll.u32 %v4151_v18, 16  ;;  %v16795_v49 = vpop.f32.mrf.mxu0 }
 0x765   : > { %5051 = vst [vmem:[#allocation4 + $0x138] sm:$0xf] %v5019_v44  ;;  %5547 = vst [vmem:[#allocation4 + $0x13c] sm:$0xf] %v5430_v20  ;;  %v4501_v1 = vor.u32 %v4500_v59, %v4497_v12  ;;  %v5099_v29 = vld [vmem:[#allocation3 + $0xb4] sm:$0xf] }
 0x766   : > { %v5100_v9 = vld [vmem:[#allocation3 + $0xb8] sm:$0xf]  ;;  %v16789_v37 = vrot.slane %v7814_v55, 4  ;;  %v4511_v58 = vor.u32 %v4510_v25, %v4506_v36  ;;  %v5101_v48 = vld [vmem:[#allocation3 + $0xbc] sm:$0x1]  ;;  %v5442_v28 = vshrl.u32 %v5099_v29, 16 }
 0x767   : > { %v16791_v47 = vld [vmem:[#allocation4 + $0x144] sm:$0xff]  ;;  %v16793_v27 = vrot.slane %v7824_v19, 4  ;;  %v4502_v17 = vrot.slane %v4501_v1, 4  ;;  %v5445_v18 = vshll.u32 %v5099_v29, 16  ;;  %v5451_v4 = vshll.u32 %v5100_v9, 16  ;;  %18842 = vst [vmem:[#allocation40_spill] sm:$0xff] %v16795_v49  ;;  %v16804_v29 = vpop.f32.mrf.mxu1 }
 0x768   : > { %5052 = vst [vmem:[#allocation4 + $0x144] sm:$0xf] %v5020_v42  ;;  %5548 = vst [vmem:[#allocation4 + $0x148] sm:$0xf] %v5440_v62  ;;  %v4512_v44 = vrot.slane %v4511_v58, 4  ;;  %v4516_v12 = vrot.slane %v4514_v56, 5  ;;  %v18843_v1 = vcombine.low %v16246_v34, %v16252_v61  ;;  %v16806_v42 = vpop.f32.mrf.mxu0  ;;  %v7820_v63 = vsel %vm15002_vm13, %v16789_v37, %v16758_v6 }
 0x769   : > { %v5444_v59 = vrot.slane %v5442_v28, 4  ;;  %v5455_v0 = vshrl.u32 %v5100_v9, 16  ;;  %v4507_v57 = vsel %vm15002_vm13, %v4502_v17, %v4506_v36  ;;  %v5447_v55 = vrot.slane %v5445_v18, 5  ;;  %v7489_v25 = vld [vmem:[#allocation3 + $0xc0] sm:$0xf]  ;;  %18844 = vst [vmem:[#allocation41_spill] sm:$0xff] %v16804_v29 }
 0x76a   : > { %v16799_v20 = vrot.slane %v5451_v4, 5  ;;  %v7490_v19 = vld [vmem:[#allocation3 + $0xc4] sm:$0xf]  ;;  %7141 = vmatmul.mubr.bf16.gmra.mxu1 %v18843_v1  ;;  %18845 = vst [vmem:[#allocation42_spill] sm:$0xff] %v16806_v42  ;;  %v4517_v56 = vsel %vm15002_vm13, %v4512_v44, %v4516_v12  ;;  %4602 = vst [vmem:[#allocation4 + $0x154] sm:$0xf] %v4507_v57  ;;  %v18846_v28 = vcombine.high %v16356_v23, %v16367_v16  ;;  %v16815_v1 = vpop.f32.mrf.mxu0 }
 0x76b   : > { %v5457_v9 = vrot.slane %v5455_v0, 4  ;;  %v5461_v62 = vshll.u32 %v5101_v48, 16  ;;  %v16810_v36 = vld [vmem:[#allocation3 + $0xc8] sm:$0x1]  ;;  %v7832_v58 = vshrl.u32 %v7489_v25, 16  ;;  %v5448_v34 = vor.u32 %v5447_v55, %v5444_v59 }
 0x76c   : > { %7148 = vmatprep.mubr.bf16.mxu1 %v18846_v28  ;;  %4603 = vst [vmem:[#allocation4 + $0x160] sm:$0xf] %v4517_v56  ;;  %v7835_v61 = vshll.u32 %v7489_v25, 16  ;;  %v7841_v17 = vshll.u32 %v7490_v19, 16  ;;  %v7845_v18 = vshrl.u32 %v7490_v19, 16  ;;  %v5877_v42 = vld [vmem:[#allocation4 + $0x138] sm:$0xff]  ;;  %v16838_v51 = vpop.f32.mrf.mxu0 }
 0x76d   : > { %v3451_v4 = vld [vmem:[#allocation3 + $0xcc] sm:$0x1]  ;;  %v7829_v44 = vrot.slane %v7827_v11, 5  ;;  %v5458_v12 = vor.u32 %v5457_v9, %v16799_v20  ;;  %v16818_v48 = vrot.slane %v7832_v58, 4  ;;  %v4073_v57 = vld [vmem:[#allocation3 + $0xb4] sm:$0xf]  ;;  %v16826_v11 = vpop.f32.mrf.mxu1 }
 0x76e   : > { %v3452_v0 = vsel %vm13512_vm3, 0, %v3451_v4  ;;  %v7409_v49 = vld [vmem:[#allocation3 + $0xb4] sm:$0xf]  ;;  %v7410_v28 = vld [vmem:[#allocation3 + $0xb8] sm:$0xf]  ;;  %v5449_v56 = vrot.slane %v5448_v34, 4  ;;  %v11143_v34 = vadd.f32 %v16699_v38, %v16674_v14 }
 0x76f   : > { %v7837_v59 = vrot.slane %v7835_v61, 5  ;;  %v16822_v55 = vrot.slane %v7841_v17, 5  ;;  %v16824_v25 = vrot.slane %v7845_v18, 4  ;;  %3453 = vst [vmem:[#allocation3 + $0xcc] sm:$0x1] %v3452_v0  ;;  %v5459_v9 = vrot.slane %v5458_v12, 4 }
 0x770   : > { %v4074_v19 = vld [vmem:[#allocation3 + $0xb8] sm:$0xf]  ;;  %4105 = vst [vmem:[#allocation4 + $0x168] sm:$0xf] %v4073_v57  ;;  %v4152_v58 = vld [vmem:[#allocation3 + $0xb4] sm:$0xf]  ;;  %v7830_v18 = vsel %vm15002_vm13, %v16793_v27, %v7829_v44  ;;  %v5454_v14 = vsel %vm15002_vm13, %v5449_v56, %v16799_v20 }
 0x771   : > { %4106 = vst [vmem:[#allocation4 + $0x174] sm:$0xf] %v4074_v19  ;;  %v4153_v4 = vld [vmem:[#allocation3 + $0xb8] sm:$0xf]  ;;  %v5879_v61 = vld [vmem:[#allocation4 + $0x144] sm:$0xff]  ;;  %v5463_v0 = vrot.slane %v5461_v62, 5 }
 0x772   : > { %v12139_v17 = vld [vmem:[#allocation4 + $0x13c] ss:$12 sps:$4 sm:$0xff]   ;;  %v7851_v57 = vshll.u32 %v16810_v36, 16  ;;  %v4519_v29 = vshrl.u32 %v4152_v58, 16  ;;  %7441 = vst [vmem:[#allocation4 + $0x138] sm:$0xf] %v7409_v49  ;;  %v10614_v6 = vcombine.low %v5877_v42, %v5879_v61  ;;  %v7838_v36 = vor.u32 %v7837_v59, %v16818_v48 }
 0x773   : > { %7442 = vst [vmem:[#allocation4 + $0x144] sm:$0xf] %v7410_v28  ;;  %7937 = vst [vmem:[#allocation4 + $0x13c] sm:$0xf] %v7820_v63  ;;  %v5021_v37 = vld [vmem:[#allocation3 + $0xb4] sm:$0xf]  ;;  %6474 = vmatprep.mubr.bf16.mxu0 %v12139_v17  ;;  %v7848_v49 = vor.u32 %v16824_v25, %v16822_v55  ;;  %v18847_v42 = vcombine.low %v16356_v23, %v16367_v16  ;;  %v16851_v63 = vpop.f32.mrf.mxu1  ;;  %v5464_v56 = vsel %vm15002_vm13, %v5459_v9, %v5463_v0  ;;  %v16863_v17 = vpop.f32.mrf.mxu0 }
 0x774   : > { %7938 = vst [vmem:[#allocation4 + $0x148] sm:$0xf] %v7830_v18  ;;  %v4154_v38 = vld [vmem:[#allocation3 + $0xbc] sm:$0x1]  ;;  %v4522_v12 = vshll.u32 %v4152_v58, 16  ;;  %v4528_v19 = vshll.u32 %v4153_v4, 16  ;;  %6475 = vmatmul.mubr.bf16.gmra.mxu0 %v10614_v6  ;;  %v16861_v23 = vadd.f32 %v11143_v34, %v16763_v43 }
 0x775   : > { %v16843_v27 = vld [vmem:[#allocation4 + $0x150] sm:$0xff]  ;;  %v5022_v62 = vld [vmem:[#allocation3 + $0xb8] sm:$0xf]  ;;  %v4521_v44 = vrot.slane %v4519_v29, 4  ;;  %v4532_v28 = vshrl.u32 %v4153_v4, 16  ;;  %7149 = vmatmul.mubr.bf16.gmra.mxu1 %v18847_v42  ;;  %v18848_v29 = vcombine.high %v16477_v3, %v16484_v54  ;;  %v4538_v25 = vshll.u32 %v4154_v38, 16 }
 0x776   : > { %v16853_v20 = vld [vmem:[#allocation4 + $0x15c] sm:$0xff]  ;;  %5053 = vst [vmem:[#allocation4 + $0x150] sm:$0xf] %v5021_v37  ;;  %5549 = vst [vmem:[#allocation4 + $0x154] sm:$0xf] %v5454_v14  ;;  %v4524_v48 = vrot.slane %v4522_v12, 5 }
 0x777   : > { %v4530_v59 = vrot.slane %v4528_v19, 5  ;;  %v5102_v58 = vld [vmem:[#allocation3 + $0xc0] sm:$0xf]  ;;  %7156 = vmatprep.mubr.bf16.mxu1 %v18848_v29  ;;  %18849 = vst [vmem:[#allocation43_spill] sm:$0xff] %v16861_v23  ;;  %5054 = vst [vmem:[#allocation4 + $0x15c] sm:$0xf] %v5022_v62  ;;  %v16865_v29 = vpop.f32.mrf.mxu1 }
 0x778   : > { %5550 = vst [vmem:[#allocation4 + $0x160] sm:$0xf] %v5464_v56  ;;  %v4534_v16 = vrot.slane %v4532_v28, 4  ;;  %v5103_v4 = vld [vmem:[#allocation3 + $0xc4] sm:$0xf]  ;;  %v5466_v61 = vshrl.u32 %v5102_v58, 16  ;;  %v4525_v18 = vor.u32 %v4524_v48, %v4521_v44  ;;  %v11163_v48 = vpop.f32.mrf.mxu0 }
 0x779   : > { %v7853_v9 = vrot.slane %v7851_v57, 5  ;;  %v5469_v0 = vshll.u32 %v5102_v58, 16  ;;  %v5475_v6 = vshll.u32 %v5103_v4, 16  ;;  %v7839_v37 = vrot.slane %v7838_v36, 4  ;;  %v5104_v12 = vld [vmem:[#allocation3 + $0xc8] sm:$0x1] }
 0x77a   : > { %v4535_v14 = vor.u32 %v4534_v16, %v4530_v59  ;;  %v5468_v19 = vrot.slane %v5466_v61, 4  ;;  %v5479_v42 = vshrl.u32 %v5103_v4, 16  ;;  %v7849_v43 = vrot.slane %v7848_v49, 4  ;;  %v7492_v38 = vld [vmem:[#allocation3 + $0xcc] sm:$0xf] }
 0x77b   : > { %v4526_v34 = vrot.slane %v4525_v18, 4  ;;  %v5471_v62 = vrot.slane %v5469_v0, 5  ;;  %v16867_v28 = vrot.slane %v5475_v6, 5  ;;  %v4540_v23 = vrot.slane %v4538_v25, 5  ;;  %v7493_v57 = vld [vmem:[#allocation3 + $0xd0] sm:$0xf] }
 0x77c   : > { %v4536_v56 = vrot.slane %v4535_v14, 4  ;;  %v5481_v13 = vrot.slane %v5479_v42, 4  ;;  %v7856_v44 = vshrl.u32 %v7492_v38, 16  ;;  %v7411_v58 = vld [vmem:[#allocation3 + $0xc0] sm:$0xf]  ;;  %v7859_v4 = vshll.u32 %v7492_v38, 16  ;;  %v16877_v42 = vpop.f32.mrf.mxu1 }
 0x77d   : > { %v4531_v36 = vsel %vm15002_vm13, %v4526_v34, %v4530_v59  ;;  %v5472_v16 = vor.u32 %v5471_v62, %v5468_v19  ;;  %v7865_v61 = vshll.u32 %v7493_v57, 16  ;;  %v5881_v39 = vld [vmem:[#allocation4 + $0x150] sm:$0xff]  ;;  %v7412_v49 = vld [vmem:[#allocation3 + $0xc4] sm:$0xf]  ;;  %v5485_v25 = vshll.u32 %v5104_v12, 16 }
 0x77e   : > { %v4541_v18 = vsel %vm15002_vm13, %v4536_v56, %v4540_v23  ;;  %4604 = vst [vmem:[#allocation4 + $0x16c] sm:$0xf] %v4531_v36  ;;  %v5482_v0 = vor.u32 %v5481_v13, %v16867_v28  ;;  %v7869_v6 = vshrl.u32 %v7493_v57, 16  ;;  %v18850_v14 = vcombine.low %v16477_v3, %v16484_v54  ;;  %v7494_v62 = vld [vmem:[#allocation3 + $0xd4] sm:$0x1]  ;;  %v11165_v57 = vpop.f32.mrf.mxu0 }
 0x77f   : > { %v5883_v59 = vld [vmem:[#allocation4 + $0x15c] sm:$0xff]  ;;  %v7844_v34 = vsel %vm15002_vm13, %v7839_v37, %v16822_v55  ;;  %v7854_v23 = vsel %vm15002_vm13, %v7849_v43, %v7853_v9  ;;  %4605 = vst [vmem:[#allocation4 + $0x178] sm:$0xf] %v4541_v18  ;;  %v7858_v13 = vrot.slane %v7856_v44, 4  ;;  %v18851_v12 = vcombine.high %v16544_v32, %v16550_v30  ;;  %7443 = vst [vmem:[#allocation4 + $0x150] sm:$0xf] %v7411_v58  ;;  %v16891_v44 = vpop.f32.mrf.mxu1 }
 0x780   : > { %7157 = vmatmul.mubr.bf16.gmra.mxu1 %v18850_v14  ;;  %v12141_v19 = vld [vmem:[#allocation4 + $0x154] ss:$12 sps:$4 sm:$0xff]   ;;  %7444 = vst [vmem:[#allocation4 + $0x15c] sm:$0xf] %v7412_v49  ;;  %v10617_v3 = vcombine.low %v5881_v39, %v5883_v59  ;;  %v7861_v54 = vrot.slane %v7859_v4, 5  ;;  %v7867_v38 = vrot.slane %v7865_v61, 5  ;;  %v11149_v9 = vadd.f32 %v16745_v15, %v16737_v45  ;;  %v11166_v58 = vpop.f32.mrf.mxu0 }
 0x781   : > { %7164 = vmatprep.mubr.bf16.mxu1 %v18851_v12  ;;  %7939 = vst [vmem:[#allocation4 + $0x154] sm:$0xf] %v7844_v34  ;;  %7940 = vst [vmem:[#allocation4 + $0x160] sm:$0xf] %v7854_v23  ;;  %v7871_v56 = vrot.slane %v7869_v6, 4  ;;  %6482 = vmatprep.mubr.bf16.mxu0 %v12141_v19  ;;  %v5473_v55 = vrot.slane %v5472_v16, 4  ;;  %v11152_v43 = vadd.f32 %v16765_v2, %v16752_v41 }
 0x782   : > { %6483 = vmatmul.mubr.bf16.gmra.mxu0 %v10617_v3  ;;  %v5483_v37 = vrot.slane %v5482_v0, 4  ;;  %v5487_v36 = vrot.slane %v5485_v25, 5  ;;  %v7875_v49 = vshll.u32 %v7494_v62, 16  ;;  %v16894_v39 = vadd.f32 %v16743_v31, %v11149_v9  ;;  %v5023_v41 = vld [vmem:[#allocation3 + $0xc0] sm:$0xf]  ;;  %v6565_v25 = vpop.f32.mrf.mxu1  ;;  %v16941_v21 = vpop.f32.mrf.mxu0 }
 0x783   : > { %v11155_v4 = vadd.f32 %v16785_v10, %v16774_v5  ;;  %v7862_v16 = vor.u32 %v7861_v54, %v7858_v13  ;;  %v7872_v61 = vor.u32 %v7871_v56, %v7867_v38  ;;  %v16899_v45 = vadd.f32 %v16783_v8, %v11152_v43  ;;  %v5024_v8 = vld [vmem:[#allocation3 + $0xc4] sm:$0xf]  ;;  %v18856_v56 = vld [vmem:[#allocation16_spill] sm:$0xff] }
 0x784   : > { %v11161_v15 = vadd.f32 %v16838_v51, %v16815_v1  ;;  %v5478_v18 = vsel %vm15002_vm13, %v5473_v55, %v16867_v28  ;;  %v11164_v5 = vadd.f32 %v11163_v48, %v16863_v17  ;;  %v11167_v10 = vadd.f32 %v11166_v58, %v11165_v57  ;;  %v18857_v57 = vld [vmem:[#allocation15_spill] sm:$0xff]  ;;  %v12153_v43 = vld [vmem:[%s18542_s8 + $0x1a8] sm:$0xff]  }
 0x785   : > { %v16903_v2 = vld [vmem:[#allocation4 + $0x168] sm:$0xff]  ;;  %v16909_v31 = vadd.f32 %v11155_v4, %v16851_v63  ;;  %v5488_v51 = vsel %vm15002_vm13, %v5483_v37, %v5487_v36  ;;  %v18852_v1 = vcombine.low %v16544_v32, %v16550_v30  ;;  %v18853_v63 = vcombine.high %v16601_v33, %v16608_v7  ;;  %v7413_v32 = vld [vmem:[#allocation3 + $0xcc] sm:$0xf]  ;;  %v7414_v30 = vld [vmem:[#allocation3 + $0xd0] sm:$0xf] }
 0x786   : > { %v16912_v0 = vld [vmem:[#allocation4 + $0x174] sm:$0xff]  ;;  %5055 = vst [vmem:[#allocation4 + $0x168] sm:$0xf] %v5023_v41  ;;  %5551 = vst [vmem:[#allocation4 + $0x16c] sm:$0xf] %v5478_v18  ;;  %v16920_v28 = vadd.f32 %v16826_v11, %v11161_v15  ;;  %v16926_v17 = vadd.f32 %v16865_v29, %v11164_v5  ;;  %v16928_v48 = vadd.f32 %v11167_v10, %v6565_v25  ;;  %v7863_v6 = vrot.slane %v7862_v16, 4 }
 0x787   : > { %5056 = vst [vmem:[#allocation4 + $0x174] sm:$0xf] %v5024_v8  ;;  %5552 = vst [vmem:[#allocation4 + $0x178] sm:$0xf] %v5488_v51  ;;  %v7873_v14 = vrot.slane %v7872_v61, 4  ;;  %v7877_v59 = vrot.slane %v7875_v49, 5  ;;  %v10681_v23 = vcombine.high %v16662_v26, %v16666_v53  ;;  %v10649_v13 = vcombine.low %v15642_v40, %v15658_v50  ;;  %v11727_v51 = vpop.f32.mrf.mxu1 }
 0x788   : > { %7165 = vmatmul.mubr.bf16.gmra.mxu1 %v18852_v1  ;;  %v7868_v11 = vsel %vm15002_vm13, %v7863_v6, %v7867_v38  ;;  %v18854_v12 = vcombine.low %v16601_v33, %v16608_v7  ;;  %v10684_v54 = vcombine.high %v16717_v46, %v16724_v35  ;;  %v12148_v40 = vld [vmem:[%s18542_s8 + $0x1b8] sm:$0xff]   ;;  %v18855_v50 = vcombine.low %v16662_v26, %v16666_v53  ;;  %v12149_v7 = vld [vmem:[%s18542_s8 + $0x1f0] sm:$0xff]   ;;  %v16956_v38 = vpop.f32.mrf.mxu0  ;;  %v18859_v49 = vld [vmem:[#allocation20_spill] sm:$0xff] }
 0x789   : > { %7172 = vmatprep.mubr.bf16.mxu1 %v18853_v63  ;;  %v7878_v19 = vsel %vm15002_vm13, %v7873_v14, %v7877_v59  ;;  %v10652_v33 = vcombine.low %v15720_v24, %v15732_v60  ;;  %v10655_v55 = vcombine.low %v18857_v57, %v18856_v56  ;;  %v12150_v26 = vld [vmem:[%s18542_s8 + $0x1b0] sm:$0xff]   ;;  %v12152_v24 = vld [vmem:[%s18542_s8 + $0x1e8] sm:$0xff]   ;;  %v10683_v53 = vcombine.low %v16717_v46, %v16724_v35  ;;  %v12154_v16 = vld [vmem:[%s18542_s8 + $0x1e0] sm:$0xff]  }
 0x78a   : > { %v11171_v60 = vpop.f32.mrf.mxu0  ;;  %v10687_v9 = vcombine.high %v16777_v52, %v16791_v47  ;;  %v18858_v36 = vld [vmem:[#allocation21_spill] sm:$0xff]  ;;  %v18860_v35 = vld [vmem:[#allocation18_spill] sm:$0xff]  ;;  %v12155_v5 = vld [vmem:[%s18542_s8 + $0x1a0] sm:$0xff]   ;;  %v10686_v1 = vcombine.low %v16777_v52, %v16791_v47  ;;  %v10690_v25 = vcombine.high %v16843_v27, %v16853_v20  ;;  %vm18890_vm3 = vcmask 1041408  }
 0x78b   : > { %v10658_v4 = vcombine.low %v18859_v49, %v18858_v36  ;;  %v18861_v61 = vld [vmem:[#allocation22_spill] sm:$0xff]  ;;  %v18862_v6 = vld [vmem:[#allocation24_spill] sm:$0xff]  ;;  %v18863_v14 = vld [vmem:[#allocation23_spill] sm:$0xff] }
 0x78c   : > { %v11172_v37 = vpop.f32.mrf.mxu0  ;;  %v10661_v15 = vcombine.low %v18861_v61, %v18860_v35  ;;  %v12157_v8 = vld [vmem:[%s18542_s8 + $0x1d8] sm:$0xff]   ;;  %v10664_v59 = vcombine.low %v18863_v14, %v18862_v6  ;;  %v18865_v47 = vld [vmem:[#allocation25_spill] sm:$0xff]  ;;  %vm18891_vm5 = vmmov %vm18890_vm3 }
 0x78d   : > { %v5885_v34 = vld [vmem:[#allocation4 + $0x168] sm:$0xff]  ;;  %v11173_v58 = vadd.f32 %v11172_v37, %v11171_v60  ;;  %v12158_v63 = vld [vmem:[%s18542_s8 + $0x198] sm:$0xff]   ;;  %vm18978_vm4 = vmmov %vm18890_vm3 }
 0x78e   : > { %v5887_v62 = vld [vmem:[#allocation4 + $0x174] sm:$0xff]  ;;  %7445 = vst [vmem:[#allocation4 + $0x168] sm:$0xf] %v7413_v32  ;;  %v11174_v46 = vpop.f32.mrf.mxu0  ;;  %v18864_v52 = vld [vmem:[#allocation26_spill] sm:$0xff]  ;;  %v18872_v60 = vld [vmem:[#allocation19_spill] sm:$0xff] }
 0x78f   : > { %v12144_v29 = vld [vmem:[#allocation4 + $0x16c] ss:$12 sps:$4 sm:$0xff]   ;;  %7446 = vst [vmem:[#allocation4 + $0x174] sm:$0xf] %v7414_v30  ;;  %v10620_v3 = vcombine.low %v5885_v34, %v5887_v62  ;;  %v16981_v41 = vadd.f32 %v16891_v44, %v11173_v58  ;;  %v10667_v30 = vcombine.low %v18865_v47, %v18864_v52  ;;  %v10689_v34 = vcombine.low %v16843_v27, %v16853_v20  ;;  %v12163_v62 = vld [vmem:[%s18542_s8 + $0x188] sm:$0xff]   ;;  %v18875_v49 = vld [vmem:[#allocation30_spill] sm:$0xff] }
 0x790   : > { %7173 = vmatmul.mubr.bf16.gmra.mxu1 %v18854_v12  ;;  %7941 = vst [vmem:[#allocation4 + $0x16c] sm:$0xf] %v7868_v11  ;;  %7942 = vst [vmem:[#allocation4 + $0x178] sm:$0xf] %v7878_v19  ;;  %6490 = vmatprep.mubr.bf16.mxu0 %v12144_v29  ;;  %v11175_v18 = vpop.f32.mrf.mxu0  ;;  %v12159_v32 = vld [vmem:[%s18542_s8 + $0x1d0] sm:$0xff]   ;;  %v12162_v19 = vld [vmem:[%s18542_s8 + $0x1c8] sm:$0xff]  }
 0x791   : > { %7180 = vmatprep.mubr.bf16.mxu1 %v10681_v23  ;;  %6491 = vmatmul.mubr.bf16.gmra.mxu0 %v10620_v3  ;;  %v11176_v10 = vadd.f32 %v11175_v18, %v11174_v46  ;;  %v12160_v11 = vld [vmem:[%s18542_s8 + $0x190] sm:$0xff]   ;;  %v10693_v23 = vcombine.high %v16903_v2, %v16912_v0  ;;  %v18866_v29 = vld [vmem:[#allocation27_spill] sm:$0xff] }
 0x792   : > { %11764 = vmatprep.mubr.bf16.mxu0 %v10649_v13  ;;  %v18867_v13 = vld [vmem:[#allocation10_spill] sm:$0xff]  ;;  %v12165_v3 = vld [vmem:[%s18542_s8 + $0x1c0] sm:$0xff]   ;;  %v18869_v27 = vld [vmem:[#allocation13_spill] sm:$0xff]  ;;  %v11177_v57 = vpop.f32.mrf.mxu0 }
 0x793   : > { %v16991_v44 = vadd.f32 %v11727_v51, %v11176_v10  ;;  %v10670_v12 = vcombine.low %v18867_v13, %v18866_v29  ;;  %v12177_v58 = vld [vmem:[#allocation4 + $0x20] ss:$12 sps:$4 sm:$0xff]   ;;  %v18879_v46 = vld [vmem:[#allocation33_spill] sm:$0xff]  ;;  %v12183_v18 = vld [vmem:[#allocation4 + $0x68] ss:$12 sps:$4 sm:$0xff]  }
 0x794   : > { %v18881_v10 = vld [vmem:[#allocation34_spill] sm:$0xff]  ;;  %v12192_v29 = vld [vmem:[#allocation4 + $0xb0] ss:$12 sps:$4 sm:$0xff]   ;;  %v12193_v13 = vld [vmem:[#allocation4 + $0xc8] ss:$12 sps:$4 sm:$0xff]  }
 0x798   : > { %7181 = vmatmul.mubr.bf16.gmra.mxu1 %v18855_v50  ;;  %v17028_v50 = vpop.f32.mrf.mxu1 }
 0x799   : > { %7188 = vmatprep.mubr.bf16.mxu1 %v10684_v54  ;;  %11765 = vmatmul.mubr.bf16.vlgmr.msra.gmra.mxu0 %v10652_v33  ;;  %v18868_v54 = vld [vmem:[#allocation14_spill] sm:$0xff]  ;;  %v10692_v33 = vcombine.low %v16903_v2, %v16912_v0 }
 0x79a   : > { %11398 = vmatpush3.bf16.msra.mxu0 %v12148_v40  ;;  %11768 = vmatprep.mubr.bf16.mxu0 %v10655_v55  ;;  %v10673_v20 = vcombine.low %v18869_v27, %v18868_v54  ;;  %v12167_v40 = vld [vmem:[%s18542_s8 + $0x180] sm:$0xff]   ;;  %v17032_v56 = vpop.f32.mrf.mxu1  ;;  %v18870_v55 = vld [vmem:[#allocation17_spill] sm:$0xff] }
 0x79b   : > { %11399 = vmatprep.subr.bf16.mxu0 %v12149_v7  ;;  %v12172_v7 = vld [vmem:[#allocation4 + $0x8] ss:$12 sps:$4 sm:$0xff]   ;;  %v12178_v0 = vld [vmem:[#allocation4 + $0x38] ss:$12 sps:$4 sm:$0xff]  }
 0x79c   : > { %v6581_v37 = vpop.f32.mrf.mxu1  ;;  %v9793_v27 = vld [vmem:[%s18546_s12] sm:$0x3] }
 0x79e   : > { %11400 = vmatpush3.bf16.msra.mxu0 %v12150_v26  ;;  %v18871_v26 = vcombine.low %v16208_v22, %v18870_v55  ;;  %v17042_v36 = vpop.f32.mrf.mxu1  ;;  %v18878_v22 = vld [vmem:[#allocation32_spill] sm:$0xff]  ;;  %v12198_v55 = vld [vmem:[#allocation4 + $0xf8] ss:$12 sps:$4 sm:$0xff]  }
 0x79f   : > { %11401 = vmatprep.subr.bf16.mxu0 %v12152_v24  ;;  %v11178_v24 = vpop.f32.mrf.mxu0  ;;  %v18880_v35 = vcombine.low %v18878_v22, %v18879_v46  ;;  %v12207_v22 = vld [vmem:[#allocation4 + $0x140] ss:$12 sps:$4 sm:$0xff]   ;;  %v12208_v46 = vld [vmem:[#allocation4 + $0x158] ss:$12 sps:$4 sm:$0xff]  }
 0x7a0   : > { %7189 = vmatmul.mubr.bf16.gmra.mxu1 %v10683_v53  ;;  %v18873_v53 = vld [vmem:[#allocation29_spill] sm:$0xff]  ;;  %v17050_v61 = vpop.f32.mrf.mxu1 }
 0x7a1   : > { %7196 = vmatprep.mubr.bf16.mxu1 %v10687_v9  ;;  %11769 = vmatmul.mubr.bf16.gmra.mxu0 %v10658_v4  ;;  %v18874_v9 = vcombine.low %v18872_v60, %v18873_v53  ;;  %v18876_v4 = vld [vmem:[#allocation31_spill] sm:$0xff]  ;;  %v17062_v14 = vpop.f32.mrf.mxu0  ;;  %v12181_v60 = vld [vmem:[#allocation4 + $0x34] ss:$12 sps:$4 sm:$0xff]  }
 0x7a2   : > { %11772 = vmatprep.mubr.bf16.mxu0 %v10661_v15  ;;  %11402 = vmatpush3.bf16.msra.mxu0 %v12153_v43  ;;  %v11179_v43 = vadd.f32 %v11178_v24, %v11177_v57  ;;  %v12182_v15 = vld [vmem:[#allocation4 + $0x50] ss:$12 sps:$4 sm:$0xff]   ;;  %v12197_v57 = vld [vmem:[#allocation4 + $0xe0] ss:$12 sps:$4 sm:$0xff]   ;;  %v12174_v24 = vld [vmem:[#allocation4 + $0x18] ss:$12 sps:$4 sm:$0xff]  }
 0x7a3   : > { %11403 = vmatprep.subr.bf16.mxu0 %v12154_v16  ;;  %v18877_v16 = vcombine.low %v18875_v49, %v18876_v4  ;;  %v17066_v47 = vpop.f32.mrf.mxu0  ;;  %v12186_v49 = vld [vmem:[#allocation4 + $0x4c] ss:$12 sps:$4 sm:$0xff]  }
 0x7a4   : > { %v17040_v2 = vadd.f32 %v11179_v43, %v6581_v37  ;;  %v12203_v37 = vld [vmem:[#allocation4 + $0x128] ss:$12 sps:$4 sm:$0xff]  }
 0x7a6   : > { %11404 = vmatpush3.bf16.msra.mxu0 %v12155_v5  ;;  %v17052_v5 = vpop.f32.mrf.mxu1 }
 0x7a7   : > { %11405 = vmatprep.subr.bf16.mxu0 %v12157_v8  ;;  %v18882_v8 = vld [vmem:[#allocation35_spill] sm:$0xff] }
 0x7a8   : > { %7197 = vmatmul.mubr.bf16.gmra.mxu1 %v10686_v1  ;;  %v18883_v51 = vcombine.low %v18881_v10, %v18882_v8  ;;  %v18884_v1 = vld [vmem:[#allocation36_spill] sm:$0xff]  ;;  %v17060_v6 = vpop.f32.mrf.mxu1 }
 0x7a9   : > { %7204 = vmatprep.mubr.bf16.mxu1 %v10690_v25  ;;  %11773 = vmatmul.mubr.bf16.gmra.mxu0 %v10664_v59  ;;  %v18885_v25 = vld [vmem:[#allocation37_spill] sm:$0xff]  ;;  %v12187_v59 = vld [vmem:[#allocation4 + $0x80] ss:$12 sps:$4 sm:$0xff]   ;;  %v12191_v8 = vld [vmem:[#allocation4 + $0x64] ss:$12 sps:$4 sm:$0xff]  }
 0x7aa   : > { %11776 = vmatprep.mubr.bf16.mxu0 %v10667_v30  ;;  %11406 = vmatpush3.bf16.msra.mxu0 %v12158_v63  ;;  %v18886_v63 = vcombine.low %v18884_v1, %v18885_v25  ;;  %v17064_v52 = vpop.f32.mrf.mxu1  ;;  %v12170_v30 = vld [vmem:[#allocation4 + $0x4] ss:$12 sps:$4 sm:$0xff]  }
 0x7ab   : > { %11407 = vmatprep.subr.bf16.mxu0 %v12159_v32  ;;  %v12188_v32 = vld [vmem:[#allocation4 + $0x98] ss:$12 sps:$4 sm:$0xff]   ;;  %v12230_v25 = vld [vmem:[#allocation4 + $0x170] ss:$12 sps:$4 sm:$0xff]  }
 0x7ae   : > { %11408 = vmatpush3.bf16.msra.mxu0 %v12160_v11  ;;  %v18887_v11 = vld [vmem:[#allocation11_spill] sm:$0xff] }
 0x7af   : > { %11409 = vmatprep.subr.bf16.mxu0 %v12162_v19  ;;  %v18888_v19 = vld [vmem:[#allocation28_spill] sm:$0xff] }
 0x7b0   : > { %7205 = vmatmul.mubr.bf16.gmra.mxu1 %v10689_v34  ;;  %v18889_v34 = vcombine.low %v18887_v11, %v18888_v19 }
 0x7b1   : > { %7212 = vmatprep.mubr.bf16.mxu1 %v10693_v23  ;;  %11777 = vmatmul.mubr.bf16.gmra.mxu0 %v10670_v12  ;;  %v17071_v23 = vpop.f32.mrf.mxu1 }
 0x7b2   : > { %11780 = vmatprep.mubr.bf16.mxu0 %v10673_v20  ;;  %11410 = vmatpush3.bf16.msra.mxu0 %v12163_v62  ;;  %v12168_v20 = vld [vmem:[#allocation4] ss:$12 sps:$4 sm:$0xff]  }
 0x7b3   : > { %11411 = vmatprep.subr.bf16.mxu0 %v12165_v3  ;;  %v17073_v3 = vpop.f32.mrf.mxu1 }
 0x7b6   : > { %11412 = vmatpush3.bf16.msra.mxu0 %v12167_v40  ;;  %v11183_v62 = vpop.f32.mrf.mxu0  ;;  %v17082_v40 = vsel %vm18891_vm5, %v9793_v27, 0 }
 0x7b7   : > { %11958 = vmatprep.subr.msk.bf16.mxu0 %vm18890_vm3, %v9793_v27  ;;  %18892 = vst [vmem:[#allocation16_spill] sm:$0xff] %v17082_v40  ;;  %v12201_v27 = vld [vmem:[#allocation4 + $0x94] ss:$12 sps:$4 sm:$0xff]  }
 0x7b8   : > { %7213 = vmatmul.mubr.bf16.gmra.mxu1 %v10692_v33  ;;  %v11184_v12 = vpop.f32.mrf.mxu0  ;;  %v12176_v33 = vld [vmem:[#allocation4 + $0x1c] ss:$12 sps:$4 sm:$0xff]  }
 0x7b9   : > { %11812 = vmatprep.mubr.bf16.mxu1 %v12172_v7  ;;  %11781 = vmatmul.mubr.bf16.gmra.mxu0 %v18871_v26  ;;  %v17075_v54 = vadd.f32 %v11184_v12, %v11183_v62  ;;  %v17084_v7 = vpop.f32.mrf.mxu1  ;;  %v12194_v12 = vld [vmem:[#allocation4 + $0x78] ss:$12 sps:$4 sm:$0xff]  }
 0x7ba   : > { %11784 = vmatprep.mubr.bf16.mxu0 %v18874_v9  ;;  %v12202_v9 = vld [vmem:[#allocation4 + $0x110] ss:$12 sps:$4 sm:$0xff]   ;;  %v17091_v43 = vpop.f32.mrf.mxu0 }
 0x7bb   : > { %v17087_v26 = vpop.f32.mrf.mxu1 }
 0x7bc   : > { %v17095_v4 = vpop.f32.mrf.mxu0 }
 0x7bd   : > { %v17089_v53 = vpop.f32.mrf.mxu1 }
 0x7c0   : > { %11813 = vmatmul.mubr.bf16.vlgmr.msra.gmra.mxu1 %v12177_v58  ;;  %v17093_v58 = vpop.f32.mrf.mxu1 }
 0x7c1   : > { %11816 = vmatprep.mubr.bf16.mxu1 %v12178_v0  ;;  %11785 = vmatmul.mubr.bf16.gmra.mxu0 %v18877_v16  ;;  %v12179_v0 = vld [vmem:[#allocation4 + $0x30] ss:$12 sps:$4 sm:$0xff]  }
 0x7c2   : > { %11788 = vmatprep.mubr.bf16.mxu0 %v18880_v35  ;;  %v17097_v16 = vpop.f32.mrf.mxu1 }
 0x7c8   : > { %11817 = vmatmul.mubr.bf16.gmra.mxu1 %v12182_v15  ;;  %v17099_v15 = vpop.f32.mrf.mxu1 }
 0x7c9   : > { %11820 = vmatprep.mubr.bf16.mxu1 %v12183_v18  ;;  %11789 = vmatmul.mubr.bf16.gmra.mxu0 %v18883_v51  ;;  %v12184_v18 = vld [vmem:[#allocation4 + $0x48] ss:$12 sps:$4 sm:$0xff]  }
 0x7ca   : > { %11792 = vmatprep.mubr.bf16.mxu0 %v18886_v63  ;;  %v17103_v1 = vpop.f32.mrf.mxu1 }
 0x7d0   : > { %11821 = vmatmul.mubr.bf16.gmra.mxu1 %v12187_v59  ;;  %v12189_v59 = vld [vmem:[#allocation4 + $0x60] ss:$12 sps:$4 sm:$0xff]  }
 0x7d1   : > { %11824 = vmatprep.mubr.bf16.mxu1 %v12188_v32  ;;  %11793 = vmatmul.mubr.bf16.gmra.mxu0 %v18889_v34  ;;  %v18894_v32 = vmov 0.0  }
 0x7d2   : > { %8760 = vmatprep.mubr.bf16.mxu0 %v12170_v30  ;;  %v12196_v30 = vld [vmem:[#allocation4 + $0x7c] ss:$12 sps:$4 sm:$0xff]  }
 0x7d7   : > { %v11189_v35 = vpop.f32.mrf.mxu0 }
 0x7d8   : > { %11825 = vmatmul.mubr.bf16.gmra.mxu1 %v12192_v29 }
 0x7d9   : > { %11828 = vmatprep.mubr.bf16.mxu1 %v12193_v13  ;;  %8761 = vmatmul.mubr.bf16.vlgmr.msra.gmra.mxu0 %v12168_v20  ;;  %v11190_v10 = vpop.f32.mrf.mxu0 }
 0x7da   : > { %8768 = vmatprep.mubr.bf16.mxu0 %v12176_v33  ;;  %11915 = vmatpush3.bf16.msra.mxu0 %v17082_v40  ;;  %v17101_v51 = vadd.f32 %v11190_v10, %v11189_v35  ;;  %v18896_v33 = vld [vmem:[#allocation38_spill] sm:$0xff] }
 0x7db   : > { %v17113_v34 = vpop.f32.mrf.mxu0 }
 0x7dd   : > { %v17117_v13 = vpop.f32.mrf.mxu0 }
 0x7e0   : > { %11829 = vmatmul.mubr.bf16.gmra.mxu1 %v12197_v57  ;;  %v17105_v63 = vpop.f32.mrf.mxu1  ;;  %v18897_v57 = vld [vmem:[#allocation39_spill] sm:$0xff] }
 0x7e1   : > { %11832 = vmatprep.mubr.bf16.mxu1 %v12198_v55  ;;  %8769 = vmatmul.mubr.bf16.gmra.mxu0 %v12174_v24  ;;  %18893 = vst [vmem:[#allocation15_spill] sm:$0xff] %v17105_v63  ;;  %v11146_v55 = vadd.f32 %v18897_v57, %v18896_v33 }
 0x7e2   : > { %8776 = vmatprep.mubr.bf16.mxu0 %v12181_v60  ;;  %v17109_v11 = vpop.f32.mrf.mxu1 }
 0x7e4   : > { %v17111_v19 = vpop.f32.mrf.mxu1 }
 0x7e5   : > { %18895 = vst [vmem:[#allocation21_spill] sm:$0xff] %v17111_v19 }
 0x7e6   : > { %v17115_v62 = vpop.f32.mrf.mxu1 }
 0x7e8   : > { %11833 = vmatmul.mubr.bf16.gmra.mxu1 %v12202_v9 }
 0x7e9   : > { %11836 = vmatprep.mubr.bf16.mxu1 %v12203_v37  ;;  %8777 = vmatmul.mubr.bf16.gmra.mxu0 %v12179_v0  ;;  %v18898_v37 = vld [vmem:[#allocation43_spill] sm:$0xff] }
 0x7ea   : > { %8784 = vmatprep.mubr.bf16.mxu0 %v12186_v49 }
 0x7ec   : > { %v11277_v29 = vpop.f32.mrf.mxu1 }
 0x7ee   : > { %v11278_v20 = vpop.f32.mrf.mxu1 }
 0x7ef   : > { %v11279_v24 = vadd.f32 %v11278_v20, %v11277_v29 }
 0x7f0   : > { %11837 = vmatmul.mubr.bf16.gmra.mxu1 %v12207_v22  ;;  %v11280_v60 = vpop.f32.mrf.mxu1  ;;  %v11195_v9 = vpop.f32.mrf.mxu0 }
 0x7f1   : > { %11840 = vmatprep.mubr.bf16.mxu1 %v12208_v46  ;;  %8785 = vmatmul.mubr.bf16.gmra.mxu0 %v12184_v18  ;;  %v17122_v0 = vadd.f32 %v11279_v24, %v18898_v37  ;;  %v18899_v46 = vld [vmem:[#allocation41_spill] sm:$0xff]  ;;  %v12204_v37 = vld [vmem:[#allocation4 + $0xa8] ss:$12 sps:$4 sm:$0xff]  }
 0x7f2   : > { %8792 = vmatprep.mubr.bf16.mxu0 %v12191_v8  ;;  %v11281_v49 = vpop.f32.mrf.mxu1  ;;  %v11196_v22 = vpop.f32.mrf.mxu0  ;;  %v6537_v35 = vadd.f32 %v11146_v55, %v18899_v46  ;;  %v12211_v46 = vld [vmem:[#allocation4 + $0xc4] ss:$12 sps:$4 sm:$0xff]  }
 0x7f3   : > { %v11282_v18 = vadd.f32 %v11281_v49, %v11280_v60  ;;  %v17125_v10 = vadd.f32 %v11196_v22, %v11195_v9 }
 0x7f4   : > { %v11283_v8 = vpop.f32.mrf.mxu1 }
 0x7f6   : > { %v11284_v29 = vpop.f32.mrf.mxu1 }
 0x7f7   : > { %v11285_v20 = vadd.f32 %v11284_v29, %v11283_v8 }
 0x7f8   : > { %11841 = vmatmul.mubr.bf16.gmra.mxu1 %v12230_v25  ;;  %v11198_v25 = vpop.f32.mrf.mxu0  ;;  %v11286_v57 = vpop.f32.mrf.mxu1 }
 0x7f9   : > { %11876 = vmatprep.mubr.msk.f32.mxu1 %vm12572_vm6, %v18894_v32  ;;  %8793 = vmatmul.mubr.bf16.gmra.mxu0 %v12189_v59  ;;  %v12199_v59 = vld [vmem:[#allocation4 + $0x90] ss:$12 sps:$4 sm:$0xff]   ;;  %v17132_v24 = vadd.f32 %v11285_v20, %v16894_v39 }
 0x7fa   : > { %8800 = vmatprep.mubr.bf16.mxu0 %v12196_v30  ;;  %v17127_v30 = vadd.f32 %v11282_v18, %v6537_v35  ;;  %v11287_v55 = vpop.f32.mrf.mxu1  ;;  %v18900_v18 = vld [vmem:[#allocation40_spill] sm:$0xff] }
 0x7fb   : > { %v11288_v60 = vadd.f32 %v11287_v55, %v11286_v57 }
 0x7fd   : > { %v17135_v22 = vadd.f32 %v11288_v60, %v16899_v45 }
 0x800   : > { %v11289_v9 = vpop.f32.mrf.mxu1 }
 0x801   : > { %8801 = vmatmul.mubr.bf16.gmra.mxu0 %v12194_v12  ;;  %v12206_v12 = vld [vmem:[#allocation4 + $0xac] ss:$12 sps:$4 sm:$0xff]  }
 0x802   : > { %8808 = vmatprep.mubr.bf16.mxu0 %v12201_v27  ;;  %v11199_v27 = vpop.f32.mrf.mxu0  ;;  %v11290_v35 = vpop.f32.mrf.mxu1 }
 0x803   : > { %v17129_v33 = vadd.f32 %v11199_v27, %v11198_v25 }
 0x804   : > { %v11201_v49 = vpop.f32.mrf.mxu0  ;;  %v11292_v39 = vpop.f32.mrf.mxu1 }
 0x806   : > { %v11202_v25 = vpop.f32.mrf.mxu0  ;;  %v11293_v57 = vpop.f32.mrf.mxu1 }
 0x807   : > { %v17139_v29 = vadd.f32 %v11202_v25, %v11201_v49  ;;  %v11294_v60 = vadd.f32 %v11293_v57, %v11292_v39  ;;  %v12217_v57 = vld [vmem:[#allocation4 + $0xf4] ss:$12 sps:$4 sm:$0xff]  }
 0x808   : > { %v11204_v27 = vpop.f32.mrf.mxu0  ;;  %v11295_v19 = vpop.f32.mrf.mxu1 }
 0x809   : > { %8809 = vmatmul.mubr.bf16.gmra.mxu0 %v12199_v59  ;;  %v18901_v59 = vld [vmem:[#allocation42_spill] sm:$0xff] }
 0x80a   : > { %8816 = vmatprep.mubr.bf16.mxu0 %v12206_v12  ;;  %v11158_v8 = vadd.f32 %v18901_v59, %v18900_v18  ;;  %v11291_v12 = vadd.f32 %v11290_v35, %v11289_v9  ;;  %v11205_v55 = vpop.f32.mrf.mxu0  ;;  %v12209_v18 = vld [vmem:[#allocation4 + $0xc0] ss:$12 sps:$4 sm:$0xff]   ;;  %v12214_v9 = vld [vmem:[#allocation4 + $0xdc] ss:$12 sps:$4 sm:$0xff]  }
 0x80b   : > { %v17145_v40 = vadd.f32 %v11205_v55, %v11204_v27 }
 0x80c   : > { %v17142_v20 = vadd.f32 %v11291_v12, %v16909_v31  ;;  %v6553_v45 = vadd.f32 %v11158_v8, %v16877_v42  ;;  %v12212_v12 = vld [vmem:[#allocation4 + $0xd8] ss:$12 sps:$4 sm:$0xff]  }
 0x811   : > { %8817 = vmatmul.mubr.bf16.gmra.mxu0 %v12204_v37  ;;  %v17147_v37 = vadd.f32 %v11294_v60, %v6553_v45 }
 0x812   : > { %8824 = vmatprep.mubr.bf16.mxu0 %v12211_v46  ;;  %v11296_v46 = vpop.f32.mrf.mxu1  ;;  %v11207_v25 = vpop.f32.mrf.mxu0 }
 0x813   : > { %v11297_v49 = vadd.f32 %v11296_v46, %v11295_v19  ;;  %v11170_v19 = vadd.f32 %v16956_v38, %v16941_v21  ;;  %v12220_v21 = vld [vmem:[#allocation4 + $0x10c] ss:$12 sps:$4 sm:$0xff]  }
 0x814   : > { %v11298_v35 = vpop.f32.mrf.mxu1  ;;  %v11208_v39 = vpop.f32.mrf.mxu0 }
 0x815   : > { %v17150_v31 = vadd.f32 %v11297_v49, %v16920_v28  ;;  %v17155_v45 = vadd.f32 %v11208_v39, %v11207_v25 }
 0x816   : > { %v11299_v59 = vpop.f32.mrf.mxu1  ;;  %v11210_v60 = vpop.f32.mrf.mxu0 }
 0x817   : > { %v11300_v42 = vadd.f32 %v11299_v59, %v11298_v35  ;;  %v6569_v35 = vadd.f32 %v11170_v19, %v17028_v50 }
 0x818   : > { %v11301_v8 = vpop.f32.mrf.mxu1 }
 0x819   : > { %8825 = vmatmul.mubr.bf16.gmra.mxu0 %v12209_v18  ;;  %v17153_v27 = vadd.f32 %v11300_v42, %v16926_v17  ;;  %v12215_v42 = vld [vmem:[#allocation4 + $0xf0] ss:$12 sps:$4 sm:$0xff]  }
 0x81a   : > { %8832 = vmatprep.mubr.bf16.mxu0 %v12214_v9  ;;  %v11302_v55 = vpop.f32.mrf.mxu1  ;;  %v11211_v9 = vpop.f32.mrf.mxu0 }
 0x81b   : > { %v11303_v28 = vadd.f32 %v11302_v55, %v11301_v8  ;;  %v17162_v49 = vadd.f32 %v11211_v9, %v11210_v60  ;;  %v12218_v9 = vld [vmem:[#allocation4 + $0x108] ss:$12 sps:$4 sm:$0xff]  }
 0x81c   : > { %v11304_v18 = vpop.f32.mrf.mxu1 }
 0x81d   : > { %v17160_v46 = vadd.f32 %v11303_v28, %v16928_v48 }
 0x81e   : > { %v11305_v17 = vpop.f32.mrf.mxu1 }
 0x81f   : > { %v11306_v59 = vadd.f32 %v11305_v17, %v11304_v18 }
 0x820   : > { %v11307_v25 = vpop.f32.mrf.mxu1 }
 0x821   : > { %8833 = vmatmul.mubr.bf16.gmra.mxu0 %v12212_v12  ;;  %v17165_v39 = vadd.f32 %v11306_v59, %v6569_v35  ;;  %v12223_v35 = vld [vmem:[#allocation4 + $0x124] ss:$12 sps:$4 sm:$0xff]  }
 0x822   : > { %8840 = vmatprep.mubr.bf16.mxu0 %v12217_v57  ;;  %v11308_v38 = vpop.f32.mrf.mxu1 }
 0x823   : > { %v11309_v8 = vadd.f32 %v11308_v38, %v11307_v25 }
 0x824   : > { %v11213_v12 = vpop.f32.mrf.mxu0  ;;  %v11310_v57 = vpop.f32.mrf.mxu1 }
 0x825   : > { %v17168_v48 = vadd.f32 %v11309_v8, %v16981_v41 }
 0x826   : > { %v11214_v55 = vpop.f32.mrf.mxu0  ;;  %v11311_v60 = vpop.f32.mrf.mxu1 }
 0x827   : > { %v17170_v28 = vadd.f32 %v11214_v55, %v11213_v12  ;;  %v11312_v50 = vadd.f32 %v11311_v60, %v11310_v57 }
 0x828   : > { %v11216_v19 = vpop.f32.mrf.mxu0 }
 0x829   : > { %8841 = vmatmul.mubr.bf16.gmra.mxu0 %v12215_v42  ;;  %v17173_v17 = vadd.f32 %v11312_v50, %v16991_v44  ;;  %v11182_v42 = vadd.f32 %v17066_v47, %v17062_v14  ;;  %v12221_v50 = vld [vmem:[#allocation4 + $0x120] ss:$12 sps:$4 sm:$0xff]   ;;  %v12226_v14 = vld [vmem:[#allocation4 + $0x13c] ss:$12 sps:$4 sm:$0xff]  }
 0x82a   : > { %8848 = vmatprep.mubr.bf16.mxu0 %v12220_v21  ;;  %v11313_v18 = vpop.f32.mrf.mxu1  ;;  %v11217_v59 = vpop.f32.mrf.mxu0 }
 0x82b   : > { %v11218_v41 = vadd.f32 %v11217_v59, %v11216_v19  ;;  %v6585_v44 = vadd.f32 %v11182_v42, %v17050_v61  ;;  %v6590_v19 = vadd.f32 %v17032_v56, %v17075_v54  ;;  %v12224_v54 = vld [vmem:[#allocation4 + $0x138] ss:$12 sps:$4 sm:$0xff]  }
 0x82c   : > { %v11314_v25 = vpop.f32.mrf.mxu1 }
 0x82d   : > { %v11315_v21 = vadd.f32 %v11314_v25, %v11313_v18  ;;  %v17178_v8 = vadd.f32 %v11218_v41, %v17103_v1  ;;  %v11188_v1 = vadd.f32 %v17095_v4, %v17091_v43  ;;  %v12229_v4 = vld [vmem:[#allocation4 + $0x154] ss:$12 sps:$4 sm:$0xff]  }
 0x82e   : > { %v11316_v38 = vpop.f32.mrf.mxu1 }
 0x82f   : > { %v17181_v12 = vadd.f32 %v11315_v21, %v17040_v2  ;;  %v6593_v42 = vadd.f32 %v17042_v36, %v11188_v1 }
 0x830   : > { %v11317_v57 = vpop.f32.mrf.mxu1 }
 0x831   : > { %8849 = vmatmul.mubr.bf16.gmra.mxu0 %v12218_v9  ;;  %v11318_v55 = vadd.f32 %v11317_v57, %v11316_v38 }
 0x832   : > { %8856 = vmatprep.mubr.bf16.mxu0 %v12223_v35 }
 0x833   : > { %v17184_v32 = vadd.f32 %v11318_v55, %v6585_v44  ;;  %v11194_v44 = vadd.f32 %v17117_v13, %v17113_v34 }
 0x834   : > { %v11219_v63 = vpop.f32.mrf.mxu0 }
 0x835   : > { %v11319_v60 = vpop.f32.mrf.mxu1 }
 0x836   : > { %v11220_v2 = vpop.f32.mrf.mxu0 }
 0x837   : > { %v11320_v47 = vpop.f32.mrf.mxu1  ;;  %v17190_v9 = vadd.f32 %v11220_v2, %v11219_v63  ;;  %v6598_v63 = vadd.f32 %v17101_v51, %v17060_v6  ;;  %v12227_v51 = vld [vmem:[#allocation4 + $0x150] ss:$12 sps:$4 sm:$0xff]  }
 0x838   : > { %v11321_v18 = vadd.f32 %v11320_v47, %v11319_v60  ;;  %v11222_v35 = vpop.f32.mrf.mxu0 }
 0x839   : > { %8857 = vmatmul.mubr.bf16.gmra.mxu0 %v12221_v50  ;;  %v11322_v61 = vpop.f32.mrf.mxu1 }
 0x83a   : > { %8864 = vmatprep.mubr.bf16.mxu0 %v12226_v14  ;;  %v17192_v59 = vadd.f32 %v11321_v18, %v6590_v19  ;;  %v11223_v41 = vpop.f32.mrf.mxu0  ;;  %v6601_v19 = vadd.f32 %v11194_v44, %v17071_v23 }
 0x83b   : > { %v11323_v25 = vpop.f32.mrf.mxu1  ;;  %v17195_v38 = vadd.f32 %v11223_v41, %v11222_v35 }
 0x83c   : > { %v11324_v21 = vadd.f32 %v11323_v25, %v11322_v61  ;;  %v12233_v61 = vld [vmem:[#allocation4 + $0x16c] ss:$12 sps:$4 sm:$0xff]   ;;  %v6606_v25 = vadd.f32 %v17052_v5, %v17125_v10  ;;  %v9882_v5 = vpop.permute.xlu0 %9881  ;;  %v6614_v10 = vadd.f32 %v17139_v29, %v17084_v7  ;;  %v9884_v29 = vpop.permute.xlu1 %9883 }
 0x83e   : > { %v17197_v43 = vadd.f32 %v11324_v21, %v6593_v42 }
 0x840   : > { %v11325_v56 = vpop.f32.mrf.mxu1 }
 0x841   : > { %8865 = vmatmul.mubr.bf16.gmra.mxu0 %v12224_v54  ;;  %v6609_v54 = vadd.f32 %v17064_v52, %v17129_v33 }
 0x842   : > { %v11326_v57 = vpop.f32.mrf.mxu1  ;;  %8872 = vmatprep.mubr.bf16.mxu0 %v12229_v4  ;;  %v11225_v36 = vpop.f32.mrf.mxu0  ;;  %v12231_v4 = vld [vmem:[#allocation4 + $0x168] ss:$12 sps:$4 sm:$0xff]  }
 0x843   : > { %v11327_v55 = vadd.f32 %v11326_v57, %v11325_v56 }
 0x844   : > { %v11328_v60 = vpop.f32.mrf.mxu1  ;;  %v11226_v14 = vpop.f32.mrf.mxu0 }
 0x845   : > { %v17203_v50 = vadd.f32 %v11327_v55, %v6598_v63  ;;  %v17206_v1 = vadd.f32 %v11226_v14, %v11225_v36 }
 0x846   : > { %v11329_v47 = vpop.f32.mrf.mxu1  ;;  %v11228_v18 = vpop.f32.mrf.mxu0 }
 0x847   : > { %v11330_v2 = vadd.f32 %v11329_v47, %v11328_v60 }
 0x848   : > { %v11331_v6 = vpop.f32.mrf.mxu1  ;;  %v11229_v34 = vpop.f32.mrf.mxu0 }
 0x849   : > { %v17208_v35 = vadd.f32 %v11330_v2, %v6601_v19  ;;  %8873 = vmatmul.mubr.bf16.gmra.mxu0 %v12227_v51  ;;  %v17212_v42 = vadd.f32 %v11229_v34, %v11228_v18  ;;  %v6617_v2 = vadd.f32 %v17145_v40, %v17089_v53 }
 0x84a   : > { %v11332_v13 = vpop.f32.mrf.mxu1  ;;  %8880 = vmatprep.mubr.bf16.mxu0 %v12233_v61 }
 0x84b   : > { %v11333_v41 = vadd.f32 %v11332_v13, %v11331_v6 }
 0x84c   : > { %v11334_v23 = vpop.f32.mrf.mxu1 }
 0x84d   : > { %v17214_v21 = vadd.f32 %v11333_v41, %v6606_v25  ;;  %v9886_v25 = vpop.permute.xlu0 %9885  ;;  %v6622_v41 = vadd.f32 %v17073_v3, %v17155_v45  ;;  %v6625_v3 = vadd.f32 %v17087_v26, %v17162_v49 }
 0x84e   : > { %v11335_v56 = vpop.f32.mrf.mxu1 }
 0x84f   : > { %v11336_v57 = vadd.f32 %v11335_v56, %v11334_v23 }
 0x850   : > { %v11337_v63 = vpop.f32.mrf.mxu1 }
 0x851   : > { %v17218_v44 = vadd.f32 %v11336_v57, %v6609_v54  ;;  %v11231_v36 = vpop.f32.mrf.mxu0  ;;  %8881 = vmatmul.mubr.bf16.gmra.mxu0 %v12231_v4 }
 0x852   : > { %v11338_v55 = vpop.f32.mrf.mxu1  ;;  %11916 = vmatprep.mubr.msk.bf16.mxu0 %vm9913_vm15, %v9882_v5 }
 0x853   : > { %v11339_v60 = vadd.f32 %v11338_v55, %v11337_v63  ;;  %v11232_v47 = vpop.f32.mrf.mxu0 }
 0x854   : > { %v11340_v14 = vpop.f32.mrf.mxu1  ;;  %v17225_v52 = vadd.f32 %v11232_v47, %v11231_v36 }
 0x855   : > { %v17223_v19 = vadd.f32 %v11339_v60, %v6614_v10  ;;  %v11234_v18 = vpop.f32.mrf.mxu0  ;;  %v9888_v60 = vpop.permute.xlu1 %9887 }
 0x856   : > { %v11341_v33 = vpop.f32.mrf.mxu1 }
 0x857   : > { %v11342_v61 = vadd.f32 %v11341_v33, %v11340_v14  ;;  %v11235_v51 = vpop.f32.mrf.mxu0  ;;  %v6630_v33 = vadd.f32 %v17170_v28, %v17097_v16 }
 0x858   : > { %v11343_v6 = vpop.f32.mrf.mxu1  ;;  %v17231_v34 = vadd.f32 %v11235_v51, %v11234_v18 }
 0x859   : > { %v17229_v7 = vadd.f32 %v11342_v61, %v6617_v2  ;;  %v11766_v23 = vpop.f32.mrf.mxu0  ;;  %11917 = vmatmul.mubr.msk.bf16.vlgmr.msra.gmra.mxu0 %vm9913_vm15, %v9884_v29 }
 0x85a   : > { %v11344_v13 = vpop.f32.mrf.mxu1  ;;  %v17237_v40 = vadd.f32 %v11766_v23, %v17132_v24  ;;  %11920 = vmatprep.mubr.msk.bf16.mxu0 %vm9913_vm15, %v9886_v25  ;;  %v9892_v25 = vpop.permute.xlu1 %9891 }
 0x85b   : > { %v11345_v56 = vadd.f32 %v11344_v13, %v11343_v6  ;;  %v7255_v54 = vpop.f32.mrf.mxu0 }
 0x85c   : > { %v11346_v53 = vpop.f32.mrf.mxu1  ;;  %v17243_v57 = vadd.f32 %v7255_v54, %v17122_v0  ;;  %v9890_v0 = vpop.permute.xlu0 %9889 }
 0x85d   : > { %v17240_v4 = vadd.f32 %v11345_v56, %v6622_v41  ;;  %v11767_v45 = vpop.f32.mrf.mxu0 }
 0x85e   : > { %v11347_v63 = vpop.f32.mrf.mxu1  ;;  %v17248_v5 = vadd.f32 %v11767_v45, %v17135_v22 }
 0x85f   : > { %v11348_v55 = vadd.f32 %v11347_v63, %v11346_v53  ;;  %v7258_v10 = vpop.f32.mrf.mxu0 }
 0x860   : > { %v11349_v24 = vpop.f32.mrf.mxu1  ;;  %v17253_v14 = vadd.f32 %v7258_v10, %v17127_v30  ;;  %v9894_v56 = vpop.permute.xlu0 %9893 }
 0x861   : > { %v17250_v36 = vadd.f32 %v11348_v55, %v6625_v3  ;;  %v11770_v2 = vpop.f32.mrf.mxu0  ;;  %11921 = vmatmul.mubr.msk.bf16.gmra.mxu0 %vm9913_vm15, %v9888_v60 }
 0x862   : > { %v11350_v47 = vpop.f32.mrf.mxu1  ;;  %v17259_v22 = vadd.f32 %v11770_v2, %v17150_v31  ;;  %11924 = vmatprep.mubr.msk.bf16.mxu0 %vm9913_vm15, %v9890_v0  ;;  %v6646_v2 = vadd.f32 %v17206_v1, %v17109_v11  ;;  %v17313_v11 = vld [vmem:[%s18548_s14 + $0x78] sm:$0xff]  ;;  %v6649_v1 = vadd.f32 %v17212_v42, %v17115_v62  ;;  %v17330_v62 = vld [vmem:[%s18548_s14 + $0x70] sm:$0xff] }
 0x863   : > { %v11351_v26 = vadd.f32 %v11350_v47, %v11349_v24  ;;  %v7271_v18 = vpop.f32.mrf.mxu0  ;;  %v9896_v47 = vpop.permute.xlu1 %9895  ;;  %18903 = vst [vmem:[#allocation18_spill] sm:$0xff] %v17313_v11  ;;  %11845 = vmatpush3.msra.mxu1 %v17313_v11  ;;  %18907 = vst [vmem:[#allocation23_spill] sm:$0xff] %v17330_v62 }
 0x864   : > { %v11352_v49 = vpop.f32.mrf.mxu1  ;;  %v17265_v30 = vadd.f32 %v7271_v18, %v17142_v20  ;;  %v6638_v20 = vadd.f32 %v17093_v58, %v17190_v9  ;;  %v6641_v58 = vadd.f32 %v17099_v15, %v17195_v38 }
 0x865   : > { %v17262_v61 = vadd.f32 %v11351_v26, %v6630_v33  ;;  %v11771_v51 = vpop.f32.mrf.mxu0 }
 0x866   : > { %v11353_v6 = vpop.f32.mrf.mxu1  ;;  %v17268_v16 = vadd.f32 %v11771_v51, %v17153_v27 }
 0x867   : > { %v11354_v29 = vadd.f32 %v11353_v6, %v11352_v49  ;;  %v7274_v13 = vpop.f32.mrf.mxu0 }
 0x868   : > { %v11355_v28 = vpop.f32.mrf.mxu1  ;;  %v17274_v41 = vadd.f32 %v7274_v13, %v17147_v37  ;;  %v18905_v13 = vmov 0.0  }
 0x869   : > { %v17271_v31 = vadd.f32 %v11354_v29, %v17178_v8  ;;  %v11774_v53 = vpop.f32.mrf.mxu0  ;;  %11925 = vmatmul.mubr.msk.bf16.gmra.mxu0 %vm9913_vm15, %v9892_v25  ;;  %11846 = vmatprep.subr.mxu1 %v18905_v13 }
 0x86a   : > { %v11356_v23 = vpop.f32.mrf.mxu1  ;;  %v17280_v27 = vadd.f32 %v11774_v53, %v17168_v48  ;;  %11928 = vmatprep.mubr.msk.bf16.mxu0 %vm9913_vm15, %v9894_v56  ;;  %11847 = vmatpush3.msra.mxu1 %v17330_v62 }
 0x86b   : > { %v11357_v54 = vadd.f32 %v11356_v23, %v11355_v28  ;;  %v7287_v63 = vpop.f32.mrf.mxu0  ;;  %v9900_v23 = vpop.permute.xlu1 %9899  ;;  %11848 = vmatprep.subr.mxu1 %v18905_v13 }
 0x86c   : > { %v11358_v8 = vpop.f32.mrf.mxu1  ;;  %v17286_v37 = vadd.f32 %v7287_v63, %v17160_v46  ;;  %v9898_v46 = vpop.permute.xlu0 %9897 }
 0x86d   : > { %v17283_v3 = vadd.f32 %v11357_v54, %v6638_v20  ;;  %v11775_v9 = vpop.f32.mrf.mxu0 }
 0x86e   : > { %v11359_v45 = vpop.f32.mrf.mxu1  ;;  %v17291_v24 = vadd.f32 %v11775_v9, %v17173_v17 }
 0x86f   : > { %v11360_v55 = vadd.f32 %v11359_v45, %v11358_v8  ;;  %v7290_v10 = vpop.f32.mrf.mxu0 }
 0x870   : > { %v11361_v48 = vpop.f32.mrf.mxu1  ;;  %v17296_v0 = vadd.f32 %v7290_v10, %v17165_v39  ;;  %v9902_v42 = vpop.permute.xlu0 %9901 }
 0x871   : > { %v17293_v60 = vadd.f32 %v11360_v55, %v6641_v58  ;;  %v11778_v26 = vpop.f32.mrf.mxu0  ;;  %11929 = vmatmul.mubr.msk.bf16.gmra.mxu0 %vm9913_vm15, %v9896_v47  ;;  %v17347_v55 = vld [vmem:[%s18548_s14 + $0x68] sm:$0xff] }
 0x872   : > { %v11362_v33 = vpop.f32.mrf.mxu1  ;;  %v17302_v17 = vadd.f32 %v11778_v26, %v17192_v59  ;;  %11932 = vmatprep.mubr.msk.bf16.mxu0 %vm9913_vm15, %v9898_v46  ;;  %18911 = vst [vmem:[#allocation27_spill] sm:$0xff] %v17347_v55  ;;  %11849 = vmatpush3.msra.mxu1 %v17347_v55 }
 0x873   : > { %v11363_v15 = vadd.f32 %v11362_v33, %v11361_v48  ;;  %v7303_v49 = vpop.f32.mrf.mxu0  ;;  %v18912_v48 = vld [vmem:[#allocation21_spill] sm:$0xff]  ;;  %11850 = vmatprep.subr.mxu1 %v18905_v13 }
 0x874   : > { %18902 = vst [vmem:[#allocation20_spill] sm:$0xff] %v17302_v17  ;;  %v11364_v38 = vpop.f32.mrf.mxu1  ;;  %v17308_v39 = vadd.f32 %v7303_v49, %v17181_v12 }
 0x875   : > { %v17305_v18 = vadd.f32 %v11363_v15, %v6646_v2  ;;  %v11779_v59 = vpop.f32.mrf.mxu0  ;;  %v9904_v2 = vpop.permute.xlu1 %9903  ;;  %v17362_v15 = vld [vmem:[%s18548_s14 + $0x60] sm:$0xff] }
 0x876   : > { %v11365_v6 = vpop.f32.mrf.mxu1  ;;  %v17319_v29 = vadd.f32 %v11779_v59, %v17197_v43  ;;  %v18908_v43 = vld [vmem:[#allocation15_spill] sm:$0xff]  ;;  %18915 = vst [vmem:[#allocation13_spill] sm:$0xff] %v17362_v15  ;;  %11851 = vmatpush3.msra.mxu1 %v17362_v15 }
 0x877   : > { %v11366_v51 = vadd.f32 %v11365_v6, %v11364_v38  ;;  %v7306_v12 = vpop.f32.mrf.mxu0  ;;  %v6654_v53 = vadd.f32 %v18908_v43, %v17225_v52  ;;  %11852 = vmatprep.subr.mxu1 %v18905_v13  ;;  %v17377_v6 = vld [vmem:[%s18548_s14 + $0x58] sm:$0xff] }
 0x878   : > { %18904 = vst [vmem:[#allocation22_spill] sm:$0xff] %v17319_v29  ;;  %v11367_v28 = vpop.f32.mrf.mxu1  ;;  %v17325_v56 = vadd.f32 %v7306_v12, %v17184_v32  ;;  %18918 = vst [vmem:[#allocation29_spill] sm:$0xff] %v17377_v6  ;;  %11853 = vmatpush3.msra.mxu1 %v17377_v6 }
 0x879   : > { %v17322_v25 = vadd.f32 %v11366_v51, %v6649_v1  ;;  %v11782_v54 = vpop.f32.mrf.mxu0  ;;  %11933 = vmatmul.mubr.msk.bf16.gmra.mxu0 %vm9913_vm15, %v9900_v23  ;;  %11854 = vmatprep.subr.mxu1 %v18905_v13 }
 0x87a   : > { %18906 = vst [vmem:[#allocation24_spill] sm:$0xff] %v17325_v56  ;;  %v11368_v20 = vpop.f32.mrf.mxu1  ;;  %v17337_v63 = vadd.f32 %v11782_v54, %v17214_v21  ;;  %11936 = vmatprep.mubr.msk.bf16.mxu0 %vm9913_vm15, %v9902_v42  ;;  %v6657_v21 = vadd.f32 %v18912_v48, %v17231_v34  ;;  %v9906_v34 = vpop.permute.xlu0 %9905 }
 0x87b   : > { %v11369_v8 = vadd.f32 %v11368_v20, %v11367_v28  ;;  %v7319_v45 = vpop.f32.mrf.mxu0 }
 0x87c   : > { %18909 = vst [vmem:[#allocation26_spill] sm:$0xff] %v17337_v63  ;;  %v11370_v32 = vpop.f32.mrf.mxu1  ;;  %v17342_v9 = vadd.f32 %v7319_v45, %v17203_v50  ;;  %v17429_v45 = vld [vmem:[%s18548_s14 + $0x38] sm:$0xff] }
 0x87d   : > { %v7215_v58 = vadd.f32 %v11369_v8, %v6654_v53  ;;  %v11783_v10 = vpop.f32.mrf.mxu0  ;;  %18930 = vst [vmem:[#allocation39_spill] sm:$0xff] %v17429_v45 }
 0x87e   : > { %18910 = vst [vmem:[#allocation25_spill] sm:$0xff] %v17342_v9  ;;  %v11371_v52 = vpop.f32.mrf.mxu1  ;;  %v17353_v33 = vadd.f32 %v11783_v10, %v17218_v44  ;;  %v9908_v51 = vpop.permute.xlu0 %9907 }
 0x87f   : > { %v11372_v47 = vadd.f32 %v11371_v52, %v11370_v32  ;;  %v7322_v50 = vpop.f32.mrf.mxu0 }
 0x880   : > { %18913 = vst [vmem:[#allocation10_spill] sm:$0xff] %v17353_v33  ;;  %v17357_v26 = vadd.f32 %v7322_v50, %v17208_v35 }
 0x881   : > { %v7218_v46 = vadd.f32 %v11372_v47, %v6657_v21  ;;  %v11786_v38 = vpop.f32.mrf.mxu0  ;;  %11937 = vmatmul.mubr.msk.bf16.gmra.mxu0 %vm9913_vm15, %v9904_v2  ;;  %v17435_v21 = vpop.f32.mrf.mxu1  ;;  %v17450_v2 = vld [vmem:[%s18548_s14 + $0x28] sm:$0xff] }
 0x882   : > { %18914 = vst [vmem:[#allocation14_spill] sm:$0xff] %v17357_v26  ;;  %v17367_v44 = vadd.f32 %v11786_v38, %v17240_v4  ;;  %11940 = vmatprep.mubr.msk.bf16.mxu0 %vm9913_vm15, %v9906_v34  ;;  %18934 = vst [vmem:[#allocation42_spill] sm:$0xff] %v17450_v2 }
 0x883   : > { %v7335_v35 = vpop.f32.mrf.mxu0  ;;  %v8923_v50 = vpop.f32.mrf.mxu1 }
 0x884   : > { %18916 = vst [vmem:[#allocation17_spill] sm:$0xff] %v17367_v44  ;;  %v17372_v49 = vadd.f32 %v7335_v35, %v17223_v19  ;;  %v17390_v19 = vld [vmem:[%s18548_s14 + $0x50] sm:$0xff] }
 0x885   : > { %v11787_v1 = vpop.f32.mrf.mxu0  ;;  %18921 = vst [vmem:[#allocation32_spill] sm:$0xff] %v17390_v19  ;;  %11855 = vmatpush3.msra.mxu1 %v17390_v19  ;;  %v17454_v35 = vpop.f32.mrf.mxu1 }
 0x886   : > { %18917 = vst [vmem:[#allocation19_spill] sm:$0xff] %v17372_v49  ;;  %v17381_v59 = vadd.f32 %v11787_v1, %v17250_v36  ;;  %11856 = vmatprep.subr.mxu1 %v18905_v13 }
 0x887   : > { %v7338_v4 = vpop.f32.mrf.mxu0 }
 0x888   : > { %18919 = vst [vmem:[#allocation30_spill] sm:$0xff] %v17381_v59  ;;  %v17385_v28 = vadd.f32 %v7338_v4, %v17229_v7  ;;  %v17404_v7 = vld [vmem:[%s18548_s14 + $0x48] sm:$0xff] }
 0x889   : > { %v11790_v12 = vpop.f32.mrf.mxu0  ;;  %11941 = vmatmul.mubr.msk.bf16.gmra.mxu0 %vm9913_vm15, %v9908_v51  ;;  %18924 = vst [vmem:[#allocation35_spill] sm:$0xff] %v17404_v7  ;;  %11857 = vmatpush3.msra.mxu1 %v17404_v7  ;;  %v8926_v51 = vpop.f32.mrf.mxu1 }
 0x88a   : > { %18920 = vst [vmem:[#allocation31_spill] sm:$0xff] %v17385_v28  ;;  %v17395_v36 = vadd.f32 %v11790_v12, %v17283_v3  ;;  %11858 = vmatprep.subr.mxu1 %v18905_v13  ;;  %v17414_v3 = vld [vmem:[%s18548_s14 + $0x40] sm:$0xff] }
 0x88b   : > { %v7351_v23 = vpop.f32.mrf.mxu0  ;;  %18926 = vst [vmem:[#allocation37_spill] sm:$0xff] %v17414_v3  ;;  %11859 = vmatpush3.msra.mxu1 %v17414_v3 }
 0x88c   : > { %18922 = vst [vmem:[#allocation33_spill] sm:$0xff] %v17395_v36  ;;  %v17399_v20 = vadd.f32 %v7351_v23, %v17262_v61  ;;  %11860 = vmatprep.subr.mxu1 %v18905_v13 }
 0x88d   : > { %v11791_v42 = vpop.f32.mrf.mxu0  ;;  %11861 = vmatpush3.msra.mxu1 %v17429_v45 }
 0x88e   : > { %18923 = vst [vmem:[#allocation34_spill] sm:$0xff] %v17399_v20  ;;  %v17408_v43 = vadd.f32 %v11791_v42, %v17293_v60  ;;  %11862 = vmatprep.subr.mxu1 %v18905_v13  ;;  %v17459_v42 = vpop.f32.mrf.mxu1 }
 0x88f   : > { %v7354_v61 = vpop.f32.mrf.mxu0 }
 0x890   : > { %18925 = vst [vmem:[#allocation36_spill] sm:$0xff] %v17408_v43  ;;  %v17418_v53 = vadd.f32 %v7354_v61, %v17271_v31 }
 0x891   : > { %v11794_v54 = vpop.f32.mrf.mxu0 }
 0x892   : > { %18927 = vst [vmem:[#allocation11_spill] sm:$0xff] %v17418_v53  ;;  %v17421_v8 = vadd.f32 %v11794_v54, %v7215_v58 }
 0x893   : > { %v7367_v60 = vpop.f32.mrf.mxu0 }
 0x894   : > { %18928 = vst [vmem:[#allocation28_spill] sm:$0xff] %v17421_v8  ;;  %v17424_v32 = vadd.f32 %v7367_v60, %v17305_v18  ;;  %v17443_v18 = vld [vmem:[%s18548_s14 + $0x30] sm:$0xff]  ;;  %v17461_v60 = vpop.f32.mrf.mxu1 }
 0x895   : > { %v11795_v52 = vpop.f32.mrf.mxu0  ;;  %18933 = vst [vmem:[#allocation40_spill] sm:$0xff] %v17443_v18  ;;  %11863 = vmatpush3.msra.mxu1 %v17443_v18 }
 0x896   : > { %18929 = vst [vmem:[#allocation38_spill] sm:$0xff] %v17424_v32  ;;  %v17432_v48 = vadd.f32 %v11795_v52, %v7218_v46  ;;  %11864 = vmatprep.subr.mxu1 %v18905_v13 }
 0x897   : > { %v7370_v31 = vpop.f32.mrf.mxu0  ;;  %11865 = vmatpush3.msra.mxu1 %v17450_v2  ;;  %v17494_v2 = vld [vmem:[%s18548_s14] sm:$0xff] }
 0x898   : > { %18931 = vst [vmem:[#allocation43_spill] sm:$0xff] %v17432_v48  ;;  %v17438_v58 = vadd.f32 %v7370_v31, %v17322_v25  ;;  %11866 = vmatprep.subr.mxu1 %v18905_v13  ;;  %v17466_v31 = vld [vmem:[%s18548_s14 + $0x20] sm:$0xff]  ;;  %18939 = vst [vmem:[#allocation46_spill] sm:$0xff] %v17494_v2 }
 0x899   : > { %v11413_v10 = vpop.f32.mrf.mxu0  ;;  %18935 = vst [vmem:[#allocation15_spill] sm:$0xff] %v17466_v31  ;;  %11867 = vmatpush3.msra.mxu1 %v17466_v31 }
 0x89a   : > { %18932 = vst [vmem:[#allocation41_spill] sm:$0xff] %v17438_v58  ;;  %11868 = vmatprep.subr.mxu1 %v18905_v13 }
 0x89b   : > { %v11414_v47 = vpop.f32.mrf.mxu0 }
 0x89c   : > { %v11415_v46 = vadd.f32 %v11414_v47, %v11413_v10  ;;  %v17478_v47 = vld [vmem:[%s18548_s14 + $0x10] sm:$0xff] }
 0x89d   : > { %v11416_v25 = vpop.f32.mrf.mxu0  ;;  %18937 = vst [vmem:[#allocation44_spill] sm:$0xff] %v17478_v47 }
 0x89e   : > { %v8924_v34 = vadd.f32 %v11415_v46, %v8923_v50  ;;  %v17480_v50 = vpop.f32.mrf.mxu1 }
 0x89f   : > { %v11417_v38 = vpop.f32.mrf.mxu0 }
 0x8a0   : > { %v17457_v1 = vadd.f32 %v8924_v34, %v17243_v57  ;;  %v17472_v57 = vld [vmem:[%s18548_s14 + $0x18] sm:$0xff]  ;;  %v17487_v34 = vld [vmem:[%s18548_s14 + $0x8] sm:$0xff]  ;;  %v8942_v18 = vpop.f32.mrf.mxu1  ;;  %v11418_v53 = vadd.f32 %v11417_v38, %v11416_v25 }
 0x8a1   : > { %v11419_v4 = vpop.f32.mrf.mxu0  ;;  %18936 = vst [vmem:[#allocation21_spill] sm:$0xff] %v17472_v57  ;;  %11869 = vmatpush3.msra.mxu1 %v17472_v57  ;;  %18938 = vst [vmem:[#allocation45_spill] sm:$0xff] %v17487_v34 }
 0x8a2   : > { %11870 = vmatprep.subr.mxu1 %v18905_v13  ;;  %v17500_v3 = vpop.f32.mrf.mxu1  ;;  %v8927_v28 = vadd.f32 %v11418_v53, %v8926_v51  ;;  %v17538_v51 = vld [vmem:[%s18543_s9] ss:$0 sm:$0xff] }
 0x8a3   : > { %v11420_v12 = vpop.f32.mrf.mxu0  ;;  %11871 = vmatpush3.msra.mxu1 %v17478_v47 }
 0x8a4   : > { %11872 = vmatprep.subr.mxu1 %v18905_v13  ;;  %v8955_v19 = vpop.f32.mrf.mxu1  ;;  %v11421_v49 = vadd.f32 %v11420_v12, %v11419_v4  ;;  %v9051_v29 = vadd.f32 %v8927_v28, %v17253_v14 }
 0x8a5   : > { %v11422_v23 = vpop.f32.mrf.mxu0  ;;  %11873 = vmatpush3.msra.mxu1 %v17487_v34 }
 0x8a6   : > { %11874 = vmatprep.subr.mxu1 %v18905_v13  ;;  %v17502_v55 = vpop.f32.mrf.mxu1  ;;  %v8932_v17 = vadd.f32 %v17435_v21, %v11421_v49  ;;  %v17541_v12 = vadd.f32 %v17538_v51, %v9051_v29 }
 0x8a7   : > { %v11423_v61 = vpop.f32.mrf.mxu0  ;;  %11875 = vmatpush3.msra.mxu1 %v17494_v2 }
 0x8a8   : > { %11879 = vmatprep.subr.mxu1 %v18905_v13  ;;  %v8958_v48 = vpop.f32.mrf.mxu1  ;;  %v11424_v26 = vadd.f32 %v11423_v61, %v11422_v23  ;;  %v9052_v14 = vadd.f32 %v8932_v17, %v17237_v40 }
 0x8a9   : > { %v11425_v54 = vpop.f32.mrf.mxu0 }
 0x8aa   : > { %v17504_v58 = vpop.f32.mrf.mxu1  ;;  %v8935_v56 = vadd.f32 %v17454_v35, %v11424_v26  ;;  %v17551_v35 = vadd.f32 %v17538_v51, %v17457_v1  ;;  %v17559_v17 = vadd.f32 %v17538_v51, %v9052_v14 }
 0x8ab   : > { %v11426_v52 = vpop.f32.mrf.mxu0 }
 0x8ac   : > { %v17508_v13 = vpop.f32.mrf.mxu1  ;;  %v11427_v25 = vadd.f32 %v11426_v52, %v11425_v54  ;;  %v9053_v23 = vadd.f32 %v8935_v56, %v17248_v5  ;;  %v9123_v40 = vadd.f32 %v17541_v12, %v17551_v35 }
 0x8ad   : > { %v11428_v10 = vpop.f32.mrf.mxu0 }
 0x8ae   : > { %v17514_v20 = vpop.f32.mrf.mxu1  ;;  %v8940_v49 = vadd.f32 %v11427_v25, %v17461_v60  ;;  %v17566_v5 = vadd.f32 %v17538_v51, %v9053_v23 }
 0x8af   : > { %v11429_v46 = vpop.f32.mrf.mxu0  ;;  %18940 = vst [vmem:[#allocation47_spill] sm:$0xff] %v17514_v20 }
 0x8b0   : > { %v17520_v33 = vpop.f32.mrf.mxu1  ;;  %v11430_v53 = vadd.f32 %v11429_v46, %v11428_v10  ;;  %v9054_v60 = vadd.f32 %v8940_v49, %v17265_v30 }
 0x8b1   : > { %v11431_v31 = vpop.f32.mrf.mxu0 }
 0x8b2   : > { %v17528_v38 = vpop.f32.mrf.mxu1  ;;  %v8943_v61 = vadd.f32 %v11430_v53, %v8942_v18  ;;  %v17572_v46 = vadd.f32 %v17538_v51, %v9054_v60 }
 0x8b3   : > { %v11432_v45 = vpop.f32.mrf.mxu0 }
 0x8b4   : > { %v17545_v28 = vpop.f32.mrf.mxu1  ;;  %v11433_v26 = vadd.f32 %v11432_v45, %v11431_v31  ;;  %v9055_v56 = vadd.f32 %v8943_v61, %v17274_v41 }
 0x8b5   : > { %v11434_v57 = vpop.f32.mrf.mxu0 }
 0x8b6   : > { %v17562_v52 = vpop.f32.mrf.mxu1  ;;  %v8948_v1 = vadd.f32 %v17459_v42, %v11433_v26  ;;  %v17577_v14 = vadd.f32 %v17538_v51, %v9055_v56 }
 0x8b7   : > { %v11435_v47 = vpop.f32.mrf.mxu0 }
 0x8b8   : > { %v11436_v29 = vadd.f32 %v11435_v47, %v11434_v57  ;;  %v9124_v47 = vadd.f32 %v9123_v40, %v17559_v17  ;;  %v8990_v30 = vpop.f32.mrf.mxu1  ;;  %v9056_v53 = vadd.f32 %v8948_v1, %v17259_v22 }
 0x8b9   : > { %v11437_v7 = vpop.f32.mrf.mxu0 }
 0x8ba   : > { %v8951_v10 = vadd.f32 %v17480_v50, %v11436_v29  ;;  %v17581_v26 = vpop.f32.mrf.mxu1  ;;  %v17584_v61 = vadd.f32 %v17538_v51, %v9056_v53 }
 0x8bb   : > { %v11438_v6 = vpop.f32.mrf.mxu0 }
 0x8bc   : > { %v11439_v31 = vadd.f32 %v11438_v6, %v11437_v7  ;;  %v9125_v7 = vadd.f32 %v9124_v47, %v17566_v5  ;;  %v9057_v50 = vadd.f32 %v8951_v10, %v17268_v16  ;;  %v9003_v40 = vpop.f32.mrf.mxu1 }
 0x8bd   : > { %v11440_v15 = vpop.f32.mrf.mxu0 }
 0x8be   : > { %v8956_v42 = vadd.f32 %v11439_v31, %v8955_v19  ;;  %v9126_v49 = vadd.f32 %v9125_v7, %v17572_v46  ;;  %v17612_v56 = vpop.f32.mrf.mxu1 }
 0x8bf   : > { %v11441_v62 = vpop.f32.mrf.mxu0 }
 0x8c0   : > { %v11442_v57 = vadd.f32 %v11441_v62, %v11440_v15  ;;  %v9058_v22 = vadd.f32 %v8956_v42, %v17286_v37  ;;  %v9006_v42 = vpop.f32.mrf.mxu1 }
 0x8c1   : > { %v11443_v11 = vpop.f32.mrf.mxu0 }
 0x8c2   : > { %v8959_v62 = vadd.f32 %v11442_v57, %v8958_v48  ;;  %v17600_v60 = vadd.f32 %v17538_v51, %v9058_v22 }
 0x8c3   : > { %v11444_v34 = vpop.f32.mrf.mxu0 }
 0x8c4   : > { %v11445_v6 = vadd.f32 %v11444_v34, %v11443_v11  ;;  %v9127_v34 = vadd.f32 %v9126_v49, %v17577_v14 }
 0x8c5   : > { %v11446_v8 = vpop.f32.mrf.mxu0 }
 0x8c6   : > { %v8964_v11 = vadd.f32 %v17500_v3, %v11445_v6  ;;  %v9128_v3 = vadd.f32 %v9127_v34, %v17584_v61  ;;  %v18942_v6 = vld [vmem:[#allocation47_spill] sm:$0xff]  ;;  %v11838_v34 = vpop.f32.mrf.mxu1 }
 0x8c7   : > { %v11447_v32 = vpop.f32.mrf.mxu0 }
 0x8c8   : > { %v11448_v15 = vadd.f32 %v11447_v32, %v11446_v8  ;;  %v17592_v8 = vadd.f32 %v17538_v51, %v9057_v50  ;;  %v9059_v32 = vadd.f32 %v8959_v62, %v17296_v0 }
 0x8c9   : > { %v17506_v2 = vpop.f32.mrf.mxu0 }
 0x8ca   : > { %v8967_v48 = vadd.f32 %v17502_v55, %v11448_v15  ;;  %v9129_v55 = vadd.f32 %v9128_v3, %v17592_v8  ;;  %v17608_v31 = vadd.f32 %v17538_v51, %v9059_v32  ;;  %v18944_v32 = vld [vmem:[#allocation22_spill] sm:$0xff] }
 0x8cb   : > { %v17510_v43 = vpop.f32.mrf.mxu0 }
 0x8cc   : > { %v11451_v19 = vadd.f32 %v17510_v43, %v17506_v2  ;;  %v9060_v43 = vadd.f32 %v8964_v11, %v17280_v27 }
 0x8cd   : > { %v17512_v36 = vpop.f32.mrf.mxu0 }
 0x8ce   : > { %v8972_v2 = vadd.f32 %v11451_v19, %v17508_v13  ;;  %v9130_v13 = vadd.f32 %v9129_v55, %v17600_v60 }
 0x8cf   : > { %v17516_v59 = vpop.f32.mrf.mxu0 }
 0x8d0   : > { %v11454_v29 = vadd.f32 %v17516_v59, %v17512_v36  ;;  %v9061_v59 = vadd.f32 %v8967_v48, %v17291_v24 }
 0x8d1   : > { %v17518_v44 = vpop.f32.mrf.mxu0 }
 0x8d2   : > { %v8975_v36 = vadd.f32 %v11454_v29, %v17520_v33  ;;  %v9131_v33 = vadd.f32 %v9130_v13, %v17608_v31  ;;  %v17626_v53 = vadd.f32 %v17538_v51, %v9061_v59  ;;  %v9019_v59 = vpop.f32.mrf.mxu1 }
 0x8d3   : > { %v17522_v63 = vpop.f32.mrf.mxu0 }
 0x8d4   : > { %v11457_v1 = vadd.f32 %v17522_v63, %v17518_v44  ;;  %v17618_v63 = vadd.f32 %v17538_v51, %v9060_v43  ;;  %v9062_v44 = vadd.f32 %v8972_v2, %v17308_v39  ;;  %v18945_v2 = vld [vmem:[#allocation25_spill] sm:$0xff] }
 0x8d5   : > { %v17524_v9 = vpop.f32.mrf.mxu0 }
 0x8d6   : > { %v8980_v57 = vadd.f32 %v17504_v58, %v11457_v1  ;;  %v9132_v39 = vadd.f32 %v9131_v33, %v17618_v63  ;;  %v17633_v58 = vadd.f32 %v17538_v51, %v9062_v44 }
 0x8d7   : > { %v17530_v20 = vpop.f32.mrf.mxu0 }
 0x8d8   : > { %v11460_v27 = vadd.f32 %v17530_v20, %v17524_v9  ;;  %v18941_v9 = vld [vmem:[#allocation24_spill] sm:$0xff]  ;;  %v9133_v11 = vadd.f32 %v9132_v39, %v17626_v53 }
 0x8d9   : > { %v17533_v4 = vpop.f32.mrf.mxu0  ;;  %v9063_v20 = vadd.f32 %v8975_v36, %v18941_v9  ;;  %v11839_v9 = vpop.f32.mrf.mxu1 }
 0x8da   : > { %v8983_v7 = vadd.f32 %v18942_v6, %v11460_v27  ;;  %v9134_v3 = vadd.f32 %v9133_v11, %v17633_v58 }
 0x8db   : > { %v17547_v21 = vpop.f32.mrf.mxu0  ;;  %v17639_v19 = vadd.f32 %v17538_v51, %v9063_v20 }
 0x8dc   : > { %v11463_v24 = vadd.f32 %v17547_v21, %v17533_v4  ;;  %v18943_v4 = vld [vmem:[#allocation20_spill] sm:$0xff] }
 0x8dd   : > { %v17554_v54 = vpop.f32.mrf.mxu0  ;;  %v9064_v21 = vadd.f32 %v8980_v57, %v18943_v4  ;;  %v9135_v55 = vadd.f32 %v9134_v3, %v17639_v19 }
 0x8de   : > { %v8988_v15 = vadd.f32 %v11463_v24, %v17545_v28 }
 0x8df   : > { %v11465_v45 = vpop.f32.mrf.mxu0  ;;  %v17644_v43 = vadd.f32 %v17538_v51, %v9064_v21  ;;  %v18949_v21 = vld [vmem:[#allocation19_spill] sm:$0xff] }
 0x8e0   : > { %v11466_v50 = vadd.f32 %v11465_v45, %v17554_v54  ;;  %v9065_v54 = vadd.f32 %v8983_v7, %v18944_v32  ;;  %v9066_v28 = vadd.f32 %v8988_v15, %v18945_v2  ;;  %v18948_v7 = vld [vmem:[#allocation10_spill] sm:$0xff] }
 0x8e1   : > { %v11467_v18 = vpop.f32.mrf.mxu0  ;;  %v9136_v44 = vadd.f32 %v9135_v55, %v17644_v43 }
 0x8e2   : > { %v8991_v45 = vadd.f32 %v11466_v50, %v8990_v30  ;;  %v17650_v36 = vadd.f32 %v17538_v51, %v9065_v54  ;;  %v18946_v30 = vld [vmem:[#allocation14_spill] sm:$0xff]  ;;  %v17656_v57 = vadd.f32 %v17538_v51, %v9066_v28  ;;  %v18951_v28 = vld [vmem:[#allocation17_spill] sm:$0xff] }
 0x8e3   : > { %v11468_v25 = vpop.f32.mrf.mxu0 }
 0x8e4   : > { %v11469_v49 = vadd.f32 %v11468_v25, %v11467_v18  ;;  %v9137_v20 = vadd.f32 %v9136_v44, %v17650_v36 }
 0x8e5   : > { %v11470_v41 = vpop.f32.mrf.mxu0 }
 0x8e6   : > { %v8996_v18 = vadd.f32 %v17528_v38, %v11469_v49  ;;  %v18947_v38 = vld [vmem:[#allocation26_spill] sm:$0xff]  ;;  %v9138_v39 = vadd.f32 %v9137_v20, %v17656_v57  ;;  %v9022_v49 = vpop.f32.mrf.mxu1 }
 0x8e7   : > { %v11471_v23 = vpop.f32.mrf.mxu0 }
 0x8e8   : > { %v11472_v48 = vadd.f32 %v11471_v23, %v11470_v41  ;;  %v9067_v41 = vadd.f32 %v8991_v45, %v18946_v30 }
 0x8e9   : > { %v11473_v16 = vpop.f32.mrf.mxu0 }
 0x8ea   : > { %v8999_v23 = vadd.f32 %v17562_v52, %v11472_v48  ;;  %v17661_v6 = vadd.f32 %v17538_v51, %v9067_v41 }
 0x8eb   : > { %v11474_v37 = vpop.f32.mrf.mxu0 }
 0x8ec   : > { %v11475_v25 = vadd.f32 %v11474_v37, %v11473_v16  ;;  %v9068_v16 = vadd.f32 %v8996_v18, %v18947_v38  ;;  %v9069_v52 = vadd.f32 %v8999_v23, %v18948_v7  ;;  %v9139_v11 = vadd.f32 %v9138_v39, %v17661_v6  ;;  %v18952_v23 = vld [vmem:[#allocation30_spill] sm:$0xff] }
 0x8ed   : > { %v11476_v0 = vpop.f32.mrf.mxu0 }
 0x8ee   : > { %v9004_v37 = vadd.f32 %v11475_v25, %v9003_v40  ;;  %v17666_v4 = vadd.f32 %v17538_v51, %v9068_v16  ;;  %v17672_v32 = vadd.f32 %v17538_v51, %v9069_v52 }
 0x8ef   : > { %v11477_v10 = vpop.f32.mrf.mxu0 }
 0x8f0   : > { %v11478_v27 = vadd.f32 %v11477_v10, %v11476_v0  ;;  %v9070_v40 = vadd.f32 %v9004_v37, %v18949_v21 }
 0x8f1   : > { %v11479_v47 = vpop.f32.mrf.mxu0 }
 0x8f2   : > { %v9007_v0 = vadd.f32 %v11478_v27, %v9006_v42  ;;  %v18950_v42 = vld [vmem:[#allocation31_spill] sm:$0xff]  ;;  %v17678_v3 = vadd.f32 %v17538_v51, %v9070_v40 }
 0x8f3   : > { %v11480_v62 = vpop.f32.mrf.mxu0 }
 0x8f4   : > { %v11481_v33 = vadd.f32 %v11480_v62, %v11479_v47  ;;  %v9071_v54 = vadd.f32 %v9007_v0, %v18950_v42  ;;  %v18954_v0 = vld [vmem:[#allocation11_spill] sm:$0xff] }
 0x8f5   : > { %v11482_v22 = vpop.f32.mrf.mxu0 }
 0x8f6   : > { %v9012_v47 = vadd.f32 %v17581_v26, %v11481_v33  ;;  %v11842_v26 = vpop.f32.mrf.mxu1  ;;  %v17683_v30 = vadd.f32 %v17538_v51, %v9071_v54 }
 0x8f7   : > { %v11483_v29 = vpop.f32.mrf.mxu0 }
 0x8f8   : > { %v11484_v50 = vadd.f32 %v11483_v29, %v11482_v22  ;;  %v9140_v29 = vadd.f32 %v9139_v11, %v17666_v4  ;;  %v9072_v18 = vadd.f32 %v9012_v47, %v18951_v28  ;;  %v9035_v16 = vpop.f32.mrf.mxu1 }
 0x8f9   : > { %v11485_v1 = vpop.f32.mrf.mxu0 }
 0x8fa   : > { %v9015_v45 = vadd.f32 %v17612_v56, %v11484_v50  ;;  %v9141_v55 = vadd.f32 %v9140_v29, %v17672_v32  ;;  %v17688_v37 = vadd.f32 %v17538_v51, %v9072_v18  ;;  %v11843_v40 = vpop.f32.mrf.mxu1  ;;  %v18957_v18 = vld [vmem:[#allocation38_spill] sm:$0xff] }
 0x8fb   : > { %v11486_v13 = vpop.f32.mrf.mxu0 }
 0x8fc   : > { %v11487_v62 = vadd.f32 %v11486_v13, %v11485_v1  ;;  %v9073_v56 = vadd.f32 %v9015_v45, %v18952_v23  ;;  %v9142_v44 = vadd.f32 %v9141_v55, %v17678_v3 }
 0x8fd   : > { %v11488_v24 = vpop.f32.mrf.mxu0 }
 0x8fe   : > { %v9020_v25 = vadd.f32 %v11487_v62, %v9019_v59  ;;  %v9143_v20 = vadd.f32 %v9142_v44, %v17683_v30  ;;  %v17693_v52 = vadd.f32 %v17538_v51, %v9073_v56  ;;  %v18955_v62 = vld [vmem:[#allocation33_spill] sm:$0xff] }
 0x8ff   : > { %v11489_v10 = vpop.f32.mrf.mxu0  ;;  %v18958_v56 = vld [vmem:[#allocation41_spill] sm:$0xff] }
 0x900   : > { %v11490_v48 = vadd.f32 %v11489_v10, %v11488_v24  ;;  %v18953_v24 = vld [vmem:[#allocation34_spill] sm:$0xff] }
 0x901   : > { %v11491_v15 = vpop.f32.mrf.mxu0  ;;  %v9074_v59 = vadd.f32 %v9020_v25, %v18953_v24 }
 0x902   : > { %v9023_v27 = vadd.f32 %v11490_v48, %v9022_v49  ;;  %v9038_v48 = vpop.f32.mrf.mxu1 }
 0x903   : > { %v11492_v22 = vpop.f32.mrf.mxu0  ;;  %v17698_v47 = vadd.f32 %v17538_v51, %v9074_v59 }
 0x904   : > { %v11493_v1 = vadd.f32 %v11492_v22, %v11491_v15  ;;  %v9075_v10 = vadd.f32 %v9023_v27, %v18954_v0  ;;  %v9144_v15 = vadd.f32 %v9143_v20, %v17688_v37  ;;  %v18956_v22 = vld [vmem:[#allocation36_spill] sm:$0xff] }
 0x905   : > { %v11494_v2 = vpop.f32.mrf.mxu0 }
 0x906   : > { %v9028_v33 = vadd.f32 %v11838_v34, %v11493_v1  ;;  %v9145_v42 = vadd.f32 %v9144_v15, %v17693_v52  ;;  %v17703_v54 = vadd.f32 %v17538_v51, %v9075_v10 }
 0x907   : > { %v11495_v41 = vpop.f32.mrf.mxu0 }
 0x908   : > { %v11496_v13 = vadd.f32 %v11495_v41, %v11494_v2  ;;  %v9076_v49 = vadd.f32 %v9028_v33, %v18955_v62  ;;  %v9146_v2 = vadd.f32 %v9145_v42, %v17698_v47  ;;  %v18960_v62 = vld [vmem:[#allocation43_spill] sm:$0xff] }
 0x909   : > { %v11497_v38 = vpop.f32.mrf.mxu0 }
 0x90a   : > { %v9031_v50 = vadd.f32 %v11839_v9, %v11496_v13  ;;  %v17708_v28 = vadd.f32 %v17538_v51, %v9076_v49  ;;  %v9147_v41 = vadd.f32 %v9146_v2, %v17703_v54  ;;  %v18961_v2 = vld [vmem:[#allocation18_spill] sm:$0xff] }
 0x90b   : > { %v11498_v7 = vpop.f32.mrf.mxu0 }
 0x90c   : > { %v11499_v39 = vadd.f32 %v11498_v7, %v11497_v38  ;;  %v9077_v45 = vadd.f32 %v9031_v50, %v18956_v22  ;;  %v9148_v38 = vadd.f32 %v9147_v41, %v17708_v28  ;;  %v18959_v7 = vld [vmem:[#allocation28_spill] sm:$0xff]  ;;  %v18968_v41 = vld [vmem:[#allocation35_spill] sm:$0xff] }
 0x90d   : > { %v11500_v21 = vpop.f32.mrf.mxu0 }
 0x90e   : > { %v9036_v34 = vadd.f32 %v11499_v39, %v9035_v16  ;;  %v17713_v23 = vadd.f32 %v17538_v51, %v9077_v45 }
 0x90f   : > { %v11501_v11 = vpop.f32.mrf.mxu0 }
 0x910   : > { %v11502_v9 = vadd.f32 %v11501_v11, %v11500_v21  ;;  %v9078_v25 = vadd.f32 %v9036_v34, %v18957_v18  ;;  %v9149_v33 = vadd.f32 %v9148_v38, %v17713_v23  ;;  %v18963_v18 = vld [vmem:[#allocation23_spill] sm:$0xff] }
 0x911   : > { %v11503_v29 = vpop.f32.mrf.mxu0  ;;  %v18973_v38 = vld [vmem:[#allocation15_spill] sm:$0xff] }
 0x912   : > { %v9039_v1 = vadd.f32 %v11502_v9, %v9038_v48  ;;  %v17718_v16 = vadd.f32 %v17538_v51, %v9078_v25  ;;  %v18965_v25 = vld [vmem:[#allocation13_spill] sm:$0xff] }
 0x913   : > { %v11504_v55 = vpop.f32.mrf.mxu0 }
 0x914   : > { %v9079_v27 = vadd.f32 %v9039_v1, %v18958_v56  ;;  %v11505_v13 = vadd.f32 %v11504_v55, %v11503_v29  ;;  %v9150_v50 = vadd.f32 %v9149_v33, %v17718_v16  ;;  %v18966_v1 = vld [vmem:[#allocation29_spill] sm:$0xff]  ;;  %v18967_v55 = vld [vmem:[#allocation32_spill] sm:$0xff] }
 0x915   : > { %v11506_v44 = vpop.f32.mrf.mxu0  ;;  %v18969_v56 = vld [vmem:[#allocation37_spill] sm:$0xff] }
 0x916   : > { %v9044_v24 = vadd.f32 %v11842_v26, %v11505_v13  ;;  %v17722_v20 = vadd.f32 %v17538_v51, %v9079_v27  ;;  %v18970_v27 = vld [vmem:[#allocation39_spill] sm:$0xff]  ;;  %v18971_v13 = vld [vmem:[#allocation40_spill] sm:$0xff]  ;;  %v18976_v33 = vld [vmem:[#allocation45_spill] sm:$0xff] }
 0x917   : > { %v11507_v59 = vpop.f32.mrf.mxu0 }
 0x918   : > { %v9080_v0 = vadd.f32 %v9044_v24, %v18959_v7  ;;  %v11508_v10 = vadd.f32 %v11507_v59, %v11506_v44  ;;  %v9151_v15 = vadd.f32 %v9150_v50, %v17722_v20  ;;  %v18972_v44 = vld [vmem:[#allocation42_spill] sm:$0xff]  ;;  %v18974_v24 = vld [vmem:[#allocation21_spill] sm:$0xff]  ;;  %v18975_v59 = vld [vmem:[#allocation44_spill] sm:$0xff] }
 0x919   : > { %v18977_v7 = vld [vmem:[#allocation46_spill] sm:$0xff] }
 0x91a   : > { %v17727_v39 = vadd.f32 %v17538_v51, %v9080_v0  ;;  %v9047_v21 = vadd.f32 %v11843_v40, %v11508_v10  ;;  %v18962_v40 = vmov 0.0   ;;  %v12499_v0 = vld [vmem:[%s18546_s12] sm:$0x3] }
 0x91c   : > { %v9081_v49 = vadd.f32 %v9047_v21, %v18960_v62  ;;  %v9152_v26 = vadd.f32 %v9151_v15, %v17727_v39  ;;  %v18979_v15 = vld [vmem:[#allocation12_spill] sm:$0xff] }
 0x91e   : > { %v17733_v34 = vadd.f32 %v17538_v51, %v9081_v49  ;;  %v18964_v51 = vld [vmem:[#allocation27_spill] sm:$0xff] }
 0x920   : > { %v9153_v11 = vadd.f32 %v9152_v26, %v17733_v34 }
 0x922   : > { %v9154_v42 = vrot.slane %v9153_v11, 4 }
 0x924   : > { %v9155_v22 = vadd.f32 %v9154_v42, %v9153_v11 }
 0x926   : > { %v9156_v45 = vrot.slane %v9155_v22, 2 }
 0x928   : > { %v9157_v9 = vadd.f32 %v9156_v45, %v9155_v22 }
 0x92a   : > { %v9158_v48 = vrot.slane %v9157_v9, 1 }
 0x92c   : > { %v9159_v29 = vadd.f32 %v9158_v48, %v9157_v9 }
 0x92e   : > { %11877 = vmatmul.mubr.f32.vlgmr.msra.gmra.mxu1 %v9159_v29 }
 0x92f   : > { %11880 = vmatpush3.msra.mxu1 %v18961_v2  ;;  %11911 = vmatprep.mubr.msk.f32.mxu1 %vm12572_vm6, %v18962_v40 }
 0x930   : > { %11881 = vmatprep.subr.mxu1 %v18962_v40 }
 0x931   : > { %11882 = vmatpush3.msra.mxu1 %v18963_v18 }
 0x932   : > { %11883 = vmatprep.subr.mxu1 %v18962_v40 }
 0x933   : > { %11884 = vmatpush3.msra.mxu1 %v18964_v51 }
 0x934   : > { %11885 = vmatprep.subr.mxu1 %v18962_v40 }
 0x935   : > { %11886 = vmatpush3.msra.mxu1 %v18965_v25 }
 0x936   : > { %11887 = vmatprep.subr.mxu1 %v18962_v40 }
 0x937   : > { %11888 = vmatpush3.msra.mxu1 %v18966_v1 }
 0x938   : > { %11889 = vmatprep.subr.mxu1 %v18962_v40 }
 0x939   : > { %11890 = vmatpush3.msra.mxu1 %v18967_v55 }
 0x93a   : > { %11891 = vmatprep.subr.mxu1 %v18962_v40 }
 0x93b   : > { %11892 = vmatpush3.msra.mxu1 %v18968_v41 }
 0x93c   : > { %11893 = vmatprep.subr.mxu1 %v18962_v40 }
 0x93d   : > { %11894 = vmatpush3.msra.mxu1 %v18969_v56 }
 0x93e   : > { %11895 = vmatprep.subr.mxu1 %v18962_v40 }
 0x93f   : > { %11896 = vmatpush3.msra.mxu1 %v18970_v27 }
 0x940   : > { %11897 = vmatprep.subr.mxu1 %v18962_v40 }
 0x941   : > { %11898 = vmatpush3.msra.mxu1 %v18971_v13 }
 0x942   : > { %11899 = vmatprep.subr.mxu1 %v18962_v40 }
 0x943   : > { %11900 = vmatpush3.msra.mxu1 %v18972_v44 }
 0x944   : > { %11901 = vmatprep.subr.mxu1 %v18962_v40 }
 0x945   : > { %11902 = vmatpush3.msra.mxu1 %v18973_v38 }
 0x946   : > { %11903 = vmatprep.subr.mxu1 %v18962_v40 }
 0x947   : > { %11904 = vmatpush3.msra.mxu1 %v18974_v24 }
 0x948   : > { %11905 = vmatprep.subr.mxu1 %v18962_v40 }
 0x949   : > { %11906 = vmatpush3.msra.mxu1 %v18975_v59 }
 0x94a   : > { %11907 = vmatprep.subr.mxu1 %v18962_v40 }
 0x94b   : > { %11908 = vmatpush3.msra.mxu1 %v18976_v33 }
 0x94c   : > { %11909 = vmatprep.subr.mxu1 %v18962_v40 }
 0x94d   : > { %11910 = vmatpush3.msra.mxu1 %v18977_v7 }
 0x94e   : > { %11959 = vmatprep.subr.msk.bf16.mxu1 %vm18978_vm4, %v12499_v0 }
 0x9ee   : > { %v9242_v10 = vpop.f32.mrf.mxu1 }
 0x9ef   : > { %v9246_v21 = vmul.f32 0.001953125, %v9242_v10 }
 0x9f0   : > { %v11878_v50 = vpop.f32.mrf.mxu1 }
 0x9f1   : > { %v17774_v62 = vrot.slane %v9246_v21, %v18979_v15 }
 0x9f3   : > { %v17778_v49 = vsub.f32 %v17551_v35, %v17774_v62  ;;  %v17782_v26 = vsub.f32 %v17541_v12, %v17774_v62  ;;  %v17786_v11 = vsub.f32 %v17559_v17, %v17774_v62  ;;  %v17794_v45 = vsub.f32 %v17566_v5, %v17774_v62 }
 0x9f4   : > { %v17798_v35 = vsub.f32 %v17572_v46, %v17774_v62  ;;  %v17804_v17 = vsub.f32 %v17577_v14, %v17774_v62  ;;  %v17810_v5 = vsub.f32 %v17584_v61, %v17774_v62  ;;  %v17816_v40 = vsub.f32 %v17592_v8, %v17774_v62 }
 0x9f5   : > { %v9283_v42 = vmul.f32 %v17778_v49, %v17778_v49  ;;  %v9284_v22 = vmul.f32 %v17782_v26, %v17782_v26  ;;  %v9285_v12 = vmul.f32 %v17786_v11, %v17786_v11  ;;  %v9286_v48 = vmul.f32 %v17794_v45, %v17794_v45 }
 0x9f6   : > { %v9287_v46 = vmul.f32 %v17798_v35, %v17798_v35  ;;  %v9288_v14 = vmul.f32 %v17804_v17, %v17804_v17  ;;  %v17822_v51 = vsub.f32 %v17600_v60, %v17774_v62  ;;  %v9289_v61 = vmul.f32 %v17810_v5, %v17810_v5 }
 0x9f7   : > { %v9315_v9 = vadd.f32 %v9284_v22, %v9283_v42  ;;  %v17828_v1 = vsub.f32 %v17608_v31, %v17774_v62  ;;  %v9290_v8 = vmul.f32 %v17816_v40, %v17816_v40  ;;  %v17834_v41 = vsub.f32 %v17618_v63, %v17774_v62 }
 0x9f8   : > { %v9291_v60 = vmul.f32 %v17822_v51, %v17822_v51  ;;  %v17840_v27 = vsub.f32 %v17626_v53, %v17774_v62  ;;  %v17846_v44 = vsub.f32 %v17633_v58, %v17774_v62  ;;  %v17852_v24 = vsub.f32 %v17639_v19, %v17774_v62 }
 0x9f9   : > { %v9316_v29 = vadd.f32 %v9315_v9, %v9285_v12  ;;  %v9292_v31 = vmul.f32 %v17828_v1, %v17828_v1  ;;  %v9293_v63 = vmul.f32 %v17834_v41, %v17834_v41  ;;  %v17858_v33 = vsub.f32 %v17644_v43, %v17774_v62 }
 0x9fa   : > { %v9294_v53 = vmul.f32 %v17840_v27, %v17840_v27  ;;  %v9295_v58 = vmul.f32 %v17846_v44, %v17846_v44  ;;  %v17864_v0 = vsub.f32 %v17650_v36, %v17774_v62  ;;  %v9296_v19 = vmul.f32 %v17852_v24, %v17852_v24 }
 0x9fb   : > { %v9317_v2 = vadd.f32 %v9316_v29, %v9286_v48  ;;  %v17870_v50 = vsub.f32 %v17656_v57, %v17774_v62  ;;  %v9297_v43 = vmul.f32 %v17858_v33, %v17858_v33  ;;  %v17876_v42 = vsub.f32 %v17661_v6, %v17774_v62 }
 0x9fc   : > { %v9298_v36 = vmul.f32 %v17864_v0, %v17864_v0  ;;  %v17882_v12 = vsub.f32 %v17666_v4, %v17774_v62  ;;  %v17888_v48 = vsub.f32 %v17672_v32, %v17774_v62 }
 0x9fd   : > { %v9318_v18 = vadd.f32 %v9317_v2, %v9287_v46  ;;  %v9299_v57 = vmul.f32 %v17870_v50, %v17870_v50  ;;  %v9300_v6 = vmul.f32 %v17876_v42, %v17876_v42  ;;  %v17894_v46 = vsub.f32 %v17678_v3, %v17774_v62 }
 0x9fe   : > { %v9301_v4 = vmul.f32 %v17882_v12, %v17882_v12  ;;  %v9302_v32 = vmul.f32 %v17888_v48, %v17888_v48 }
 0x9ff   : > { %v9319_v25 = vadd.f32 %v9318_v18, %v9288_v14  ;;  %v17900_v14 = vsub.f32 %v17683_v30, %v17774_v62  ;;  %v9303_v3 = vmul.f32 %v17894_v46, %v17894_v46 }
 0xa01   : > { %v9320_v55 = vadd.f32 %v9319_v25, %v9289_v61  ;;  %v17906_v61 = vsub.f32 %v17688_v37, %v17774_v62  ;;  %v9304_v30 = vmul.f32 %v17900_v14, %v17900_v14 }
 0xa03   : > { %v9321_v56 = vadd.f32 %v9320_v55, %v9290_v8  ;;  %v17912_v8 = vsub.f32 %v17693_v52, %v17774_v62  ;;  %v9305_v37 = vmul.f32 %v17906_v61, %v17906_v61 }
 0xa05   : > { %v9322_v13 = vadd.f32 %v9321_v56, %v9291_v60  ;;  %v17918_v60 = vsub.f32 %v17698_v47, %v17774_v62  ;;  %v9306_v52 = vmul.f32 %v17912_v8, %v17912_v8 }
 0xa07   : > { %v9323_v38 = vadd.f32 %v9322_v13, %v9292_v31  ;;  %v17924_v31 = vsub.f32 %v17703_v54, %v17774_v62  ;;  %v9307_v47 = vmul.f32 %v17918_v60, %v17918_v60 }
 0xa09   : > { %v9324_v59 = vadd.f32 %v9323_v38, %v9293_v63  ;;  %v17930_v63 = vsub.f32 %v17708_v28, %v17774_v62  ;;  %v9308_v54 = vmul.f32 %v17924_v31, %v17924_v31 }
 0xa0b   : > { %v9325_v7 = vadd.f32 %v9324_v59, %v9294_v53  ;;  %v17936_v53 = vsub.f32 %v17713_v23, %v17774_v62  ;;  %v9309_v28 = vmul.f32 %v17930_v63, %v17930_v63 }
 0xa0d   : > { %v9326_v10 = vadd.f32 %v9325_v7, %v9295_v58  ;;  %v17942_v58 = vsub.f32 %v17718_v16, %v17774_v62  ;;  %v9310_v23 = vmul.f32 %v17936_v53, %v17936_v53 }
 0xa0f   : > { %v9327_v21 = vadd.f32 %v9326_v10, %v9296_v19  ;;  %v17948_v19 = vsub.f32 %v17722_v20, %v17774_v62  ;;  %v9311_v16 = vmul.f32 %v17942_v58, %v17942_v58 }
 0xa11   : > { %v9328_v22 = vadd.f32 %v9327_v21, %v9297_v43  ;;  %v17954_v43 = vsub.f32 %v17727_v39, %v17774_v62  ;;  %v9312_v20 = vmul.f32 %v17948_v19, %v17948_v19 }
 0xa13   : > { %v9329_v9 = vadd.f32 %v9328_v22, %v9298_v36  ;;  %v17960_v36 = vsub.f32 %v17733_v34, %v17774_v62  ;;  %v9910_v34 = vpop.permute.xlu1 %9909 }
 0xa15   : > { %v9330_v29 = vadd.f32 %v9329_v9, %v9299_v57  ;;  %v9313_v57 = vmul.f32 %v17954_v43, %v17954_v43  ;;  %v9314_v39 = vmul.f32 %v17960_v36, %v17960_v36 }
 0xa17   : > { %v9331_v2 = vadd.f32 %v9330_v29, %v9300_v6 }
 0xa19   : > { %v9332_v18 = vadd.f32 %v9331_v2, %v9301_v4 }
 0xa1b   : > { %v9333_v25 = vadd.f32 %v9332_v18, %v9302_v32 }
 0xa1d   : > { %v9334_v55 = vadd.f32 %v9333_v25, %v9303_v3  ;;  %v18980_v25 = vld [vmem:[#allocation16_spill] sm:$0xff] }
 0xa1f   : > { %v9335_v56 = vadd.f32 %v9334_v55, %v9304_v30  ;;  %v9912_v30 = vpop.permute.xlu1 %9911 }
 0xa21   : > { %v9336_v13 = vadd.f32 %v9335_v56, %v9305_v37  ;;  %v17971_v37 = vpop.f32.mrf.mxu0 }
 0xa23   : > { %v9337_v38 = vadd.f32 %v9336_v13, %v9306_v52  ;;  %v17973_v13 = vpop.f32.mrf.mxu0 }
 0xa25   : > { %v9338_v59 = vadd.f32 %v9337_v38, %v9307_v47  ;;  %v17975_v38 = vpop.f32.mrf.mxu0 }
 0xa27   : > { %v9339_v7 = vadd.f32 %v9338_v59, %v9308_v54  ;;  %v17977_v54 = vpop.f32.mrf.mxu0 }
 0xa29   : > { %v9340_v10 = vadd.f32 %v9339_v7, %v9309_v28  ;;  %v17979_v59 = vpop.f32.mrf.mxu0 }
 0xa2b   : > { %v9341_v21 = vadd.f32 %v9340_v10, %v9310_v23  ;;  %v17981_v28 = vpop.f32.mrf.mxu0 }
 0xa2d   : > { %v9342_v22 = vadd.f32 %v9341_v21, %v9311_v16  ;;  %v17983_v23 = vpop.f32.mrf.mxu0 }
 0xa2f   : > { %v9343_v9 = vadd.f32 %v9342_v22, %v9312_v20  ;;  %v17988_v16 = vpop.f32.mrf.mxu0 }
 0xa31   : > { %v9344_v6 = vadd.f32 %v9343_v9, %v9313_v57  ;;  %v17999_v57 = vld [vmem:[%s18544_s10] ss:$0 sm:$0xff] }
 0xa33   : > { %v9345_v29 = vadd.f32 %v9344_v6, %v9314_v39  ;;  %v18013_v6 = vpop.f32.mrf.mxu0 }
 0xa35   : > { %v9346_v4 = vrot.slane %v9345_v29, 4 }
 0xa37   : > { %v9347_v2 = vadd.f32 %v9346_v4, %v9345_v29 }
 0xa39   : > { %v9348_v32 = vrot.slane %v9347_v2, 2 }
 0xa3b   : > { %v9349_v18 = vadd.f32 %v9348_v32, %v9347_v2 }
 0xa3d   : > { %v9350_v3 = vrot.slane %v9349_v18, 1 }
 0xa3f   : > { %v9351_v62 = vadd.f32 %v9350_v3, %v9349_v18 }
 0xa41   : > { %11912 = vmatmul.mubr.f32.vlgmr.msra.gmra.mxu1 %v9351_v62 }
 0xa42   : > { %11955 = vmatpush3.bf16.msra.mxu1 %v18980_v25  ;;  %11944 = vmatprep.mubr.msk.bf16.mxu1 %vm9913_vm15, %v9910_v34 }
 0xa45   : > { %11945 = vmatmul.mubr.msk.bf16.vlgmr.msra.gmra.mxu1 %vm9913_vm15, %v9912_v30 }
 0xb01   : > { %v9418_v55 = vpop.f32.mrf.mxu1 }
 0xb02   : > { %v9422_v52 = vmul.f32 0.001953125, %v9418_v55 }
 0xb03   : > { %v11913_v56 = vpop.f32.mrf.mxu1 }
 0xb04   : > { %v9423_v47 = vadd.f32 1e-05, %v9422_v52 }
 0xb06   : > { %12368 = vrsqrt.f32 %v9423_v47 }
 0xb13   : > { %v12369_v7 = vpop.eup %12368 }
 0xb14   : > { %v17986_v10 = vrot.slane %v12369_v7, %v18979_v15 }
 0xb16   : > { %v9429_v21 = vmul.f32 %v17986_v10, %v17778_v49  ;;  %v9430_v20 = vmul.f32 %v17986_v10, %v17782_v26  ;;  %v9431_v22 = vmul.f32 %v17986_v10, %v17786_v11  ;;  %v9432_v15 = vmul.f32 %v17986_v10, %v17794_v45 }
 0xb17   : > { %v9433_v9 = vmul.f32 %v17986_v10, %v17798_v35  ;;  %v9434_v49 = vmul.f32 %v17986_v10, %v17804_v17  ;;  %v9435_v26 = vmul.f32 %v17986_v10, %v17810_v5  ;;  %v9436_v11 = vmul.f32 %v17986_v10, %v17816_v40 }
 0xb18   : > { %v9437_v39 = vmul.f32 %v17986_v10, %v17822_v51  ;;  %v9438_v45 = vmul.f32 %v17986_v10, %v17828_v1  ;;  %v9439_v35 = vmul.f32 %v17986_v10, %v17834_v41  ;;  %v9440_v17 = vmul.f32 %v17986_v10, %v17840_v27  ;;  %v18031_v1 = vld [vmem:[%s18545_s11] ss:$0 sm:$0xff] }
 0xb19   : > { %v9441_v5 = vmul.f32 %v17986_v10, %v17846_v44  ;;  %v9442_v40 = vmul.f32 %v17986_v10, %v17852_v24  ;;  %v9467_v29 = vmul.f32 %v17999_v57, %v9429_v21  ;;  %v9468_v51 = vmul.f32 %v17999_v57, %v9430_v20 }
 0xb1a   : > { %v9469_v4 = vmul.f32 %v17999_v57, %v9431_v22  ;;  %v9443_v41 = vmul.f32 %v17986_v10, %v17858_v33  ;;  %v9444_v27 = vmul.f32 %v17986_v10, %v17864_v0  ;;  %v9445_v44 = vmul.f32 %v17986_v10, %v17870_v50  ;;  %v18047_v33 = vpop.f32.mrf.mxu0 }
 0xb1b   : > { %v9470_v24 = vmul.f32 %v17999_v57, %v9432_v15  ;;  %v9446_v2 = vmul.f32 %v17986_v10, %v17876_v42  ;;  %v9447_v32 = vmul.f32 %v17986_v10, %v17882_v12  ;;  %v9448_v18 = vmul.f32 %v17986_v10, %v17888_v48 }
 0xb1c   : > { %v9471_v3 = vmul.f32 %v17999_v57, %v9433_v9  ;;  %v9449_v0 = vmul.f32 %v17986_v10, %v17894_v46  ;;  %v9450_v50 = vmul.f32 %v17986_v10, %v17900_v14  ;;  %v18055_v34 = vmul.f32 %v17986_v10, %v17906_v61 }
 0xb1d   : > { %v9472_v42 = vmul.f32 %v17999_v57, %v9434_v49  ;;  %v9473_v12 = vmul.f32 %v17999_v57, %v9435_v26  ;;  %v18060_v48 = vadd.f32 %v18031_v1, %v9467_v29  ;;  %v18063_v62 = vadd.f32 %v18031_v1, %v9468_v51 }
 0xb1e   : > { %v18066_v25 = vadd.f32 %v18031_v1, %v9469_v4  ;;  %v18070_v46 = vmul.f32 %v17986_v10, %v17912_v8  ;;  %v18074_v14 = vmul.f32 %v17986_v10, %v17918_v60  ;;  %v9474_v61 = vmul.f32 %v17999_v57, %v9436_v11  ;;  %v18092_v60 = vpop.f32.mrf.mxu0 }
 0xb1f   : > { %v18078_v30 = vadd.f32 %v18031_v1, %v9470_v24  ;;  %v18082_v55 = vmul.f32 %v17986_v10, %v17924_v31  ;;  %v18086_v56 = vmul.f32 %v17986_v10, %v17930_v63  ;;  %v9475_v8 = vmul.f32 %v17999_v57, %v9437_v39 }
 0xb20   : > { %v18090_v52 = vadd.f32 %v18031_v1, %v9471_v3  ;;  %v18096_v47 = vmul.f32 %v17986_v10, %v17936_v53  ;;  %v9476_v7 = vmul.f32 %v17999_v57, %v9438_v45  ;;  %v9477_v31 = vmul.f32 %v17999_v57, %v9439_v35  ;;  %v18120_v35 = vpop.f32.mrf.mxu0 }
 0xb21   : > { %v18101_v21 = vadd.f32 %v18031_v1, %v9472_v42  ;;  %v18104_v63 = vadd.f32 %v18031_v1, %v9473_v12  ;;  %v10858_v20 = vmul.f32 -1.442695, %v18060_v48  ;;  %v10859_v22 = vmul.f32 -1.442695, %v18063_v62 }
 0xb22   : > { %v10860_v15 = vmul.f32 -1.442695, %v18066_v25  ;;  %v9478_v9 = vmul.f32 %v17999_v57, %v9440_v17  ;;  %v9479_v53 = vmul.f32 %v17999_v57, %v9441_v5  ;;  %v18112_v49 = vadd.f32 %v18031_v1, %v9474_v61  ;;  %v18142_v61 = vpop.f32.mrf.mxu0 }
 0xb23   : > { %v10861_v26 = vmul.f32 -1.442695, %v18078_v30  ;;  %v9480_v11 = vmul.f32 %v17999_v57, %v9442_v40  ;;  %v18117_v39 = vadd.f32 %v18031_v1, %v9475_v8  ;;  %12370 = vpow2.f32 %v10858_v20 }
 0xb24   : > { %v10862_v45 = vmul.f32 -1.442695, %v18090_v52  ;;  %v9481_v29 = vmul.f32 %v17999_v57, %v9443_v41  ;;  %v18124_v17 = vadd.f32 %v18031_v1, %v9476_v7  ;;  %12372 = vpow2.f32 %v10859_v22 }
 0xb25   : > { %v10863_v5 = vmul.f32 -1.442695, %v18101_v21  ;;  %v9482_v51 = vmul.f32 %v17999_v57, %v9444_v27  ;;  %v18129_v40 = vadd.f32 %v18031_v1, %v9477_v31  ;;  %12374 = vpow2.f32 %v10860_v15 }
 0xb26   : > { %v10864_v4 = vmul.f32 -1.442695, %v18104_v63  ;;  %v9483_v24 = vmul.f32 %v17999_v57, %v9445_v44  ;;  %v18134_v3 = vadd.f32 %v18031_v1, %v9478_v9  ;;  %12376 = vpow2.f32 %v10861_v26  ;;  %v18164_v26 = vpop.f32.mrf.mxu0 }
 0xb27   : > { %v10865_v41 = vmul.f32 -1.442695, %v18112_v49  ;;  %v9484_v42 = vmul.f32 %v17999_v57, %v9446_v2  ;;  %v18139_v12 = vadd.f32 %v18031_v1, %v9479_v53  ;;  %12378 = vpow2.f32 %v10862_v45 }
 0xb28   : > { %v10866_v27 = vmul.f32 -1.442695, %v18117_v39  ;;  %v9485_v8 = vmul.f32 %v17999_v57, %v9447_v32  ;;  %v18146_v44 = vadd.f32 %v18031_v1, %v9480_v11  ;;  %12380 = vpow2.f32 %v10863_v5 }
 0xb29   : > { %v10867_v7 = vmul.f32 -1.442695, %v18124_v17  ;;  %v9486_v31 = vmul.f32 %v17999_v57, %v9448_v18  ;;  %v18151_v2 = vadd.f32 %v18031_v1, %v9481_v29  ;;  %12382 = vpow2.f32 %v10864_v4 }
 0xb2a   : > { %v10868_v20 = vmul.f32 -1.442695, %v18129_v40  ;;  %v9487_v22 = vmul.f32 %v17999_v57, %v9449_v0  ;;  %v18156_v15 = vadd.f32 %v18031_v1, %v9482_v51  ;;  %12384 = vpow2.f32 %v10865_v41 }
 0xb2b   : > { %18981 = vst [vmem:[#allocation24_spill] sm:$0xff] %v18151_v2  ;;  %v10869_v32 = vmul.f32 -1.442695, %v18134_v3  ;;  %v9488_v9 = vmul.f32 %v17999_v57, %v9450_v50  ;;  %v18161_v53 = vadd.f32 %v18031_v1, %v9483_v24  ;;  %12386 = vpow2.f32 %v10866_v27  ;;  %v18190_v27 = vpop.f32.mrf.mxu0 }
 0xb2c   : > { %18982 = vst [vmem:[#allocation47_spill] sm:$0xff] %v18156_v15  ;;  %v10870_v18 = vmul.f32 -1.442695, %v18139_v12  ;;  %v9489_v11 = vmul.f32 %v17999_v57, %v18055_v34  ;;  %v18169_v0 = vadd.f32 %v18031_v1, %v9484_v42  ;;  %12388 = vpow2.f32 %v10867_v7  ;;  %18988 = vst [vmem:[#allocation10_spill] sm:$0xff] %v18190_v27 }
 0xb2d   : > { %18983 = vst [vmem:[#allocation20_spill] sm:$0xff] %v18161_v53  ;;  %v10871_v45 = vmul.f32 -1.442695, %v18146_v44  ;;  %v9490_v50 = vmul.f32 %v17999_v57, %v18070_v46  ;;  %v18175_v29 = vadd.f32 %v18031_v1, %v9485_v8  ;;  %12390 = vpow2.f32 %v10868_v20 }
 0xb2e   : > { %18984 = vst [vmem:[#allocation22_spill] sm:$0xff] %v18169_v0  ;;  %v10872_v5 = vmul.f32 -1.442695, %v18151_v2  ;;  %v9491_v51 = vmul.f32 %v17999_v57, %v18074_v14  ;;  %v18181_v34 = vadd.f32 %v18031_v1, %v9486_v31  ;;  %12392 = vpow2.f32 %v10869_v32 }
 0xb2f   : > { %18985 = vst [vmem:[#allocation25_spill] sm:$0xff] %v18175_v29  ;;  %v10873_v4 = vmul.f32 -1.442695, %v18156_v15  ;;  %v9459_v24 = vmul.f32 %v17986_v10, %v17954_v43  ;;  %v18187_v46 = vadd.f32 %v18031_v1, %v9487_v22  ;;  %12394 = vpow2.f32 %v10870_v18 }
 0xb30   : > { %18986 = vst [vmem:[#allocation14_spill] sm:$0xff] %v18181_v34  ;;  %v10874_v41 = vmul.f32 -1.442695, %v18161_v53  ;;  %v12371_v42 = vpop.eup %12370  ;;  %v9492_v14 = vmul.f32 %v17999_v57, %v18082_v55  ;;  %v18195_v8 = vadd.f32 %v18031_v1, %v9488_v9  ;;  %12396 = vpow2.f32 %v10871_v45 }
 0xb31   : > { %18987 = vst [vmem:[#allocation26_spill] sm:$0xff] %v18187_v46  ;;  %v10875_v7 = vmul.f32 -1.442695, %v18169_v0  ;;  %v12373_v31 = vpop.eup %12372  ;;  %v9493_v43 = vmul.f32 %v17999_v57, %v18086_v56  ;;  %v18201_v20 = vadd.f32 %v18031_v1, %v9489_v11  ;;  %12398 = vpow2.f32 %v10872_v5 }
 0xb32   : > { %18989 = vst [vmem:[#allocation19_spill] sm:$0xff] %v18195_v8  ;;  %v10876_v22 = vmul.f32 -1.442695, %v18175_v29  ;;  %v12375_v32 = vpop.eup %12374  ;;  %v9494_v55 = vmul.f32 %v17999_v57, %v18096_v47  ;;  %v18207_v9 = vadd.f32 %v18031_v1, %v9490_v50  ;;  %12400 = vpow2.f32 %v10873_v4  ;;  %v18215_v29 = vpop.f32.mrf.mxu0 }
 0xb33   : > { %18990 = vst [vmem:[#allocation31_spill] sm:$0xff] %v18201_v20  ;;  %v10877_v18 = vmul.f32 -1.442695, %v18181_v34  ;;  %v12377_v45 = vpop.eup %12376  ;;  %v9497_v0 = vmul.f32 %v17999_v57, %v9459_v24  ;;  %v18212_v56 = vadd.f32 %v18031_v1, %v9491_v51  ;;  %12402 = vpow2.f32 %v10874_v41 }
 0xb34   : > { %18991 = vst [vmem:[#allocation17_spill] sm:$0xff] %v18207_v9  ;;  %v10878_v11 = vmul.f32 -1.442695, %v18187_v46  ;;  %v12379_v5 = vpop.eup %12378  ;;  %v18218_v47 = vadd.f32 %v18031_v1, %v9492_v14  ;;  %12404 = vpow2.f32 %v10875_v7  ;;  %v10879_v50 = vmul.f32 -1.442695, %v18195_v8 }
 0xb35   : > { %18992 = vst [vmem:[#allocation30_spill] sm:$0xff] %v18212_v56  ;;  %v12381_v4 = vpop.eup %12380  ;;  %v18222_v34 = vadd.f32 %v18031_v1, %v9493_v43  ;;  %12406 = vpow2.f32 %v10876_v22  ;;  %v10880_v51 = vmul.f32 -1.442695, %v18201_v20  ;;  %v18226_v41 = vadd.f32 %v18031_v1, %v9494_v55  ;;  %v18233_v43 = vpop.f32.mrf.mxu0 }
 0xb36   : > { %18993 = vst [vmem:[#allocation34_spill] sm:$0xff] %v18218_v47  ;;  %v12383_v24 = vpop.eup %12382  ;;  %12408 = vpow2.f32 %v10877_v18  ;;  %v10881_v46 = vmul.f32 -1.442695, %v18207_v9  ;;  %v18230_v14 = vadd.f32 %v18031_v1, %v9497_v0  ;;  %v10882_v7 = vmul.f32 -1.442695, %v18212_v56  ;;  %18997 = vst [vmem:[#allocation38_spill] sm:$0xff] %v18233_v43 }
 0xb37   : > { %18994 = vst [vmem:[#allocation11_spill] sm:$0xff] %v18222_v34  ;;  %18995 = vst [vmem:[#allocation33_spill] sm:$0xff] %v18226_v41  ;;  %v12385_v53 = vpop.eup %12384  ;;  %12410 = vpow2.f32 %v10878_v11  ;;  %v10883_v22 = vmul.f32 -1.442695, %v18218_v47  ;;  %v10884_v55 = vmul.f32 -1.442695, %v18222_v34  ;;  %v18239_v56 = vpop.f32.mrf.mxu0 }
 0xb38   : > { %18996 = vst [vmem:[#allocation36_spill] sm:$0xff] %v18230_v14  ;;  %v12387_v8 = vpop.eup %12386  ;;  %12412 = vpow2.f32 %v10879_v50  ;;  %v10885_v9 = vmul.f32 -1.442695, %v18226_v41  ;;  %v10888_v0 = vmul.f32 -1.442695, %v18230_v14  ;;  %v9633_v43 = vadd.f32 1.0, %v12371_v42 }
 0xb39   : > { %v12389_v20 = vpop.eup %12388  ;;  %12414 = vpow2.f32 %v10880_v51  ;;  %v9634_v47 = vadd.f32 1.0, %v12373_v31  ;;  %v9635_v51 = vadd.f32 1.0, %v12375_v32  ;;  %v18246_v14 = vpop.f32.mrf.mxu0  ;;  %v9637_v41 = vadd.f32 1.0, %v12379_v5 }
 0xb3a   : > { %v12391_v18 = vpop.eup %12390  ;;  %12416 = vpow2.f32 %v10881_v46  ;;  %v9636_v46 = vadd.f32 1.0, %v12377_v45  ;;  %v9640_v45 = vadd.f32 1.0, %v12385_v53  ;;  %v9457_v53 = vmul.f32 %v17986_v10, %v17942_v58 }
 0xb3b   : > { %v12393_v15 = vpop.eup %12392  ;;  %12418 = vpow2.f32 %v10882_v7  ;;  %v18244_v7 = vld [vmem:[%s18547_s13] ss:$0 sm:$0xff] }
 0xb3c   : > { %v12395_v11 = vpop.eup %12394  ;;  %12420 = vpow2.f32 %v10883_v22  ;;  %v9638_v22 = vadd.f32 1.0, %v12381_v4  ;;  %v18258_v5 = vadd.f32 %v18244_v7, %v17973_v13  ;;  %v18264_v4 = vpop.f32.mrf.mxu0  ;;  %v9644_v58 = vadd.f32 1.0, %v12393_v15 }
 0xb3d   : > { %v12397_v50 = vpop.eup %12396  ;;  %12422 = vpow2.f32 %v10884_v55  ;;  %v9639_v55 = vadd.f32 1.0, %v12383_v24  ;;  %v9641_v24 = vadd.f32 1.0, %v12387_v8  ;;  %v9458_v8 = vmul.f32 %v17986_v10, %v17948_v19 }
 0xb3e   : > { %v12399_v27 = vpop.eup %12398  ;;  %12424 = vpow2.f32 %v10885_v9  ;;  %v18252_v9 = vadd.f32 %v17971_v37, %v18244_v7  ;;  %v18270_v37 = vadd.f32 %v18244_v7, %v17977_v54  ;;  %v18286_v54 = vadd.f32 %v18244_v7, %v17981_v28 }
 0xb3f   : > { %v12401_v34 = vpop.eup %12400  ;;  %12426 = vpow2.f32 %v10888_v0  ;;  %v18298_v19 = vadd.f32 %v18244_v7, %v17988_v16  ;;  %v18314_v16 = vadd.f32 %v18244_v7, %v18047_v33  ;;  %v18332_v33 = vadd.f32 %v18244_v7, %v18120_v35 }
 0xb40   : > { %v12403_v2 = vpop.eup %12402  ;;  %12428 = vrcp.f32 %v9633_v43 }
 0xb41   : > { %v12405_v42 = vpop.eup %12404  ;;  %12430 = vrcp.f32 %v9634_v47  ;;  %v18262_v47 = vadd.f32 %v17975_v38, %v18244_v7  ;;  %v18278_v38 = vadd.f32 %v17979_v59, %v18244_v7  ;;  %v18294_v59 = vadd.f32 %v17983_v23, %v18244_v7 }
 0xb42   : > { %v12407_v31 = vpop.eup %12406  ;;  %12432 = vrcp.f32 %v9635_v51  ;;  %v9642_v51 = vadd.f32 1.0, %v12389_v20  ;;  %v9460_v20 = vmul.f32 %v17986_v10, %v17960_v36  ;;  %v18307_v36 = vadd.f32 %v18013_v6, %v18244_v7 }
 0xb43   : > { %v18248_v32 = vpop.eup %12408  ;;  %12434 = vrcp.f32 %v9636_v46  ;;  %v9646_v10 = vadd.f32 1.0, %v12397_v50  ;;  %v9495_v23 = vmul.f32 %v17999_v57, %v9457_v53  ;;  %v18321_v6 = vadd.f32 %v18092_v60, %v18244_v7 }
 0xb44   : > { %v18254_v0 = vpop.eup %12410  ;;  %12436 = vrcp.f32 %v9637_v41  ;;  %v9643_v41 = vadd.f32 1.0, %v12391_v18  ;;  %v18300_v18 = vpop.f32.mrf.mxu0  ;;  %v9648_v50 = vadd.f32 1.0, %v12401_v34  ;;  %v9498_v53 = vmul.f32 %v17999_v57, %v9460_v20 }
 0xb45   : > { %v18266_v43 = vpop.eup %12412  ;;  %12438 = vrcp.f32 %v9638_v22  ;;  %18998 = vst [vmem:[#allocation41_spill] sm:$0xff] %v18300_v18  ;;  %v9649_v60 = vadd.f32 1.0, %v12403_v2  ;;  %v9651_v20 = vadd.f32 1.0, %v12407_v31  ;;  %v9653_v31 = vadd.f32 1.0, %v18254_v0 }
 0xb46   : > { %v18274_v13 = vpop.eup %12414  ;;  %12440 = vrcp.f32 %v9639_v55  ;;  %v9645_v55 = vadd.f32 1.0, %v12395_v11  ;;  %v9647_v11 = vadd.f32 1.0, %v12399_v27  ;;  %v18336_v27 = vadd.f32 %v18244_v7, %v18164_v26 }
 0xb47   : > { %v18282_v46 = vpop.eup %12416  ;;  %12442 = vrcp.f32 %v9640_v45  ;;  %v9496_v45 = vmul.f32 %v17999_v57, %v9458_v8  ;;  %v18338_v8 = vpop.f32.mrf.mxu0  ;;  %v18342_v57 = vadd.f32 %v18244_v7, %v18215_v29 }
 0xb48   : > { %v18290_v22 = vpop.eup %12418  ;;  %12444 = vrcp.f32 %v9641_v24 }
 0xb49   : > { %v18302_v28 = vpop.eup %12420  ;;  %12446 = vrcp.f32 %v9642_v51  ;;  %v18349_v18 = vadd.f32 %v18031_v1, %v9496_v45 }
 0xb4a   : > { %v18310_v15 = vpop.eup %12422  ;;  %12448 = vrcp.f32 %v9643_v41  ;;  %v9650_v41 = vadd.f32 1.0, %v12405_v42  ;;  %v18354_v42 = vadd.f32 %v18031_v1, %v9498_v53  ;;  %v9655_v53 = vadd.f32 1.0, %v18274_v13 }
 0xb4b   : > { %v18317_v24 = vpop.eup %12424  ;;  %12450 = vrcp.f32 %v9644_v58  ;;  %v18345_v58 = vadd.f32 %v18031_v1, %v9495_v23  ;;  %v18356_v23 = vpop.f32.mrf.mxu0 }
 0xb4c   : > { %v18324_v51 = vpop.eup %12426  ;;  %12452 = vrcp.f32 %v9645_v55  ;;  %v9652_v55 = vadd.f32 1.0, %v18248_v32  ;;  %v9654_v32 = vadd.f32 1.0, %v18266_v43 }
 0xb4d   : > { %v12429_v34 = vpop.eup %12428  ;;  %12454 = vrcp.f32 %v9646_v10 }
 0xb4e   : > { %v12431_v35 = vpop.eup %12430  ;;  %12456 = vrcp.f32 %v9647_v11  ;;  %v9729_v26 = vmul.f32 %v12429_v34, %v18060_v48 }
 0xb4f   : > { %v12433_v2 = vpop.eup %12432  ;;  %12458 = vrcp.f32 %v9648_v50  ;;  %v9730_v29 = vmul.f32 %v12431_v35, %v18063_v62 }
 0xb50   : > { %v12435_v10 = vpop.eup %12434  ;;  %12460 = vrcp.f32 %v9649_v60  ;;  %v9731_v48 = vmul.f32 %v12433_v2, %v18066_v25  ;;  %v10126_v11 = vadd.f32 %v18258_v5, %v9729_v26  ;;  %v9656_v5 = vadd.f32 1.0, %v18282_v46 }
 0xb51   : > { %v12437_v45 = vpop.eup %12436  ;;  %12462 = vrcp.f32 %v9650_v41  ;;  %v9732_v62 = vmul.f32 %v12435_v10, %v18078_v30  ;;  %v10127_v1 = vadd.f32 %v18270_v37, %v9730_v29  ;;  %v9658_v41 = vadd.f32 1.0, %v18302_v28 }
 0xb52   : > { %v12439_v50 = vpop.eup %12438  ;;  %12464 = vrcp.f32 %v9651_v20  ;;  %v9733_v34 = vmul.f32 %v12437_v45, %v18090_v52  ;;  %v10128_v0 = vadd.f32 %v18252_v9, %v9731_v48  ;;  %10158 = vst [vmem:[%s18368_s20] sm:$0xff] %v10126_v11  ;;  %v18375_v52 = vpop.f32.mrf.mxu0  ;;  %v9657_v9 = vadd.f32 1.0, %v18290_v22 }
 0xb53   : > { %v12441_v25 = vpop.eup %12440  ;;  %12466 = vrcp.f32 %v9652_v55  ;;  %v9734_v30 = vmul.f32 %v12439_v50, %v18101_v21  ;;  %v10129_v43 = vadd.f32 %v18262_v47, %v9732_v62  ;;  %10159 = vst [vmem:[%s18368_s20 + $0x8] sm:$0xff] %v10127_v1  ;;  %v9659_v22 = vadd.f32 1.0, %v18310_v15  ;;  %v19001_v1 = vld [vmem:[#allocation47_spill] sm:$0xff] }
 0xb54   : > { %v12443_v37 = vpop.eup %12442  ;;  %12468 = vrcp.f32 %v9653_v31  ;;  %v9735_v13 = vmul.f32 %v12441_v25, %v18104_v63  ;;  %v10130_v60 = vadd.f32 %v18286_v54, %v9733_v34  ;;  %10160 = vst [vmem:[%s18368_s20 + $0x10] sm:$0xff] %v10128_v0  ;;  %v9660_v28 = vadd.f32 1.0, %v18317_v24  ;;  %v18393_v2 = vpop.f32.mrf.mxu0  ;;  %v19002_v0 = vld [vmem:[#allocation20_spill] sm:$0xff] }
 0xb55   : > { %v12445_v46 = vpop.eup %12444  ;;  %12470 = vrcp.f32 %v9654_v32  ;;  %v9736_v21 = vmul.f32 %v12443_v37, %v18112_v49  ;;  %v10131_v47 = vadd.f32 %v18298_v19, %v9734_v30  ;;  %10161 = vst [vmem:[%s18368_s20 + $0x18] sm:$0xff] %v10129_v43  ;;  %v9663_v15 = vadd.f32 1.0, %v18324_v51  ;;  %v19003_v43 = vld [vmem:[#allocation22_spill] sm:$0xff] }
 0xb56   : > { %v12447_v35 = vpop.eup %12446  ;;  %12472 = vrcp.f32 %v9655_v53  ;;  %v9737_v63 = vmul.f32 %v12445_v46, %v18117_v39  ;;  %v10132_v54 = vadd.f32 %v18278_v38, %v9735_v13  ;;  %10162 = vst [vmem:[%s18368_s20 + $0x20] sm:$0xff] %v10130_v60  ;;  %v10886_v55 = vmul.f32 -1.442695, %v18345_v58  ;;  %v10095_v11 = vpop.f32.mrf.mxu0  ;;  %v19005_v46 = vld [vmem:[#allocation25_spill] sm:$0xff] }
 0xb57   : > { %v12449_v20 = vpop.eup %12448  ;;  %12474 = vrcp.f32 %v9656_v5  ;;  %v9738_v49 = vmul.f32 %v12447_v35, %v18124_v17  ;;  %v10133_v19 = vadd.f32 %v18294_v59, %v9736_v21  ;;  %10163 = vst [vmem:[%s18368_s20 + $0x28] sm:$0xff] %v10131_v47  ;;  %v10064_v34 = vadd.f32 %v18244_v7, %v18239_v56  ;;  %v19004_v56 = vld [vmem:[#allocation38_spill] sm:$0xff] }
 0xb58   : > { %v12451_v26 = vpop.eup %12450  ;;  %12476 = vrcp.f32 %v9657_v9  ;;  %v9739_v39 = vmul.f32 %v12449_v20, %v18129_v40  ;;  %v10134_v38 = vadd.f32 %v18314_v16, %v9737_v63  ;;  %10164 = vst [vmem:[%s18368_s20 + $0x30] sm:$0xff] %v10132_v54  ;;  %v10889_v16 = vmul.f32 -1.442695, %v18354_v42  ;;  %v11943_v60 = vpop.f32.mrf.mxu0  ;;  %v19006_v35 = vld [vmem:[#allocation14_spill] sm:$0xff] }
 0xb59   : > { %v12453_v24 = vpop.eup %12452  ;;  %12478 = vrcp.f32 %v9658_v41  ;;  %v9740_v17 = vmul.f32 %v12451_v26, %v18134_v3  ;;  %v10135_v59 = vadd.f32 %v18332_v33, %v9738_v49  ;;  %10165 = vst [vmem:[%s18368_s20 + $0x38] sm:$0xff] %v10133_v19  ;;  %v10887_v33 = vmul.f32 -1.442695, %v18349_v18 }
 0xb5a   : > { %v12455_v29 = vpop.eup %12454  ;;  %12480 = vrcp.f32 %v9659_v22  ;;  %v9741_v51 = vmul.f32 %v12453_v24, %v18139_v12  ;;  %v10136_v40 = vadd.f32 %v18307_v36, %v9739_v39  ;;  %10166 = vst [vmem:[%s18368_s20 + $0x40] sm:$0xff] %v10134_v38  ;;  %v10056_v12 = vadd.f32 %v18142_v61, %v18244_v7  ;;  %v18999_v36 = vld [vmem:[#allocation24_spill] sm:$0xff]  ;;  %v19008_v39 = vld [vmem:[#allocation19_spill] sm:$0xff] }
 0xb5b   : > { %v12457_v10 = vpop.eup %12456  ;;  %12482 = vrcp.f32 %v9660_v28  ;;  %v9742_v31 = vmul.f32 %v12455_v29, %v18146_v44  ;;  %v10137_v3 = vadd.f32 %v18321_v6, %v9740_v17  ;;  %10167 = vst [vmem:[%s18368_s20 + $0x48] sm:$0xff] %v10135_v59  ;;  %v19000_v44 = vld [vmem:[#allocation10_spill] sm:$0xff]  ;;  %v10067_v30 = vadd.f32 %v18244_v7, %v18264_v4  ;;  %v19009_v17 = vld [vmem:[#allocation41_spill] sm:$0xff] }
 0xb5c   : > { %v12459_v48 = vpop.eup %12458  ;;  %12484 = vrcp.f32 %v9663_v15  ;;  %v9743_v45 = vmul.f32 %v12457_v10, %v18999_v36  ;;  %v10138_v32 = vadd.f32 %v18336_v27, %v9741_v51  ;;  %10168 = vst [vmem:[%s18368_s20 + $0x50] sm:$0xff] %v10136_v40  ;;  %v10059_v6 = vadd.f32 %v19000_v44, %v18244_v7  ;;  %v19007_v28 = vld [vmem:[#allocation26_spill] sm:$0xff] }
 0xb5d   : > { %v12461_v62 = vpop.eup %12460  ;;  %v9744_v50 = vmul.f32 %v12459_v48, %v19001_v1  ;;  %v10139_v53 = vadd.f32 %v18342_v57, %v9742_v31  ;;  %12486 = vpow2.f32 %v10886_v55  ;;  %10169 = vst [vmem:[%s18368_s20 + $0x58] sm:$0xff] %v10137_v3  ;;  %v10072_v13 = vadd.f32 %v19004_v56, %v18244_v7  ;;  %v10098_v55 = vpop.f32.mrf.mxu0  ;;  %v19012_v48 = vld [vmem:[#allocation30_spill] sm:$0xff] }
 0xb5e   : > { %v12463_v61 = vpop.eup %12462  ;;  %v9745_v25 = vmul.f32 %v12461_v62, %v19002_v0  ;;  %v10140_v27 = vadd.f32 %v10056_v12, %v9743_v45  ;;  %10170 = vst [vmem:[%s18368_s20 + $0x60] sm:$0xff] %v10138_v32  ;;  %12488 = vpow2.f32 %v10889_v16  ;;  %v10075_v4 = vadd.f32 %v18246_v14, %v18244_v7  ;;  %v19013_v62 = vld [vmem:[#allocation34_spill] sm:$0xff] }
 0xb5f   : > { %v12465_v5 = vpop.eup %12464  ;;  %v9746_v37 = vmul.f32 %v12463_v61, %v19003_v43  ;;  %v10141_v57 = vadd.f32 %v10059_v6, %v9744_v50  ;;  %10171 = vst [vmem:[%s18368_s20 + $0x68] sm:$0xff] %v10139_v53  ;;  %12490 = vpow2.f32 %v10887_v33  ;;  %v10080_v20 = vadd.f32 %v18244_v7, %v18338_v8  ;;  %v19010_v8 = vld [vmem:[#allocation31_spill] sm:$0xff]  ;;  %v11946_v6 = vpop.f32.mrf.mxu1  ;;  %v19016_v43 = vld [vmem:[#allocation36_spill] sm:$0xff] }
 0xb60   : > { %v12467_v9 = vpop.eup %12466  ;;  %v9747_v41 = vmul.f32 %v12465_v5, %v19005_v46  ;;  %v10142_v21 = vadd.f32 %v10064_v34, %v9745_v25  ;;  %10172 = vst [vmem:[%s18368_s20 + $0x70] sm:$0xff] %v10140_v27  ;;  %v10083_v15 = vadd.f32 %v18244_v7, %v18375_v52  ;;  %v10088_v59 = vadd.f32 %v19009_v17, %v18244_v7  ;;  %v19011_v52 = vld [vmem:[#allocation17_spill] sm:$0xff]  ;;  %v19014_v53 = vld [vmem:[#allocation11_spill] sm:$0xff] }
 0xb61   : > { %v12469_v47 = vpop.eup %12468  ;;  %v9748_v22 = vmul.f32 %v12467_v9, %v19006_v35  ;;  %v10143_v63 = vadd.f32 %v10067_v30, %v9746_v37  ;;  %10173 = vst [vmem:[%s18368_s20 + $0x78] sm:$0xff] %v10141_v57  ;;  %v10091_v16 = vadd.f32 %v18356_v23, %v18244_v7  ;;  %v10096_v33 = vadd.f32 %v18244_v7, %v10095_v11  ;;  %v19015_v25 = vld [vmem:[#allocation33_spill] sm:$0xff] }
 0xb62   : > { %v12471_v54 = vpop.eup %12470  ;;  %v9749_v49 = vmul.f32 %v12469_v47, %v19007_v28  ;;  %v10144_v19 = vadd.f32 %v10072_v13, %v9747_v41  ;;  %10174 = vst [vmem:[%s18368_s20 + $0x80] sm:$0xff] %v10142_v21  ;;  %v10099_v32 = vadd.f32 %v18244_v7, %v10098_v55  ;;  %v10104_v50 = vadd.f32 %v18393_v2, %v18244_v7  ;;  %v10111_v47 = vpop.f32.mrf.mxu1 }
 0xb63   : > { %v12473_v26 = vpop.eup %12472  ;;  %v9750_v14 = vmul.f32 %v12471_v54, %v19008_v39  ;;  %v10145_v38 = vadd.f32 %v10075_v4, %v9748_v22  ;;  %10175 = vst [vmem:[%s18368_s20 + $0x88] sm:$0xff] %v10143_v63  ;;  %v10107_v0 = vadd.f32 %v11943_v60, %v18244_v7  ;;  %v10120_v2 = vadd.f32 %v11946_v6, %v18244_v7 }
 0xb64   : > { %v12475_v24 = vpop.eup %12474  ;;  %v9751_v29 = vmul.f32 %v12473_v26, %v19010_v8  ;;  %v10146_v51 = vadd.f32 %v10080_v20, %v9749_v49  ;;  %10176 = vst [vmem:[%s18368_s20 + $0x90] sm:$0xff] %v10144_v19  ;;  %v11947_v4 = vpop.f32.mrf.mxu1  ;;  %v10112_v20 = vadd.f32 %v18244_v7, %v10111_v47 }
 0xb65   : > { %v12477_v40 = vpop.eup %12476  ;;  %v9752_v10 = vmul.f32 %v12475_v24, %v19011_v52  ;;  %v10147_v31 = vadd.f32 %v10083_v15, %v9750_v14  ;;  %10177 = vst [vmem:[%s18368_s20 + $0x98] sm:$0xff] %v10145_v38  ;;  %v10123_v19 = vadd.f32 %v11947_v4, %v18244_v7 }
 0xb66   : > { %v12479_v3 = vpop.eup %12478  ;;  %v9753_v12 = vmul.f32 %v12477_v40, %v19012_v48  ;;  %v10148_v36 = vadd.f32 %v10088_v59, %v9751_v29  ;;  %10178 = vst [vmem:[%s18368_s20 + $0xa0] sm:$0xff] %v10146_v51  ;;  %v10114_v22 = vpop.f32.mrf.mxu1 }
 0xb67   : > { %v12481_v45 = vpop.eup %12480  ;;  %v9754_v44 = vmul.f32 %v12479_v3, %v19013_v62  ;;  %v10149_v23 = vadd.f32 %v10091_v16, %v9752_v10  ;;  %10179 = vst [vmem:[%s18368_s20 + $0xa8] sm:$0xff] %v10147_v31  ;;  %v10115_v39 = vadd.f32 %v18244_v7, %v10114_v22 }
 0xb68   : > { %v12483_v1 = vpop.eup %12482  ;;  %v9755_v11 = vmul.f32 %v12481_v45, %v19014_v53  ;;  %v10150_v61 = vadd.f32 %v10096_v33, %v9753_v12  ;;  %10180 = vst [vmem:[%s18368_s20 + $0xb0] sm:$0xff] %v10148_v36 }
 0xb69   : > { %v12485_v34 = vpop.eup %12484  ;;  %v9756_v27 = vmul.f32 %v12483_v1, %v19015_v25  ;;  %v10151_v5 = vadd.f32 %v10099_v32, %v9754_v44  ;;  %10181 = vst [vmem:[%s18368_s20 + $0xb8] sm:$0xff] %v10149_v23 }
 0xb6a   : > { %v12487_v30 = vpop.eup %12486  ;;  %v9759_v37 = vmul.f32 %v12485_v34, %v19016_v43  ;;  %v10152_v57 = vadd.f32 %v10104_v50, %v9755_v11  ;;  %10182 = vst [vmem:[%s18368_s20 + $0xc0] sm:$0xff] %v10150_v61 }
 0xb6b   : > { %v12489_v9 = vpop.eup %12488  ;;  %v10153_v56 = vadd.f32 %v10107_v0, %v9756_v27  ;;  %v9661_v13 = vadd.f32 1.0, %v12487_v30  ;;  %10183 = vst [vmem:[%s18368_s20 + $0xc8] sm:$0xff] %v10151_v5 }
 0xb6c   : > { %v12491_v46 = vpop.eup %12490  ;;  %v10156_v41 = vadd.f32 %v10120_v2, %v9759_v37  ;;  %10184 = vst [vmem:[%s18368_s20 + $0xd0] sm:$0xff] %v10152_v57  ;;  %v9664_v60 = vadd.f32 1.0, %v12489_v9 }
 0xb6d   : > { %12492 = vrcp.f32 %v9661_v13  ;;  %10185 = vst [vmem:[%s18368_s20 + $0xd8] sm:$0xff] %v10153_v56  ;;  %v9662_v21 = vadd.f32 1.0, %v12491_v46 }
 0xb6e   : > { %10188 = vst [vmem:[%s18368_s20 + $0xf0] sm:$0xff] %v10156_v41  ;;  %12494 = vrcp.f32 %v9664_v60 }
 0xb6f   : > { %12496 = vrcp.f32 %v9662_v21 }
 0xb7a   : > { %v12493_v35 = vpop.eup %12492 }
 0xb7b   : > { %v12495_v63 = vpop.eup %12494  ;;  %v9757_v54 = vmul.f32 %v12493_v35, %v18345_v58 }
 0xb7c   : > { %v12497_v28 = vpop.eup %12496  ;;  %v9760_v49 = vmul.f32 %v12495_v63, %v18354_v42 }
 0xb7d   : > { %v10154_v26 = vadd.f32 %v10112_v20, %v9757_v54  ;;  %v9758_v15 = vmul.f32 %v12497_v28, %v18349_v18 }
 0xb7e   : > { %v10157_v14 = vadd.f32 %v10123_v19, %v9760_v49 }
 0xb7f   : > { %10186 = vst [vmem:[%s18368_s20 + $0xe0] sm:$0xff] %v10154_v26  ;;  %v10155_v58 = vadd.f32 %v10115_v39, %v9758_v15 }
 0xb80   : > { %10189 = vst [vmem:[%s18368_s20 + $0xf8] sm:$0xff] %v10157_v14 }
 0xb81   : > { %10187 = vst [vmem:[%s18368_s20 + $0xe8] sm:$0xff] %v10155_v58 }
 0xb82   : > { %12513 = shalt.err (!%p12510_p3)
}
 0xb83   : > { %s12514_s17 = scalar_lea.hbm %s18484_s30, 4096  ;;  %s12518_s2 = scalar_lea.hbm %s18549_s15, 8192 }
 0xb84   : > { %p12515_p4 = scmp.ne.s32.totalorder %s18484_s30, %s12514_s17  ;;  %p12519_p9 = scmp.lt.s32.totalorder %s18484_s30, %s18549_s15 }
 0xb85   : > { %p12520_p10 = scmp.lt.s32.totalorder %s12518_s2, %s12514_s17 }
 0xb86   : > { %p12516_p7 = pnand %p12515_p4, %p12694_p5 }
 0xb87   : > { %p12521_p11 = por %p12520_p10, %p12519_p9 }
 0xb88   : > { %p12517_p8 = pneg %p12516_p7 }
 0xb8a   : > { %p12522_p12 = pnand %p12521_p11, %p12517_p8 }
 0xb8c   : > { %12525 = shalt.err (!%p12522_p12)
}
 0xb8d   : > { %s12575_s23 = smov 128  }
 0xb8e   : > { %11961 = dma.vmem_to_hbm [thread:$0]  (%p12694_p5), %s18487_s25, 4096, %s18484_s30, %s18493_s22, %s12575_s23, %s12575_s23, %s18658_s0  }
 0xb8f PF: > { %p11967_p13 = scmp.ge.s32.totalorder %s12560_s21, 2  ;;  %s10219_s27 = sand.u32 1, %s12548_s18  }
 0xb90   : > { %s10220_s1 = scalar_lea.sflag [#allocation6], %s10219_s27 }
 0xb91   : > { %p11964_p0 = pnand %p11967_p13, %p12698_p6 }
 0xb93   : > { %p11965_p1 = pneg %p11964_p0 }
 0xb95   : > { %12543 = dma.done.wait (%p11965_p1), %s10220_s1, 4096  }
 0xb96   : > { %12545 = vsyncadd (%p11965_p1), %s10220_s1, 4294963200  ;;  %s19017_s3 = sld [smem:[#allocation8_spill]]  ;;  %p25_p2 = scmp.ge.s32.totalorder %s12681_s24, 4  }
 0xb97   : > { %s19018_s20 = sld [smem:[#allocation9_spill]]  ;;  %s19019_s18 = smov %s12552_s19 }
 0xb98   : > { %s19021_s21 = smov %s12681_s24  ;;  %27 = sbr.rel (!%p25_p2) target bundleno = 8 (0x8), region = 123 }
 0xb9c   : > { %s19020_s19 = smov %s19017_s3 }
 0xb9d   :  { %10225 = vsyncpa [#allocation6], 1 }
 0xb9e   :  { %10227 = vsyncpa [#allocation6 + $0x1], 1 }

</bundles_post_ra>
